<compile_context>
chip_gen: v7x
topology: tpu7x:2x2x1
jax: 0.10.0
libtpu: 0.0.40
codegen_flags: <defaults>
</compile_context>

<pallas_src>
import jax
import jax.numpy as jnp
import numpy as np
from jax.experimental import pallas as pl
from jax.experimental.pallas import tpu as pltpu

# Padded / derived sizes (zero padding keeps the math exact).
C1 = 32            # conv1 output channels 20 -> 32 (lane block)
C2 = 64            # conv2 output channels 50 -> 64 (lane block)
L1 = 24 * C1       # conv1 output lanes:  ow(24) * C1 = 768
L1P = L1 - C1      # pooled conv1 lanes:  736  (valid data at 64*q + c)
L2 = 8 * C2        # conv2 output lanes:  ow2(8) * C2 = 512
L2P = L2 - C2      # pooled conv2 lanes:  448  (valid data at 128*q2 + c2)
H1 = 512           # fc1 features 500 -> 512
NL = 128           # logits 10 -> 128 (lane-dense output)


# ----------------------------------------------------------------------------
# Fused forward-pass kernel (one batch block per grid step)
# ----------------------------------------------------------------------------
def _lenet3_kernel(x_ref, w1_ref, b1_ref, w2_ref, b2_ref, w3_ref, b3_ref,
                   w4_ref, b4_ref, o_ref, p1_ref):
    """x_ref: (TB, 28, 28) f32.  All weights resident in VMEM (bf16).
    p1_ref: (TB, 12, 736) f32 VMEM scratch holding the pooled conv1 map.
    o_ref:  (TB, 128) f32 logits (lane-dense)."""
    tb = x_ref.shape[0]
    f32, bf16 = jnp.float32, jnp.bfloat16

    # ---- conv1: banded matmul, 5 row-taps, K = input width (28) -------------
    # acc1 row (n*24 + oh), lane (32*ow + c).
    x = x_ref[...]
    acc1 = None
    for i in range(5):
        lhs = x[:, i:i + 24, :].reshape(tb * 24, 28).astype(bf16)
        part = jnp.dot(lhs, w1_ref[i], preferred_element_type=f32)
        acc1 = part if acc1 is None else acc1 + part
    acc1 = acc1.reshape(tb, 24, L1)

    # ---- max-pool1 (2x2/2) + bias + ReLU fused into the conv1 epilogue ------
    # Row pairs are plain integer slices; column pairs are a 32-lane shift.
    b1 = b1_ref[...]                                        # (1, 736)
    for p in range(12):
        r = jnp.maximum(acc1[:, 2 * p, :], acc1[:, 2 * p + 1, :])   # (TB, 768)
        r = jnp.maximum(r[:, :L1P], r[:, C1:L1])                    # (TB, 736)
        p1_ref[:, p, :] = jnp.maximum(r + b1, 0.0)

    # ---- conv2: banded matmul, 5 row-taps, K = pooled width*channels (736) --
    # acc2 row (n*8 + oh2), lane (64*ow2 + c2).
    acc2 = None
    for i in range(5):
        lhs = p1_ref[:, i:i + 8, :].reshape(tb * 8, L1P).astype(bf16)
        part = jnp.dot(lhs, w2_ref[i], preferred_element_type=f32)
        acc2 = part if acc2 is None else acc2 + part
    acc2 = acc2.reshape(tb, 8, L2)

    # ---- max-pool2 + bias + ReLU fused with fc1 (one matmul per pooled row) -
    b2 = b2_ref[...]                                        # (1, 448)
    h1 = jnp.zeros((tb, H1), f32)
    for p in range(4):
        r = jnp.maximum(acc2[:, 2 * p, :], acc2[:, 2 * p + 1, :])   # (TB, 512)
        r = jnp.maximum(r[:, :L2P], r[:, C2:L2])                    # (TB, 448)
        a = jnp.maximum(r + b2, 0.0).astype(bf16)
        h1 = h1 + jnp.dot(a, w3_ref[p], preferred_element_type=f32)

    # ---- fc1 bias + ReLU, then fc2 ------------------------------------------
    a3 = jnp.maximum(h1 + b3_ref[...], 0.0).astype(bf16)            # (TB, 512)
    out = jnp.dot(a3, w4_ref[...], preferred_element_type=f32) + b4_ref[...]
    o_ref[...] = out


def lenet3_forward(params, x):
    """x: (N, 1, 28, 28) f32 (NCHW, as in PyTorch) -> logits (N, 10) f32."""
    n = x.shape[0]
    xs = x.reshape(n, 28, 28)                      # Cin == 1: drop channel dim
    tb = n if n <= 16 else 16
    n_pad = ((n + tb - 1) // tb) * tb
    if n_pad != n:
        xs = jnp.pad(xs, ((0, n_pad - n), (0, 0), (0, 0)))

    out = pl.pallas_call(
        _lenet3_kernel,
        out_shape=jax.ShapeDtypeStruct((n_pad, NL), jnp.float32),
        grid=(n_pad // tb,),
        in_specs=[
            pl.BlockSpec((tb, 28, 28), lambda b: (b, 0, 0)),
            pl.BlockSpec((5, 28, L1), lambda b: (0, 0, 0)),      # resident
            pl.BlockSpec((1, L1P), lambda b: (0, 0)),            # resident
            pl.BlockSpec((5, L1P, L2), lambda b: (0, 0, 0)),     # resident
            pl.BlockSpec((1, L2P), lambda b: (0, 0)),            # resident
            pl.BlockSpec((4, L2P, H1), lambda b: (0, 0, 0)),     # resident
            pl.BlockSpec((1, H1), lambda b: (0, 0)),             # resident
            pl.BlockSpec((H1, NL), lambda b: (0, 0)),            # resident
            pl.BlockSpec((1, NL), lambda b: (0, 0)),             # resident
        ],
        out_specs=pl.BlockSpec((tb, NL), lambda b: (b, 0)),
        scratch_shapes=[pltpu.VMEM((tb, 12, L1P), jnp.float32)],
        compiler_params=pltpu.CompilerParams(
            dimension_semantics=("parallel",),
            vmem_limit_bytes=40 * 1024 * 1024),
    )(xs, params["w1"], params["b1"], params["w2"], params["b2"],
      params["w3"], params["b3"], params["w4"], params["b4"])
    return out[:n, :10]


# ----------------------------------------------------------------------------
# Parameters: PyTorch-layout init + one-time kernel-layout preparation
# ----------------------------------------------------------------------------
def init_params(key):
    """PyTorch-layout LeNet3 parameters (nn.Conv2d / nn.Linear style init)."""
    ks = jax.random.split(key, 8)

    def u(k, shape, fan_in):
        bound = 1.0 / jnp.sqrt(fan_in)
        return jax.random.uniform(k, shape, jnp.float32, -bound, bound)

    return {
        "conv1_w": u(ks[0], (20, 1, 5, 5), 1 * 5 * 5),
        "conv1_b": u(ks[1], (20,), 1 * 5 * 5),
        "conv2_w": u(ks[2], (50, 20, 5, 5), 20 * 5 * 5),
        "conv2_b": u(ks[3], (50,), 20 * 5 * 5),
        "fc1_w": u(ks[4], (500, 800), 800),   # (out, in), PyTorch Linear layout
        "fc1_b": u(ks[5], (500,), 800),
        "fc2_w": u(ks[6], (10, 500), 500),
        "fc2_b": u(ks[7], (10,), 500),
    }


def prepare_params(p):
    """One-time re-layout into banded bf16 kernel weights (exact zero padding)."""
    c1w = np.asarray(p["conv1_w"], np.float32)   # (20, 1, 5, 5)
    c1b = np.asarray(p["conv1_b"], np.float32)
    c2w = np.asarray(p["conv2_w"], np.float32)   # (50, 20, 5, 5)
    c2b = np.asarray(p["conv2_b"], np.float32)
    f1w = np.asarray(p["fc1_w"], np.float32)     # (500, 800)
    f1b = np.asarray(p["fc1_b"], np.float32)
    f2w = np.asarray(p["fc2_w"], np.float32)     # (10, 500)
    f2b = np.asarray(p["fc2_b"], np.float32)

    # conv1 banded: out1[n, oh, 32*ow + c] = sum_{i,r} x[n, oh+i, r] * W1[i, r, 32*ow + c]
    W1 = np.zeros((5, 28, L1), np.float32)
    for i in range(5):
        for ow in range(24):
            for j in range(5):
                W1[i, ow + j, 32 * ow:32 * ow + 20] = c1w[:, 0, i, j]
    B1 = np.zeros((1, L1P), np.float32)
    for q in range(12):
        B1[0, 64 * q:64 * q + 20] = c1b

    # conv2 banded: pooled1 lanes are (64*q + cin); out lanes are (64*ow2 + c2).
    W2 = np.zeros((5, L1P, L2), np.float32)
    for i in range(5):
        for ow2 in range(8):
            for j in range(5):
                q = ow2 + j
                W2[i, 64 * q:64 * q + 20, 64 * ow2:64 * ow2 + 50] = c2w[:, :, i, j].T
    B2 = np.zeros((1, L2P), np.float32)
    for q2 in range(4):
        B2[0, 128 * q2:128 * q2 + 50] = c2b

    # fc1: pooled2 lanes (per row p2) are (128*q2 + c2); PyTorch flat index = c2*16 + p2*4 + q2.
    W3 = np.zeros((4, L2P, H1), np.float32)
    f1w_r = f1w.reshape(500, 50, 4, 4)           # (out, c2, h, w)
    for p2 in range(4):
        for q2 in range(4):
            W3[p2, 128 * q2:128 * q2 + 50, :500] = f1w_r[:, :, p2, q2].T
    B3 = np.zeros((1, H1), np.float32)
    B3[0, :500] = f1b

    W4 = np.zeros((H1, NL), np.float32)
    W4[:500, :10] = f2w.T
    B4 = np.zeros((1, NL), np.float32)
    B4[0, :10] = f2b

    return {
        "w1": jnp.asarray(W1, jnp.bfloat16), "b1": jnp.asarray(B1),
        "w2": jnp.asarray(W2, jnp.bfloat16), "b2": jnp.asarray(B2),
        "w3": jnp.asarray(W3, jnp.bfloat16), "b3": jnp.asarray(B3),
        "w4": jnp.asarray(W4, jnp.bfloat16), "b4": jnp.asarray(B4),
    }


# ----------------------------------------------------------------------------
# Pure-XLA reference (original PyTorch-layout params) for a sanity check
# ----------------------------------------------------------------------------
def lenet3_reference(p, x):
    hp = jax.lax.Precision.HIGHEST

    def conv(z, w, b):
        z = jax.lax.conv_general_dilated(
            z, w, (1, 1), "VALID",
            dimension_numbers=("NCHW", "OIHW", "NCHW"), precision=hp)
        return jnp.maximum(z + b[None, :, None, None], 0.0)

    def pool(z):
        n, c, h, w = z.shape
        return jnp.max(z.reshape(n, c, h // 2, 2, w // 2, 2), axis=(3, 5))

    z = pool(conv(x, p["conv1_w"], p["conv1_b"]))
    z = pool(conv(z, p["conv2_w"], p["conv2_b"]))
    z = z.reshape(z.shape[0], -1)                                # (N, 800)
    z = jnp.maximum(jnp.dot(z, p["fc1_w"].T, precision=hp) + p["fc1_b"], 0.0)
    return jnp.dot(z, p["fc2_w"].T, precision=hp) + p["fc2_b"]


if __name__ == "__main__":
    key = jax.random.PRNGKey(0)
    k_params, k_x = jax.random.split(key)
    torch_params = init_params(k_params)
    params = prepare_params(torch_params)
    # MNIST-shaped input (28x28 is required by LeNet3's 4*4*50 flatten).
    x = jax.random.normal(k_x, (2, 1, 28, 28), dtype=jnp.float32)

    logits = jax.block_until_ready(jax.jit(lenet3_forward)(params, x))
    assert logits.shape == (2, 10) and logits.dtype == jnp.float32

    ref = jax.block_until_ready(lenet3_reference(torch_params, x))
    err = float(jnp.max(jnp.abs(logits - ref)))
    tol = 5e-2 * float(jnp.max(jnp.abs(ref))) + 2e-3   # bf16 weights, f32 accum
    assert err <= tol, f"mismatch vs XLA reference: max|diff|={err} tol={tol}"
    print("KERNEL_OK")
</pallas_src>

<mosaic_0001>
module attributes {stable_mosaic.version = 11 : i64} {
  func.func @_lenet3_kernel(%arg0: i32, %arg1: memref<2x28x28xf32, #tpu.memory_space<vmem>>, %arg2: memref<5x28x768xbf16, #tpu.memory_space<vmem>>, %arg3: memref<1x736xf32, #tpu.memory_space<vmem>>, %arg4: memref<5x736x512xbf16, #tpu.memory_space<vmem>>, %arg5: memref<1x448xf32, #tpu.memory_space<vmem>>, %arg6: memref<4x448x512xbf16, #tpu.memory_space<vmem>>, %arg7: memref<1x512xf32, #tpu.memory_space<vmem>>, %arg8: memref<512x128xbf16, #tpu.memory_space<vmem>>, %arg9: memref<1x128xf32, #tpu.memory_space<vmem>>, %arg10: memref<2x128xf32, #tpu.memory_space<vmem>>, %arg11: memref<2x12x736xf32, #tpu.memory_space<vmem>>) attributes {dimension_semantics = [#tpu.dimension_semantics<parallel>], iteration_bounds = array<i64: 1>, scalar_prefetch = 0 : i64, scratch_operands = 1 : i64, tpu.core_type = #tpu.core_type<tc>, window_params = [{transform_indices = @transform_0, window_bounds = array<i64: 2, 28, 28>}, {pipeline_mode = #tpu.pipeline_mode<synchronous>, transform_indices = @transform_1, window_bounds = array<i64: 5, 28, 768>}, {pipeline_mode = #tpu.pipeline_mode<synchronous>, transform_indices = @transform_2, window_bounds = array<i64: 1, 736>}, {pipeline_mode = #tpu.pipeline_mode<synchronous>, transform_indices = @transform_3, window_bounds = array<i64: 5, 736, 512>}, {pipeline_mode = #tpu.pipeline_mode<synchronous>, transform_indices = @transform_4, window_bounds = array<i64: 1, 448>}, {pipeline_mode = #tpu.pipeline_mode<synchronous>, transform_indices = @transform_5, window_bounds = array<i64: 4, 448, 512>}, {pipeline_mode = #tpu.pipeline_mode<synchronous>, transform_indices = @transform_6, window_bounds = array<i64: 1, 512>}, {pipeline_mode = #tpu.pipeline_mode<synchronous>, transform_indices = @transform_7, window_bounds = array<i64: 512, 128>}, {pipeline_mode = #tpu.pipeline_mode<synchronous>, transform_indices = @transform_8, window_bounds = array<i64: 1, 128>}, {transform_indices = @transform_9, window_bounds = array<i64: 2, 128>}]} {
    %c0 = arith.constant 0 : index
    %c0_0 = arith.constant 0 : index
    %c0_1 = arith.constant 0 : index
    %0 = vector.load %arg1[%c0, %c0_0, %c0_1] : memref<2x28x28xf32, #tpu.memory_space<vmem>>, vector<2x28x28xf32>
    %1 = vector.extract_strided_slice %0 {offsets = [0, 0, 0], sizes = [2, 24, 28], strides = [1, 1, 1]} : vector<2x28x28xf32> to vector<2x24x28xf32>
    %2 = vector.shape_cast %1 : vector<2x24x28xf32> to vector<48x28xf32>
    %3 = arith.truncf %2 : vector<48x28xf32> to vector<48x28xbf16>
    %c0_2 = arith.constant 0 : index
    %c0_3 = arith.constant 0 : index
    %c0_4 = arith.constant 0 : index
    %4 = vector.load %arg2[%c0_2, %c0_3, %c0_4] : memref<5x28x768xbf16, #tpu.memory_space<vmem>>, vector<1x28x768xbf16>
    %5 = vector.shape_cast %4 : vector<1x28x768xbf16> to vector<28x768xbf16>
    %cst = arith.constant dense<0.000000e+00> : vector<48x768xf32>
    %6 = tpu.matmul %3, %5, %cst {dimension_numbers = #tpu.dot_dimension_numbers<[1], [0], [0], [1], [0, 0, 1, 1], [], []>} : vector<48x28xbf16>, vector<28x768xbf16>, vector<48x768xf32> -> vector<48x768xf32>
    %7 = vector.extract_strided_slice %0 {offsets = [0, 1, 0], sizes = [2, 24, 28], strides = [1, 1, 1]} : vector<2x28x28xf32> to vector<2x24x28xf32>
    %8 = vector.shape_cast %7 : vector<2x24x28xf32> to vector<48x28xf32>
    %9 = arith.truncf %8 : vector<48x28xf32> to vector<48x28xbf16>
    %c1 = arith.constant 1 : index
    %c0_5 = arith.constant 0 : index
    %c0_6 = arith.constant 0 : index
    %10 = vector.load %arg2[%c1, %c0_5, %c0_6] : memref<5x28x768xbf16, #tpu.memory_space<vmem>>, vector<1x28x768xbf16>
    %11 = vector.shape_cast %10 : vector<1x28x768xbf16> to vector<28x768xbf16>
    %cst_7 = arith.constant dense<0.000000e+00> : vector<48x768xf32>
    %12 = tpu.matmul %9, %11, %cst_7 {dimension_numbers = #tpu.dot_dimension_numbers<[1], [0], [0], [1], [0, 0, 1, 1], [], []>} : vector<48x28xbf16>, vector<28x768xbf16>, vector<48x768xf32> -> vector<48x768xf32>
    %13 = arith.addf %6, %12 : vector<48x768xf32>
    %14 = vector.extract_strided_slice %0 {offsets = [0, 2, 0], sizes = [2, 24, 28], strides = [1, 1, 1]} : vector<2x28x28xf32> to vector<2x24x28xf32>
    %15 = vector.shape_cast %14 : vector<2x24x28xf32> to vector<48x28xf32>
    %16 = arith.truncf %15 : vector<48x28xf32> to vector<48x28xbf16>
    %c2 = arith.constant 2 : index
    %c0_8 = arith.constant 0 : index
    %c0_9 = arith.constant 0 : index
    %17 = vector.load %arg2[%c2, %c0_8, %c0_9] : memref<5x28x768xbf16, #tpu.memory_space<vmem>>, vector<1x28x768xbf16>
    %18 = vector.shape_cast %17 : vector<1x28x768xbf16> to vector<28x768xbf16>
    %cst_10 = arith.constant dense<0.000000e+00> : vector<48x768xf32>
    %19 = tpu.matmul %16, %18, %cst_10 {dimension_numbers = #tpu.dot_dimension_numbers<[1], [0], [0], [1], [0, 0, 1, 1], [], []>} : vector<48x28xbf16>, vector<28x768xbf16>, vector<48x768xf32> -> vector<48x768xf32>
    %20 = arith.addf %13, %19 : vector<48x768xf32>
    %21 = vector.extract_strided_slice %0 {offsets = [0, 3, 0], sizes = [2, 24, 28], strides = [1, 1, 1]} : vector<2x28x28xf32> to vector<2x24x28xf32>
    %22 = vector.shape_cast %21 : vector<2x24x28xf32> to vector<48x28xf32>
    %23 = arith.truncf %22 : vector<48x28xf32> to vector<48x28xbf16>
    %c3 = arith.constant 3 : index
    %c0_11 = arith.constant 0 : index
    %c0_12 = arith.constant 0 : index
    %24 = vector.load %arg2[%c3, %c0_11, %c0_12] : memref<5x28x768xbf16, #tpu.memory_space<vmem>>, vector<1x28x768xbf16>
    %25 = vector.shape_cast %24 : vector<1x28x768xbf16> to vector<28x768xbf16>
    %cst_13 = arith.constant dense<0.000000e+00> : vector<48x768xf32>
    %26 = tpu.matmul %23, %25, %cst_13 {dimension_numbers = #tpu.dot_dimension_numbers<[1], [0], [0], [1], [0, 0, 1, 1], [], []>} : vector<48x28xbf16>, vector<28x768xbf16>, vector<48x768xf32> -> vector<48x768xf32>
    %27 = arith.addf %20, %26 : vector<48x768xf32>
    %28 = vector.extract_strided_slice %0 {offsets = [0, 4, 0], sizes = [2, 24, 28], strides = [1, 1, 1]} : vector<2x28x28xf32> to vector<2x24x28xf32>
    %29 = vector.shape_cast %28 : vector<2x24x28xf32> to vector<48x28xf32>
    %30 = arith.truncf %29 : vector<48x28xf32> to vector<48x28xbf16>
    %c4 = arith.constant 4 : index
    %c0_14 = arith.constant 0 : index
    %c0_15 = arith.constant 0 : index
    %31 = vector.load %arg2[%c4, %c0_14, %c0_15] : memref<5x28x768xbf16, #tpu.memory_space<vmem>>, vector<1x28x768xbf16>
    %32 = vector.shape_cast %31 : vector<1x28x768xbf16> to vector<28x768xbf16>
    %cst_16 = arith.constant dense<0.000000e+00> : vector<48x768xf32>
    %33 = tpu.matmul %30, %32, %cst_16 {dimension_numbers = #tpu.dot_dimension_numbers<[1], [0], [0], [1], [0, 0, 1, 1], [], []>} : vector<48x28xbf16>, vector<28x768xbf16>, vector<48x768xf32> -> vector<48x768xf32>
    %34 = arith.addf %27, %33 : vector<48x768xf32>
    %35 = vector.shape_cast %34 : vector<48x768xf32> to vector<2x24x768xf32>
    %c0_17 = arith.constant 0 : index
    %c0_18 = arith.constant 0 : index
    %36 = vector.load %arg3[%c0_17, %c0_18] : memref<1x736xf32, #tpu.memory_space<vmem>>, vector<1x736xf32>
    %37 = vector.extract_strided_slice %35 {offsets = [0, 0, 0], sizes = [2, 1, 768], strides = [1, 1, 1]} : vector<2x24x768xf32> to vector<2x1x768xf32>
    %38 = vector.shape_cast %37 : vector<2x1x768xf32> to vector<2x768xf32>
    %39 = vector.extract_strided_slice %35 {offsets = [0, 1, 0], sizes = [2, 1, 768], strides = [1, 1, 1]} : vector<2x24x768xf32> to vector<2x1x768xf32>
    %40 = vector.shape_cast %39 : vector<2x1x768xf32> to vector<2x768xf32>
    %41 = arith.maximumf %38, %40 : vector<2x768xf32>
    %42 = vector.extract_strided_slice %41 {offsets = [0, 0], sizes = [2, 736], strides = [1, 1]} : vector<2x768xf32> to vector<2x736xf32>
    %43 = vector.extract_strided_slice %41 {offsets = [0, 32], sizes = [2, 736], strides = [1, 1]} : vector<2x768xf32> to vector<2x736xf32>
    %44 = arith.maximumf %42, %43 : vector<2x736xf32>
    %45 = vector.broadcast %36 : vector<1x736xf32> to vector<2x736xf32>
    %46 = arith.addf %44, %45 : vector<2x736xf32>
    %cst_19 = arith.constant 0.000000e+00 : f32
    %47 = vector.broadcast %cst_19 : f32 to vector<2x736xf32>
    %48 = arith.maximumf %46, %47 : vector<2x736xf32>
    %c0_20 = arith.constant 0 : index
    %c0_21 = arith.constant 0 : index
    %c0_22 = arith.constant 0 : index
    %49 = vector.load %arg11[%c0_20, %c0_21, %c0_22] : memref<2x12x736xf32, #tpu.memory_space<vmem>>, vector<2x1x736xf32>
    %50 = vector.shape_cast %49 : vector<2x1x736xf32> to vector<2x736xf32>
    %51 = vector.shape_cast %48 : vector<2x736xf32> to vector<2x1x736xf32>
    tpu.vector_store %arg11[%c0_20, %c0_21, %c0_22], %51 {strides = array<i32>} : memref<2x12x736xf32, #tpu.memory_space<vmem>>, vector<2x1x736xf32>,
    %52 = vector.extract_strided_slice %35 {offsets = [0, 2, 0], sizes = [2, 1, 768], strides = [1, 1, 1]} : vector<2x24x768xf32> to vector<2x1x768xf32>
    %53 = vector.shape_cast %52 : vector<2x1x768xf32> to vector<2x768xf32>
    %54 = vector.extract_strided_slice %35 {offsets = [0, 3, 0], sizes = [2, 1, 768], strides = [1, 1, 1]} : vector<2x24x768xf32> to vector<2x1x768xf32>
    %55 = vector.shape_cast %54 : vector<2x1x768xf32> to vector<2x768xf32>
    %56 = arith.maximumf %53, %55 : vector<2x768xf32>
    %57 = vector.extract_strided_slice %56 {offsets = [0, 0], sizes = [2, 736], strides = [1, 1]} : vector<2x768xf32> to vector<2x736xf32>
    %58 = vector.extract_strided_slice %56 {offsets = [0, 32], sizes = [2, 736], strides = [1, 1]} : vector<2x768xf32> to vector<2x736xf32>
    %59 = arith.maximumf %57, %58 : vector<2x736xf32>
    %60 = vector.broadcast %36 : vector<1x736xf32> to vector<2x736xf32>
    %61 = arith.addf %59, %60 : vector<2x736xf32>
    %cst_23 = arith.constant 0.000000e+00 : f32
    %62 = vector.broadcast %cst_23 : f32 to vector<2x736xf32>
    %63 = arith.maximumf %61, %62 : vector<2x736xf32>
    %c0_24 = arith.constant 0 : index
    %c1_25 = arith.constant 1 : index
    %c0_26 = arith.constant 0 : index
    %64 = vector.load %arg11[%c0_24, %c1_25, %c0_26] : memref<2x12x736xf32, #tpu.memory_space<vmem>>, vector<2x1x736xf32>
    %65 = vector.shape_cast %64 : vector<2x1x736xf32> to vector<2x736xf32>
    %66 = vector.shape_cast %63 : vector<2x736xf32> to vector<2x1x736xf32>
    tpu.vector_store %arg11[%c0_24, %c1_25, %c0_26], %66 {strides = array<i32>} : memref<2x12x736xf32, #tpu.memory_space<vmem>>, vector<2x1x736xf32>,
    %67 = vector.extract_strided_slice %35 {offsets = [0, 4, 0], sizes = [2, 1, 768], strides = [1, 1, 1]} : vector<2x24x768xf32> to vector<2x1x768xf32>
    %68 = vector.shape_cast %67 : vector<2x1x768xf32> to vector<2x768xf32>
    %69 = vector.extract_strided_slice %35 {offsets = [0, 5, 0], sizes = [2, 1, 768], strides = [1, 1, 1]} : vector<2x24x768xf32> to vector<2x1x768xf32>
    %70 = vector.shape_cast %69 : vector<2x1x768xf32> to vector<2x768xf32>
    %71 = arith.maximumf %68, %70 : vector<2x768xf32>
    %72 = vector.extract_strided_slice %71 {offsets = [0, 0], sizes = [2, 736], strides = [1, 1]} : vector<2x768xf32> to vector<2x736xf32>
    %73 = vector.extract_strided_slice %71 {offsets = [0, 32], sizes = [2, 736], strides = [1, 1]} : vector<2x768xf32> to vector<2x736xf32>
    %74 = arith.maximumf %72, %73 : vector<2x736xf32>
    %75 = vector.broadcast %36 : vector<1x736xf32> to vector<2x736xf32>
    %76 = arith.addf %74, %75 : vector<2x736xf32>
    %cst_27 = arith.constant 0.000000e+00 : f32
    %77 = vector.broadcast %cst_27 : f32 to vector<2x736xf32>
    %78 = arith.maximumf %76, %77 : vector<2x736xf32>
    %c0_28 = arith.constant 0 : index
    %c2_29 = arith.constant 2 : index
    %c0_30 = arith.constant 0 : index
    %79 = vector.load %arg11[%c0_28, %c2_29, %c0_30] : memref<2x12x736xf32, #tpu.memory_space<vmem>>, vector<2x1x736xf32>
    %80 = vector.shape_cast %79 : vector<2x1x736xf32> to vector<2x736xf32>
    %81 = vector.shape_cast %78 : vector<2x736xf32> to vector<2x1x736xf32>
    tpu.vector_store %arg11[%c0_28, %c2_29, %c0_30], %81 {strides = array<i32>} : memref<2x12x736xf32, #tpu.memory_space<vmem>>, vector<2x1x736xf32>,
    %82 = vector.extract_strided_slice %35 {offsets = [0, 6, 0], sizes = [2, 1, 768], strides = [1, 1, 1]} : vector<2x24x768xf32> to vector<2x1x768xf32>
    %83 = vector.shape_cast %82 : vector<2x1x768xf32> to vector<2x768xf32>
    %84 = vector.extract_strided_slice %35 {offsets = [0, 7, 0], sizes = [2, 1, 768], strides = [1, 1, 1]} : vector<2x24x768xf32> to vector<2x1x768xf32>
    %85 = vector.shape_cast %84 : vector<2x1x768xf32> to vector<2x768xf32>
    %86 = arith.maximumf %83, %85 : vector<2x768xf32>
    %87 = vector.extract_strided_slice %86 {offsets = [0, 0], sizes = [2, 736], strides = [1, 1]} : vector<2x768xf32> to vector<2x736xf32>
    %88 = vector.extract_strided_slice %86 {offsets = [0, 32], sizes = [2, 736], strides = [1, 1]} : vector<2x768xf32> to vector<2x736xf32>
    %89 = arith.maximumf %87, %88 : vector<2x736xf32>
    %90 = vector.broadcast %36 : vector<1x736xf32> to vector<2x736xf32>
    %91 = arith.addf %89, %90 : vector<2x736xf32>
    %cst_31 = arith.constant 0.000000e+00 : f32
    %92 = vector.broadcast %cst_31 : f32 to vector<2x736xf32>
    %93 = arith.maximumf %91, %92 : vector<2x736xf32>
    %c0_32 = arith.constant 0 : index
    %c3_33 = arith.constant 3 : index
    %c0_34 = arith.constant 0 : index
    %94 = vector.load %arg11[%c0_32, %c3_33, %c0_34] : memref<2x12x736xf32, #tpu.memory_space<vmem>>, vector<2x1x736xf32>
    %95 = vector.shape_cast %94 : vector<2x1x736xf32> to vector<2x736xf32>
    %96 = vector.shape_cast %93 : vector<2x736xf32> to vector<2x1x736xf32>
    tpu.vector_store %arg11[%c0_32, %c3_33, %c0_34], %96 {strides = array<i32>} : memref<2x12x736xf32, #tpu.memory_space<vmem>>, vector<2x1x736xf32>,
    %97 = vector.extract_strided_slice %35 {offsets = [0, 8, 0], sizes = [2, 1, 768], strides = [1, 1, 1]} : vector<2x24x768xf32> to vector<2x1x768xf32>
    %98 = vector.shape_cast %97 : vector<2x1x768xf32> to vector<2x768xf32>
    %99 = vector.extract_strided_slice %35 {offsets = [0, 9, 0], sizes = [2, 1, 768], strides = [1, 1, 1]} : vector<2x24x768xf32> to vector<2x1x768xf32>
    %100 = vector.shape_cast %99 : vector<2x1x768xf32> to vector<2x768xf32>
    %101 = arith.maximumf %98, %100 : vector<2x768xf32>
    %102 = vector.extract_strided_slice %101 {offsets = [0, 0], sizes = [2, 736], strides = [1, 1]} : vector<2x768xf32> to vector<2x736xf32>
    %103 = vector.extract_strided_slice %101 {offsets = [0, 32], sizes = [2, 736], strides = [1, 1]} : vector<2x768xf32> to vector<2x736xf32>
    %104 = arith.maximumf %102, %103 : vector<2x736xf32>
    %105 = vector.broadcast %36 : vector<1x736xf32> to vector<2x736xf32>
    %106 = arith.addf %104, %105 : vector<2x736xf32>
    %cst_35 = arith.constant 0.000000e+00 : f32
    %107 = vector.broadcast %cst_35 : f32 to vector<2x736xf32>
    %108 = arith.maximumf %106, %107 : vector<2x736xf32>
    %c0_36 = arith.constant 0 : index
    %c4_37 = arith.constant 4 : index
    %c0_38 = arith.constant 0 : index
    %109 = vector.load %arg11[%c0_36, %c4_37, %c0_38] : memref<2x12x736xf32, #tpu.memory_space<vmem>>, vector<2x1x736xf32>
    %110 = vector.shape_cast %109 : vector<2x1x736xf32> to vector<2x736xf32>
    %111 = vector.shape_cast %108 : vector<2x736xf32> to vector<2x1x736xf32>
    tpu.vector_store %arg11[%c0_36, %c4_37, %c0_38], %111 {strides = array<i32>} : memref<2x12x736xf32, #tpu.memory_space<vmem>>, vector<2x1x736xf32>,
    %112 = vector.extract_strided_slice %35 {offsets = [0, 10, 0], sizes = [2, 1, 768], strides = [1, 1, 1]} : vector<2x24x768xf32> to vector<2x1x768xf32>
    %113 = vector.shape_cast %112 : vector<2x1x768xf32> to vector<2x768xf32>
    %114 = vector.extract_strided_slice %35 {offsets = [0, 11, 0], sizes = [2, 1, 768], strides = [1, 1, 1]} : vector<2x24x768xf32> to vector<2x1x768xf32>
    %115 = vector.shape_cast %114 : vector<2x1x768xf32> to vector<2x768xf32>
    %116 = arith.maximumf %113, %115 : vector<2x768xf32>
    %117 = vector.extract_strided_slice %116 {offsets = [0, 0], sizes = [2, 736], strides = [1, 1]} : vector<2x768xf32> to vector<2x736xf32>
    %118 = vector.extract_strided_slice %116 {offsets = [0, 32], sizes = [2, 736], strides = [1, 1]} : vector<2x768xf32> to vector<2x736xf32>
    %119 = arith.maximumf %117, %118 : vector<2x736xf32>
    %120 = vector.broadcast %36 : vector<1x736xf32> to vector<2x736xf32>
    %121 = arith.addf %119, %120 : vector<2x736xf32>
    %cst_39 = arith.constant 0.000000e+00 : f32
    %122 = vector.broadcast %cst_39 : f32 to vector<2x736xf32>
    %123 = arith.maximumf %121, %122 : vector<2x736xf32>
    %c0_40 = arith.constant 0 : index
    %c5 = arith.constant 5 : index
    %c0_41 = arith.constant 0 : index
    %124 = vector.load %arg11[%c0_40, %c5, %c0_41] : memref<2x12x736xf32, #tpu.memory_space<vmem>>, vector<2x1x736xf32>
    %125 = vector.shape_cast %124 : vector<2x1x736xf32> to vector<2x736xf32>
    %126 = vector.shape_cast %123 : vector<2x736xf32> to vector<2x1x736xf32>
    tpu.vector_store %arg11[%c0_40, %c5, %c0_41], %126 {strides = array<i32>} : memref<2x12x736xf32, #tpu.memory_space<vmem>>, vector<2x1x736xf32>,
    %127 = vector.extract_strided_slice %35 {offsets = [0, 12, 0], sizes = [2, 1, 768], strides = [1, 1, 1]} : vector<2x24x768xf32> to vector<2x1x768xf32>
    %128 = vector.shape_cast %127 : vector<2x1x768xf32> to vector<2x768xf32>
    %129 = vector.extract_strided_slice %35 {offsets = [0, 13, 0], sizes = [2, 1, 768], strides = [1, 1, 1]} : vector<2x24x768xf32> to vector<2x1x768xf32>
    %130 = vector.shape_cast %129 : vector<2x1x768xf32> to vector<2x768xf32>
    %131 = arith.maximumf %128, %130 : vector<2x768xf32>
    %132 = vector.extract_strided_slice %131 {offsets = [0, 0], sizes = [2, 736], strides = [1, 1]} : vector<2x768xf32> to vector<2x736xf32>
    %133 = vector.extract_strided_slice %131 {offsets = [0, 32], sizes = [2, 736], strides = [1, 1]} : vector<2x768xf32> to vector<2x736xf32>
    %134 = arith.maximumf %132, %133 : vector<2x736xf32>
    %135 = vector.broadcast %36 : vector<1x736xf32> to vector<2x736xf32>
    %136 = arith.addf %134, %135 : vector<2x736xf32>
    %cst_42 = arith.constant 0.000000e+00 : f32
    %137 = vector.broadcast %cst_42 : f32 to vector<2x736xf32>
    %138 = arith.maximumf %136, %137 : vector<2x736xf32>
    %c0_43 = arith.constant 0 : index
    %c6 = arith.constant 6 : index
    %c0_44 = arith.constant 0 : index
    %139 = vector.load %arg11[%c0_43, %c6, %c0_44] : memref<2x12x736xf32, #tpu.memory_space<vmem>>, vector<2x1x736xf32>
    %140 = vector.shape_cast %139 : vector<2x1x736xf32> to vector<2x736xf32>
    %141 = vector.shape_cast %138 : vector<2x736xf32> to vector<2x1x736xf32>
    tpu.vector_store %arg11[%c0_43, %c6, %c0_44], %141 {strides = array<i32>} : memref<2x12x736xf32, #tpu.memory_space<vmem>>, vector<2x1x736xf32>,
    %142 = vector.extract_strided_slice %35 {offsets = [0, 14, 0], sizes = [2, 1, 768], strides = [1, 1, 1]} : vector<2x24x768xf32> to vector<2x1x768xf32>
    %143 = vector.shape_cast %142 : vector<2x1x768xf32> to vector<2x768xf32>
    %144 = vector.extract_strided_slice %35 {offsets = [0, 15, 0], sizes = [2, 1, 768], strides = [1, 1, 1]} : vector<2x24x768xf32> to vector<2x1x768xf32>
    %145 = vector.shape_cast %144 : vector<2x1x768xf32> to vector<2x768xf32>
    %146 = arith.maximumf %143, %145 : vector<2x768xf32>
    %147 = vector.extract_strided_slice %146 {offsets = [0, 0], sizes = [2, 736], strides = [1, 1]} : vector<2x768xf32> to vector<2x736xf32>
    %148 = vector.extract_strided_slice %146 {offsets = [0, 32], sizes = [2, 736], strides = [1, 1]} : vector<2x768xf32> to vector<2x736xf32>
    %149 = arith.maximumf %147, %148 : vector<2x736xf32>
    %150 = vector.broadcast %36 : vector<1x736xf32> to vector<2x736xf32>
    %151 = arith.addf %149, %150 : vector<2x736xf32>
    %cst_45 = arith.constant 0.000000e+00 : f32
    %152 = vector.broadcast %cst_45 : f32 to vector<2x736xf32>
    %153 = arith.maximumf %151, %152 : vector<2x736xf32>
    %c0_46 = arith.constant 0 : index
    %c7 = arith.constant 7 : index
    %c0_47 = arith.constant 0 : index
    %154 = vector.load %arg11[%c0_46, %c7, %c0_47] : memref<2x12x736xf32, #tpu.memory_space<vmem>>, vector<2x1x736xf32>
    %155 = vector.shape_cast %154 : vector<2x1x736xf32> to vector<2x736xf32>
    %156 = vector.shape_cast %153 : vector<2x736xf32> to vector<2x1x736xf32>
    tpu.vector_store %arg11[%c0_46, %c7, %c0_47], %156 {strides = array<i32>} : memref<2x12x736xf32, #tpu.memory_space<vmem>>, vector<2x1x736xf32>,
    %157 = vector.extract_strided_slice %35 {offsets = [0, 16, 0], sizes = [2, 1, 768], strides = [1, 1, 1]} : vector<2x24x768xf32> to vector<2x1x768xf32>
    %158 = vector.shape_cast %157 : vector<2x1x768xf32> to vector<2x768xf32>
    %159 = vector.extract_strided_slice %35 {offsets = [0, 17, 0], sizes = [2, 1, 768], strides = [1, 1, 1]} : vector<2x24x768xf32> to vector<2x1x768xf32>
    %160 = vector.shape_cast %159 : vector<2x1x768xf32> to vector<2x768xf32>
    %161 = arith.maximumf %158, %160 : vector<2x768xf32>
    %162 = vector.extract_strided_slice %161 {offsets = [0, 0], sizes = [2, 736], strides = [1, 1]} : vector<2x768xf32> to vector<2x736xf32>
    %163 = vector.extract_strided_slice %161 {offsets = [0, 32], sizes = [2, 736], strides = [1, 1]} : vector<2x768xf32> to vector<2x736xf32>
    %164 = arith.maximumf %162, %163 : vector<2x736xf32>
    %165 = vector.broadcast %36 : vector<1x736xf32> to vector<2x736xf32>
    %166 = arith.addf %164, %165 : vector<2x736xf32>
    %cst_48 = arith.constant 0.000000e+00 : f32
    %167 = vector.broadcast %cst_48 : f32 to vector<2x736xf32>
    %168 = arith.maximumf %166, %167 : vector<2x736xf32>
    %c0_49 = arith.constant 0 : index
    %c8 = arith.constant 8 : index
    %c0_50 = arith.constant 0 : index
    %169 = vector.load %arg11[%c0_49, %c8, %c0_50] : memref<2x12x736xf32, #tpu.memory_space<vmem>>, vector<2x1x736xf32>
    %170 = vector.shape_cast %169 : vector<2x1x736xf32> to vector<2x736xf32>
    %171 = vector.shape_cast %168 : vector<2x736xf32> to vector<2x1x736xf32>
    tpu.vector_store %arg11[%c0_49, %c8, %c0_50], %171 {strides = array<i32>} : memref<2x12x736xf32, #tpu.memory_space<vmem>>, vector<2x1x736xf32>,
    %172 = vector.extract_strided_slice %35 {offsets = [0, 18, 0], sizes = [2, 1, 768], strides = [1, 1, 1]} : vector<2x24x768xf32> to vector<2x1x768xf32>
    %173 = vector.shape_cast %172 : vector<2x1x768xf32> to vector<2x768xf32>
    %174 = vector.extract_strided_slice %35 {offsets = [0, 19, 0], sizes = [2, 1, 768], strides = [1, 1, 1]} : vector<2x24x768xf32> to vector<2x1x768xf32>
    %175 = vector.shape_cast %174 : vector<2x1x768xf32> to vector<2x768xf32>
    %176 = arith.maximumf %173, %175 : vector<2x768xf32>
    %177 = vector.extract_strided_slice %176 {offsets = [0, 0], sizes = [2, 736], strides = [1, 1]} : vector<2x768xf32> to vector<2x736xf32>
    %178 = vector.extract_strided_slice %176 {offsets = [0, 32], sizes = [2, 736], strides = [1, 1]} : vector<2x768xf32> to vector<2x736xf32>
    %179 = arith.maximumf %177, %178 : vector<2x736xf32>
    %180 = vector.broadcast %36 : vector<1x736xf32> to vector<2x736xf32>
    %181 = arith.addf %179, %180 : vector<2x736xf32>
    %cst_51 = arith.constant 0.000000e+00 : f32
    %182 = vector.broadcast %cst_51 : f32 to vector<2x736xf32>
    %183 = arith.maximumf %181, %182 : vector<2x736xf32>
    %c0_52 = arith.constant 0 : index
    %c9 = arith.constant 9 : index
    %c0_53 = arith.constant 0 : index
    %184 = vector.load %arg11[%c0_52, %c9, %c0_53] : memref<2x12x736xf32, #tpu.memory_space<vmem>>, vector<2x1x736xf32>
    %185 = vector.shape_cast %184 : vector<2x1x736xf32> to vector<2x736xf32>
    %186 = vector.shape_cast %183 : vector<2x736xf32> to vector<2x1x736xf32>
    tpu.vector_store %arg11[%c0_52, %c9, %c0_53], %186 {strides = array<i32>} : memref<2x12x736xf32, #tpu.memory_space<vmem>>, vector<2x1x736xf32>,
    %187 = vector.extract_strided_slice %35 {offsets = [0, 20, 0], sizes = [2, 1, 768], strides = [1, 1, 1]} : vector<2x24x768xf32> to vector<2x1x768xf32>
    %188 = vector.shape_cast %187 : vector<2x1x768xf32> to vector<2x768xf32>
    %189 = vector.extract_strided_slice %35 {offsets = [0, 21, 0], sizes = [2, 1, 768], strides = [1, 1, 1]} : vector<2x24x768xf32> to vector<2x1x768xf32>
    %190 = vector.shape_cast %189 : vector<2x1x768xf32> to vector<2x768xf32>
    %191 = arith.maximumf %188, %190 : vector<2x768xf32>
    %192 = vector.extract_strided_slice %191 {offsets = [0, 0], sizes = [2, 736], strides = [1, 1]} : vector<2x768xf32> to vector<2x736xf32>
    %193 = vector.extract_strided_slice %191 {offsets = [0, 32], sizes = [2, 736], strides = [1, 1]} : vector<2x768xf32> to vector<2x736xf32>
    %194 = arith.maximumf %192, %193 : vector<2x736xf32>
    %195 = vector.broadcast %36 : vector<1x736xf32> to vector<2x736xf32>
    %196 = arith.addf %194, %195 : vector<2x736xf32>
    %cst_54 = arith.constant 0.000000e+00 : f32
    %197 = vector.broadcast %cst_54 : f32 to vector<2x736xf32>
    %198 = arith.maximumf %196, %197 : vector<2x736xf32>
    %c0_55 = arith.constant 0 : index
    %c10 = arith.constant 10 : index
    %c0_56 = arith.constant 0 : index
    %199 = vector.load %arg11[%c0_55, %c10, %c0_56] : memref<2x12x736xf32, #tpu.memory_space<vmem>>, vector<2x1x736xf32>
    %200 = vector.shape_cast %199 : vector<2x1x736xf32> to vector<2x736xf32>
    %201 = vector.shape_cast %198 : vector<2x736xf32> to vector<2x1x736xf32>
    tpu.vector_store %arg11[%c0_55, %c10, %c0_56], %201 {strides = array<i32>} : memref<2x12x736xf32, #tpu.memory_space<vmem>>, vector<2x1x736xf32>,
    %202 = vector.extract_strided_slice %35 {offsets = [0, 22, 0], sizes = [2, 1, 768], strides = [1, 1, 1]} : vector<2x24x768xf32> to vector<2x1x768xf32>
    %203 = vector.shape_cast %202 : vector<2x1x768xf32> to vector<2x768xf32>
    %204 = vector.extract_strided_slice %35 {offsets = [0, 23, 0], sizes = [2, 1, 768], strides = [1, 1, 1]} : vector<2x24x768xf32> to vector<2x1x768xf32>
    %205 = vector.shape_cast %204 : vector<2x1x768xf32> to vector<2x768xf32>
    %206 = arith.maximumf %203, %205 : vector<2x768xf32>
    %207 = vector.extract_strided_slice %206 {offsets = [0, 0], sizes = [2, 736], strides = [1, 1]} : vector<2x768xf32> to vector<2x736xf32>
    %208 = vector.extract_strided_slice %206 {offsets = [0, 32], sizes = [2, 736], strides = [1, 1]} : vector<2x768xf32> to vector<2x736xf32>
    %209 = arith.maximumf %207, %208 : vector<2x736xf32>
    %210 = vector.broadcast %36 : vector<1x736xf32> to vector<2x736xf32>
    %211 = arith.addf %209, %210 : vector<2x736xf32>
    %cst_57 = arith.constant 0.000000e+00 : f32
    %212 = vector.broadcast %cst_57 : f32 to vector<2x736xf32>
    %213 = arith.maximumf %211, %212 : vector<2x736xf32>
    %c0_58 = arith.constant 0 : index
    %c11 = arith.constant 11 : index
    %c0_59 = arith.constant 0 : index
    %214 = vector.load %arg11[%c0_58, %c11, %c0_59] : memref<2x12x736xf32, #tpu.memory_space<vmem>>, vector<2x1x736xf32>
    %215 = vector.shape_cast %214 : vector<2x1x736xf32> to vector<2x736xf32>
    %216 = vector.shape_cast %213 : vector<2x736xf32> to vector<2x1x736xf32>
    tpu.vector_store %arg11[%c0_58, %c11, %c0_59], %216 {strides = array<i32>} : memref<2x12x736xf32, #tpu.memory_space<vmem>>, vector<2x1x736xf32>,
    %c0_60 = arith.constant 0 : index
    %c0_61 = arith.constant 0 : index
    %c0_62 = arith.constant 0 : index
    %217 = vector.load %arg11[%c0_60, %c0_61, %c0_62] : memref<2x12x736xf32, #tpu.memory_space<vmem>>, vector<2x8x736xf32>
    %218 = vector.shape_cast %217 : vector<2x8x736xf32> to vector<16x736xf32>
    %219 = arith.truncf %218 : vector<16x736xf32> to vector<16x736xbf16>
    %c0_63 = arith.constant 0 : index
    %c0_64 = arith.constant 0 : index
    %c0_65 = arith.constant 0 : index
    %220 = vector.load %arg4[%c0_63, %c0_64, %c0_65] : memref<5x736x512xbf16, #tpu.memory_space<vmem>>, vector<1x736x512xbf16>
    %221 = vector.shape_cast %220 : vector<1x736x512xbf16> to vector<736x512xbf16>
    %cst_66 = arith.constant dense<0.000000e+00> : vector<16x512xf32>
    %222 = tpu.matmul %219, %221, %cst_66 {dimension_numbers = #tpu.dot_dimension_numbers<[1], [0], [0], [1], [0, 0, 1, 1], [], []>} : vector<16x736xbf16>, vector<736x512xbf16>, vector<16x512xf32> -> vector<16x512xf32>
    %c0_67 = arith.constant 0 : index
    %c1_68 = arith.constant 1 : index
    %c0_69 = arith.constant 0 : index
    %223 = vector.load %arg11[%c0_67, %c1_68, %c0_69] : memref<2x12x736xf32, #tpu.memory_space<vmem>>, vector<2x8x736xf32>
    %224 = vector.shape_cast %223 : vector<2x8x736xf32> to vector<16x736xf32>
    %225 = arith.truncf %224 : vector<16x736xf32> to vector<16x736xbf16>
    %c1_70 = arith.constant 1 : index
    %c0_71 = arith.constant 0 : index
    %c0_72 = arith.constant 0 : index
    %226 = vector.load %arg4[%c1_70, %c0_71, %c0_72] : memref<5x736x512xbf16, #tpu.memory_space<vmem>>, vector<1x736x512xbf16>
    %227 = vector.shape_cast %226 : vector<1x736x512xbf16> to vector<736x512xbf16>
    %cst_73 = arith.constant dense<0.000000e+00> : vector<16x512xf32>
    %228 = tpu.matmul %225, %227, %cst_73 {dimension_numbers = #tpu.dot_dimension_numbers<[1], [0], [0], [1], [0, 0, 1, 1], [], []>} : vector<16x736xbf16>, vector<736x512xbf16>, vector<16x512xf32> -> vector<16x512xf32>
    %229 = arith.addf %222, %228 : vector<16x512xf32>
    %c0_74 = arith.constant 0 : index
    %c2_75 = arith.constant 2 : index
    %c0_76 = arith.constant 0 : index
    %230 = vector.load %arg11[%c0_74, %c2_75, %c0_76] : memref<2x12x736xf32, #tpu.memory_space<vmem>>, vector<2x8x736xf32>
    %231 = vector.shape_cast %230 : vector<2x8x736xf32> to vector<16x736xf32>
    %232 = arith.truncf %231 : vector<16x736xf32> to vector<16x736xbf16>
    %c2_77 = arith.constant 2 : index
    %c0_78 = arith.constant 0 : index
    %c0_79 = arith.constant 0 : index
    %233 = vector.load %arg4[%c2_77, %c0_78, %c0_79] : memref<5x736x512xbf16, #tpu.memory_space<vmem>>, vector<1x736x512xbf16>
    %234 = vector.shape_cast %233 : vector<1x736x512xbf16> to vector<736x512xbf16>
    %cst_80 = arith.constant dense<0.000000e+00> : vector<16x512xf32>
    %235 = tpu.matmul %232, %234, %cst_80 {dimension_numbers = #tpu.dot_dimension_numbers<[1], [0], [0], [1], [0, 0, 1, 1], [], []>} : vector<16x736xbf16>, vector<736x512xbf16>, vector<16x512xf32> -> vector<16x512xf32>
    %236 = arith.addf %229, %235 : vector<16x512xf32>
    %c0_81 = arith.constant 0 : index
    %c3_82 = arith.constant 3 : index
    %c0_83 = arith.constant 0 : index
    %237 = vector.load %arg11[%c0_81, %c3_82, %c0_83] : memref<2x12x736xf32, #tpu.memory_space<vmem>>, vector<2x8x736xf32>
    %238 = vector.shape_cast %237 : vector<2x8x736xf32> to vector<16x736xf32>
    %239 = arith.truncf %238 : vector<16x736xf32> to vector<16x736xbf16>
    %c3_84 = arith.constant 3 : index
    %c0_85 = arith.constant 0 : index
    %c0_86 = arith.constant 0 : index
    %240 = vector.load %arg4[%c3_84, %c0_85, %c0_86] : memref<5x736x512xbf16, #tpu.memory_space<vmem>>, vector<1x736x512xbf16>
    %241 = vector.shape_cast %240 : vector<1x736x512xbf16> to vector<736x512xbf16>
    %cst_87 = arith.constant dense<0.000000e+00> : vector<16x512xf32>
    %242 = tpu.matmul %239, %241, %cst_87 {dimension_numbers = #tpu.dot_dimension_numbers<[1], [0], [0], [1], [0, 0, 1, 1], [], []>} : vector<16x736xbf16>, vector<736x512xbf16>, vector<16x512xf32> -> vector<16x512xf32>
    %243 = arith.addf %236, %242 : vector<16x512xf32>
    %c0_88 = arith.constant 0 : index
    %c4_89 = arith.constant 4 : index
    %c0_90 = arith.constant 0 : index
    %244 = vector.load %arg11[%c0_88, %c4_89, %c0_90] : memref<2x12x736xf32, #tpu.memory_space<vmem>>, vector<2x8x736xf32>
    %245 = vector.shape_cast %244 : vector<2x8x736xf32> to vector<16x736xf32>
    %246 = arith.truncf %245 : vector<16x736xf32> to vector<16x736xbf16>
    %c4_91 = arith.constant 4 : index
    %c0_92 = arith.constant 0 : index
    %c0_93 = arith.constant 0 : index
    %247 = vector.load %arg4[%c4_91, %c0_92, %c0_93] : memref<5x736x512xbf16, #tpu.memory_space<vmem>>, vector<1x736x512xbf16>
    %248 = vector.shape_cast %247 : vector<1x736x512xbf16> to vector<736x512xbf16>
    %cst_94 = arith.constant dense<0.000000e+00> : vector<16x512xf32>
    %249 = tpu.matmul %246, %248, %cst_94 {dimension_numbers = #tpu.dot_dimension_numbers<[1], [0], [0], [1], [0, 0, 1, 1], [], []>} : vector<16x736xbf16>, vector<736x512xbf16>, vector<16x512xf32> -> vector<16x512xf32>
    %250 = arith.addf %243, %249 : vector<16x512xf32>
    %251 = vector.shape_cast %250 : vector<16x512xf32> to vector<2x8x512xf32>
    %c0_95 = arith.constant 0 : index
    %c0_96 = arith.constant 0 : index
    %252 = vector.load %arg5[%c0_95, %c0_96] : memref<1x448xf32, #tpu.memory_space<vmem>>, vector<1x448xf32>
    %cst_97 = arith.constant 0.000000e+00 : f32
    %253 = vector.broadcast %cst_97 : f32 to vector<2x512xf32>
    %254 = vector.extract_strided_slice %251 {offsets = [0, 0, 0], sizes = [2, 1, 512], strides = [1, 1, 1]} : vector<2x8x512xf32> to vector<2x1x512xf32>
    %255 = vector.shape_cast %254 : vector<2x1x512xf32> to vector<2x512xf32>
    %256 = vector.extract_strided_slice %251 {offsets = [0, 1, 0], sizes = [2, 1, 512], strides = [1, 1, 1]} : vector<2x8x512xf32> to vector<2x1x512xf32>
    %257 = vector.shape_cast %256 : vector<2x1x512xf32> to vector<2x512xf32>
    %258 = arith.maximumf %255, %257 : vector<2x512xf32>
    %259 = vector.extract_strided_slice %258 {offsets = [0, 0], sizes = [2, 448], strides = [1, 1]} : vector<2x512xf32> to vector<2x448xf32>
    %260 = vector.extract_strided_slice %258 {offsets = [0, 64], sizes = [2, 448], strides = [1, 1]} : vector<2x512xf32> to vector<2x448xf32>
    %261 = arith.maximumf %259, %260 : vector<2x448xf32>
    %262 = vector.broadcast %252 : vector<1x448xf32> to vector<2x448xf32>
    %263 = arith.addf %261, %262 : vector<2x448xf32>
    %cst_98 = arith.constant 0.000000e+00 : f32
    %264 = vector.broadcast %cst_98 : f32 to vector<2x448xf32>
    %265 = arith.maximumf %263, %264 : vector<2x448xf32>
    %266 = arith.truncf %265 : vector<2x448xf32> to vector<2x448xbf16>
    %c0_99 = arith.constant 0 : index
    %c0_100 = arith.constant 0 : index
    %c0_101 = arith.constant 0 : index
    %267 = vector.load %arg6[%c0_99, %c0_100, %c0_101] : memref<4x448x512xbf16, #tpu.memory_space<vmem>>, vector<1x448x512xbf16>
    %268 = vector.shape_cast %267 : vector<1x448x512xbf16> to vector<448x512xbf16>
    %cst_102 = arith.constant dense<0.000000e+00> : vector<2x512xf32>
    %269 = tpu.matmul %266, %268, %cst_102 {dimension_numbers = #tpu.dot_dimension_numbers<[1], [0], [0], [1], [0, 0, 1, 1], [], []>} : vector<2x448xbf16>, vector<448x512xbf16>, vector<2x512xf32> -> vector<2x512xf32>
    %270 = arith.addf %253, %269 : vector<2x512xf32>
    %271 = vector.extract_strided_slice %251 {offsets = [0, 2, 0], sizes = [2, 1, 512], strides = [1, 1, 1]} : vector<2x8x512xf32> to vector<2x1x512xf32>
    %272 = vector.shape_cast %271 : vector<2x1x512xf32> to vector<2x512xf32>
    %273 = vector.extract_strided_slice %251 {offsets = [0, 3, 0], sizes = [2, 1, 512], strides = [1, 1, 1]} : vector<2x8x512xf32> to vector<2x1x512xf32>
    %274 = vector.shape_cast %273 : vector<2x1x512xf32> to vector<2x512xf32>
    %275 = arith.maximumf %272, %274 : vector<2x512xf32>
    %276 = vector.extract_strided_slice %275 {offsets = [0, 0], sizes = [2, 448], strides = [1, 1]} : vector<2x512xf32> to vector<2x448xf32>
    %277 = vector.extract_strided_slice %275 {offsets = [0, 64], sizes = [2, 448], strides = [1, 1]} : vector<2x512xf32> to vector<2x448xf32>
    %278 = arith.maximumf %276, %277 : vector<2x448xf32>
    %279 = vector.broadcast %252 : vector<1x448xf32> to vector<2x448xf32>
    %280 = arith.addf %278, %279 : vector<2x448xf32>
    %cst_103 = arith.constant 0.000000e+00 : f32
    %281 = vector.broadcast %cst_103 : f32 to vector<2x448xf32>
    %282 = arith.maximumf %280, %281 : vector<2x448xf32>
    %283 = arith.truncf %282 : vector<2x448xf32> to vector<2x448xbf16>
    %c1_104 = arith.constant 1 : index
    %c0_105 = arith.constant 0 : index
    %c0_106 = arith.constant 0 : index
    %284 = vector.load %arg6[%c1_104, %c0_105, %c0_106] : memref<4x448x512xbf16, #tpu.memory_space<vmem>>, vector<1x448x512xbf16>
    %285 = vector.shape_cast %284 : vector<1x448x512xbf16> to vector<448x512xbf16>
    %cst_107 = arith.constant dense<0.000000e+00> : vector<2x512xf32>
    %286 = tpu.matmul %283, %285, %cst_107 {dimension_numbers = #tpu.dot_dimension_numbers<[1], [0], [0], [1], [0, 0, 1, 1], [], []>} : vector<2x448xbf16>, vector<448x512xbf16>, vector<2x512xf32> -> vector<2x512xf32>
    %287 = arith.addf %270, %286 : vector<2x512xf32>
    %288 = vector.extract_strided_slice %251 {offsets = [0, 4, 0], sizes = [2, 1, 512], strides = [1, 1, 1]} : vector<2x8x512xf32> to vector<2x1x512xf32>
    %289 = vector.shape_cast %288 : vector<2x1x512xf32> to vector<2x512xf32>
    %290 = vector.extract_strided_slice %251 {offsets = [0, 5, 0], sizes = [2, 1, 512], strides = [1, 1, 1]} : vector<2x8x512xf32> to vector<2x1x512xf32>
    %291 = vector.shape_cast %290 : vector<2x1x512xf32> to vector<2x512xf32>
    %292 = arith.maximumf %289, %291 : vector<2x512xf32>
    %293 = vector.extract_strided_slice %292 {offsets = [0, 0], sizes = [2, 448], strides = [1, 1]} : vector<2x512xf32> to vector<2x448xf32>
    %294 = vector.extract_strided_slice %292 {offsets = [0, 64], sizes = [2, 448], strides = [1, 1]} : vector<2x512xf32> to vector<2x448xf32>
    %295 = arith.maximumf %293, %294 : vector<2x448xf32>
    %296 = vector.broadcast %252 : vector<1x448xf32> to vector<2x448xf32>
    %297 = arith.addf %295, %296 : vector<2x448xf32>
    %cst_108 = arith.constant 0.000000e+00 : f32
    %298 = vector.broadcast %cst_108 : f32 to vector<2x448xf32>
    %299 = arith.maximumf %297, %298 : vector<2x448xf32>
    %300 = arith.truncf %299 : vector<2x448xf32> to vector<2x448xbf16>
    %c2_109 = arith.constant 2 : index
    %c0_110 = arith.constant 0 : index
    %c0_111 = arith.constant 0 : index
    %301 = vector.load %arg6[%c2_109, %c0_110, %c0_111] : memref<4x448x512xbf16, #tpu.memory_space<vmem>>, vector<1x448x512xbf16>
    %302 = vector.shape_cast %301 : vector<1x448x512xbf16> to vector<448x512xbf16>
    %cst_112 = arith.constant dense<0.000000e+00> : vector<2x512xf32>
    %303 = tpu.matmul %300, %302, %cst_112 {dimension_numbers = #tpu.dot_dimension_numbers<[1], [0], [0], [1], [0, 0, 1, 1], [], []>} : vector<2x448xbf16>, vector<448x512xbf16>, vector<2x512xf32> -> vector<2x512xf32>
    %304 = arith.addf %287, %303 : vector<2x512xf32>
    %305 = vector.extract_strided_slice %251 {offsets = [0, 6, 0], sizes = [2, 1, 512], strides = [1, 1, 1]} : vector<2x8x512xf32> to vector<2x1x512xf32>
    %306 = vector.shape_cast %305 : vector<2x1x512xf32> to vector<2x512xf32>
    %307 = vector.extract_strided_slice %251 {offsets = [0, 7, 0], sizes = [2, 1, 512], strides = [1, 1, 1]} : vector<2x8x512xf32> to vector<2x1x512xf32>
    %308 = vector.shape_cast %307 : vector<2x1x512xf32> to vector<2x512xf32>
    %309 = arith.maximumf %306, %308 : vector<2x512xf32>
    %310 = vector.extract_strided_slice %309 {offsets = [0, 0], sizes = [2, 448], strides = [1, 1]} : vector<2x512xf32> to vector<2x448xf32>
    %311 = vector.extract_strided_slice %309 {offsets = [0, 64], sizes = [2, 448], strides = [1, 1]} : vector<2x512xf32> to vector<2x448xf32>
    %312 = arith.maximumf %310, %311 : vector<2x448xf32>
    %313 = vector.broadcast %252 : vector<1x448xf32> to vector<2x448xf32>
    %314 = arith.addf %312, %313 : vector<2x448xf32>
    %cst_113 = arith.constant 0.000000e+00 : f32
    %315 = vector.broadcast %cst_113 : f32 to vector<2x448xf32>
    %316 = arith.maximumf %314, %315 : vector<2x448xf32>
    %317 = arith.truncf %316 : vector<2x448xf32> to vector<2x448xbf16>
    %c3_114 = arith.constant 3 : index
    %c0_115 = arith.constant 0 : index
    %c0_116 = arith.constant 0 : index
    %318 = vector.load %arg6[%c3_114, %c0_115, %c0_116] : memref<4x448x512xbf16, #tpu.memory_space<vmem>>, vector<1x448x512xbf16>
    %319 = vector.shape_cast %318 : vector<1x448x512xbf16> to vector<448x512xbf16>
    %cst_117 = arith.constant dense<0.000000e+00> : vector<2x512xf32>
    %320 = tpu.matmul %317, %319, %cst_117 {dimension_numbers = #tpu.dot_dimension_numbers<[1], [0], [0], [1], [0, 0, 1, 1], [], []>} : vector<2x448xbf16>, vector<448x512xbf16>, vector<2x512xf32> -> vector<2x512xf32>
    %321 = arith.addf %304, %320 : vector<2x512xf32>
    %c0_118 = arith.constant 0 : index
    %c0_119 = arith.constant 0 : index
    %322 = vector.load %arg7[%c0_118, %c0_119] : memref<1x512xf32, #tpu.memory_space<vmem>>, vector<1x512xf32>
    %323 = vector.broadcast %322 : vector<1x512xf32> to vector<2x512xf32>
    %324 = arith.addf %321, %323 : vector<2x512xf32>
    %cst_120 = arith.constant 0.000000e+00 : f32
    %325 = vector.broadcast %cst_120 : f32 to vector<2x512xf32>
    %326 = arith.maximumf %324, %325 : vector<2x512xf32>
    %327 = arith.truncf %326 : vector<2x512xf32> to vector<2x512xbf16>
    %c0_121 = arith.constant 0 : index
    %c0_122 = arith.constant 0 : index
    %328 = vector.load %arg8[%c0_121, %c0_122] : memref<512x128xbf16, #tpu.memory_space<vmem>>, vector<512x128xbf16>
    %cst_123 = arith.constant dense<0.000000e+00> : vector<2x128xf32>
    %329 = tpu.matmul %327, %328, %cst_123 {dimension_numbers = #tpu.dot_dimension_numbers<[1], [0], [0], [1], [0, 0, 1, 1], [], []>} : vector<2x512xbf16>, vector<512x128xbf16>, vector<2x128xf32> -> vector<2x128xf32>
    %c0_124 = arith.constant 0 : index
    %c0_125 = arith.constant 0 : index
    %330 = vector.load %arg9[%c0_124, %c0_125] : memref<1x128xf32, #tpu.memory_space<vmem>>, vector<1x128xf32>
    %331 = vector.broadcast %330 : vector<1x128xf32> to vector<2x128xf32>
    %332 = arith.addf %329, %331 : vector<2x128xf32>
    %c0_126 = arith.constant 0 : index
    %c0_127 = arith.constant 0 : index
    %333 = vector.load %arg10[%c0_126, %c0_127] : memref<2x128xf32, #tpu.memory_space<vmem>>, vector<2x128xf32>
    tpu.vector_store %arg10[%c0_126, %c0_127], %332 {strides = array<i32>} : memref<2x128xf32, #tpu.memory_space<vmem>>, vector<2x128xf32>,
    return
  }
  func.func @transform_0(%arg0: i32) -> (i32, i32, i32) {
    %c0_i32 = arith.constant 0 : i32
    %c0_i32_0 = arith.constant 0 : i32
    %c0_i32_1 = arith.constant 0 : i32
    return %arg0, %c0_i32, %c0_i32_0 : i32, i32, i32
  }
  func.func @transform_1(%arg0: i32) -> (i32, i32, i32) {
    %c0_i32 = arith.constant 0 : i32
    %c0_i32_0 = arith.constant 0 : i32
    %c0_i32_1 = arith.constant 0 : i32
    %c0_i32_2 = arith.constant 0 : i32
    return %c0_i32, %c0_i32_0, %c0_i32_1 : i32, i32, i32
  }
  func.func @transform_2(%arg0: i32) -> (i32, i32) {
    %c0_i32 = arith.constant 0 : i32
    %c0_i32_0 = arith.constant 0 : i32
    %c0_i32_1 = arith.constant 0 : i32
    return %c0_i32, %c0_i32_0 : i32, i32
  }
  func.func @transform_3(%arg0: i32) -> (i32, i32, i32) {
    %c0_i32 = arith.constant 0 : i32
    %c0_i32_0 = arith.constant 0 : i32
    %c0_i32_1 = arith.constant 0 : i32
    %c0_i32_2 = arith.constant 0 : i32
    return %c0_i32, %c0_i32_0, %c0_i32_1 : i32, i32, i32
  }
  func.func @transform_4(%arg0: i32) -> (i32, i32) {
    %c0_i32 = arith.constant 0 : i32
    %c0_i32_0 = arith.constant 0 : i32
    %c0_i32_1 = arith.constant 0 : i32
    return %c0_i32, %c0_i32_0 : i32, i32
  }
  func.func @transform_5(%arg0: i32) -> (i32, i32, i32) {
    %c0_i32 = arith.constant 0 : i32
    %c0_i32_0 = arith.constant 0 : i32
    %c0_i32_1 = arith.constant 0 : i32
    %c0_i32_2 = arith.constant 0 : i32
    return %c0_i32, %c0_i32_0, %c0_i32_1 : i32, i32, i32
  }
  func.func @transform_6(%arg0: i32) -> (i32, i32) {
    %c0_i32 = arith.constant 0 : i32
    %c0_i32_0 = arith.constant 0 : i32
    %c0_i32_1 = arith.constant 0 : i32
    return %c0_i32, %c0_i32_0 : i32, i32
  }
  func.func @transform_7(%arg0: i32) -> (i32, i32) {
    %c0_i32 = arith.constant 0 : i32
    %c0_i32_0 = arith.constant 0 : i32
    %c0_i32_1 = arith.constant 0 : i32
    return %c0_i32, %c0_i32_0 : i32, i32
  }
  func.func @transform_8(%arg0: i32) -> (i32, i32) {
    %c0_i32 = arith.constant 0 : i32
    %c0_i32_0 = arith.constant 0 : i32
    %c0_i32_1 = arith.constant 0 : i32
    return %c0_i32, %c0_i32_0 : i32, i32
  }
  func.func @transform_9(%arg0: i32) -> (i32, i32) {
    %c0_i32 = arith.constant 0 : i32
    %c0_i32_0 = arith.constant 0 : i32
    return %arg0, %c0_i32 : i32, i32
  }
}

</mosaic_0001>

<bundles_post_ra>
// kernel: lenet3_forward.1
= control target key start
LH: loop header
LB: loop body
LE: loop exit
PB: predicated region body
PF: predicated region fallthrough
CT: control target
= control target key end

     0   :  { %14 = vsyncpa [#allocation4], 0  ;;  %s19722_s0 = inlined_call_operand.vmem [shape: f32[2,28,28], index: 0, kind: input, shape index: {}]   ;;  %s19723_s1 = inlined_call_operand.hbm [shape: bf16[5,28,768], index: 1, kind: input, shape index: {}]   ;;  %s19724_s2 = inlined_call_operand.hbm [shape: f32[1,736], index: 2, kind: input, shape index: {}]   ;;  %s19725_s3 = inlined_call_operand.hbm [shape: bf16[5,736,512], index: 3, kind: input, shape index: {}]   ;;  %s19726_s4 = inlined_call_operand.hbm [shape: f32[1,448], index: 4, kind: input, shape index: {}]   ;;  %s19727_s5 = inlined_call_operand.hbm [shape: bf16[4,448,512], index: 5, kind: input, shape index: {}]   ;;  %s19728_s6 = inlined_call_operand.hbm [shape: f32[1,512], index: 6, kind: input, shape index: {}]   ;;  %s19729_s7 = inlined_call_operand.hbm [shape: bf16[512,128], index: 7, kind: input, shape index: {}]   ;;  %s19730_s8 = inlined_call_operand.hbm [shape: f32[1,128], index: 8, kind: input, shape index: {}]   ;;  %s19731_s9 = inlined_call_operand.hbm [shape: f32[2,128], index: 9, kind: output, shape index: {}]  }
   0x1   :  { %15 = vsyncpa [#allocation7], 0 }
   0x2   :  { %16 = vsyncpa [#allocation10], 0 }
   0x3   :  { %17 = vsyncpa [#allocation13], 0 }
   0x4   :  { %18 = vsyncpa [#allocation16], 0 }
   0x5   :  { %19 = vsyncpa [#allocation5], 0  ;;  %s18357_s30 = smov [#allocation6]   ;;  %s18358_s11 = smov [#allocation9]  }
   0x6   :  { %s40_s10 = sshll.u32 %s18357_s30, 4  ;;  %s62_s12 = sshll.u32 %s18358_s11, 4  ;;  %s41_s10 = int_to_ptr.vmem [resolvable:$true] %s40_s10  ;;  %s63_s12 = int_to_ptr.vmem [resolvable:$true] %s62_s12 }
   0x7   :  { %s18147_s15 = scalar_lea.hbm %s19724_s2, 96 }
   0x8   :  { %p18148_p0 = scmp.ne.s32.totalorder %s19724_s2, %s18147_s15  ;;  %p18151_p1 = scmp.lt.u32.totalorder %s18147_s15, %s19724_s2 }
   0xa   :  { %p18153_p2 = pnand %p18151_p1, %p18148_p0 }
   0xc   :  { %18156 = shalt.err (!%p18153_p2)
}
   0xd   :  { %s18157_s20 = scalar_lea.vmem %s41_s10, 96  ;;  %p18162_p4 = scmp.lt.s32.totalorder %s41_s10, %s41_s10 }
   0xe   :  { %p18158_p3 = scmp.ne.s32.totalorder %s41_s10, %s18157_s20  ;;  %p18163_p5 = scmp.lt.s32.totalorder %s18157_s20, %s18157_s20 }
  0x10   :  { %p18164_p6 = por %p18163_p5, %p18162_p4 }
  0x12   :  { %p18165_p7 = pnand %p18164_p6, %p18158_p3 }
  0x14   :  { %18168 = shalt.err (!%p18165_p7)
}
  0x15   :  { %43 = dma.hbm_to_vmem [thread:$0]  %s19724_s2, 96, %s41_s10, [#allocation7]  }
  0x16   :  { %s18169_s25 = scalar_lea.hbm %s19726_s4, 64 }
  0x17   :  { %p18170_p8 = scmp.ne.s32.totalorder %s19726_s4, %s18169_s25  ;;  %p18173_p9 = scmp.lt.u32.totalorder %s18169_s25, %s19726_s4 }
  0x19   :  { %p18175_p10 = pnand %p18173_p9, %p18170_p8 }
  0x1b   :  { %18178 = shalt.err (!%p18175_p10)
}
  0x1c   :  { %s18179_s30 = scalar_lea.vmem %s63_s12, 64  ;;  %p18184_p12 = scmp.lt.s32.totalorder %s63_s12, %s63_s12 }
  0x1d   :  { %p18180_p11 = scmp.ne.s32.totalorder %s63_s12, %s18179_s30  ;;  %p18185_p13 = scmp.lt.s32.totalorder %s18179_s30, %s18179_s30 }
  0x1f   :  { %p18186_p0 = por %p18185_p13, %p18184_p12 }
  0x21   :  { %p18187_p1 = pnand %p18186_p0, %p18180_p11 }
  0x23   :  { %18190 = shalt.err (!%p18187_p1)
}
  0x24   :  { %65 = dma.hbm_to_vmem [thread:$0]  %s19726_s4, 64, %s63_s12, [#allocation10]  }
  0x25   :  { %s18359_s11 = smov [#allocation12]   ;;  %s18360_s14 = smov [#allocation3]  }
  0x26   :  { %s84_s13 = sshll.u32 %s18359_s11, 4  ;;  %s27_s15 = sshll.u32 %s18360_s14, 4  ;;  %s85_s13 = int_to_ptr.vmem [resolvable:$true] %s84_s13  ;;  %s18449_s15 = int_to_ptr.vmem [resolvable:$true] %s27_s15 }
  0x27   :  { %s18191_s18 = scalar_lea.hbm %s19728_s6, 64 }
  0x28   :  { %p18192_p2 = scmp.ne.s32.totalorder %s19728_s6, %s18191_s18  ;;  %p18195_p3 = scmp.lt.u32.totalorder %s18191_s18, %s19728_s6 }
  0x2a   :  { %p18197_p4 = pnand %p18195_p3, %p18192_p2 }
  0x2c   :  { %18200 = shalt.err (!%p18197_p4)
}
  0x2d   :  { %s18201_s4 = scalar_lea.vmem %s85_s13, 64  ;;  %p18206_p6 = scmp.lt.s32.totalorder %s85_s13, %s85_s13 }
  0x2e   :  { %p18202_p5 = scmp.ne.s32.totalorder %s85_s13, %s18201_s4  ;;  %p18207_p7 = scmp.lt.s32.totalorder %s18201_s4, %s18201_s4 }
  0x30   :  { %p18208_p8 = por %p18207_p7, %p18206_p6 }
  0x32   :  { %p18209_p9 = pnand %p18208_p8, %p18202_p5 }
  0x34   :  { %18212 = shalt.err (!%p18209_p9)
}
  0x35   :  { %87 = dma.hbm_to_vmem [thread:$0]  %s19728_s6, 64, %s85_s13, [#allocation13]  }
  0x36   :  { %s18213_s26 = scalar_lea.hbm %s19723_s1, 7680 }
  0x37   :  { %p18214_p10 = scmp.ne.s32.totalorder %s19723_s1, %s18213_s26  ;;  %p18217_p11 = scmp.lt.u32.totalorder %s18213_s26, %s19723_s1 }
  0x39   :  { %p18219_p12 = pnand %p18217_p11, %p18214_p10 }
  0x3b   :  { %18222 = shalt.err (!%p18219_p12)
}
  0x3c   :  { %s18223_s2 = scalar_lea.vmem %s18449_s15, 7680  ;;  %p18228_p0 = scmp.lt.s32.totalorder %s18449_s15, %s18449_s15 }
  0x3d   :  { %p18224_p13 = scmp.ne.s32.totalorder %s18449_s15, %s18223_s2  ;;  %p18229_p1 = scmp.lt.s32.totalorder %s18223_s2, %s18223_s2 }
  0x3f   :  { %p18230_p2 = por %p18229_p1, %p18228_p0 }
  0x41   :  { %p18231_p3 = pnand %p18230_p2, %p18224_p13 }
  0x43   :  { %18234 = shalt.err (!%p18231_p3)
}
  0x44   :  { %s18361_s6 = smov 384   ;;  %s18362_s10 = smov 24  }
  0x45   :  { %33 = dma.hbm_to_vmem [thread:$0]  %s19723_s1, 7680, %s18449_s15, [#allocation4], %s18361_s6, %s18361_s6, %s18362_s10  }
  0x46   :  { %s18363_s14 = smov [#allocation8]   ;;  %s18235_s19 = scalar_lea.hbm %s19725_s3, 117760 }
  0x47   :  { %s49_s16 = sshll.u32 %s18363_s14, 4  ;;  %p18236_p4 = scmp.ne.s32.totalorder %s19725_s3, %s18235_s19  ;;  %s50_s16 = int_to_ptr.vmem [resolvable:$true] %s49_s16 }
  0x48   :  { %p18239_p5 = scmp.lt.u32.totalorder %s18235_s19, %s19725_s3 }
  0x4a   :  { %p18241_p6 = pnand %p18239_p5, %p18236_p4 }
  0x4c   :  { %18244 = shalt.err (!%p18241_p6)
}
  0x4d   :  { %s18245_s12 = scalar_lea.vmem %s50_s16, 117760  ;;  %p18250_p8 = scmp.lt.s32.totalorder %s50_s16, %s50_s16 }
  0x4e   :  { %p18246_p7 = scmp.ne.s32.totalorder %s50_s16, %s18245_s12  ;;  %p18251_p9 = scmp.lt.s32.totalorder %s18245_s12, %s18245_s12 }
  0x50   :  { %p18252_p10 = por %p18251_p9, %p18250_p8 }
  0x52   :  { %p18253_p11 = pnand %p18252_p10, %p18246_p7 }
  0x54   :  { %18256 = shalt.err (!%p18253_p11)
}
  0x55   :  { %s18364_s1 = smov 256   ;;  %s18365_s15 = smov 16  }
  0x56   :  { %55 = dma.hbm_to_vmem [thread:$0]  %s19725_s3, 117760, %s50_s16, [#allocation7], %s18364_s1, %s18364_s1, %s18365_s15  }
  0x57   :  { %s18366_s25 = smov [#allocation11]   ;;  %s18367_s27 = smov [#allocation14]  }
  0x58   :  { %s71_s26 = sshll.u32 %s18366_s25, 4  ;;  %s93_s28 = sshll.u32 %s18367_s27, 4  ;;  %s72_s26 = int_to_ptr.vmem [resolvable:$true] %s71_s26  ;;  %s94_s28 = int_to_ptr.vmem [resolvable:$true] %s93_s28 }
  0x59   :  { %s18257_s2 = scalar_lea.hbm %s19727_s5, 57344 }
  0x5a   :  { %p18258_p12 = scmp.ne.s32.totalorder %s19727_s5, %s18257_s2  ;;  %p18261_p13 = scmp.lt.u32.totalorder %s18257_s2, %s19727_s5 }
  0x5c   :  { %p18263_p0 = pnand %p18261_p13, %p18258_p12 }
  0x5e   :  { %18266 = shalt.err (!%p18263_p0)
}
  0x5f   :  { %s18267_s3 = scalar_lea.vmem %s72_s26, 57344  ;;  %p18272_p2 = scmp.lt.s32.totalorder %s72_s26, %s72_s26 }
  0x60   :  { %p18268_p1 = scmp.ne.s32.totalorder %s72_s26, %s18267_s3  ;;  %p18273_p3 = scmp.lt.s32.totalorder %s18267_s3, %s18267_s3 }
  0x62   :  { %p18274_p4 = por %p18273_p3, %p18272_p2 }
  0x64   :  { %p18275_p5 = pnand %p18274_p4, %p18268_p1 }
  0x66   :  { %18278 = shalt.err (!%p18275_p5)
}
  0x67   :  { %77 = dma.hbm_to_vmem [thread:$0]  %s19727_s5, 57344, %s72_s26, [#allocation10], %s18364_s1, %s18364_s1, %s18365_s15  }
  0x68   :  { %s18279_s19 = scalar_lea.hbm %s19729_s7, 4096 }
  0x69   :  { %p18280_p6 = scmp.ne.s32.totalorder %s19729_s7, %s18279_s19  ;;  %p18283_p7 = scmp.lt.u32.totalorder %s18279_s19, %s19729_s7 }
  0x6b   :  { %p18285_p8 = pnand %p18283_p7, %p18280_p6 }
  0x6d   :  { %18288 = shalt.err (!%p18285_p8)
}
  0x6e   :  { %s18289_s12 = scalar_lea.vmem %s94_s28, 4096  ;;  %p18294_p10 = scmp.lt.s32.totalorder %s94_s28, %s94_s28 }
  0x6f   :  { %p18290_p9 = scmp.ne.s32.totalorder %s94_s28, %s18289_s12  ;;  %p18295_p11 = scmp.lt.s32.totalorder %s18289_s12, %s18289_s12 }
  0x71   :  { %p18296_p12 = por %p18295_p11, %p18294_p10 }
  0x73   :  { %p18297_p13 = pnand %p18296_p12, %p18290_p9 }
  0x75   :  { %18300 = shalt.err (!%p18297_p13)
}
  0x76   :  { %s18368_s5 = smov 64   ;;  %s18369_s1 = smov 4  }
  0x77   :  { %99 = dma.hbm_to_vmem [thread:$0]  %s19729_s7, 4096, %s94_s28, [#allocation13], %s18368_s5, %s18368_s5, %s18369_s1  }
  0x78   :  { %s18370_s24 = smov [#allocation15]   ;;  %s18301_s29 = scalar_lea.hbm %s19730_s8, 16 }
  0x79   :  { %s106_s25 = sshll.u32 %s18370_s24, 4  ;;  %p18302_p0 = scmp.ne.s32.totalorder %s19730_s8, %s18301_s29  ;;  %s107_s25 = int_to_ptr.vmem [resolvable:$true] %s106_s25 }
  0x7a   :  { %p18305_p1 = scmp.lt.u32.totalorder %s18301_s29, %s19730_s8 }
  0x7c   :  { %p18307_p2 = pnand %p18305_p1, %p18302_p0 }
  0x7e   :  { %18310 = shalt.err (!%p18307_p2)
}
  0x7f   :  { %s18311_s11 = scalar_lea.vmem %s107_s25, 16  ;;  %s18315_s7 = scalar_lea.vmem %s107_s25, 32 }
  0x80   :  { %p18312_p3 = scmp.ne.s32.totalorder %s107_s25, %s18311_s11  ;;  %p18316_p4 = scmp.lt.s32.totalorder %s107_s25, %s107_s25 }
  0x81   :  { %p18317_p5 = scmp.lt.s32.totalorder %s18315_s7, %s18311_s11 }
  0x83   :  { %p18318_p6 = por %p18317_p5, %p18316_p4 }
  0x85   :  { %p18319_p7 = pnand %p18318_p6, %p18312_p3 }
  0x87   :  { %18322 = shalt.err (!%p18319_p7)
}
  0x88   :  { %109 = dma.hbm_to_vmem [thread:$0]  %s19730_s8, 16, %s107_s25, [#allocation16]  }
  0x89   :  { %18345 = dma.done.wait [#allocation4], 7680  }
  0x8a   :  { %18346 = vsyncadd [#allocation4], 4294959616 }
  0x8b   :  { %18347 = dma.done.wait [#allocation7], 117856  }
  0x8c   :  { %18348 = vsyncadd [#allocation7], 4294849440 }
  0x8d   :  { %18349 = dma.done.wait [#allocation10], 57408  }
  0x8e   :  { %18350 = vsyncadd [#allocation10], 4294909888 }
  0x8f   :  { %18351 = dma.done.wait [#allocation13], 4160  }
  0x90   :  { %18352 = vsyncadd [#allocation13], 4294963136 }
  0x91   :  { %18353 = dma.done.wait [#allocation16], 16  }
  0x92   :  { %18354 = vsyncadd [#allocation16], 4294967280  ;;  %v18371_v0 = vmov 0   ;;  %v15973_v1 = vld [vmem:[#allocation3 + $0x64] ss:$24 sps:$4 sm:$0xff]   ;;  %vm267_vm0 = vcmask 1045504  }
  0x93   :  { %318 = vmatprep.mubr.bf16.mxu0 %v18371_v0  ;;  %381 = vmatprep.mubr.bf16.mxu1 %v18371_v0  ;;  %v15975_v2 = vld [vmem:[#allocation3 + $0x6c] ss:$24 sps:$4 sm:$0xff]   ;;  %v15977_v3 = vld [vmem:[#allocation3 + $0x60] ss:$24 sps:$4 sm:$0xff]   ;;  %v18547_v11 = vld [vmem:[%s19722_s0 + $0x10] sm:$0xff]  ;;  %vm166_vm1 = vcmask 1046528  }
  0x94   :  { %286 = vmatprep.subr.bf16.mxu0 %v15973_v1  ;;  %v15978_v4 = vld [vmem:[#allocation3 + $0x68] ss:$24 sps:$4 sm:$0xff]   ;;  %349 = vmatprep.subr.bf16.mxu1 %v15975_v2  ;;  %v15979_v5 = vld [vmem:[#allocation3 + $0x94] ss:$24 sps:$4 sm:$0x3f]   ;;  %vm257_vm2 = vcmask 228352  }
  0x95   :  { %287 = vmatpush1.bf16.msra.mxu0 %v15977_v3  ;;  %350 = vmatpush1.bf16.msra.mxu1 %v15978_v4  ;;  %v15981_v6 = vld [vmem:[#allocation3 + $0x9c] ss:$24 sps:$4 sm:$0x3f]   ;;  %v18535_v7 = vld [vmem:[%s19722_s0] sm:$0xff]  ;;  %v18542_v10 = vld [vmem:[%s19722_s0 + $0x8] sm:$0xff]  ;;  %v170_v16 = vrot.slane %v18547_v11, 1 }
  0x96   :  { %14128 = vmatprep.subr.msk.bf16.mxu0 %vm267_vm0, %v15979_v5  ;;  %v15983_v8 = vld [vmem:[#allocation3 + $0x90] ss:$24 sps:$4 sm:$0x3f]   ;;  %14132 = vmatprep.subr.msk.bf16.mxu1 %vm267_vm0, %v15981_v6  ;;  %v167_v12 = vrot.slane %v18535_v7, 1  ;;  %v168_v15 = vrot.slane %v18542_v10, 1  ;;  %v18557_v17 = vld [vmem:[%s19722_s0 + $0x20] sm:$0xff]  ;;  %v18636_v62 = vpack.c.bf16 %v18542_v10, %v18535_v7 }
  0x97   :  { %v15984_v9 = vld [vmem:[#allocation3 + $0x98] ss:$24 sps:$4 sm:$0x3f]   ;;  %v269_v13 = vsel %vm267_vm0, %v15983_v8, 0  ;;  %v15987_v19 = vld [vmem:[#allocation3 + $0x74] ss:$24 sps:$4 sm:$0xff]  }
  0x98   :  { %v275_v14 = vsel %vm267_vm0, %v15984_v9, 0  ;;  %v15985_v18 = vld [vmem:[#allocation3 + $0x70] ss:$24 sps:$4 sm:$0xff]   ;;  %v18562_v20 = vld [vmem:[%s19722_s0 + $0x18] sm:$0xf]  ;;  %v169_v21 = vsel %vm166_vm1, %v167_v12, %v168_v15  ;;  %v171_v22 = vsel %vm166_vm1, %v168_v15, %v170_v16  ;;  %v174_v25 = vrot.slane %v18557_v17, 1 }
  0x99   :  { %289 = vmatpush1.bf16.msra.mxu0 %v269_v13  ;;  %352 = vmatpush1.bf16.msra.mxu1 %v275_v14  ;;  %v18569_v23 = vld [vmem:[%s19722_s0 + $0x28] sm:$0xff]  ;;  %v172_v24 = vrot.slane %v18562_v20, 1  ;;  %v18573_v26 = vpack.c.bf16 %v171_v22, %v169_v21  ;;  %v15988_v28 = vld [vmem:[#allocation3 + $0xa4] ss:$24 sps:$4 sm:$0x3f]   ;;  %v18583_v30 = vld [vmem:[%s19722_s0 + $0x30] sm:$0xff] }
  0x9a   :  { %412 = vmatprep.subr.bf16.mxu0 %v15987_v19  ;;  %v175_v27 = vrot.slane %v18569_v23, 1  ;;  %v15990_v29 = vld [vmem:[#allocation3 + $0xa0] ss:$24 sps:$4 sm:$0x3f]   ;;  %v15993_v32 = vld [vmem:[#allocation3 + $0xc] ss:$24 sps:$4 sm:$0xff]  }
  0x9b   :  { %v15991_v31 = vld [vmem:[#allocation3 + $0x8] ss:$24 sps:$4 sm:$0xff]   ;;  %v173_v33 = vsel %vm166_vm1, %v170_v16, %v172_v24  ;;  %v281_v35 = vsel %vm267_vm0, %v15990_v29, 0  ;;  %v18594_v36 = vld [vmem:[%s19722_s0 + $0x38] sm:$0xf]  ;;  %619 = vmatprep.subr.bf16.mxu1 %v15993_v32  ;;  %v177_v41 = vrot.slane %v18583_v30, 1 }
  0x9c   :  { %14129 = vmatmul.mubr.msk.bf16.vlgmr.msra.gmra.mrb[0].mxu0 %vm257_vm2, %v18573_v26  ;;  %14133 = vmatmul.mubr.msk.bf16.vlgmr.msra.gmra.mrb[0].mxu1 %vm257_vm2, %v18573_v26  ;;  %v176_v34 = vsel %vm166_vm1, %v174_v25, %v175_v27  ;;  %v15994_v37 = vld [vmem:[#allocation3 + $0x3c] ss:$24 sps:$4 sm:$0x3f]   ;;  %v15996_v38 = vld [vmem:[#allocation3 + $0x38] ss:$24 sps:$4 sm:$0x3f]  }
  0x9d   :  { %413 = vmatpush1.bf16.msra.mxu0 %v15985_v18  ;;  %328 = vmatprep.mubr.bf16.mxu0 %v18371_v0  ;;  %v15999_v39 = vld [vmem:[#allocation3 + $0x4] ss:$24 sps:$4 sm:$0xff]   ;;  %v18596_v40 = vpack.c.bf16 %v176_v34, %v173_v33  ;;  %v179_v42 = vrot.slane %v18594_v36, 1  ;;  %v545_v44 = vsel %vm267_vm0, %v15996_v38, 0  ;;  %v178_v45 = vsel %vm166_vm1, %v175_v27, %v177_v41  ;;  %v15997_v4 = vld [vmem:[#allocation3] ss:$24 sps:$4 sm:$0xff]  }
  0x9e   :  { %391 = vmatprep.mubr.bf16.mxu1 %v18371_v0  ;;  %14136 = vmatprep.subr.msk.bf16.mxu0 %vm267_vm0, %v15988_v28  ;;  %v16005_v43 = vld [vmem:[#allocation3 + $0xcc] ss:$24 sps:$4 sm:$0xff]   ;;  %v1088_v47 = vrot.slane %v18535_v7, 3  ;;  %vm1087_vm3 = vcmask 1044480   ;;  %v1089_v49 = vrot.slane %v18542_v10, 3  ;;  %v1091_v50 = vrot.slane %v18547_v11, 3 }
  0x9f   :  { %620 = vmatpush1.bf16.msra.mxu1 %v15991_v31  ;;  %v180_v46 = vsel %vm166_vm1, %v177_v41, %v179_v42  ;;  %v1093_v53 = vrot.slane %v18562_v20, 3  ;;  %v1095_v55 = vrot.slane %v18557_v17, 3  ;;  %v1096_v56 = vrot.slane %v18569_v23, 3  ;;  %v16000_v63 = vld [vmem:[#allocation3 + $0x34] ss:$24 sps:$4 sm:$0x3f]  }
  0xa0   :  { %14156 = vmatprep.subr.msk.bf16.mxu1 %vm267_vm0, %v15994_v37  ;;  %v18611_v48 = vpack.c.bf16 %v180_v46, %v178_v45  ;;  %v1090_v51 = vsel %vm1087_vm3, %v1088_v47, %v1089_v49  ;;  %v1092_v52 = vsel %vm1087_vm3, %v1089_v49, %v1091_v50  ;;  %v1098_v59 = vrot.slane %v18583_v30, 3  ;;  %v16002_v1 = vld [vmem:[#allocation3 + $0x30] ss:$24 sps:$4 sm:$0x3f]   ;;  %v16011_v31 = vld [vmem:[#allocation3 + $0x14] ss:$24 sps:$4 sm:$0xff]  }
  0xa1   :  { %415 = vmatpush1.bf16.msra.mxu0 %v281_v35  ;;  %v18622_v54 = vpack.c.bf16 %v1092_v52, %v1090_v51  ;;  %v1094_v57 = vsel %vm1087_vm3, %v1091_v50, %v1093_v53  ;;  %v1097_v58 = vsel %vm1087_vm3, %v1095_v55, %v1096_v56  ;;  %v1100_v60 = vrot.slane %v18594_v36, 3  ;;  %v16003_v9 = vld [vmem:[#allocation3 + $0xc8] ss:$24 sps:$4 sm:$0xff]   ;;  %v16006_v21 = vld [vmem:[#allocation3 + $0xfc] ss:$24 sps:$4 sm:$0x3f]  }
  0xa2   :  { %556 = vmatprep.subr.bf16.mxu0 %v15999_v39  ;;  %v18632_v61 = vpack.c.bf16 %v1097_v58, %v1094_v57  ;;  %vm1430_vm4 = vcmask 1043456   ;;  %v1099_v2 = vsel %vm1087_vm3, %v1096_v56, %v1098_v59  ;;  %v1431_v6 = vrot.slane %v18535_v7, 4  ;;  %v16008_v22 = vld [vmem:[#allocation3 + $0xf8] ss:$24 sps:$4 sm:$0x3f]   ;;  %s18372_s0 = smov 96  }
  0xa3   :  { %622 = vmatpush1.bf16.msra.mxu1 %v545_v44  ;;  %v1101_v3 = vsel %vm1087_vm3, %v1098_v59, %v1100_v60  ;;  %v1432_v8 = vrot.slane %v18542_v10, 4  ;;  %v1434_v12 = vrot.slane %v18547_v11, 4  ;;  %v1436_v13 = vrot.slane %v18562_v20, 4  ;;  %v16017_v38 = vld [vmem:[#allocation3 + $0x12c] ss:$24 sps:$4 sm:$0xff]  }
  0xa4   :  { %14130 = vmatmul.mubr.msk.bf16.gmra.mrb[4].mxu0 %vm257_vm2, %v18596_v40  ;;  %14134 = vmatmul.mubr.msk.bf16.gmra.mrb[4].mxu1 %vm257_vm2, %v18596_v40  ;;  %v18640_v5 = vpack.c.bf16 %v1101_v3, %v1099_v2  ;;  %v1438_v14 = vrot.slane %v18557_v17, 4  ;;  %v1439_v16 = vrot.slane %v18569_v23, 4  ;;  %v1441_v18 = vrot.slane %v18583_v30, 4  ;;  %v16009_v45 = vld [vmem:[#allocation3 + $0x10] ss:$24 sps:$4 sm:$0xff]  }
  0xa5   :  { %338 = vmatprep.mubr.bf16.mxu0 %v18371_v0  ;;  %401 = vmatprep.mubr.bf16.mxu1 %v18371_v0  ;;  %v1433_v15 = vsel %vm1430_vm4, %v1431_v6, %v1432_v8  ;;  %v1443_v19 = vrot.slane %v18594_v36, 4  ;;  %v1435_v24 = vsel %vm1430_vm4, %v1432_v8, %v1434_v12  ;;  %v1437_v25 = vsel %vm1430_vm4, %v1434_v12, %v1436_v13  ;;  %v16014_v46 = vld [vmem:[#allocation3 + $0x40] ss:$24 sps:$4 sm:$0x3f]   ;;  %v16023_v52 = vld [vmem:[#allocation3 + $0xc4] ss:$24 sps:$4 sm:$0xff]  }
  0xa6   :  { %925 = vmatprep.subr.bf16.mxu1 %v16005_v43  ;;  %v18658_v27 = vpack.c.bf16 %v1435_v24, %v1433_v15  ;;  %v1440_v28 = vsel %vm1430_vm4, %v1438_v14, %v1439_v16  ;;  %v1442_v29 = vsel %vm1430_vm4, %v1439_v16, %v1441_v18  ;;  %v18672_v35 = vpack.c.bf16 %v18557_v17, %v18547_v11  ;;  %v16015_v49 = vld [vmem:[#allocation3 + $0x128] ss:$24 sps:$4 sm:$0xff]   ;;  %v16018_v50 = vld [vmem:[#allocation3 + $0x15c] ss:$24 sps:$4 sm:$0x3f]  }
  0xa7   :  { %v18665_v32 = vpack.c.bf16 %v1440_v28, %v1437_v25  ;;  %v1444_v33 = vsel %vm1430_vm4, %v1441_v18, %v1443_v19  ;;  %v851_v37 = vsel %vm267_vm0, %v16008_v22, 0  ;;  %v18684_v39 = vpack.c.bf16 %v18583_v30, %v18569_v23  ;;  %v16020_v51 = vld [vmem:[#allocation3 + $0x158] ss:$24 sps:$4 sm:$0x3f]   ;;  %v16029_v56 = vld [vmem:[#allocation3 + $0x18c] ss:$24 sps:$4 sm:$0xff]  }
  0xa8   :  { %v18668_v34 = vpack.c.bf16 %v1444_v33, %v1442_v29  ;;  %v745_v41 = vrot.slane %v18535_v7, 2  ;;  %v746_v42 = vrot.slane %v18542_v10, 2  ;;  %v748_v43 = vrot.slane %v18547_v11, 2  ;;  %v16012_v10 = vld [vmem:[#allocation3 + $0x44] ss:$24 sps:$4 sm:$0x3f]  }
  0xa9   :  { %v750_v11 = vrot.slane %v18562_v20, 2  ;;  %v752_v47 = vrot.slane %v18557_v17, 2  ;;  %v551_v17 = vsel %vm267_vm0, %v16014_v46, 0  ;;  %v1194_v55 = vsel %vm267_vm0, %v16020_v51, 0  ;;  %v16027_v2 = vld [vmem:[#allocation3 + $0x188] ss:$24 sps:$4 sm:$0xff]  }
  0xaa   :  { %v749_v44 = vsel %vm267_vm0, %v746_v42, %v748_v43  ;;  %v755_v57 = vrot.slane %v18583_v30, 2  ;;  %v757_v58 = vrot.slane %v18594_v36, 2  ;;  %v16021_v36 = vld [vmem:[#allocation3 + $0xc0] ss:$24 sps:$4 sm:$0xff]   ;;  %v16035_v6 = vld [vmem:[#allocation3 + $0xd4] ss:$24 sps:$4 sm:$0xff]  }
  0xab   :  { %v751_v53 = vsel %vm267_vm0, %v748_v43, %v750_v11  ;;  %v16030_v3 = vld [vmem:[#allocation3 + $0x1bc] ss:$24 sps:$4 sm:$0x3f]   ;;  %v16038_v13 = vld [vmem:[#allocation3 + $0x100] ss:$24 sps:$4 sm:$0x3f]  }
  0xac   :  { %14131 = vmatmul.mubr.msk.bf16.gmra.mrb[8].mxu0 %vm257_vm2, %v18611_v48  ;;  %14135 = vmatmul.mubr.msk.bf16.gmra.mrb[8].mxu1 %vm257_vm2, %v18611_v48  ;;  %v758_v60 = vsel %vm267_vm0, %v755_v57, %v757_v58  ;;  %v16036_v12 = vld [vmem:[#allocation3 + $0x104] ss:$24 sps:$4 sm:$0x3f]   ;;  %v857_v15 = vsel %vm267_vm0, %v16038_v13, 0  ;;  %v16039_v16 = vld [vmem:[#allocation3 + $0x120] ss:$24 sps:$4 sm:$0xff]  }
  0xad   :  { %444 = vmatprep.mubr.bf16.mxu0 %v18371_v0  ;;  %651 = vmatprep.mubr.bf16.mxu1 %v18371_v0  ;;  %v16041_v14 = vld [vmem:[#allocation3 + $0x124] ss:$24 sps:$4 sm:$0xff]   ;;  %v16042_v18 = vld [vmem:[#allocation3 + $0x154] ss:$24 sps:$4 sm:$0x3f]   ;;  %vm1858_vm5 = vcmask 785408  }
  0xae   :  { %v16044_v19 = vld [vmem:[#allocation3 + $0x150] ss:$24 sps:$4 sm:$0x3f]   ;;  %v16048_v25 = vld [vmem:[#allocation3 + $0x164] ss:$24 sps:$4 sm:$0x3f]  }
  0xaf   :  { %v1188_v22 = vsel %vm267_vm0, %v16044_v19, 0  ;;  %v16045_v24 = vld [vmem:[#allocation3 + $0x130] ss:$24 sps:$4 sm:$0xff]   ;;  %v16050_v28 = vld [vmem:[#allocation3 + $0x160] ss:$24 sps:$4 sm:$0x3f]  }
  0xb0   :  { %v16053_v29 = vld [vmem:[#allocation3 + $0x184] ss:$24 sps:$4 sm:$0xff]   ;;  %v16054_v33 = vld [vmem:[#allocation3 + $0x1b4] ss:$24 sps:$4 sm:$0x3f]   ;;  %vm10195_vm7 = vcmask 523264  }
  0xb1   :  { %vm10506_vm8 = vcmask 1041409  }
  0xb4   :  { %14137 = vmatmul.mubr.msk.bf16.vlgmr.msra.gmra.mrb[12].mxu0 %vm257_vm2, %v18573_v26  ;;  %14157 = vmatmul.mubr.msk.bf16.vlgmr.msra.gmra.mrb[0].mxu1 %vm257_vm2, %v18636_v62  ;;  %v539_v26 = vsel %vm267_vm0, %v16002_v1, 0  ;;  %v16026_v1 = vld [vmem:[#allocation3 + $0xf0] ss:$24 sps:$4 sm:$0x3f]  }
  0xb5   :  { %557 = vmatpush1.bf16.msra.mxu0 %v15997_v4  ;;  %454 = vmatprep.mubr.bf16.mxu0 %v18371_v0  ;;  %v16032_v4 = vld [vmem:[#allocation3 + $0x1b8] ss:$24 sps:$4 sm:$0x3f]   ;;  %v845_v8 = vsel %vm267_vm0, %v16026_v1, 0 }
  0xb6   :  { %661 = vmatprep.mubr.bf16.mxu1 %v18371_v0  ;;  %14152 = vmatprep.subr.msk.bf16.mxu0 %vm267_vm0, %v16000_v63  ;;  %v16024_v63 = vld [vmem:[#allocation3 + $0xf4] ss:$24 sps:$4 sm:$0x3f]  }
  0xb7   :  { %926 = vmatpush1.bf16.msra.mxu1 %v16003_v9  ;;  %v1537_v9 = vsel %vm267_vm0, %v16032_v4, 0 }
  0xb8   :  { %14180 = vmatprep.subr.msk.bf16.mxu1 %vm267_vm0, %v16006_v21  ;;  %v16047_v21 = vld [vmem:[#allocation3 + $0x134] ss:$24 sps:$4 sm:$0xff]  }
  0xb9   :  { %559 = vmatpush1.bf16.msra.mxu0 %v539_v26  ;;  %v1200_v26 = vsel %vm267_vm0, %v16050_v28, 0 }
  0xba   :  { %682 = vmatprep.subr.bf16.mxu0 %v16011_v31  ;;  %v16051_v31 = vld [vmem:[#allocation3 + $0x180] ss:$24 sps:$4 sm:$0xff]  }
  0xbb   :  { %928 = vmatpush1.bf16.msra.mxu1 %v851_v37  ;;  %v16059_v37 = vld [vmem:[#allocation3 + $0x194] ss:$24 sps:$4 sm:$0xff]  }
  0xbc   :  { %14138 = vmatmul.mubr.msk.bf16.gmra.mrb[16].mxu0 %vm257_vm2, %v18596_v40  ;;  %14158 = vmatmul.mubr.msk.bf16.gmra.mrb[4].mxu1 %vm257_vm2, %v18672_v35  ;;  %v747_v40 = vsel %vm267_vm0, %v745_v41, %v746_v42  ;;  %v16062_v41 = vld [vmem:[#allocation3 + $0x1c0] ss:$24 sps:$4 sm:$0x3f]  }
  0xbd   :  { %464 = vmatprep.mubr.bf16.mxu0 %v18371_v0  ;;  %671 = vmatprep.mubr.bf16.mxu1 %v18371_v0  ;;  %v18697_v7 = vpack.c.bf16 %v749_v44, %v747_v40 }
  0xbe   :  { %1268 = vmatprep.subr.bf16.mxu1 %v16017_v38 }
  0xc4   :  { %14139 = vmatmul.mubr.msk.bf16.gmra.mrb[20].mxu0 %vm257_vm2, %v18611_v48  ;;  %14159 = vmatmul.mubr.msk.bf16.gmra.mrb[8].mxu1 %vm257_vm2, %v18684_v39  ;;  %v753_v48 = vrot.slane %v18569_v23, 2 }
  0xc5   :  { %588 = vmatprep.mubr.bf16.mxu0 %v18371_v0  ;;  %957 = vmatprep.mubr.bf16.mxu1 %v18371_v0 }
  0xc6   :  { %v754_v20 = vsel %vm267_vm0, %v752_v47, %v753_v48  ;;  %v756_v59 = vsel %vm267_vm0, %v753_v48, %v755_v57 }
  0xc7   :  { %v18712_v23 = vpack.c.bf16 %v754_v20, %v751_v53  ;;  %v18726_v30 = vpack.c.bf16 %v758_v60, %v756_v59 }
  0xcc   :  { %14153 = vmatmul.mubr.msk.bf16.vlgmr.msra.gmra.mrb[0].mxu0 %vm257_vm2, %v18636_v62  ;;  %14181 = vmatmul.mubr.msk.bf16.vlgmr.msra.gmra.mrb[0].mxu1 %vm257_vm2, %v18697_v7 }
  0xcd   :  { %683 = vmatpush1.bf16.msra.mxu0 %v16009_v45  ;;  %598 = vmatprep.mubr.bf16.mxu0 %v18371_v0 }
  0xce   :  { %967 = vmatprep.mubr.bf16.mxu1 %v18371_v0  ;;  %14160 = vmatprep.subr.msk.bf16.mxu0 %vm267_vm0, %v16012_v10 }
  0xcf   :  { %1269 = vmatpush1.bf16.msra.mxu1 %v16015_v49 }
  0xd0   :  { %14204 = vmatprep.subr.msk.bf16.mxu1 %vm267_vm0, %v16018_v50 }
  0xd1   :  { %685 = vmatpush1.bf16.msra.mxu0 %v551_v17 }
  0xd2   :  { %862 = vmatprep.subr.bf16.mxu0 %v16023_v52 }
  0xd3   :  { %1271 = vmatpush1.bf16.msra.mxu1 %v1194_v55 }
  0xd4   :  { %14154 = vmatmul.mubr.msk.bf16.gmra.mrb[4].mxu0 %vm257_vm2, %v18672_v35  ;;  %14182 = vmatmul.mubr.msk.bf16.gmra.mrb[4].mxu1 %vm257_vm2, %v18712_v23 }
  0xd5   :  { %608 = vmatprep.mubr.bf16.mxu0 %v18371_v0  ;;  %977 = vmatprep.mubr.bf16.mxu1 %v18371_v0 }
  0xd6   :  { %1611 = vmatprep.subr.bf16.mxu1 %v16029_v56 }
  0xdc   :  { %14155 = vmatmul.mubr.msk.bf16.gmra.mrb[8].mxu0 %vm257_vm2, %v18684_v39  ;;  %14183 = vmatmul.mubr.msk.bf16.gmra.mrb[8].mxu1 %vm257_vm2, %v18726_v30 }
  0xdd   :  { %714 = vmatprep.mubr.bf16.mxu0 %v18371_v0  ;;  %1300 = vmatprep.mubr.bf16.mxu1 %v18371_v0 }
  0xe4   :  { %14161 = vmatmul.mubr.msk.bf16.vlgmr.msra.gmra.mrb[12].mxu0 %vm257_vm2, %v18636_v62  ;;  %14205 = vmatmul.mubr.msk.bf16.vlgmr.msra.gmra.mrb[0].mxu1 %vm257_vm2, %v18622_v54  ;;  %v16033_v62 = vld [vmem:[#allocation3 + $0xd0] ss:$24 sps:$4 sm:$0xff]  }
  0xe5   :  { %863 = vmatpush1.bf16.msra.mxu0 %v16021_v36  ;;  %724 = vmatprep.mubr.bf16.mxu0 %v18371_v0 }
  0xe6   :  { %1310 = vmatprep.mubr.bf16.mxu1 %v18371_v0  ;;  %14176 = vmatprep.subr.msk.bf16.mxu0 %vm267_vm0, %v16024_v63 }
  0xe7   :  { %1612 = vmatpush1.bf16.msra.mxu1 %v16027_v2 }
  0xe8   :  { %14228 = vmatprep.subr.msk.bf16.mxu1 %vm267_vm0, %v16030_v3 }
  0xe9   :  { %865 = vmatpush1.bf16.msra.mxu0 %v845_v8 }
  0xea   :  { %988 = vmatprep.subr.bf16.mxu0 %v16035_v6 }
  0xeb   :  { %1614 = vmatpush1.bf16.msra.mxu1 %v1537_v9 }
  0xec   :  { %14162 = vmatmul.mubr.msk.bf16.gmra.mrb[16].mxu0 %vm257_vm2, %v18672_v35  ;;  %14206 = vmatmul.mubr.msk.bf16.gmra.mrb[4].mxu1 %vm257_vm2, %v18632_v61  ;;  %v16056_v35 = vld [vmem:[#allocation3 + $0x1b0] ss:$24 sps:$4 sm:$0x3f]  }
  0xed   :  { %734 = vmatprep.mubr.bf16.mxu0 %v18371_v0  ;;  %1320 = vmatprep.mubr.bf16.mxu1 %v18371_v0  ;;  %v1531_v38 = vsel %vm267_vm0, %v16056_v35, 0 }
  0xf4   :  { %14163 = vmatmul.mubr.msk.bf16.gmra.mrb[20].mxu0 %vm257_vm2, %v18684_v39  ;;  %14207 = vmatmul.mubr.msk.bf16.gmra.mrb[8].mxu1 %vm257_vm2, %v18640_v5  ;;  %v16060_v39 = vld [vmem:[#allocation3 + $0x1c4] ss:$24 sps:$4 sm:$0x3f]  }
  0xf5   :  { %894 = vmatprep.mubr.bf16.mxu0 %v18371_v0  ;;  %1643 = vmatprep.mubr.bf16.mxu1 %v18371_v0 }
  0xfc   :  { %14177 = vmatmul.mubr.msk.bf16.vlgmr.msra.gmra.mrb[0].mxu0 %vm257_vm2, %v18697_v7  ;;  %14229 = vmatmul.mubr.msk.bf16.vlgmr.msra.gmra.mrb[0].mxu1 %vm257_vm2, %v18658_v27 }
  0xfd   :  { %989 = vmatpush1.bf16.msra.mxu0 %v16033_v62  ;;  %904 = vmatprep.mubr.bf16.mxu0 %v18371_v0 }
  0xfe   :  { %1653 = vmatprep.mubr.bf16.mxu1 %v18371_v0  ;;  %14184 = vmatprep.subr.msk.bf16.mxu0 %vm267_vm0, %v16036_v12 }
 0x101   :  { %991 = vmatpush1.bf16.msra.mxu0 %v857_v15 }
 0x102   :  { %1205 = vmatprep.subr.bf16.mxu0 %v16041_v14 }
 0x104   :  { %14178 = vmatmul.mubr.msk.bf16.gmra.mrb[4].mxu0 %vm257_vm2, %v18712_v23  ;;  %14230 = vmatmul.mubr.msk.bf16.gmra.mrb[4].mxu1 %vm257_vm2, %v18665_v32 }
 0x105   :  { %914 = vmatprep.mubr.bf16.mxu0 %v18371_v0  ;;  %1663 = vmatprep.mubr.bf16.mxu1 %v18371_v0 }
 0x10c   :  { %14179 = vmatmul.mubr.msk.bf16.gmra.mrb[8].mxu0 %vm257_vm2, %v18726_v30  ;;  %14231 = vmatmul.mubr.msk.bf16.gmra.mrb[8].mxu1 %vm257_vm2, %v18668_v34 }
 0x10d   :  { %1020 = vmatprep.mubr.bf16.mxu0 %v18371_v0 }
 0x114   :  { %14185 = vmatmul.mubr.msk.bf16.vlgmr.msra.gmra.mrb[12].mxu0 %vm257_vm2, %v18697_v7 }
 0x115   :  { %1206 = vmatpush1.bf16.msra.mxu0 %v16039_v16  ;;  %1030 = vmatprep.mubr.bf16.mxu0 %v18371_v0 }
 0x116   :  { %14200 = vmatprep.subr.msk.bf16.mxu0 %vm267_vm0, %v16042_v18 }
 0x119   :  { %1208 = vmatpush1.bf16.msra.mxu0 %v1188_v22  ;;  %v16065_v22 = vld [vmem:[#allocation8 + $0x5c4] ss:$16 sps:$4 sm:$0xff]  }
 0x11a   :  { %1331 = vmatprep.subr.bf16.mxu0 %v16047_v21  ;;  %4271 = vmatprep.subr.bf16.mxu1 %v16065_v22 }
 0x11c   :  { %14186 = vmatmul.mubr.msk.bf16.gmra.mrb[16].mxu0 %vm257_vm2, %v18712_v23 }
 0x11d   :  { %1040 = vmatprep.mubr.bf16.mxu0 %v18371_v0 }
 0x124   :  { %14187 = vmatmul.mubr.msk.bf16.gmra.mrb[20].mxu0 %vm257_vm2, %v18726_v30 }
 0x125   :  { %1237 = vmatprep.mubr.bf16.mxu0 %v18371_v0 }
 0x12c   :  { %14201 = vmatmul.mubr.msk.bf16.vlgmr.msra.gmra.mrb[0].mxu0 %vm257_vm2, %v18622_v54 }
 0x12d   :  { %1332 = vmatpush1.bf16.msra.mxu0 %v16045_v24  ;;  %1247 = vmatprep.mubr.bf16.mxu0 %v18371_v0  ;;  %v16068_v24 = vld [vmem:[#allocation8 + $0x5cc] ss:$16 sps:$4 sm:$0xff]  }
 0x12e   :  { %14208 = vmatprep.subr.msk.bf16.mxu0 %vm267_vm0, %v16048_v25 }
 0x131   :  { %1334 = vmatpush1.bf16.msra.mxu0 %v1200_v26  ;;  %v16066_v26 = vld [vmem:[#allocation8 + $0x5c8] ss:$16 sps:$4 sm:$0xff]  }
 0x132   :  { %1548 = vmatprep.subr.bf16.mxu0 %v16053_v29  ;;  %v16063_v29 = vld [vmem:[#allocation8 + $0x5c0] ss:$16 sps:$4 sm:$0xff]  }
 0x133   :  { %4272 = vmatpush1.bf16.msra.mxu1 %v16063_v29 }
 0x134   :  { %14202 = vmatmul.mubr.msk.bf16.gmra.mrb[4].mxu0 %vm257_vm2, %v18632_v61 }
 0x135   :  { %1257 = vmatprep.mubr.bf16.mxu0 %v18371_v0 }
 0x13c   :  { %14203 = vmatmul.mubr.msk.bf16.gmra.mrb[8].mxu0 %vm257_vm2, %v18640_v5 }
 0x13d   :  { %1363 = vmatprep.mubr.bf16.mxu0 %v18371_v0 }
 0x144   :  { %14209 = vmatmul.mubr.msk.bf16.vlgmr.msra.gmra.mrb[12].mxu0 %vm257_vm2, %v18622_v54  ;;  %v16057_v54 = vld [vmem:[#allocation3 + $0x190] ss:$24 sps:$4 sm:$0xff]  }
 0x145   :  { %1549 = vmatpush1.bf16.msra.mxu0 %v16051_v31  ;;  %1373 = vmatprep.mubr.bf16.mxu0 %v18371_v0 }
 0x146   :  { %14224 = vmatprep.subr.msk.bf16.mxu0 %vm267_vm0, %v16054_v33 }
 0x149   :  { %1551 = vmatpush1.bf16.msra.mxu0 %v1531_v38 }
 0x14a   :  { %1674 = vmatprep.subr.bf16.mxu0 %v16059_v37 }
 0x14c   :  { %14210 = vmatmul.mubr.msk.bf16.gmra.mrb[16].mxu0 %vm257_vm2, %v18632_v61  ;;  %v1543_v61 = vsel %vm267_vm0, %v16062_v41, 0  ;;  %v16069_v41 = vld [vmem:[#allocation8 + $0x5e0] ss:$16 sps:$4 sm:$0xff]  }
 0x14d   :  { %1383 = vmatprep.mubr.bf16.mxu0 %v18371_v0 }
 0x154   :  { %14211 = vmatmul.mubr.msk.bf16.gmra.mrb[20].mxu0 %vm257_vm2, %v18640_v5 }
 0x155   :  { %1580 = vmatprep.mubr.bf16.mxu0 %v18371_v0 }
 0x15c   :  { %14225 = vmatmul.mubr.msk.bf16.vlgmr.msra.gmra.mrb[0].mxu0 %vm257_vm2, %v18658_v27 }
 0x15d   :  { %1675 = vmatpush1.bf16.msra.mxu0 %v16057_v54  ;;  %1590 = vmatprep.mubr.bf16.mxu0 %v18371_v0  ;;  %v16071_v54 = vld [vmem:[#allocation8 + $0x5e4] ss:$16 sps:$4 sm:$0xff]  }
 0x15e   :  { %14232 = vmatprep.subr.msk.bf16.mxu0 %vm267_vm0, %v16060_v39  ;;  %v16074_v39 = vld [vmem:[#allocation8 + $0x5ec] ss:$16 sps:$4 sm:$0xff]   ;;  %4273 = vmatprep.subr.bf16.mxu1 %v16071_v54 }
 0x15f   :  { %4274 = vmatpush1.bf16.msra.mxu1 %v16069_v41 }
 0x161   :  { %1677 = vmatpush1.bf16.msra.mxu0 %v1543_v61  ;;  %v16072_v61 = vld [vmem:[#allocation8 + $0x5e8] ss:$16 sps:$4 sm:$0xff]  }
 0x162   :  { %4400 = vmatprep.subr.bf16.mxu0 %v16068_v24 }
 0x164   :  { %14226 = vmatmul.mubr.msk.bf16.gmra.mrb[4].mxu0 %vm257_vm2, %v18665_v32 }
 0x165   :  { %1600 = vmatprep.mubr.bf16.mxu0 %v18371_v0 }
 0x16c   :  { %14227 = vmatmul.mubr.msk.bf16.gmra.mrb[8].mxu0 %vm257_vm2, %v18668_v34 }
 0x16d   :  { %1706 = vmatprep.mubr.bf16.mxu0 %v18371_v0 }
 0x174   :  { %14233 = vmatmul.mubr.msk.bf16.vlgmr.msra.gmra.mrb[12].mxu0 %vm257_vm2, %v18658_v27 }
 0x175   :  { %1716 = vmatprep.mubr.bf16.mxu0 %v18371_v0  ;;  %4401 = vmatpush1.bf16.msra.mxu0 %v16066_v26  ;;  %v16093_v26 = vld [vmem:[#allocation8 + $0x660] ss:$16 sps:$4 sm:$0xff]  }
 0x176   :  { %4402 = vmatprep.subr.bf16.mxu0 %v16074_v39 }
 0x179   :  { %4403 = vmatpush1.bf16.msra.mxu0 %v16072_v61 }
 0x17c   :  { %14234 = vmatmul.mubr.msk.bf16.gmra.mrb[16].mxu0 %vm257_vm2, %v18665_v32 }
 0x17d   :  { %1726 = vmatprep.mubr.bf16.mxu0 %v18371_v0 }
 0x184   :  { %14235 = vmatmul.mubr.msk.bf16.gmra.mrb[20].mxu0 %vm257_vm2, %v18668_v34 }
 0x1cf   :  { %v1645_v5 = vpop.f32.mrb[0].mxu1 }
 0x1d0   :  { %v1788_v42 = vrot.slane %v1645_v5, 1  ;;  %v1647_v43 = vpop.f32.mrb[1].mxu1 }
 0x1d1   :  { %v1649_v40 = vpop.f32.mrb[2].mxu1  ;;  %v1789_v44 = vrot.slane %v1647_v43, 1 }
 0x1d2   :  { %v2173_v45 = vrot.slane %v1649_v40, 1  ;;  %v1651_v7 = vpop.f32.mrb[3].mxu1  ;;  %v18827_v10 = vmax.f32 %v1645_v5, %v1788_v42 }
 0x1d3   :  { %v18833_v32 = vmax.f32 %v1647_v43, %v1789_v44  ;;  %v2174_v0 = vrot.slane %v1651_v7, 1 }
 0x1d4   :  { %1838 = vrot.lane.b32.xlu1 %v18827_v10, %s18372_s0  ;;  %v18831_v27 = vmax.f32 %v1649_v40, %v2173_v45 }
 0x1d5   :  { %v18839_v48 = vmax.f32 %v1651_v7, %v2174_v0  ;;  %v16077_v7 = vld [vmem:[#allocation8 + $0x604] ss:$16 sps:$4 sm:$0xff]   ;;  %v16080_v0 = vld [vmem:[#allocation8 + $0x60c] ss:$16 sps:$4 sm:$0xff]  }
 0x1d6   :  { %2223 = vrot.lane.b32.xlu0 %v18831_v27, %s18372_s0  ;;  %4275 = vmatprep.subr.bf16.mxu1 %v16077_v7  ;;  %v16101_v7 = vld [vmem:[#allocation8 + $0x684] ss:$16 sps:$4 sm:$0xff]  }
 0x1d7   :  { %v1655_v34 = vpop.f32.mrb[4].mxu1  ;;  %4404 = vmatprep.subr.bf16.mxu0 %v16080_v0  ;;  %v16104_v0 = vld [vmem:[#allocation8 + $0x68c] ss:$16 sps:$4 sm:$0xff]  }
 0x1d8   :  { %v2523_v46 = vrot.slane %v1655_v34, 1  ;;  %1840 = vrot.lane.b32.xlu1 %v18833_v32, %s18372_s0  ;;  %v1657_v11 = vpop.f32.mrb[5].mxu1 }
 0x1d9   :  { %v1659_v47 = vpop.f32.mrb[6].mxu1  ;;  %v2524_v50 = vrot.slane %v1657_v11, 1 }
 0x1da   :  { %v18841_v49 = vmax.f32 %v1655_v34, %v2523_v46  ;;  %v1661_v51 = vpop.f32.mrb[7].mxu1  ;;  %v1794_v17 = vrot.slane %v1659_v47, 1  ;;  %v16075_v46 = vld [vmem:[#allocation8 + $0x600] ss:$16 sps:$4 sm:$0xff]  }
 0x1db   :  { %v1795_v52 = vrot.slane %v1661_v51, 1  ;;  %v18849_v20 = vmax.f32 %v1657_v11, %v2524_v50  ;;  %v16078_v11 = vld [vmem:[#allocation8 + $0x608] ss:$16 sps:$4 sm:$0xff]   ;;  %4276 = vmatpush1.bf16.msra.mxu1 %v16075_v46 }
 0x1dc   :  { %2225 = vrot.lane.b32.xlu1 %v18839_v48, %s18372_s0  ;;  %2573 = vrot.lane.b32.xlu0 %v18841_v49, %s18372_s0  ;;  %v18855_v58 = vmax.f32 %v1659_v47, %v1794_v17 }
 0x1dd   :  { %v18847_v53 = vmax.f32 %v1661_v51, %v1795_v52  ;;  %19747 = vst [vmem:[#allocation24_spill] sm:$0xff] %v18849_v20  ;;  %4405 = vmatpush1.bf16.msra.mxu0 %v16078_v11 }
 0x1df   :  { %v1665_v23 = vpop.f32.mrb[8].mxu1 }
 0x1e0   :  { %2575 = vrot.lane.b32.xlu1 %v18849_v20, %s18372_s0  ;;  %1852 = vrot.lane.b32.xlu0 %v18847_v53, %s18372_s0  ;;  %v1667_v55 = vpop.f32.mrb[9].mxu1  ;;  %v2179_v59 = vrot.slane %v1665_v23, 1 }
 0x1e1   :  { %v2180_v56 = vrot.slane %v1667_v55, 1  ;;  %v1669_v57 = vpop.f32.mrb[10].mxu1 }
 0x1e2   :  { %v1671_v60 = vpop.f32.mrb[11].mxu1  ;;  %v18863_v63 = vmax.f32 %v1665_v23, %v2179_v59  ;;  %v2529_v1 = vrot.slane %v1669_v57, 1  ;;  %v16083_v23 = vld [vmem:[#allocation8 + $0x624] ss:$16 sps:$4 sm:$0xff]  }
 0x1e3   :  { %v18857_v30 = vmax.f32 %v1667_v55, %v2180_v56  ;;  %v2530_v36 = vrot.slane %v1671_v60, 1  ;;  %v16086_v55 = vld [vmem:[#allocation8 + $0x62c] ss:$16 sps:$4 sm:$0xff]   ;;  %v16081_v56 = vld [vmem:[#allocation8 + $0x620] ss:$16 sps:$4 sm:$0xff]   ;;  %4277 = vmatprep.subr.bf16.mxu1 %v16083_v23 }
 0x1e4   :  { %1850 = vrot.lane.b32.xlu1 %v18855_v58, %s18372_s0  ;;  %v18871_v3 = vmax.f32 %v1669_v57, %v2529_v1  ;;  %v16084_v57 = vld [vmem:[#allocation8 + $0x628] ss:$16 sps:$4 sm:$0xff]   ;;  %4406 = vmatprep.subr.bf16.mxu0 %v16086_v55 }
 0x1e5   :  { %2237 = vrot.lane.b32.xlu0 %v18857_v30, %s18372_s0  ;;  %v18865_v2 = vmax.f32 %v1671_v60, %v2530_v36  ;;  %4278 = vmatpush1.bf16.msra.mxu1 %v16081_v56 }
 0x1e6   :  { %4407 = vmatpush1.bf16.msra.mxu0 %v16084_v57 }
 0x1e7   :  { %19748 = vst [vmem:[#allocation25_spill] sm:$0xff] %v18865_v2 }
 0x1e8   :  { %2235 = vrot.lane.b32.xlu1 %v18863_v63, %s18372_s0 }
 0x1e9   :  { %2587 = vrot.lane.b32.xlu0 %v18865_v2, %s18372_s0 }
 0x1ec   :  { %2585 = vrot.lane.b32.xlu1 %v18871_v3, %s18372_s0 }
 0x22f   :  { %v1582_v4 = vpop.f32.mrb[0].mxu0 }
 0x230   :  { %v1786_v6 = vrot.slane %v1582_v4, 1  ;;  %v1584_v8 = vpop.f32.mrb[1].mxu0 }
 0x231   :  { %v1586_v9 = vpop.f32.mrb[2].mxu0  ;;  %v1787_v12 = vrot.slane %v1584_v8, 1 }
 0x232   :  { %v18875_v62 = vmax.f32 %v1582_v4, %v1786_v6  ;;  %v1588_v13 = vpop.f32.mrb[3].mxu0  ;;  %v2171_v18 = vrot.slane %v1586_v9, 1  ;;  %v16089_v6 = vld [vmem:[#allocation8 + $0x644] ss:$16 sps:$4 sm:$0xff]  }
 0x233   :  { %v2172_v14 = vrot.slane %v1588_v13, 1  ;;  %v18881_v16 = vmax.f32 %v1584_v8, %v1787_v12  ;;  %v16092_v8 = vld [vmem:[#allocation8 + $0x64c] ss:$16 sps:$4 sm:$0xff]   ;;  %v16087_v12 = vld [vmem:[#allocation8 + $0x640] ss:$16 sps:$4 sm:$0xff]   ;;  %4279 = vmatprep.subr.bf16.mxu1 %v16089_v6 }
 0x234   :  { %1834 = vrot.lane.b32.xlu0 %v18875_v62, %s18372_s0  ;;  %v18887_v31 = vmax.f32 %v1586_v9, %v2171_v18  ;;  %4408 = vmatprep.subr.bf16.mxu0 %v16092_v8  ;;  %v16105_v6 = vld [vmem:[#allocation8 + $0x6a0] ss:$16 sps:$4 sm:$0xff]   ;;  %v16108_v8 = vld [vmem:[#allocation8 + $0x6a8] ss:$16 sps:$4 sm:$0xff]  }
 0x235   :  { %v18879_v15 = vmax.f32 %v1588_v13, %v2172_v14  ;;  %v16090_v13 = vld [vmem:[#allocation8 + $0x648] ss:$16 sps:$4 sm:$0xff]   ;;  %4280 = vmatpush1.bf16.msra.mxu1 %v16087_v12 }
 0x236   :  { %4409 = vmatpush1.bf16.msra.mxu0 %v16090_v13 }
 0x237   :  { %2221 = vrot.lane.b32.xlu1 %v18879_v15, %s18372_s0  ;;  %v1592_v19 = vpop.f32.mrb[4].mxu0 }
 0x238   :  { %1836 = vrot.lane.b32.xlu0 %v18881_v16, %s18372_s0  ;;  %v1594_v21 = vpop.f32.mrb[5].mxu0  ;;  %v2521_v33 = vrot.slane %v1592_v19, 1 }
 0x239   :  { %v2522_v25 = vrot.slane %v1594_v21, 1  ;;  %v1596_v28 = vpop.f32.mrb[6].mxu0 }
 0x23a   :  { %v1598_v35 = vpop.f32.mrb[7].mxu0  ;;  %v1792_v38 = vrot.slane %v1596_v28, 1  ;;  %v18895_v5 = vmax.f32 %v1592_v19, %v2521_v33 }
 0x23b   :  { %v18889_v37 = vmax.f32 %v1594_v21, %v2522_v25  ;;  %v1793_v42 = vrot.slane %v1598_v35, 1  ;;  %v16095_v25 = vld [vmem:[#allocation8 + $0x664] ss:$16 sps:$4 sm:$0xff]  }
 0x23c   :  { %2219 = vrot.lane.b32.xlu0 %v18887_v31, %s18372_s0  ;;  %v18897_v43 = vmax.f32 %v1596_v28, %v1792_v38  ;;  %v16098_v28 = vld [vmem:[#allocation8 + $0x66c] ss:$16 sps:$4 sm:$0xff]   ;;  %4281 = vmatprep.subr.bf16.mxu1 %v16095_v25 }
 0x23d   :  { %2571 = vrot.lane.b32.xlu1 %v18889_v37, %s18372_s0  ;;  %v18903_v47 = vmax.f32 %v1598_v35, %v1793_v42  ;;  %v16096_v35 = vld [vmem:[#allocation8 + $0x668] ss:$16 sps:$4 sm:$0xff]   ;;  %4410 = vmatprep.subr.bf16.mxu0 %v16098_v28  ;;  %v16113_v28 = vld [vmem:[#allocation8 + $0x6c4] ss:$16 sps:$4 sm:$0xff]  }
 0x23e   :  { %4282 = vmatpush1.bf16.msra.mxu1 %v16093_v26  ;;  %4411 = vmatpush1.bf16.msra.mxu0 %v16096_v35  ;;  %v16116_v26 = vld [vmem:[#allocation8 + $0x6cc] ss:$16 sps:$4 sm:$0xff]   ;;  %v16114_v35 = vld [vmem:[#allocation8 + $0x6c8] ss:$16 sps:$4 sm:$0xff]  }
 0x23f   :  { %v1602_v40 = vpop.f32.mrb[8].mxu0  ;;  %4283 = vmatprep.subr.bf16.mxu1 %v16101_v7  ;;  %4412 = vmatprep.subr.bf16.mxu0 %v16104_v0  ;;  %v16126_v7 = vld [vmem:[#allocation8 + $0x708] ss:$16 sps:$4 sm:$0xff]   ;;  %v16131_v0 = vld [vmem:[#allocation8 + $0x724] ss:$16 sps:$4 sm:$0xff]  }
 0x240   :  { %v2177_v44 = vrot.slane %v1602_v40, 1  ;;  %2569 = vrot.lane.b32.xlu0 %v18895_v5, %s18372_s0  ;;  %v1604_v45 = vpop.f32.mrb[9].mxu0 }
 0x241   :  { %1846 = vrot.lane.b32.xlu1 %v18897_v43, %s18372_s0  ;;  %v1606_v34 = vpop.f32.mrb[10].mxu0  ;;  %v2178_v51 = vrot.slane %v1604_v45, 1 }
 0x242   :  { %v18905_v50 = vmax.f32 %v1602_v40, %v2177_v44  ;;  %v1608_v52 = vpop.f32.mrb[11].mxu0  ;;  %v2527_v17 = vrot.slane %v1606_v34, 1 }
 0x243   :  { %v18911_v59 = vmax.f32 %v1604_v45, %v2178_v51  ;;  %v2528_v60 = vrot.slane %v1608_v52, 1  ;;  %v16099_v51 = vld [vmem:[#allocation8 + $0x680] ss:$16 sps:$4 sm:$0xff]  }
 0x244   :  { %1848 = vrot.lane.b32.xlu0 %v18903_v47, %s18372_s0  ;;  %v18913_v36 = vmax.f32 %v1606_v34, %v2527_v17  ;;  %v16102_v17 = vld [vmem:[#allocation8 + $0x688] ss:$16 sps:$4 sm:$0xff]   ;;  %4284 = vmatpush1.bf16.msra.mxu1 %v16099_v51 }
 0x245   :  { %2231 = vrot.lane.b32.xlu1 %v18905_v50, %s18372_s0  ;;  %v18919_v14 = vmax.f32 %v1608_v52, %v2528_v60  ;;  %4413 = vmatpush1.bf16.msra.mxu0 %v16102_v17  ;;  %v16132_v51 = vld [vmem:[#allocation8 + $0x728] ss:$16 sps:$4 sm:$0xff]   ;;  %v16140_v17 = vld [vmem:[#allocation8 + $0x74c] ss:$16 sps:$4 sm:$0xff]  }
 0x247   :  { %v1708_v1 = vpop.f32.mrb[12].mxu0 }
 0x248   :  { %2233 = vrot.lane.b32.xlu0 %v18911_v59, %s18372_s0  ;;  %v1710_v4 = vpop.f32.mrb[13].mxu0  ;;  %v1790_v18 = vrot.slane %v1708_v1, 1 }
 0x249   :  { %2581 = vrot.lane.b32.xlu1 %v18913_v36, %s18372_s0  ;;  %v1712_v9 = vpop.f32.mrb[14].mxu0  ;;  %v1791_v22 = vrot.slane %v1710_v4, 1 }
 0x24a   :  { %v1714_v19 = vpop.f32.mrb[15].mxu0  ;;  %v18923_v21 = vmax.f32 %v1708_v1, %v1790_v18  ;;  %v2175_v54 = vrot.slane %v1712_v9, 1  ;;  %v16107_v1 = vld [vmem:[#allocation8 + $0x6a4] ss:$16 sps:$4 sm:$0xff]  }
 0x24b   :  { %v18927_v38 = vmax.f32 %v1710_v4, %v1791_v22  ;;  %v2176_v44 = vrot.slane %v1714_v19, 1  ;;  %v16110_v4 = vld [vmem:[#allocation8 + $0x6ac] ss:$16 sps:$4 sm:$0xff]   ;;  %4285 = vmatprep.subr.bf16.mxu1 %v16107_v1  ;;  %v16143_v1 = vld [vmem:[#allocation8 + $0x764] ss:$16 sps:$4 sm:$0xff]  }
 0x24c   :  { %2583 = vrot.lane.b32.xlu0 %v18919_v14, %s18372_s0  ;;  %v18933_v40 = vmax.f32 %v1712_v9, %v2175_v54  ;;  %4414 = vmatprep.subr.bf16.mxu0 %v16110_v4  ;;  %v16122_v54 = vld [vmem:[#allocation8 + $0x6ec] ss:$16 sps:$4 sm:$0xff]   ;;  %v16144_v4 = vld [vmem:[#allocation8 + $0x768] ss:$16 sps:$4 sm:$0xff]  }
 0x24d   :  { %v18941_v23 = vmax.f32 %v1714_v19, %v2176_v44  ;;  %4286 = vmatpush1.bf16.msra.mxu1 %v16105_v6  ;;  %4415 = vmatpush1.bf16.msra.mxu0 %v16108_v8  ;;  %v16128_v44 = vld [vmem:[#allocation8 + $0x70c] ss:$16 sps:$4 sm:$0xff]   ;;  %v16149_v8 = vld [vmem:[#allocation8 + $0x784] ss:$16 sps:$4 sm:$0xff]  }
 0x24e   :  { %4287 = vmatprep.subr.bf16.mxu1 %v16113_v28  ;;  %4416 = vmatprep.subr.bf16.mxu0 %v16116_v26  ;;  %v16146_v6 = vld [vmem:[#allocation8 + $0x76c] ss:$16 sps:$4 sm:$0xff]   ;;  %v16155_v28 = vld [vmem:[#allocation8 + $0x7a4] ss:$16 sps:$4 sm:$0xff]  }
 0x24f   :  { %v1718_v24 = vpop.f32.mrb[16].mxu0  ;;  %v16158_v26 = vld [vmem:[#allocation8 + $0x7ac] ss:$16 sps:$4 sm:$0xff]  }
 0x250   :  { %1842 = vrot.lane.b32.xlu0 %v18923_v21, %s18372_s0  ;;  %v1720_v29 = vpop.f32.mrb[17].mxu0  ;;  %v2525_v55 = vrot.slane %v1718_v24, 1 }
 0x251   :  { %v1722_v33 = vpop.f32.mrb[18].mxu0  ;;  %v2526_v12 = vrot.slane %v1720_v29, 1  ;;  %4417 = vmatpush1.bf16.msra.mxu0 %v16114_v35  ;;  %v16156_v35 = vld [vmem:[#allocation8 + $0x7a8] ss:$16 sps:$4 sm:$0xff]  }
 0x252   :  { %v1796_v39 = vrot.slane %v1722_v33, 1  ;;  %v1724_v41 = vpop.f32.mrb[19].mxu0  ;;  %v18949_v9 = vmax.f32 %v1718_v24, %v2525_v55  ;;  %4418 = vmatprep.subr.bf16.mxu0 %v16122_v54  ;;  %v16135_v55 = vld [vmem:[#allocation8 + $0x740] ss:$16 sps:$4 sm:$0xff]   ;;  %v16161_v54 = vld [vmem:[#allocation8 + $0x7c4] ss:$16 sps:$4 sm:$0xff]  }
 0x253   :  { %v1797_v42 = vrot.slane %v1724_v41, 1  ;;  %v18957_v19 = vmax.f32 %v1720_v29, %v2526_v12  ;;  %v16119_v29 = vld [vmem:[#allocation8 + $0x6e4] ss:$16 sps:$4 sm:$0xff]   ;;  %v16152_v12 = vld [vmem:[#allocation8 + $0x78c] ss:$16 sps:$4 sm:$0xff]  }
 0x254   :  { %v18929_v61 = vmax.f32 %v1722_v33, %v1796_v39  ;;  %1844 = vrot.lane.b32.xlu0 %v18927_v38, %s18372_s0  ;;  %19750 = vst [vmem:[#allocation27_spill] sm:$0xff] %v18949_v9  ;;  %v16111_v33 = vld [vmem:[#allocation8 + $0x6c0] ss:$16 sps:$4 sm:$0xff]  }
 0x255   :  { %v18937_v34 = vmax.f32 %v1724_v41, %v1797_v42  ;;  %19752 = vst [vmem:[#allocation29_spill] sm:$0xff] %v18957_v19  ;;  %4288 = vmatpush1.bf16.msra.mxu1 %v16111_v33  ;;  %v16117_v39 = vld [vmem:[#allocation8 + $0x6e0] ss:$16 sps:$4 sm:$0xff]   ;;  %v16120_v41 = vld [vmem:[#allocation8 + $0x6e8] ss:$16 sps:$4 sm:$0xff]  }
 0x256   :  { %1854 = vrot.lane.b32.xlu1 %v18929_v61, %s18372_s0  ;;  %4289 = vmatprep.subr.bf16.mxu1 %v16119_v29  ;;  %v16125_v42 = vld [vmem:[#allocation8 + $0x704] ss:$16 sps:$4 sm:$0xff]   ;;  %v16153_v33 = vld [vmem:[#allocation8 + $0x7a0] ss:$16 sps:$4 sm:$0xff]   ;;  %v1839_v29 = vpop.permute.xlu1 %1838 }
 0x257   :  { %v1728_v45 = vpop.f32.mrb[20].mxu0  ;;  %4419 = vmatpush1.bf16.msra.mxu0 %v16120_v41  ;;  %v16164_v41 = vld [vmem:[#allocation8 + $0x7cc] ss:$16 sps:$4 sm:$0xff]  }
 0x258   :  { %v2181_v46 = vrot.slane %v1728_v45, 1  ;;  %2227 = vrot.lane.b32.xlu0 %v18933_v40, %s18372_s0  ;;  %v1730_v11 = vpop.f32.mrb[21].mxu0  ;;  %4420 = vmatprep.subr.bf16.mxu0 %v16128_v44 }
 0x259   :  { %v1732_v52 = vpop.f32.mrb[22].mxu0  ;;  %v2182_v60 = vrot.slane %v1730_v11, 1  ;;  %4290 = vmatpush1.bf16.msra.mxu1 %v16117_v39 }
 0x25a   :  { %1856 = vrot.lane.b32.xlu1 %v18937_v34, %s18372_s0  ;;  %v1734_v56 = vpop.f32.mrb[23].mxu0  ;;  %v18945_v57 = vmax.f32 %v1728_v45, %v2181_v46  ;;  %v2531_v18 = vrot.slane %v1732_v52, 1  ;;  %v16123_v45 = vld [vmem:[#allocation8 + $0x700] ss:$16 sps:$4 sm:$0xff]   ;;  %4291 = vmatprep.subr.bf16.mxu1 %v16125_v42  ;;  %v16134_v46 = vld [vmem:[#allocation8 + $0x72c] ss:$16 sps:$4 sm:$0xff]   ;;  %v18971_v39 = vpop.permute.xlu1 %1840 }
 0x25b   :  { %v18953_v13 = vmax.f32 %v1730_v11, %v2182_v60  ;;  %v2532_v24 = vrot.slane %v1734_v56, 1  ;;  %4421 = vmatpush1.bf16.msra.mxu0 %v16126_v7  ;;  %v16129_v11 = vld [vmem:[#allocation8 + $0x720] ss:$16 sps:$4 sm:$0xff]   ;;  %v2224_v42 = vpop.permute.xlu0 %2223 }
 0x25c   :  { %19749 = vst [vmem:[#allocation26_spill] sm:$0xff] %v18945_v57  ;;  %2229 = vrot.lane.b32.xlu0 %v18941_v23, %s18372_s0  ;;  %v18961_v22 = vmax.f32 %v1732_v52, %v2531_v18  ;;  %4422 = vmatprep.subr.bf16.mxu0 %v16134_v46  ;;  %v16137_v52 = vld [vmem:[#allocation8 + $0x744] ss:$16 sps:$4 sm:$0xff]   ;;  %v16141_v60 = vld [vmem:[#allocation8 + $0x760] ss:$16 sps:$4 sm:$0xff]  }
 0x25d   :  { %19751 = vst [vmem:[#allocation28_spill] sm:$0xff] %v18953_v13  ;;  %v18967_v25 = vmax.f32 %v1734_v56, %v2532_v24  ;;  %4292 = vmatpush1.bf16.msra.mxu1 %v16123_v45  ;;  %v16138_v56 = vld [vmem:[#allocation8 + $0x748] ss:$16 sps:$4 sm:$0xff]   ;;  %v16147_v18 = vld [vmem:[#allocation8 + $0x780] ss:$16 sps:$4 sm:$0xff]  }
 0x25e   :  { %2239 = vrot.lane.b32.xlu1 %v18945_v57, %s18372_s0  ;;  %19753 = vst [vmem:[#allocation30_spill] sm:$0xff] %v18961_v22  ;;  %4293 = vmatprep.subr.bf16.mxu1 %v16131_v0  ;;  %v16150_v24 = vld [vmem:[#allocation8 + $0x788] ss:$16 sps:$4 sm:$0xff]   ;;  %v18973_v44 = vpop.permute.xlu1 %2225 }
 0x25f   :  { %19754 = vst [vmem:[#allocation31_spill] sm:$0xff] %v18967_v25  ;;  %4423 = vmatpush1.bf16.msra.mxu0 %v16132_v51  ;;  %v2574_v45 = vpop.permute.xlu0 %2573 }
 0x260   :  { %2577 = vrot.lane.b32.xlu0 %v18949_v9, %s18372_s0  ;;  %4424 = vmatprep.subr.bf16.mxu0 %v16140_v17 }
 0x261   :  { %4294 = vmatpush1.bf16.msra.mxu1 %v16129_v11 }
 0x262   :  { %2241 = vrot.lane.b32.xlu1 %v18953_v13, %s18372_s0  ;;  %4295 = vmatprep.subr.bf16.mxu1 %v16137_v52  ;;  %v18975_v7 = vpop.permute.xlu1 %2575  ;;  %v19732_v52 = vlaneseq }
 0x263   :  { %4425 = vmatpush1.bf16.msra.mxu0 %v16138_v56  ;;  %v18977_v0 = vpop.permute.xlu0 %1852 }
 0x264   :  { %2579 = vrot.lane.b32.xlu0 %v18957_v19, %s18372_s0  ;;  %4426 = vmatprep.subr.bf16.mxu0 %v16146_v6  ;;  %v18993_v6 = vld [vmem:[#allocation6] sm:$0x3f] }
 0x265   :  { %4296 = vmatpush1.bf16.msra.mxu1 %v16135_v55  ;;  %v18986_v55 = vshrl.u32 %v19732_v52, 7 }
 0x266   :  { %2589 = vrot.lane.b32.xlu1 %v18961_v22, %s18372_s0  ;;  %4297 = vmatprep.subr.bf16.mxu1 %v16143_v1  ;;  %v1851_v46 = vpop.permute.xlu1 %1850 }
 0x267   :  { %4427 = vmatpush1.bf16.msra.mxu0 %v16144_v4  ;;  %v18979_v11 = vpop.permute.xlu0 %2237  ;;  %v18991_v1 = vsub.s32 2, %v18986_v55  ;;  %v19012_v22 = vsub.s32 3, %v18986_v55  ;;  %v1912_v13 = vsub.s32 4, %v18986_v55 }
 0x268   :  { %4428 = vmatprep.subr.bf16.mxu0 %v16152_v12 }
 0x269   :  { %4298 = vmatpush1.bf16.msra.mxu1 %v16141_v60  ;;  %19755 = vst [vmem:[#allocation32_spill] sm:$0xff] %v18991_v1  ;;  %v19042_v9 = vrot.slane %v18993_v6, %v19012_v22 }
 0x26a   :  { %2591 = vrot.lane.b32.xlu1 %v18967_v25, %s18372_s0  ;;  %4299 = vmatprep.subr.bf16.mxu1 %v16149_v8  ;;  %v18981_v51 = vpop.permute.xlu1 %2235  ;;  %v1861_v8 = vsel %vm1858_vm5, %v1839_v29, %v18971_v39 }
 0x26b   :  { %4429 = vmatpush1.bf16.msra.mxu0 %v16150_v24  ;;  %v18983_v17 = vpop.permute.xlu0 %2587 }
 0x26c   :  { %4430 = vmatprep.subr.bf16.mxu0 %v16158_v26  ;;  %v19001_v26 = vrot.slane %v18993_v6, %v18991_v1 }
 0x26d   :  { %4300 = vmatpush1.bf16.msra.mxu1 %v16147_v18  ;;  %v18373_v18 = vmov 1966171168  }
 0x26e   :  { %4301 = vmatprep.subr.bf16.mxu1 %v16155_v28  ;;  %v18988_v60 = vpop.permute.xlu1 %2585  ;;  %v1964_v24 = vunpack.c.l.s4 %v18373_v18  ;;  %v2245_v28 = vsel %vm1858_vm5, %v2224_v42, %v18973_v44 }
 0x26f   :  { %4431 = vmatpush1.bf16.msra.mxu0 %v16156_v35  ;;  %v19005_v35 = vsub.s32 1, %v18986_v55  ;;  %v2267_v18 = vmax.f32 %v18831_v27, %v2245_v28  ;;  %v2595_v27 = vsel %vm1858_vm5, %v2574_v45, %v18975_v7  ;;  %v1866_v28 = vsel %vm1858_vm5, %v1851_v46, %v18977_v0 }
 0x270   :  { %4443 = vmatprep.subr.bf16.mxu0 %v16164_v41  ;;  %v19008_v41 = vsub.s32 0, %v18986_v55  ;;  %v1965_v52 = vunpack.c.0.s8 %v1964_v24  ;;  %v2617_v20 = vmax.f32 %v18841_v49, %v2595_v27 }
 0x271   :  { %4302 = vmatpush1.bf16.msra.mxu1 %v16153_v33  ;;  %v1883_v33 = vmax.f32 %v18827_v10, %v1861_v8  ;;  %19756 = vst [vmem:[#allocation33_spill] sm:$0xff] %v19005_v35  ;;  %v19020_v10 = vrot.slane %v18993_v6, %v19005_v35  ;;  %v19036_v35 = vadd.f32 %v2267_v18, %v19001_v26 }
 0x272   :  { %4314 = vmatprep.subr.bf16.mxu1 %v16161_v54  ;;  %19757 = vst [vmem:[#allocation34_spill] sm:$0xff] %v19008_v41 }
 0x273   :  { %v19016_v1 = vadd.f32 %v19001_v26, %v1883_v33  ;;  %v19033_v33 = vsub.s32 %v1965_v52, %v18986_v55  ;;  %v1916_v52 = vsub.s32 5, %v18986_v55  ;;  %v2291_v55 = vmax.f32 %v19036_v35, 0.0 }
 0x275   :  { %v1938_v18 = vmax.f32 %v19016_v1, 0.0 }
 0x2a6   :  { %v1835_v56 = vpop.permute.xlu0 %1834 }
 0x2a9   :  { %v2222_v12 = vpop.permute.xlu1 %2221 }
 0x2aa   :  { %v1837_v4 = vpop.permute.xlu0 %1836 }
 0x2ab   :  { %v1859_v2 = vsel %vm1858_vm5, %v1835_v56, %v1837_v4  ;;  %v1860_v8 = vsel %vm1858_vm5, %v1837_v4, %v1839_v29  ;;  %v19030_v56 = vrot.slane %v18993_v6, %v19008_v41  ;;  %v2244_v29 = vsel %vm1858_vm5, %v2222_v12, %v2224_v42 }
 0x2ac   :  { %v1881_v4 = vmax.f32 %v18875_v62, %v1859_v2  ;;  %v1882_v57 = vmax.f32 %v18881_v16, %v1860_v8  ;;  %v1889_v42 = vmax.f32 %v18855_v58, %v1866_v28  ;;  %v2250_v2 = vsel %vm1858_vm5, %v18981_v51, %v18979_v11 }
 0x2ad   :  { %v2273_v27 = vmax.f32 %v18863_v63, %v2250_v2 }
 0x2ae   :  { %v2220_v54 = vpop.permute.xlu0 %2219  ;;  %v1924_v8 = vadd.f32 %v19030_v56, %v1881_v4  ;;  %v1925_v28 = vadd.f32 %v19020_v10, %v1882_v57 }
 0x2af   :  { %v2572_v25 = vpop.permute.xlu1 %2571  ;;  %v2243_v19 = vsel %vm1858_vm5, %v2220_v54, %v2222_v12  ;;  %v2266_v12 = vmax.f32 %v18879_v15, %v2244_v29  ;;  %v19067_v29 = vadd.f32 %v2617_v20, %v19001_v26 }
 0x2b0   :  { %v2265_v41 = vmax.f32 %v18887_v31, %v2243_v19  ;;  %v2594_v49 = vsel %vm1858_vm5, %v2572_v25, %v2574_v45  ;;  %v1936_v4 = vmax.f32 %v1924_v8, 0.0 }
 0x2b1   :  { %v2278_v57 = vadd.f32 %v2266_v12, %v19020_v10 }
 0x2b2   :  { %v2570_v24 = vpop.permute.xlu0 %2569  ;;  %v2277_v15 = vadd.f32 %v2265_v41, %v19030_v56  ;;  %v2616_v41 = vmax.f32 %v18889_v37, %v2594_v49  ;;  %v2641_v37 = vmax.f32 %v19067_v29, 0.0 }
 0x2b3   :  { %v1847_v54 = vpop.permute.xlu1 %1846  ;;  %v2593_v16 = vsel %vm1858_vm5, %v2570_v24, %v2572_v25  ;;  %v2600_v25 = vsel %vm1858_vm5, %v18988_v60, %v18983_v17  ;;  %v2290_v49 = vmax.f32 %v2278_v57, 0.0 }
 0x2b6   :  { %v1849_v62 = vpop.permute.xlu0 %1848 }
 0x2b7   :  { %v1864_v31 = vsel %vm1858_vm5, %v1847_v54, %v1849_v62  ;;  %v1865_v19 = vsel %vm1858_vm5, %v1849_v62, %v1851_v46  ;;  %v19070_v46 = vadd.f32 %v19001_v26, %v1889_v42  ;;  %v2232_v45 = vpop.permute.xlu1 %2231  ;;  %v1937_v62 = vmax.f32 %v1925_v28, 0.0 }
 0x2b8   :  { %v1887_v58 = vmax.f32 %v18897_v43, %v1864_v31  ;;  %v1888_v24 = vmax.f32 %v18903_v47, %v1865_v19  ;;  %v2615_v43 = vmax.f32 %v18895_v5, %v2593_v16  ;;  %v19085_v5 = vadd.f32 %v2273_v27, %v19001_v26 }
 0x2b9   :  { %v2289_v16 = vmax.f32 %v2277_v15, 0.0  ;;  %v1944_v31 = vmax.f32 %v19070_v46, 0.0 }
 0x2ba   :  { %v2234_v63 = vpop.permute.xlu0 %2233  ;;  %v1930_v54 = vadd.f32 %v19030_v56, %v1887_v58  ;;  %v1931_v42 = vadd.f32 %v19020_v10, %v1888_v24  ;;  %v2627_v19 = vadd.f32 %v2615_v43, %v19030_v56  ;;  %v2628_v58 = vadd.f32 %v2616_v41, %v19020_v10 }
 0x2bb   :  { %v2248_v47 = vsel %vm1858_vm5, %v2232_v45, %v2234_v63  ;;  %v2249_v20 = vsel %vm1858_vm5, %v2234_v63, %v18981_v51  ;;  %v2623_v51 = vmax.f32 %v18871_v3, %v2600_v25  ;;  %v19099_v24 = vrot.slane %v18993_v6, %v1916_v52  ;;  %v2582_v63 = vpop.permute.xlu1 %2581 }
 0x2bc   :  { %v2271_v2 = vmax.f32 %v18905_v50, %v2248_v47  ;;  %v2272_v12 = vmax.f32 %v18911_v59, %v2249_v20  ;;  %v1942_v28 = vmax.f32 %v1930_v54, 0.0  ;;  %v1943_v15 = vmax.f32 %v1931_v42, 0.0 }
 0x2bd   :  { %v19096_v59 = vrot.slane %v18993_v6, %v1912_v13  ;;  %v2297_v3 = vmax.f32 %v19085_v5, 0.0  ;;  %v1960_v25 = vcombine.low %v1936_v4, %v1937_v62  ;;  %v2061_v43 = vcombine.high %v1936_v4, %v1937_v62 }
 0x2be   :  { %v2584_v8 = vpop.permute.xlu0 %2583  ;;  %v2283_v50 = vadd.f32 %v2271_v2, %v19030_v56  ;;  %v2284_v27 = vadd.f32 %v2272_v12, %v19020_v10  ;;  %v19102_v45 = vcombine.low %v2289_v16, %v2290_v49  ;;  %v19105_v57 = vadd.f32 %v2623_v51, %v19001_v26 }
 0x2bf   :  { %v19107_v41 = vcombine.high %v2289_v16, %v2290_v49  ;;  %v2639_v47 = vmax.f32 %v2627_v19, 0.0  ;;  %v2598_v20 = vsel %vm1858_vm5, %v2582_v63, %v2584_v8  ;;  %v2640_v54 = vmax.f32 %v2628_v58, 0.0 }
 0x2c0   :  { %v2295_v42 = vmax.f32 %v2283_v50, 0.0  ;;  %v2296_v6 = vmax.f32 %v2284_v27, 0.0  ;;  %v19112_v2 = vcombine.low %v1942_v28, %v1943_v15  ;;  %v19114_v4 = vcombine.high %v1942_v28, %v1943_v15 }
 0x2c1   :  { %v2599_v26 = vsel %vm1858_vm5, %v2584_v8, %v18988_v60  ;;  %v1969_v16 = vrot.slane %v1960_v25, %v19033_v33  ;;  %v2070_v12 = vrot.slane %v2061_v43, %v19033_v33  ;;  %v2322_v51 = vrot.slane %v19102_v45, %v19033_v33 }
 0x2c2   :  { %v1843_v13 = vpop.permute.xlu0 %1842  ;;  %v2621_v19 = vmax.f32 %v18913_v36, %v2598_v20  ;;  %v19126_v49 = vcombine.low %v2639_v47, %v2640_v54  ;;  %v19128_v58 = vcombine.high %v2639_v47, %v2640_v54  ;;  %v2622_v50 = vmax.f32 %v18919_v14, %v2599_v26 }
 0x2c3   :  { %v1862_v52 = vsel %vm1858_vm5, %v18971_v39, %v1843_v13  ;;  %v2420_v39 = vrot.slane %v19107_v41, %v19033_v33  ;;  %v2009_v36 = vrot.slane %v19112_v2, %v19033_v33  ;;  %v2110_v15 = vrot.slane %v19114_v4, %v19033_v33 }
 0x2c4   :  { %v1884_v62 = vmax.f32 %v18833_v32, %v1862_v52  ;;  %v19131_v32 = vcombine.low %v2295_v42, %v2296_v6  ;;  %v19141_v47 = vcombine.high %v2295_v42, %v2296_v6  ;;  %v19144_v20 = vadd.f32 %v2621_v19, %v19030_v56 }
 0x2c5   :  { %v19758_v6 = vlaneseq }
 0x2c6   :  { %v1927_v60 = vadd.f32 %v19042_v9, %v1884_v62  ;;  %v1845_v8 = vpop.permute.xlu0 %1844  ;;  %v2362_v2 = vrot.slane %v19131_v32, %v19033_v33 }
 0x2c7   :  { %v1863_v27 = vsel %vm1858_vm5, %v1843_v13, %v1845_v8  ;;  %v1886_v28 = vmax.f32 %v18927_v38, %v1845_v8  ;;  %vm19156_vm6 = vcmp.lt.s32.totalorder %v19758_v6, 736 }
 0x2c8   :  { %v1939_v25 = vmax.f32 %v1927_v60, 0.0  ;;  %v1885_v43 = vmax.f32 %v18923_v21, %v1863_v27  ;;  %v1855_v63 = vpop.permute.xlu1 %1854  ;;  %v2460_v60 = vrot.slane %v19141_v47, %v19033_v33 }
 0x2c9   :  { %v1929_v14 = vadd.f32 %v19099_v24, %v1886_v28  ;;  %v1867_v38 = vsel %vm1858_vm5, %v18977_v0, %v1855_v63  ;;  %v19163_v0 = vadd.f32 %v2622_v50, %v19020_v10 }
 0x2ca   :  { %v1961_v13 = vcombine.low %v1938_v18, %v1939_v25  ;;  %v2062_v54 = vcombine.high %v1938_v18, %v1939_v25  ;;  %v1928_v52 = vadd.f32 %v19096_v59, %v1885_v43  ;;  %v1890_v21 = vmax.f32 %v18847_v53, %v1867_v38  ;;  %v2228_v42 = vpop.permute.xlu0 %2227 }
 0x2cb   :  { %v1941_v4 = vmax.f32 %v1929_v14, 0.0  ;;  %v2246_v1 = vsel %vm1858_vm5, %v18973_v44, %v2228_v42 }
 0x2cc   :  { %v1976_v18 = vrot.slane %v1961_v13, %v19033_v33  ;;  %v2077_v53 = vrot.slane %v2062_v54, %v19033_v33  ;;  %v1940_v26 = vmax.f32 %v1928_v52, 0.0  ;;  %v1933_v62 = vadd.f32 %v19042_v9, %v1890_v21  ;;  %v1857_v19 = vpop.permute.xlu1 %1856 }
 0x2cd   :  { %v2268_v8 = vmax.f32 %v18839_v48, %v2246_v1  ;;  %v1868_v10 = vsel %vm1858_vm5, %v1855_v63, %v1857_v19  ;;  %v1892_v50 = vmax.f32 %v18937_v34, %v1857_v19 }
 0x2ce   :  { %v1984_v27 = vcombine.low %v1969_v16, %v1976_v18  ;;  %v2085_v28 = vcombine.low %v2070_v12, %v2077_v53  ;;  %v1962_v44 = vcombine.low %v1940_v26, %v1941_v4  ;;  %v2063_v25 = vcombine.high %v1940_v26, %v1941_v4  ;;  %v2230_v54 = vpop.permute.xlu0 %2229 }
 0x2cf   :  { %v1945_v43 = vmax.f32 %v1933_v62, 0.0  ;;  %v2280_v14 = vadd.f32 %v2268_v8, %v19042_v9  ;;  %v1891_v38 = vmax.f32 %v18929_v61, %v1868_v10  ;;  %v1935_v13 = vadd.f32 %v19099_v24, %v1892_v50 }
 0x2d0   :  { %v1991_v52 = vrot.slane %v1984_v27, %v19033_v33  ;;  %v2092_v48 = vrot.slane %v2085_v28, %v19033_v33  ;;  %v1983_v63 = vrot.slane %v1962_v44, %v19033_v33  ;;  %v2084_v34 = vrot.slane %v2063_v25, %v19033_v33  ;;  %v2240_v53 = vpop.permute.xlu1 %2239 }
 0x2d1   :  { %v2001_v16 = vcombine.low %v1944_v31, %v1945_v43  ;;  %v2102_v12 = vcombine.high %v1944_v31, %v1945_v43  ;;  %v2292_v21 = vmax.f32 %v2280_v14, 0.0  ;;  %v1934_v61 = vadd.f32 %v19096_v59, %v1891_v38 }
 0x2d2   :  { %v1998_v6 = vrot.slane %v1983_v63, %v19033_v33  ;;  %v2099_v4 = vrot.slane %v2084_v34, %v19033_v33  ;;  %v1947_v1 = vmax.f32 %v1935_v13, 0.0  ;;  %v2247_v18 = vsel %vm1858_vm5, %v2228_v42, %v2230_v54  ;;  %v2578_v25 = vpop.permute.xlu0 %2577 }
 0x2d3   :  { %v2016_v26 = vrot.slane %v2001_v16, %v19033_v33  ;;  %v2117_v62 = vrot.slane %v2102_v12, %v19033_v33  ;;  %v2314_v19 = vcombine.low %v2291_v55, %v2292_v21  ;;  %v2412_v46 = vcombine.high %v2291_v55, %v2292_v21  ;;  %v19761_v21 = vld [vmem:[#allocation24_spill] sm:$0xff] }
 0x2d4   :  { %v1999_v31 = vcombine.low %v1991_v52, %v1998_v6  ;;  %v2051_v8 = vcombine.high %v1991_v52, %v1998_v6  ;;  %v2100_v10 = vcombine.low %v2092_v48, %v2099_v4  ;;  %v2149_v50 = vcombine.high %v2092_v48, %v2099_v4  ;;  %v19762_v4 = vld [vmem:[#allocation28_spill] sm:$0xff] }
 0x2d5   :  { %v2024_v27 = vcombine.low %v2009_v36, %v2016_v26  ;;  %v2125_v28 = vcombine.low %v2110_v15, %v2117_v62  ;;  %v2329_v44 = vrot.slane %v2314_v19, %v19033_v33  ;;  %v2427_v42 = vrot.slane %v2412_v46, %v19033_v33  ;;  %v19763_v46 = vld [vmem:[#allocation26_spill] sm:$0xff] }
 0x2d6   :  { %2046 = vst.msk [vmem:[#allocation2] ss:$8 sm:$0xf] %vm19156_vm6, %v1999_v31  ;;  %2047 = vst.msk [vmem:[#allocation2] ss:$8 sm:$0x30] %vm19156_vm6, %v1999_v31  ;;  %v2269_v55 = vmax.f32 %v18933_v40, %v2247_v18  ;;  %v2270_v36 = vmax.f32 %v18941_v23, %v2230_v54  ;;  %v2251_v15 = vsel %vm1858_vm5, %v18979_v11, %v2240_v53  ;;  %v2242_v11 = vpop.permute.xlu1 %2241 }
 0x2d7   :  { %2056 = vst.msk [vmem:[#allocation2 + $0x1] ss:$8 sm:$0xf] %vm19156_vm6, %v2051_v8  ;;  %2057 = vst.msk [vmem:[#allocation2 + $0x1] ss:$8 sm:$0x30] %vm19156_vm6, %v2051_v8  ;;  %v2031_v43 = vrot.slane %v2024_v27, %v19033_v33  ;;  %v2132_v14 = vrot.slane %v2125_v28, %v19033_v33  ;;  %v2337_v38 = vcombine.low %v2322_v51, %v2329_v44 }
 0x2d8   :  { %2144 = vst.msk [vmem:[#allocation2 + $0x2] ss:$8 sm:$0xf] %vm19156_vm6, %v2100_v10  ;;  %2145 = vst.msk [vmem:[#allocation2 + $0x2] ss:$8 sm:$0x30] %vm19156_vm6, %v2100_v10  ;;  %v2435_v13 = vcombine.low %v2420_v39, %v2427_v42  ;;  %v2281_v23 = vadd.f32 %v2269_v55, %v19096_v59  ;;  %v2282_v54 = vadd.f32 %v2270_v36, %v19099_v24  ;;  %v2580_v10 = vpop.permute.xlu0 %2579 }
 0x2d9   :  { %2154 = vst.msk [vmem:[#allocation2 + $0x3] ss:$8 sm:$0xf] %vm19156_vm6, %v2149_v50  ;;  %2155 = vst.msk [vmem:[#allocation2 + $0x3] ss:$8 sm:$0x30] %vm19156_vm6, %v2149_v50  ;;  %v2344_v48 = vrot.slane %v2337_v38, %v19033_v33  ;;  %v2274_v34 = vmax.f32 %v18857_v30, %v2251_v15  ;;  %v2596_v45 = vsel %vm1858_vm5, %v18975_v7, %v2578_v25 }
 0x2da   :  { %v1946_v35 = vmax.f32 %v1934_v61, 0.0  ;;  %v2442_v63 = vrot.slane %v2435_v13, %v19033_v33  ;;  %v2293_v39 = vmax.f32 %v2281_v23, 0.0  ;;  %v2294_v16 = vmax.f32 %v2282_v54, 0.0  ;;  %v2590_v36 = vpop.permute.xlu1 %2589 }
 0x2db   :  { %v2286_v12 = vadd.f32 %v2274_v34, %v19042_v9  ;;  %v2618_v61 = vmax.f32 %v19761_v21, %v2596_v45  ;;  %v2252_v6 = vsel %vm1858_vm5, %v2240_v53, %v2242_v11 }
 0x2dc   :  { %v2002_v52 = vcombine.low %v1946_v35, %v1947_v1  ;;  %v2103_v40 = vcombine.high %v1946_v35, %v1947_v1  ;;  %v2276_v1 = vmax.f32 %v19762_v4, %v2242_v11  ;;  %v2315_v26 = vcombine.low %v2293_v39, %v2294_v16  ;;  %v19764_v11 = vld [vmem:[#allocation27_spill] sm:$0xff] }
 0x2dd   :  { %v2413_v7 = vcombine.high %v2293_v39, %v2294_v16  ;;  %v2298_v62 = vmax.f32 %v2286_v12, 0.0  ;;  %v2630_v19 = vadd.f32 %v2618_v61, %v19042_v9  ;;  %v2275_v31 = vmax.f32 %v19763_v46, %v2252_v6 }
 0x2de   :  { %v2023_v51 = vrot.slane %v2002_v52, %v19033_v33  ;;  %v2124_v41 = vrot.slane %v2103_v40, %v19033_v33  ;;  %v2288_v8 = vadd.f32 %v2276_v1, %v19099_v24  ;;  %v2336_v44 = vrot.slane %v2315_v26, %v19033_v33 }
 0x2df   :  { %v2434_v42 = vrot.slane %v2413_v7, %v19033_v33  ;;  %v2354_v35 = vcombine.low %v2297_v3, %v2298_v62  ;;  %v2452_v55 = vcombine.high %v2297_v3, %v2298_v62  ;;  %v2642_v5 = vmax.f32 %v2630_v19, 0.0  ;;  %v19766_v19 = vld [vmem:[#allocation25_spill] sm:$0xff] }
 0x2e0   :  { %v2038_v18 = vrot.slane %v2023_v51, %v19033_v33  ;;  %v2139_v30 = vrot.slane %v2124_v41, %v19033_v33  ;;  %v2287_v3 = vadd.f32 %v2275_v31, %v19096_v59  ;;  %v2300_v15 = vmax.f32 %v2288_v8, 0.0 }
 0x2e1   :  { %v2449_v38 = vrot.slane %v2434_v42, %v19033_v33  ;;  %v2369_v13 = vrot.slane %v2354_v35, %v19033_v33  ;;  %v2467_v52 = vrot.slane %v2452_v55, %v19033_v33  ;;  %v2664_v40 = vcombine.low %v2641_v37, %v2642_v5 }
 0x2e2   :  { %v2039_v50 = vcombine.low %v2031_v43, %v2038_v18  ;;  %v2052_v27 = vcombine.high %v2031_v43, %v2038_v18  ;;  %v2140_v28 = vcombine.low %v2132_v14, %v2139_v30  ;;  %v2150_v53 = vcombine.high %v2132_v14, %v2139_v30 }
 0x2e3   :  { %v2597_v43 = vsel %vm1858_vm5, %v2578_v25, %v2580_v10  ;;  %v2351_v14 = vrot.slane %v2336_v44, %v19033_v33  ;;  %v2762_v23 = vcombine.high %v2641_v37, %v2642_v5  ;;  %v2299_v54 = vmax.f32 %v2287_v3, 0.0 }
 0x2e4   :  { %2049 = vst.msk [vmem:[#allocation2 + $0x60] ss:$8 sm:$0xf] %vm19156_vm6, %v2039_v50  ;;  %2050 = vst.msk [vmem:[#allocation2 + $0x60] ss:$8 sm:$0x30] %vm19156_vm6, %v2039_v50  ;;  %v2619_v34 = vmax.f32 %v19764_v11, %v2597_v43  ;;  %v2450_v25 = vcombine.low %v2442_v63, %v2449_v38  ;;  %v2499_v41 = vcombine.high %v2442_v63, %v2449_v38 }
 0x2e5   :  { %2059 = vst.msk [vmem:[#allocation2 + $0x61] ss:$8 sm:$0xf] %vm19156_vm6, %v2052_v27  ;;  %2060 = vst.msk [vmem:[#allocation2 + $0x61] ss:$8 sm:$0x30] %vm19156_vm6, %v2052_v27  ;;  %v2352_v45 = vcombine.low %v2344_v48, %v2351_v14  ;;  %v2401_v51 = vcombine.high %v2344_v48, %v2351_v14  ;;  %v2672_v39 = vrot.slane %v19126_v49, %v19033_v33 }
 0x2e6   :  { %2147 = vst.msk [vmem:[#allocation2 + $0x62] ss:$8 sm:$0xf] %vm19156_vm6, %v2140_v28  ;;  %2148 = vst.msk [vmem:[#allocation2 + $0x62] ss:$8 sm:$0x30] %vm19156_vm6, %v2140_v28  ;;  %v2770_v16 = vrot.slane %v19128_v58, %v19033_v33  ;;  %v2377_v12 = vcombine.low %v2362_v2, %v2369_v13  ;;  %v2475_v29 = vcombine.low %v2460_v60, %v2467_v52  ;;  %v2592_v2 = vpop.permute.xlu1 %2591 }
 0x2e7   :  { %2157 = vst.msk [vmem:[#allocation2 + $0x63] ss:$8 sm:$0xf] %vm19156_vm6, %v2150_v53  ;;  %2158 = vst.msk [vmem:[#allocation2 + $0x63] ss:$8 sm:$0x30] %vm19156_vm6, %v2150_v53  ;;  %v2355_v37 = vcombine.low %v2299_v54, %v2300_v15  ;;  %v2453_v49 = vcombine.high %v2299_v54, %v2300_v15  ;;  %v2631_v47 = vadd.f32 %v2619_v34, %v19096_v59 }
 0x2e8   :  { %2396 = vst.msk [vmem:[#allocation2 + $0x4] ss:$8 sm:$0xf] %vm19156_vm6, %v2352_v45  ;;  %2397 = vst.msk [vmem:[#allocation2 + $0x4] ss:$8 sm:$0x30] %vm19156_vm6, %v2352_v45  ;;  %v2679_v63 = vrot.slane %v2664_v40, %v19033_v33  ;;  %v2777_v21 = vrot.slane %v2762_v23, %v19033_v33  ;;  %v2384_v61 = vrot.slane %v2377_v12, %v19033_v33 }
 0x2e9   :  { %2406 = vst.msk [vmem:[#allocation2 + $0x5] ss:$8 sm:$0xf] %vm19156_vm6, %v2401_v51  ;;  %2407 = vst.msk [vmem:[#allocation2 + $0x5] ss:$8 sm:$0x30] %vm19156_vm6, %v2401_v51  ;;  %v2376_v6 = vrot.slane %v2355_v37, %v19033_v33  ;;  %v2474_v4 = vrot.slane %v2453_v49, %v19033_v33  ;;  %v2482_v18 = vrot.slane %v2475_v29, %v19033_v33 }
 0x2ea   :  { %2494 = vst.msk [vmem:[#allocation2 + $0x6] ss:$8 sm:$0xf] %vm19156_vm6, %v2450_v25  ;;  %2495 = vst.msk [vmem:[#allocation2 + $0x6] ss:$8 sm:$0x30] %vm19156_vm6, %v2450_v25  ;;  %v2687_v31 = vcombine.low %v2672_v39, %v2679_v63  ;;  %v2785_v8 = vcombine.low %v2770_v16, %v2777_v21 }
 0x2eb   :  { %2504 = vst.msk [vmem:[#allocation2 + $0x7] ss:$8 sm:$0xf] %vm19156_vm6, %v2499_v41  ;;  %2505 = vst.msk [vmem:[#allocation2 + $0x7] ss:$8 sm:$0x30] %vm19156_vm6, %v2499_v41  ;;  %v2391_v26 = vrot.slane %v2376_v6, %v19033_v33  ;;  %v2489_v7 = vrot.slane %v2474_v4, %v19033_v33 }
 0x2ec   :  { %v19765_v58 = vld [vmem:[#allocation29_spill] sm:$0xff]  ;;  %v2645_v60 = vmax.f32 %v19144_v20, 0.0  ;;  %v2646_v48 = vmax.f32 %v19163_v0, 0.0  ;;  %v2643_v30 = vmax.f32 %v2631_v47, 0.0  ;;  %v2601_v20 = vsel %vm1858_vm5, %v18983_v17, %v2590_v36  ;;  %v19768_v27 = vld [vmem:[#allocation31_spill] sm:$0xff] }
 0x2ed   :  { %v2620_v32 = vmax.f32 %v19765_v58, %v2580_v10  ;;  %v2602_v0 = vsel %vm1858_vm5, %v2590_v36, %v2592_v2  ;;  %v2624_v46 = vmax.f32 %v19766_v19, %v2601_v20  ;;  %v19767_v10 = vld [vmem:[#allocation30_spill] sm:$0xff]  ;;  %v2626_v28 = vmax.f32 %v19768_v27, %v2592_v2 }
 0x2ee   :  { %v2625_v50 = vmax.f32 %v19767_v10, %v2602_v0  ;;  %v2392_v53 = vcombine.low %v2384_v61, %v2391_v26  ;;  %v2402_v44 = vcombine.high %v2384_v61, %v2391_v26  ;;  %v2490_v42 = vcombine.low %v2482_v18, %v2489_v7 }
 0x2ef   :  { %v2632_v1 = vadd.f32 %v2620_v32, %v19099_v24  ;;  %v2500_v35 = vcombine.high %v2482_v18, %v2489_v7  ;;  %v2636_v36 = vadd.f32 %v2624_v46, %v19042_v9  ;;  %v2647_v3 = vmax.f32 %v19105_v57, 0.0 }
 0x2f0   :  { %v2637_v5 = vadd.f32 %v2625_v50, %v19096_v59  ;;  %v2703_v15 = vcombine.low %v2645_v60, %v2646_v48  ;;  %v2801_v43 = vcombine.high %v2645_v60, %v2646_v48  ;;  %2399 = vst.msk [vmem:[#allocation2 + $0x64] ss:$8 sm:$0xf] %vm19156_vm6, %v2392_v53  ;;  %2400 = vst.msk [vmem:[#allocation2 + $0x64] ss:$8 sm:$0x30] %vm19156_vm6, %v2392_v53 }
 0x2f1   :  { %v2644_v62 = vmax.f32 %v2632_v1, 0.0  ;;  %2409 = vst.msk [vmem:[#allocation2 + $0x65] ss:$8 sm:$0xf] %vm19156_vm6, %v2402_v44  ;;  %v2638_v9 = vadd.f32 %v2626_v28, %v19099_v24  ;;  %v2648_v14 = vmax.f32 %v2636_v36, 0.0  ;;  %v2694_v13 = vrot.slane %v2687_v31, %v19033_v33 }
 0x2f2   :  { %2410 = vst.msk [vmem:[#allocation2 + $0x65] ss:$8 sm:$0x30] %vm19156_vm6, %v2402_v44  ;;  %2497 = vst.msk [vmem:[#allocation2 + $0x66] ss:$8 sm:$0xf] %vm19156_vm6, %v2490_v42  ;;  %v2792_v52 = vrot.slane %v2785_v8, %v19033_v33  ;;  %v2712_v45 = vrot.slane %v2703_v15, %v19033_v33  ;;  %v2810_v24 = vrot.slane %v2801_v43, %v19033_v33 }
 0x2f3   :  { %v2665_v17 = vcombine.low %v2643_v30, %v2644_v62  ;;  %v2763_v55 = vcombine.high %v2643_v30, %v2644_v62  ;;  %2498 = vst.msk [vmem:[#allocation2 + $0x66] ss:$8 sm:$0x30] %vm19156_vm6, %v2490_v42  ;;  %2507 = vst.msk [vmem:[#allocation2 + $0x67] ss:$8 sm:$0xf] %vm19156_vm6, %v2500_v35  ;;  %v2704_v11 = vcombine.low %v2647_v3, %v2648_v14 }
 0x2f4   :  { %2508 = vst.msk [vmem:[#allocation2 + $0x67] ss:$8 sm:$0x30] %vm19156_vm6, %v2500_v35  ;;  %v2649_v38 = vmax.f32 %v2637_v5, 0.0  ;;  %v2650_v40 = vmax.f32 %v2638_v9, 0.0  ;;  %v2802_v34 = vcombine.high %v2647_v3, %v2648_v14 }
 0x2f5   :  { %v2686_v59 = vrot.slane %v2665_v17, %v19033_v33  ;;  %v2784_v57 = vrot.slane %v2763_v55, %v19033_v33  ;;  %v2719_v29 = vrot.slane %v2704_v11, %v19033_v33  ;;  %v3061_v1 = vld [vmem:[#allocation2] sm:$0xfe]  ;;  %v3064_v44 = vld [vmem:[#allocation2 + $0x18] sm:$0xfe] }
 0x2f6   :  { %v2705_v51 = vcombine.low %v2649_v38, %v2650_v40  ;;  %v2803_v25 = vcombine.high %v2649_v38, %v2650_v40  ;;  %v2817_v37 = vrot.slane %v2802_v34, %v19033_v33  ;;  %v3109_v46 = vrot.slane %v3061_v1, 1  ;;  %v16159_v43 = vld [vmem:[#allocation8 + $0x7c0] ss:$16 sps:$4 sm:$0xff]   ;;  %v16162_v9 = vld [vmem:[#allocation8 + $0x7c8] ss:$16 sps:$4 sm:$0xff]  }
 0x2f7   :  { %v2701_v23 = vrot.slane %v2686_v59, %v19033_v33  ;;  %v2799_v54 = vrot.slane %v2784_v57, %v19033_v33  ;;  %v2727_v32 = vcombine.low %v2712_v45, %v2719_v29  ;;  %v3118_v57 = vrot.slane %v3064_v44, 1  ;;  %v16173_v11 = vld [vmem:[#allocation8 + $0x804] ss:$16 sps:$4 sm:$0xff]   ;;  %v16176_v34 = vld [vmem:[#allocation8 + $0x80c] ss:$16 sps:$4 sm:$0xff]  }
 0x2f8   :  { %v2726_v49 = vrot.slane %v2705_v51, %v19033_v33  ;;  %v2824_v58 = vrot.slane %v2803_v25, %v19033_v33  ;;  %v2825_v47 = vcombine.low %v2810_v24, %v2817_v37  ;;  %v16171_v45 = vld [vmem:[#allocation8 + $0x800] ss:$16 sps:$4 sm:$0xff]   ;;  %v16174_v24 = vld [vmem:[#allocation8 + $0x808] ss:$16 sps:$4 sm:$0xff]   ;;  %v16179_v51 = vld [vmem:[#allocation8 + $0x824] ss:$16 sps:$4 sm:$0xff]  }
 0x2f9   :  { %v2702_v41 = vcombine.low %v2694_v13, %v2701_v23  ;;  %v2751_v39 = vcombine.high %v2694_v13, %v2701_v23  ;;  %v2800_v16 = vcombine.low %v2792_v52, %v2799_v54  ;;  %v2849_v12 = vcombine.high %v2792_v52, %v2799_v54  ;;  %v16167_v13 = vld [vmem:[#allocation8 + $0x7e4] ss:$16 sps:$4 sm:$0xff]   ;;  %v16170_v52 = vld [vmem:[#allocation8 + $0x7ec] ss:$16 sps:$4 sm:$0xff]   ;;  %v16165_v23 = vld [vmem:[#allocation8 + $0x7e0] ss:$16 sps:$4 sm:$0xff]  }
 0x2fa   :  { %v2741_v2 = vrot.slane %v2726_v49, %v19033_v33  ;;  %v2839_v60 = vrot.slane %v2824_v58, %v19033_v33  ;;  %v2734_v48 = vrot.slane %v2727_v32, %v19033_v33  ;;  %v2832_v63 = vrot.slane %v2825_v47, %v19033_v33  ;;  %v3062_v33 = vld [vmem:[#allocation2 + $0x8] sm:$0xfe]  ;;  %v3073_v26 = vld [vmem:[#allocation2 + $0x60] sm:$0xfe]  ;;  %v3076_v7 = vld [vmem:[#allocation2 + $0x78] sm:$0xfe] }
 0x2fb   :  { %2746 = vst.msk [vmem:[#allocation2 + $0x30] ss:$8 sm:$0xf] %vm19156_vm6, %v2702_v41  ;;  %2747 = vst.msk [vmem:[#allocation2 + $0x30] ss:$8 sm:$0x30] %vm19156_vm6, %v2702_v41 }
 0x2fc   :  { %2756 = vst.msk [vmem:[#allocation2 + $0x31] ss:$8 sm:$0xf] %vm19156_vm6, %v2751_v39  ;;  %2757 = vst.msk [vmem:[#allocation2 + $0x31] ss:$8 sm:$0x30] %vm19156_vm6, %v2751_v39  ;;  %v2742_v21 = vcombine.low %v2734_v48, %v2741_v2  ;;  %v2752_v61 = vcombine.high %v2734_v48, %v2741_v2  ;;  %v2840_v6 = vcombine.low %v2832_v63, %v2839_v60 }
 0x2fd   :  { %2844 = vst.msk [vmem:[#allocation2 + $0x32] ss:$8 sm:$0xf] %vm19156_vm6, %v2800_v16  ;;  %2845 = vst.msk [vmem:[#allocation2 + $0x32] ss:$8 sm:$0x30] %vm19156_vm6, %v2800_v16  ;;  %v2850_v4 = vcombine.high %v2832_v63, %v2839_v60 }
 0x2fe   :  { %2854 = vst.msk [vmem:[#allocation2 + $0x33] ss:$8 sm:$0xf] %vm19156_vm6, %v2849_v12  ;;  %2855 = vst.msk [vmem:[#allocation2 + $0x33] ss:$8 sm:$0x30] %vm19156_vm6, %v2849_v12 }
 0x2ff   :  { %2749 = vst.msk [vmem:[#allocation2 + $0x90] ss:$8 sm:$0xf] %vm19156_vm6, %v2742_v21  ;;  %2750 = vst.msk [vmem:[#allocation2 + $0x90] ss:$8 sm:$0x30] %vm19156_vm6, %v2742_v21 }
 0x300   :  { %2759 = vst.msk [vmem:[#allocation2 + $0x91] ss:$8 sm:$0xf] %vm19156_vm6, %v2752_v61  ;;  %2760 = vst.msk [vmem:[#allocation2 + $0x91] ss:$8 sm:$0x30] %vm19156_vm6, %v2752_v61 }
 0x301   :  { %2847 = vst.msk [vmem:[#allocation2 + $0x92] ss:$8 sm:$0xf] %vm19156_vm6, %v2840_v6  ;;  %2848 = vst.msk [vmem:[#allocation2 + $0x92] ss:$8 sm:$0x30] %vm19156_vm6, %v2840_v6 }
 0x302   :  { %2857 = vst.msk [vmem:[#allocation2 + $0x93] ss:$8 sm:$0xf] %vm19156_vm6, %v2850_v4  ;;  %2858 = vst.msk [vmem:[#allocation2 + $0x93] ss:$8 sm:$0x30] %vm19156_vm6, %v2850_v4 }
 0x303   :  { %v3068_v18 = vld [vmem:[#allocation2 + $0x38] sm:$0x1]  ;;  %v3074_v30 = vld [vmem:[#allocation2 + $0x68] sm:$0xfe]  ;;  %v3067_v20 = vld [vmem:[#allocation2 + $0x30] sm:$0x1] }
 0x304   :  { %v3112_v0 = vrot.slane %v3062_v33, 1  ;;  %v3113_v62 = vrot.slane %v3068_v18, 1  ;;  %v3130_v19 = vrot.slane %v3074_v30, 1  ;;  %v3110_v31 = vrot.slane %v3067_v20, 1  ;;  %v3070_v8 = vld [vmem:[#allocation2 + $0x48] sm:$0x1] }
 0x305   :  { %v3127_v53 = vrot.slane %v3073_v26, 1  ;;  %v3119_v35 = vrot.slane %v3070_v8, 1  ;;  %v3136_v17 = vrot.slane %v3076_v7, 1  ;;  %v16168_v54 = vld [vmem:[#allocation8 + $0x7e8] ss:$16 sps:$4 sm:$0xff]  }
 0x306   :  { %v3080_v10 = vld [vmem:[#allocation2 + $0x98] sm:$0x1]  ;;  %v3079_v50 = vld [vmem:[#allocation2 + $0x90] sm:$0x1]  ;;  %v3082_v27 = vld [vmem:[#allocation2 + $0xa8] sm:$0x1]  ;;  %v3114_v55 = vsel %vm166_vm1, %v3112_v0, %v3113_v62  ;;  %v3111_v5 = vsel %vm166_vm1, %v3109_v46, %v3110_v31 }
 0x307   :  { %v3131_v28 = vrot.slane %v3080_v10, 1  ;;  %v3128_v56 = vrot.slane %v3079_v50, 1  ;;  %v3137_v42 = vrot.slane %v3082_v27, 1  ;;  %v3120_v38 = vsel %vm166_vm1, %v3118_v57, %v3119_v35  ;;  %v16182_v25 = vld [vmem:[#allocation8 + $0x82c] ss:$16 sps:$4 sm:$0xff]  }
 0x308   :  { %v16177_v41 = vld [vmem:[#allocation8 + $0x820] ss:$16 sps:$4 sm:$0xff]   ;;  %v16180_v39 = vld [vmem:[#allocation8 + $0x828] ss:$16 sps:$4 sm:$0xff]   ;;  %v16185_v16 = vld [vmem:[#allocation8 + $0x844] ss:$16 sps:$4 sm:$0xff]  }
 0x309   :  { %v3132_v36 = vsel %vm166_vm1, %v3130_v19, %v3131_v28  ;;  %v3129_v3 = vsel %vm166_vm1, %v3127_v53, %v3128_v56  ;;  %v3138_v14 = vsel %vm166_vm1, %v3136_v17, %v3137_v42  ;;  %v16188_v12 = vld [vmem:[#allocation8 + $0x84c] ss:$16 sps:$4 sm:$0xff]   ;;  %v16183_v29 = vld [vmem:[#allocation8 + $0x840] ss:$16 sps:$4 sm:$0xff]   ;;  %v16186_v37 = vld [vmem:[#allocation8 + $0x848] ss:$16 sps:$4 sm:$0xff]  }
 0x30a   :  { %v3158_v15 = vpack.c.bf16 %v3132_v36, %v3114_v55  ;;  %v3157_v59 = vpack.c.bf16 %v3129_v3, %v3111_v5  ;;  %v3160_v40 = vpack.c.bf16 %v3138_v14, %v3120_v38  ;;  %v16191_v49 = vld [vmem:[#allocation8 + $0x864] ss:$16 sps:$4 sm:$0xff]   ;;  %v16194_v58 = vld [vmem:[#allocation8 + $0x86c] ss:$16 sps:$4 sm:$0xff]   ;;  %v16189_v32 = vld [vmem:[#allocation8 + $0x860] ss:$16 sps:$4 sm:$0xff]  }
 0x30b   :  { %v16192_v47 = vld [vmem:[#allocation8 + $0x868] ss:$16 sps:$4 sm:$0xff]   ;;  %v16197_v2 = vld [vmem:[#allocation8 + $0x884] ss:$16 sps:$4 sm:$0xff]   ;;  %v16200_v60 = vld [vmem:[#allocation8 + $0x88c] ss:$16 sps:$4 sm:$0xff]  }
 0x30c   :  { %4303 = vmatprep.mubr.bf16.mxu1 %v3158_v15  ;;  %4432 = vmatprep.mubr.bf16.mxu0 %v3158_v15  ;;  %v16195_v48 = vld [vmem:[#allocation8 + $0x880] ss:$16 sps:$4 sm:$0xff]   ;;  %v16198_v63 = vld [vmem:[#allocation8 + $0x888] ss:$16 sps:$4 sm:$0xff]   ;;  %v16203_v21 = vld [vmem:[#allocation8 + $0x8a4] ss:$16 sps:$4 sm:$0xff]  }
 0x30d   :  { %4304 = vmatmul.mubr.bf16.vlgmr.msra.gmra.mrb[12].mxu1 %v3157_v59  ;;  %4433 = vmatmul.mubr.bf16.vlgmr.msra.gmra.mrb[24].mxu0 %v3157_v59  ;;  %v16206_v61 = vld [vmem:[#allocation8 + $0x8ac] ss:$16 sps:$4 sm:$0xff]   ;;  %v16201_v6 = vld [vmem:[#allocation8 + $0x8a0] ss:$16 sps:$4 sm:$0xff]   ;;  %v16204_v4 = vld [vmem:[#allocation8 + $0x8a8] ss:$16 sps:$4 sm:$0xff]  }
 0x30e   :  { %4315 = vmatpush1.bf16.msra.mxu1 %v16159_v43  ;;  %4444 = vmatpush1.bf16.msra.mxu0 %v16162_v9  ;;  %v16209_v33 = vld [vmem:[#allocation8 + $0x8c4] ss:$16 sps:$4 sm:$0xff]   ;;  %v16212_v1 = vld [vmem:[#allocation8 + $0x8cc] ss:$16 sps:$4 sm:$0xff]   ;;  %v16207_v18 = vld [vmem:[#allocation8 + $0x8c0] ss:$16 sps:$4 sm:$0xff]  }
 0x30f   :  { %4346 = vmatprep.mubr.bf16.mxu1 %v3160_v40  ;;  %4475 = vmatprep.mubr.bf16.mxu0 %v3160_v40  ;;  %v16210_v30 = vld [vmem:[#allocation8 + $0x8c8] ss:$16 sps:$4 sm:$0xff]   ;;  %v16215_v20 = vld [vmem:[#allocation8 + $0x8e4] ss:$16 sps:$4 sm:$0xff]   ;;  %v16218_v0 = vld [vmem:[#allocation8 + $0x8ec] ss:$16 sps:$4 sm:$0xff]  }
 0x310   :  { %4316 = vmatprep.subr.bf16.mxu1 %v16167_v13  ;;  %4445 = vmatprep.subr.bf16.mxu0 %v16170_v52  ;;  %v16213_v26 = vld [vmem:[#allocation8 + $0x8e0] ss:$16 sps:$4 sm:$0xff]   ;;  %v16216_v7 = vld [vmem:[#allocation8 + $0x8e8] ss:$16 sps:$4 sm:$0xff]   ;;  %v16221_v62 = vld [vmem:[#allocation8 + $0x904] ss:$16 sps:$4 sm:$0xff]  }
 0x311   :  { %v16224_v19 = vld [vmem:[#allocation8 + $0x90c] ss:$16 sps:$4 sm:$0xff]   ;;  %v16219_v46 = vld [vmem:[#allocation8 + $0x900] ss:$16 sps:$4 sm:$0xff]   ;;  %v16222_v31 = vld [vmem:[#allocation8 + $0x908] ss:$16 sps:$4 sm:$0xff]  }
 0x312   :  { %4317 = vmatpush1.bf16.msra.mxu1 %v16165_v23  ;;  %4446 = vmatpush1.bf16.msra.mxu0 %v16168_v54  ;;  %v16227_v8 = vld [vmem:[#allocation8 + $0x924] ss:$16 sps:$4 sm:$0xff]   ;;  %v16230_v10 = vld [vmem:[#allocation8 + $0x92c] ss:$16 sps:$4 sm:$0xff]   ;;  %v16225_v50 = vld [vmem:[#allocation8 + $0x920] ss:$16 sps:$4 sm:$0xff]  }
 0x313   :  { %4318 = vmatprep.subr.bf16.mxu1 %v16173_v11  ;;  %4447 = vmatprep.subr.bf16.mxu0 %v16176_v34  ;;  %v16228_v27 = vld [vmem:[#allocation8 + $0x928] ss:$16 sps:$4 sm:$0xff]   ;;  %v16233_v28 = vld [vmem:[#allocation8 + $0x944] ss:$16 sps:$4 sm:$0xff]   ;;  %v16236_v53 = vld [vmem:[#allocation8 + $0x94c] ss:$16 sps:$4 sm:$0xff]  }
 0x314   :  { %v16231_v56 = vld [vmem:[#allocation8 + $0x940] ss:$16 sps:$4 sm:$0xff]   ;;  %v16234_v44 = vld [vmem:[#allocation8 + $0x948] ss:$16 sps:$4 sm:$0xff]   ;;  %v16239_v42 = vld [vmem:[#allocation8 + $0x964] ss:$16 sps:$4 sm:$0xff]  }
 0x315   :  { %v16242_v35 = vld [vmem:[#allocation8 + $0x96c] ss:$16 sps:$4 sm:$0xff]   ;;  %v16237_v17 = vld [vmem:[#allocation8 + $0x960] ss:$16 sps:$4 sm:$0xff]   ;;  %v16240_v55 = vld [vmem:[#allocation8 + $0x968] ss:$16 sps:$4 sm:$0xff]  }
 0x316   :  { %4319 = vmatpush1.bf16.msra.mxu1 %v16171_v45  ;;  %4448 = vmatpush1.bf16.msra.mxu0 %v16174_v24  ;;  %v16245_v36 = vld [vmem:[#allocation8 + $0x984] ss:$16 sps:$4 sm:$0xff]   ;;  %v16248_v5 = vld [vmem:[#allocation8 + $0x98c] ss:$16 sps:$4 sm:$0xff]   ;;  %v16243_v3 = vld [vmem:[#allocation8 + $0x980] ss:$16 sps:$4 sm:$0xff]  }
 0x317   :  { %4320 = vmatprep.subr.bf16.mxu1 %v16179_v51  ;;  %4449 = vmatprep.subr.bf16.mxu0 %v16182_v25  ;;  %v3081_v15 = vld [vmem:[#allocation2 + $0xa0] sm:$0x1]  ;;  %v16251_v9 = vld [vmem:[#allocation8 + $0x9a4] ss:$16 sps:$4 sm:$0xff]   ;;  %v3084_v59 = vld [vmem:[#allocation2 + $0xb8] sm:$0x1] }
 0x318   :  { %v16246_v43 = vld [vmem:[#allocation8 + $0x988] ss:$16 sps:$4 sm:$0xff]   ;;  %v16254_v57 = vld [vmem:[#allocation8 + $0x9ac] ss:$16 sps:$4 sm:$0xff]   ;;  %v3134_v13 = vrot.slane %v3081_v15, 1  ;;  %v3143_v11 = vrot.slane %v3084_v59, 1 }
 0x319   :  { %v3069_v14 = vld [vmem:[#allocation2 + $0x40] sm:$0x1]  ;;  %v3075_v38 = vld [vmem:[#allocation2 + $0x70] sm:$0xfe]  ;;  %v3072_v52 = vld [vmem:[#allocation2 + $0x58] sm:$0x1] }
 0x31a   :  { %4321 = vmatpush1.bf16.msra.mxu1 %v16177_v41  ;;  %4450 = vmatpush1.bf16.msra.mxu0 %v16180_v39  ;;  %v3078_v40 = vld [vmem:[#allocation2 + $0x88] sm:$0xfe]  ;;  %v3063_v54 = vld [vmem:[#allocation2 + $0x10] sm:$0xfe]  ;;  %v3116_v45 = vrot.slane %v3069_v14, 1  ;;  %v3133_v24 = vrot.slane %v3075_v38, 1 }
 0x31b   :  { %4322 = vmatprep.subr.bf16.mxu1 %v16185_v16  ;;  %4451 = vmatprep.subr.bf16.mxu0 %v16188_v12  ;;  %v16249_v23 = vld [vmem:[#allocation8 + $0x9a0] ss:$16 sps:$4 sm:$0xff]   ;;  %v16252_v34 = vld [vmem:[#allocation8 + $0x9a8] ss:$16 sps:$4 sm:$0xff]   ;;  %v16257_v25 = vld [vmem:[#allocation8 + $0x9c4] ss:$16 sps:$4 sm:$0xff]  }
 0x31c   :  { %v3066_v51 = vld [vmem:[#allocation2 + $0x28] sm:$0xfe]  ;;  %v16260_v41 = vld [vmem:[#allocation8 + $0x9cc] ss:$16 sps:$4 sm:$0xff]   ;;  %v3125_v39 = vrot.slane %v3072_v52, 1  ;;  %v3142_v16 = vrot.slane %v3078_v40, 1 }
 0x31d   :  { %v3115_v12 = vrot.slane %v3063_v54, 1  ;;  %v16311_v15 = vld [vmem:[#allocation8 + $0xae4] ss:$16 sps:$4 sm:$0xff]   ;;  %v16312_v59 = vld [vmem:[#allocation8 + $0xae8] ss:$16 sps:$4 sm:$0xff]  }
 0x31e   :  { %4323 = vmatpush1.bf16.msra.mxu1 %v16183_v29  ;;  %4452 = vmatpush1.bf16.msra.mxu0 %v16186_v37  ;;  %v3135_v29 = vsel %vm166_vm1, %v3133_v24, %v3134_v13  ;;  %v3124_v37 = vrot.slane %v3066_v51, 1  ;;  %v16320_v14 = vld [vmem:[#allocation8 + $0xb0c] ss:$16 sps:$4 sm:$0xff]   ;;  %v16315_v38 = vld [vmem:[#allocation8 + $0xb00] ss:$16 sps:$4 sm:$0xff]  }
 0x31f   :  { %4324 = vmatprep.subr.bf16.mxu1 %v16191_v49  ;;  %4453 = vmatprep.subr.bf16.mxu0 %v16194_v58  ;;  %v3144_v49 = vsel %vm166_vm1, %v3142_v16, %v3143_v11  ;;  %v3117_v58 = vsel %vm166_vm1, %v3115_v12, %v3116_v45  ;;  %v16318_v13 = vld [vmem:[#allocation8 + $0xb08] ss:$16 sps:$4 sm:$0xff]   ;;  %v16323_v52 = vld [vmem:[#allocation8 + $0xb24] ss:$16 sps:$4 sm:$0xff]   ;;  %v16326_v40 = vld [vmem:[#allocation8 + $0xb2c] ss:$16 sps:$4 sm:$0xff]  }
 0x320   :  { %v16324_v54 = vld [vmem:[#allocation8 + $0xb28] ss:$16 sps:$4 sm:$0xff]   ;;  %v16329_v11 = vld [vmem:[#allocation8 + $0xb44] ss:$16 sps:$4 sm:$0xff]   ;;  %v16327_v24 = vld [vmem:[#allocation8 + $0xb40] ss:$16 sps:$4 sm:$0xff]  }
 0x321   :  { %v3083_v45 = vld [vmem:[#allocation2 + $0xb0] sm:$0x1]  ;;  %v3077_v51 = vld [vmem:[#allocation2 + $0x80] sm:$0xfe] }
 0x322   :  { %4325 = vmatpush1.bf16.msra.mxu1 %v16189_v32  ;;  %4454 = vmatpush1.bf16.msra.mxu0 %v16192_v47  ;;  %v16255_v32 = vld [vmem:[#allocation8 + $0x9c0] ss:$16 sps:$4 sm:$0xff]   ;;  %v3159_v47 = vpack.c.bf16 %v3135_v29, %v3117_v58  ;;  %v16338_v16 = vld [vmem:[#allocation8 + $0xb6c] ss:$16 sps:$4 sm:$0xff]   ;;  %v3140_v12 = vrot.slane %v3083_v45, 1  ;;  %v3139_v58 = vrot.slane %v3077_v51, 1 }
 0x323   :  { %4326 = vmatprep.subr.bf16.mxu1 %v16197_v2  ;;  %4455 = vmatprep.subr.bf16.mxu0 %v16200_v60  ;;  %v16258_v2 = vld [vmem:[#allocation8 + $0x9c8] ss:$16 sps:$4 sm:$0xff]   ;;  %v3126_v60 = vsel %vm166_vm1, %v3124_v37, %v3125_v39  ;;  %v16333_v37 = vld [vmem:[#allocation8 + $0xb60] ss:$16 sps:$4 sm:$0xff]   ;;  %v16410_v51 = vld [vmem:[#allocation8 + $0x16c] ss:$16 sps:$4 sm:$0xff]  }
 0x324   :  { %v3071_v39 = vld [vmem:[#allocation2 + $0x50] sm:$0x1]  ;;  %v3065_v29 = vld [vmem:[#allocation2 + $0x20] sm:$0xfe] }
 0x325   :  { %v16402_v45 = vld [vmem:[#allocation8 + $0x148] ss:$16 sps:$4 sm:$0xff]  }
 0x326   :  { %4327 = vmatpush1.bf16.msra.mxu1 %v16195_v48  ;;  %4456 = vmatpush1.bf16.msra.mxu0 %v16198_v63  ;;  %v3162_v48 = vpack.c.bf16 %v3144_v49, %v3126_v60  ;;  %v16263_v63 = vld [vmem:[#allocation8 + $0x9e4] ss:$16 sps:$4 sm:$0xff]   ;;  %v3122_v49 = vrot.slane %v3071_v39, 1  ;;  %v3141_v60 = vsel %vm166_vm1, %v3139_v58, %v3140_v12  ;;  %v16411_v12 = vld [vmem:[#allocation8 + $0x180] ss:$16 sps:$4 sm:$0xff]  }
 0x327   :  { %4328 = vmatprep.subr.bf16.mxu1 %v16203_v21  ;;  %4457 = vmatprep.subr.bf16.mxu0 %v16206_v61  ;;  %v16266_v21 = vld [vmem:[#allocation8 + $0x9ec] ss:$16 sps:$4 sm:$0xff]   ;;  %v16261_v61 = vld [vmem:[#allocation8 + $0x9e0] ss:$16 sps:$4 sm:$0xff]   ;;  %v16413_v39 = vld [vmem:[#allocation8 + $0x184] ss:$16 sps:$4 sm:$0xff]  }
 0x328   :  { %v16417_v58 = vld [vmem:[#allocation8 + $0x1a0] ss:$16 sps:$4 sm:$0xff]  }
 0x32a   :  { %4329 = vmatpush1.bf16.msra.mxu1 %v16201_v6  ;;  %4458 = vmatpush1.bf16.msra.mxu0 %v16204_v4  ;;  %v16264_v6 = vld [vmem:[#allocation8 + $0x9e8] ss:$16 sps:$4 sm:$0xff]   ;;  %v16269_v4 = vld [vmem:[#allocation8 + $0xa04] ss:$16 sps:$4 sm:$0xff]  }
 0x32b   :  { %4330 = vmatprep.subr.bf16.mxu1 %v16209_v33  ;;  %4459 = vmatprep.subr.bf16.mxu0 %v16212_v1  ;;  %v16272_v33 = vld [vmem:[#allocation8 + $0xa0c] ss:$16 sps:$4 sm:$0xff]   ;;  %v16267_v1 = vld [vmem:[#allocation8 + $0xa00] ss:$16 sps:$4 sm:$0xff]  }
 0x32e   :  { %4331 = vmatpush1.bf16.msra.mxu1 %v16207_v18  ;;  %4460 = vmatpush1.bf16.msra.mxu0 %v16210_v30  ;;  %v16270_v18 = vld [vmem:[#allocation8 + $0xa08] ss:$16 sps:$4 sm:$0xff]   ;;  %v16275_v30 = vld [vmem:[#allocation8 + $0xa24] ss:$16 sps:$4 sm:$0xff]  }
 0x32f   :  { %4332 = vmatprep.subr.bf16.mxu1 %v16215_v20  ;;  %4461 = vmatprep.subr.bf16.mxu0 %v16218_v0  ;;  %v16278_v20 = vld [vmem:[#allocation8 + $0xa2c] ss:$16 sps:$4 sm:$0xff]   ;;  %v16273_v0 = vld [vmem:[#allocation8 + $0xa20] ss:$16 sps:$4 sm:$0xff]  }
 0x332   :  { %4333 = vmatpush1.bf16.msra.mxu1 %v16213_v26  ;;  %4462 = vmatpush1.bf16.msra.mxu0 %v16216_v7  ;;  %v16276_v26 = vld [vmem:[#allocation8 + $0xa28] ss:$16 sps:$4 sm:$0xff]   ;;  %v16281_v7 = vld [vmem:[#allocation8 + $0xa44] ss:$16 sps:$4 sm:$0xff]  }
 0x333   :  { %4334 = vmatprep.subr.bf16.mxu1 %v16221_v62  ;;  %4463 = vmatprep.subr.bf16.mxu0 %v16224_v19  ;;  %v16284_v62 = vld [vmem:[#allocation8 + $0xa4c] ss:$16 sps:$4 sm:$0xff]   ;;  %v16279_v19 = vld [vmem:[#allocation8 + $0xa40] ss:$16 sps:$4 sm:$0xff]  }
 0x336   :  { %4335 = vmatpush1.bf16.msra.mxu1 %v16219_v46  ;;  %4464 = vmatpush1.bf16.msra.mxu0 %v16222_v31  ;;  %v16282_v46 = vld [vmem:[#allocation8 + $0xa48] ss:$16 sps:$4 sm:$0xff]   ;;  %v16287_v31 = vld [vmem:[#allocation8 + $0xa64] ss:$16 sps:$4 sm:$0xff]  }
 0x337   :  { %4336 = vmatprep.subr.bf16.mxu1 %v16227_v8  ;;  %4465 = vmatprep.subr.bf16.mxu0 %v16230_v10  ;;  %v16290_v8 = vld [vmem:[#allocation8 + $0xa6c] ss:$16 sps:$4 sm:$0xff]   ;;  %v16285_v10 = vld [vmem:[#allocation8 + $0xa60] ss:$16 sps:$4 sm:$0xff]  }
 0x33a   :  { %4337 = vmatpush1.bf16.msra.mxu1 %v16225_v50  ;;  %4466 = vmatpush1.bf16.msra.mxu0 %v16228_v27  ;;  %v16288_v50 = vld [vmem:[#allocation8 + $0xa68] ss:$16 sps:$4 sm:$0xff]   ;;  %v16293_v27 = vld [vmem:[#allocation8 + $0xa84] ss:$16 sps:$4 sm:$0xff]  }
 0x33b   :  { %4338 = vmatprep.subr.bf16.mxu1 %v16233_v28  ;;  %4467 = vmatprep.subr.bf16.mxu0 %v16236_v53  ;;  %v16296_v28 = vld [vmem:[#allocation8 + $0xa8c] ss:$16 sps:$4 sm:$0xff]   ;;  %v16291_v53 = vld [vmem:[#allocation8 + $0xa80] ss:$16 sps:$4 sm:$0xff]  }
 0x33e   :  { %4339 = vmatpush1.bf16.msra.mxu1 %v16231_v56  ;;  %4468 = vmatpush1.bf16.msra.mxu0 %v16234_v44  ;;  %v16294_v56 = vld [vmem:[#allocation8 + $0xa88] ss:$16 sps:$4 sm:$0xff]   ;;  %v16299_v44 = vld [vmem:[#allocation8 + $0xaa4] ss:$16 sps:$4 sm:$0xff]  }
 0x33f   :  { %4340 = vmatprep.subr.bf16.mxu1 %v16239_v42  ;;  %4469 = vmatprep.subr.bf16.mxu0 %v16242_v35  ;;  %v16302_v42 = vld [vmem:[#allocation8 + $0xaac] ss:$16 sps:$4 sm:$0xff]   ;;  %v16297_v35 = vld [vmem:[#allocation8 + $0xaa0] ss:$16 sps:$4 sm:$0xff]  }
 0x342   :  { %4341 = vmatpush1.bf16.msra.mxu1 %v16237_v17  ;;  %4470 = vmatpush1.bf16.msra.mxu0 %v16240_v55  ;;  %v16300_v17 = vld [vmem:[#allocation8 + $0xaa8] ss:$16 sps:$4 sm:$0xff]   ;;  %v16305_v55 = vld [vmem:[#allocation8 + $0xac4] ss:$16 sps:$4 sm:$0xff]  }
 0x343   :  { %4342 = vmatprep.subr.bf16.mxu1 %v16245_v36  ;;  %4471 = vmatprep.subr.bf16.mxu0 %v16248_v5  ;;  %v16308_v36 = vld [vmem:[#allocation8 + $0xacc] ss:$16 sps:$4 sm:$0xff]   ;;  %v16303_v5 = vld [vmem:[#allocation8 + $0xac0] ss:$16 sps:$4 sm:$0xff]  }
 0x346   :  { %4343 = vmatpush1.bf16.msra.mxu1 %v16243_v3  ;;  %4472 = vmatpush1.bf16.msra.mxu0 %v16246_v43  ;;  %v16306_v3 = vld [vmem:[#allocation8 + $0xac8] ss:$16 sps:$4 sm:$0xff]   ;;  %v16314_v43 = vld [vmem:[#allocation8 + $0xaec] ss:$16 sps:$4 sm:$0xff]  }
 0x347   :  { %4344 = vmatprep.subr.bf16.mxu1 %v16251_v9  ;;  %4473 = vmatprep.subr.bf16.mxu0 %v16254_v57  ;;  %v16309_v9 = vld [vmem:[#allocation8 + $0xae0] ss:$16 sps:$4 sm:$0xff]   ;;  %v16317_v57 = vld [vmem:[#allocation8 + $0xb04] ss:$16 sps:$4 sm:$0xff]  }
 0x34a   :  { %4345 = vmatpush1.bf16.msra.mxu1 %v16249_v23  ;;  %4474 = vmatpush1.bf16.msra.mxu0 %v16252_v34  ;;  %v16321_v23 = vld [vmem:[#allocation8 + $0xb20] ss:$16 sps:$4 sm:$0xff]   ;;  %v16332_v34 = vld [vmem:[#allocation8 + $0xb4c] ss:$16 sps:$4 sm:$0xff]  }
 0x34b   :  { %4357 = vmatprep.subr.bf16.mxu1 %v16257_v25  ;;  %4486 = vmatprep.subr.bf16.mxu0 %v16260_v41  ;;  %v16330_v25 = vld [vmem:[#allocation8 + $0xb48] ss:$16 sps:$4 sm:$0xff]   ;;  %v16335_v41 = vld [vmem:[#allocation8 + $0xb64] ss:$16 sps:$4 sm:$0xff]  }
 0x34d   :  { %4347 = vmatmul.mubr.bf16.vlgmr.msra.gmra.mrb[12].mxu1 %v3159_v47  ;;  %4476 = vmatmul.mubr.bf16.vlgmr.msra.gmra.mrb[24].mxu0 %v3159_v47  ;;  %v16341_v47 = vld [vmem:[#allocation8 + $0x4] ss:$16 sps:$4 sm:$0xff]  }
 0x34e   :  { %4358 = vmatpush1.bf16.msra.mxu1 %v16255_v32  ;;  %14420 = vmatprep.mubr.msk.bf16.mxu1 %vm1858_vm5, %v3162_v48  ;;  %v16336_v32 = vld [vmem:[#allocation8 + $0xb68] ss:$16 sps:$4 sm:$0xff]  }
 0x34f   :  { %4487 = vmatpush1.bf16.msra.mxu0 %v16258_v2  ;;  %14421 = vmatprep.mubr.msk.bf16.mxu0 %vm1858_vm5, %v3162_v48  ;;  %v3121_v2 = vrot.slane %v3065_v29, 1  ;;  %v16344_v48 = vld [vmem:[#allocation8 + $0xc] ss:$16 sps:$4 sm:$0xff]   ;;  %v16414_v29 = vld [vmem:[#allocation8 + $0x188] ss:$16 sps:$4 sm:$0xff]  }
 0x350   :  { %4359 = vmatprep.subr.bf16.mxu1 %v16263_v63  ;;  %4488 = vmatprep.subr.bf16.mxu0 %v16266_v21  ;;  %v16339_v21 = vld [vmem:[#allocation8] ss:$16 sps:$4 sm:$0xff]  }
 0x351   :  { %v3123_v63 = vsel %vm166_vm1, %v3121_v2, %v3122_v49  ;;  %v16422_v49 = vld [vmem:[#allocation8 + $0x1ac] ss:$16 sps:$4 sm:$0xff]  }
 0x352   :  { %4360 = vmatpush1.bf16.msra.mxu1 %v16261_v61  ;;  %v2866_v61 = vld [vmem:[#allocation2 + $0x68] sm:$0xff]  ;;  %v16428_v2 = vld [vmem:[#allocation8 + $0x1cc] ss:$16 sps:$4 sm:$0xff]  }
 0x353   :  { %4489 = vmatpush1.bf16.msra.mxu0 %v16264_v6  ;;  %4361 = vmatprep.subr.bf16.mxu1 %v16269_v4  ;;  %v3161_v6 = vpack.c.bf16 %v3141_v60, %v3123_v63  ;;  %v16342_v4 = vld [vmem:[#allocation8 + $0x8] ss:$16 sps:$4 sm:$0xff]   ;;  %v16423_v60 = vld [vmem:[#allocation8 + $0x1c0] ss:$16 sps:$4 sm:$0xff]   ;;  %v16431_v63 = vld [vmem:[#allocation8 + $0x1e4] ss:$16 sps:$4 sm:$0xff]  }
 0x354   :  { %4490 = vmatprep.subr.bf16.mxu0 %v16272_v33  ;;  %v2860_v33 = vld [vmem:[#allocation2 + $0x8] sm:$0xff] }
 0x356   :  { %4362 = vmatpush1.bf16.msra.mxu1 %v16267_v1  ;;  %v16347_v1 = vld [vmem:[#allocation8 + $0x24] ss:$16 sps:$4 sm:$0xff]  }
 0x357   :  { %4491 = vmatpush1.bf16.msra.mxu0 %v16270_v18  ;;  %4363 = vmatprep.subr.bf16.mxu1 %v16275_v30  ;;  %v2872_v18 = vpack.c.bf16 %v2866_v61, %v2860_v33  ;;  %v16350_v30 = vld [vmem:[#allocation8 + $0x2c] ss:$16 sps:$4 sm:$0xff]   ;;  %v16429_v61 = vld [vmem:[#allocation8 + $0x1e0] ss:$16 sps:$4 sm:$0xff]  }
 0x358   :  { %4492 = vmatprep.subr.bf16.mxu0 %v16278_v20  ;;  %v16345_v20 = vld [vmem:[#allocation8 + $0x20] ss:$16 sps:$4 sm:$0xff]  }
 0x359   :  { %v2865_v33 = vld [vmem:[#allocation2 + $0x60] sm:$0xff] }
 0x35a   :  { %4364 = vmatpush1.bf16.msra.mxu1 %v16273_v0  ;;  %v16348_v0 = vld [vmem:[#allocation8 + $0x28] ss:$16 sps:$4 sm:$0xff]  }
 0x35b   :  { %4493 = vmatpush1.bf16.msra.mxu0 %v16276_v26  ;;  %4365 = vmatprep.subr.bf16.mxu1 %v16281_v7  ;;  %v16353_v26 = vld [vmem:[#allocation8 + $0x44] ss:$16 sps:$4 sm:$0xff]   ;;  %v16356_v7 = vld [vmem:[#allocation8 + $0x4c] ss:$16 sps:$4 sm:$0xff]  }
 0x35c   :  { %4494 = vmatprep.subr.bf16.mxu0 %v16284_v62  ;;  %v16351_v62 = vld [vmem:[#allocation8 + $0x40] ss:$16 sps:$4 sm:$0xff]  }
 0x35e   :  { %4366 = vmatpush1.bf16.msra.mxu1 %v16279_v19  ;;  %v16354_v19 = vld [vmem:[#allocation8 + $0x48] ss:$16 sps:$4 sm:$0xff]  }
 0x35f   :  { %4495 = vmatpush1.bf16.msra.mxu0 %v16282_v46  ;;  %4367 = vmatprep.subr.bf16.mxu1 %v16287_v31  ;;  %v16359_v46 = vld [vmem:[#allocation8 + $0x64] ss:$16 sps:$4 sm:$0xff]   ;;  %v16362_v31 = vld [vmem:[#allocation8 + $0x6c] ss:$16 sps:$4 sm:$0xff]  }
 0x360   :  { %4496 = vmatprep.subr.bf16.mxu0 %v16290_v8  ;;  %v16357_v8 = vld [vmem:[#allocation8 + $0x60] ss:$16 sps:$4 sm:$0xff]  }
 0x362   :  { %4368 = vmatpush1.bf16.msra.mxu1 %v16285_v10  ;;  %v16360_v10 = vld [vmem:[#allocation8 + $0x68] ss:$16 sps:$4 sm:$0xff]  }
 0x363   :  { %4497 = vmatpush1.bf16.msra.mxu0 %v16288_v50  ;;  %4369 = vmatprep.subr.bf16.mxu1 %v16293_v27  ;;  %v16365_v50 = vld [vmem:[#allocation8 + $0x84] ss:$16 sps:$4 sm:$0xff]   ;;  %v16368_v27 = vld [vmem:[#allocation8 + $0x8c] ss:$16 sps:$4 sm:$0xff]  }
 0x364   :  { %4498 = vmatprep.subr.bf16.mxu0 %v16296_v28  ;;  %v16363_v28 = vld [vmem:[#allocation8 + $0x80] ss:$16 sps:$4 sm:$0xff]  }
 0x366   :  { %4370 = vmatpush1.bf16.msra.mxu1 %v16291_v53  ;;  %v16366_v53 = vld [vmem:[#allocation8 + $0x88] ss:$16 sps:$4 sm:$0xff]  }
 0x367   :  { %4499 = vmatpush1.bf16.msra.mxu0 %v16294_v56  ;;  %4371 = vmatprep.subr.bf16.mxu1 %v16299_v44  ;;  %v16371_v56 = vld [vmem:[#allocation8 + $0xa4] ss:$16 sps:$4 sm:$0xff]   ;;  %v16374_v44 = vld [vmem:[#allocation8 + $0xac] ss:$16 sps:$4 sm:$0xff]  }
 0x368   :  { %4500 = vmatprep.subr.bf16.mxu0 %v16302_v42  ;;  %v16369_v42 = vld [vmem:[#allocation8 + $0xa0] ss:$16 sps:$4 sm:$0xff]  }
 0x36a   :  { %4372 = vmatpush1.bf16.msra.mxu1 %v16297_v35  ;;  %v16372_v35 = vld [vmem:[#allocation8 + $0xa8] ss:$16 sps:$4 sm:$0xff]  }
 0x36b   :  { %4501 = vmatpush1.bf16.msra.mxu0 %v16300_v17  ;;  %4373 = vmatprep.subr.bf16.mxu1 %v16305_v55  ;;  %v16377_v17 = vld [vmem:[#allocation8 + $0xc4] ss:$16 sps:$4 sm:$0xff]   ;;  %v16380_v55 = vld [vmem:[#allocation8 + $0xcc] ss:$16 sps:$4 sm:$0xff]  }
 0x36c   :  { %4502 = vmatprep.subr.bf16.mxu0 %v16308_v36  ;;  %v16375_v36 = vld [vmem:[#allocation8 + $0xc0] ss:$16 sps:$4 sm:$0xff]  }
 0x36e   :  { %4374 = vmatpush1.bf16.msra.mxu1 %v16303_v5  ;;  %v16378_v5 = vld [vmem:[#allocation8 + $0xc8] ss:$16 sps:$4 sm:$0xff]  }
 0x36f   :  { %4503 = vmatpush1.bf16.msra.mxu0 %v16306_v3  ;;  %4375 = vmatprep.subr.bf16.mxu1 %v16311_v15  ;;  %v16383_v3 = vld [vmem:[#allocation8 + $0xe4] ss:$16 sps:$4 sm:$0xff]   ;;  %v16386_v15 = vld [vmem:[#allocation8 + $0xec] ss:$16 sps:$4 sm:$0xff]  }
 0x370   :  { %4504 = vmatprep.subr.bf16.mxu0 %v16314_v43  ;;  %v16381_v43 = vld [vmem:[#allocation8 + $0xe0] ss:$16 sps:$4 sm:$0xff]  }
 0x372   :  { %4376 = vmatpush1.bf16.msra.mxu1 %v16309_v9  ;;  %v16384_v9 = vld [vmem:[#allocation8 + $0xe8] ss:$16 sps:$4 sm:$0xff]  }
 0x373   :  { %4505 = vmatpush1.bf16.msra.mxu0 %v16312_v59  ;;  %4377 = vmatprep.subr.bf16.mxu1 %v16317_v57  ;;  %v16389_v59 = vld [vmem:[#allocation8 + $0x104] ss:$16 sps:$4 sm:$0xff]   ;;  %v16392_v57 = vld [vmem:[#allocation8 + $0x10c] ss:$16 sps:$4 sm:$0xff]  }
 0x374   :  { %4506 = vmatprep.subr.bf16.mxu0 %v16320_v14  ;;  %v16387_v14 = vld [vmem:[#allocation8 + $0x100] ss:$16 sps:$4 sm:$0xff]  }
 0x376   :  { %4378 = vmatpush1.bf16.msra.mxu1 %v16315_v38  ;;  %v16390_v38 = vld [vmem:[#allocation8 + $0x108] ss:$16 sps:$4 sm:$0xff]  }
 0x377   :  { %4507 = vmatpush1.bf16.msra.mxu0 %v16318_v13  ;;  %4379 = vmatprep.subr.bf16.mxu1 %v16323_v52  ;;  %v16395_v13 = vld [vmem:[#allocation8 + $0x124] ss:$16 sps:$4 sm:$0xff]   ;;  %v16398_v52 = vld [vmem:[#allocation8 + $0x12c] ss:$16 sps:$4 sm:$0xff]  }
 0x378   :  { %4508 = vmatprep.subr.bf16.mxu0 %v16326_v40  ;;  %v16393_v40 = vld [vmem:[#allocation8 + $0x120] ss:$16 sps:$4 sm:$0xff]  }
 0x37a   :  { %4380 = vmatpush1.bf16.msra.mxu1 %v16321_v23  ;;  %v16396_v23 = vld [vmem:[#allocation8 + $0x128] ss:$16 sps:$4 sm:$0xff]  }
 0x37b   :  { %4509 = vmatpush1.bf16.msra.mxu0 %v16324_v54  ;;  %4381 = vmatprep.subr.bf16.mxu1 %v16329_v11  ;;  %v16401_v54 = vld [vmem:[#allocation8 + $0x144] ss:$16 sps:$4 sm:$0xff]   ;;  %v16404_v11 = vld [vmem:[#allocation8 + $0x14c] ss:$16 sps:$4 sm:$0xff]  }
 0x37c   :  { %4510 = vmatprep.subr.bf16.mxu0 %v16332_v34  ;;  %v16399_v34 = vld [vmem:[#allocation8 + $0x140] ss:$16 sps:$4 sm:$0xff]  }
 0x37e   :  { %4382 = vmatpush1.bf16.msra.mxu1 %v16327_v24  ;;  %v16407_v24 = vld [vmem:[#allocation8 + $0x164] ss:$16 sps:$4 sm:$0xff]  }
 0x37f   :  { %4511 = vmatpush1.bf16.msra.mxu0 %v16330_v25  ;;  %4383 = vmatprep.subr.bf16.mxu1 %v16335_v41  ;;  %v16405_v25 = vld [vmem:[#allocation8 + $0x160] ss:$16 sps:$4 sm:$0xff]   ;;  %v16408_v41 = vld [vmem:[#allocation8 + $0x168] ss:$16 sps:$4 sm:$0xff]  }
 0x380   :  { %4512 = vmatprep.subr.bf16.mxu0 %v16338_v16  ;;  %v16416_v16 = vld [vmem:[#allocation8 + $0x18c] ss:$16 sps:$4 sm:$0xff]  }
 0x382   :  { %4384 = vmatpush1.bf16.msra.mxu1 %v16333_v37  ;;  %v16419_v37 = vld [vmem:[#allocation8 + $0x1a4] ss:$16 sps:$4 sm:$0xff]  }
 0x383   :  { %4513 = vmatpush1.bf16.msra.mxu0 %v16336_v32  ;;  %5452 = vmatprep.subr.bf16.mxu1 %v16341_v47  ;;  %v16420_v32 = vld [vmem:[#allocation8 + $0x1a8] ss:$16 sps:$4 sm:$0xff]   ;;  %v16425_v47 = vld [vmem:[#allocation8 + $0x1c4] ss:$16 sps:$4 sm:$0xff]  }
 0x384   :  { %5581 = vmatprep.subr.bf16.mxu0 %v16344_v48  ;;  %v16426_v48 = vld [vmem:[#allocation8 + $0x1c8] ss:$16 sps:$4 sm:$0xff]  }
 0x385   :  { %4390 = vmatmul.mubr.bf16.vlgmr.msra.gmra.mrb[12].mxu1 %v3161_v6 }
 0x386   :  { %4519 = vmatmul.mubr.bf16.vlgmr.msra.gmra.mrb[24].mxu0 %v3161_v6  ;;  %5453 = vmatpush1.bf16.msra.mxu1 %v16339_v21  ;;  %v16434_v21 = vld [vmem:[#allocation8 + $0x1ec] ss:$16 sps:$4 sm:$0xff]   ;;  %v16432_v6 = vld [vmem:[#allocation8 + $0x1e8] ss:$16 sps:$4 sm:$0xff]  }
 0x387   :  { %5484 = vmatprep.mubr.bf16.mxu1 %v2872_v18  ;;  %5582 = vmatpush1.bf16.msra.mxu0 %v16342_v4  ;;  %v16437_v4 = vld [vmem:[#allocation8 + $0x204] ss:$16 sps:$4 sm:$0xff]  }
 0x388   :  { %5613 = vmatprep.mubr.bf16.mxu0 %v2872_v18  ;;  %5454 = vmatprep.subr.bf16.mxu1 %v16347_v1  ;;  %v16440_v1 = vld [vmem:[#allocation8 + $0x20c] ss:$16 sps:$4 sm:$0xff]  }
 0x389   :  { %5583 = vmatprep.subr.bf16.mxu0 %v16350_v30  ;;  %v2859_v18 = vld [vmem:[#allocation2] sm:$0xff] }
 0x38a   :  { %5455 = vmatpush1.bf16.msra.mxu1 %v16345_v20  ;;  %v16435_v30 = vld [vmem:[#allocation8 + $0x200] ss:$16 sps:$4 sm:$0xff]  }
 0x38b   :  { %5584 = vmatpush1.bf16.msra.mxu0 %v16348_v0  ;;  %5456 = vmatprep.subr.bf16.mxu1 %v16353_v26  ;;  %v2868_v20 = vld [vmem:[#allocation2 + $0x78] sm:$0xff]  ;;  %v2871_v0 = vpack.c.bf16 %v2865_v33, %v2859_v18 }
 0x38c   :  { %5585 = vmatprep.subr.bf16.mxu0 %v16356_v7  ;;  %v16438_v26 = vld [vmem:[#allocation8 + $0x208] ss:$16 sps:$4 sm:$0xff]   ;;  %v16519_v33 = vld [vmem:[#allocation8 + $0x3c0] ss:$16 sps:$4 sm:$0xff]   ;;  %v16527_v18 = vld [vmem:[#allocation8 + $0x3e4] ss:$16 sps:$4 sm:$0xff]  }
 0x38d   :  { %v2862_v7 = vld [vmem:[#allocation2 + $0x18] sm:$0xff] }
 0x38e   :  { %5457 = vmatpush1.bf16.msra.mxu1 %v16351_v62  ;;  %v16443_v62 = vld [vmem:[#allocation8 + $0x224] ss:$16 sps:$4 sm:$0xff]  }
 0x38f   :  { %5586 = vmatpush1.bf16.msra.mxu0 %v16354_v19  ;;  %5458 = vmatprep.subr.bf16.mxu1 %v16359_v46  ;;  %v2874_v19 = vpack.c.bf16 %v2868_v20, %v2862_v7  ;;  %v16446_v46 = vld [vmem:[#allocation8 + $0x22c] ss:$16 sps:$4 sm:$0xff]   ;;  %v16525_v20 = vld [vmem:[#allocation8 + $0x3e0] ss:$16 sps:$4 sm:$0xff]  }
 0x390   :  { %5587 = vmatprep.subr.bf16.mxu0 %v16362_v31  ;;  %v16441_v31 = vld [vmem:[#allocation8 + $0x220] ss:$16 sps:$4 sm:$0xff]  }
 0x391   :  { %v2867_v7 = vld [vmem:[#allocation2 + $0x70] sm:$0xff] }
 0x392   :  { %5459 = vmatpush1.bf16.msra.mxu1 %v16357_v8  ;;  %v16444_v8 = vld [vmem:[#allocation8 + $0x228] ss:$16 sps:$4 sm:$0xff]  }
 0x393   :  { %5588 = vmatpush1.bf16.msra.mxu0 %v16360_v10  ;;  %5460 = vmatprep.subr.bf16.mxu1 %v16365_v50  ;;  %v16449_v10 = vld [vmem:[#allocation8 + $0x244] ss:$16 sps:$4 sm:$0xff]   ;;  %v16452_v50 = vld [vmem:[#allocation8 + $0x24c] ss:$16 sps:$4 sm:$0xff]  }
 0x394   :  { %5589 = vmatprep.subr.bf16.mxu0 %v16368_v27  ;;  %v16447_v27 = vld [vmem:[#allocation8 + $0x240] ss:$16 sps:$4 sm:$0xff]  }
 0x396   :  { %5461 = vmatpush1.bf16.msra.mxu1 %v16363_v28  ;;  %v16450_v28 = vld [vmem:[#allocation8 + $0x248] ss:$16 sps:$4 sm:$0xff]  }
 0x397   :  { %5590 = vmatpush1.bf16.msra.mxu0 %v16366_v53  ;;  %5462 = vmatprep.subr.bf16.mxu1 %v16371_v56  ;;  %v16455_v53 = vld [vmem:[#allocation8 + $0x264] ss:$16 sps:$4 sm:$0xff]   ;;  %v16458_v56 = vld [vmem:[#allocation8 + $0x26c] ss:$16 sps:$4 sm:$0xff]  }
 0x398   :  { %5591 = vmatprep.subr.bf16.mxu0 %v16374_v44  ;;  %v16453_v44 = vld [vmem:[#allocation8 + $0x260] ss:$16 sps:$4 sm:$0xff]  }
 0x39a   :  { %5463 = vmatpush1.bf16.msra.mxu1 %v16369_v42  ;;  %v16456_v42 = vld [vmem:[#allocation8 + $0x268] ss:$16 sps:$4 sm:$0xff]  }
 0x39b   :  { %5592 = vmatpush1.bf16.msra.mxu0 %v16372_v35  ;;  %5464 = vmatprep.subr.bf16.mxu1 %v16377_v17  ;;  %v16461_v35 = vld [vmem:[#allocation8 + $0x284] ss:$16 sps:$4 sm:$0xff]   ;;  %v16464_v17 = vld [vmem:[#allocation8 + $0x28c] ss:$16 sps:$4 sm:$0xff]  }
 0x39c   :  { %5593 = vmatprep.subr.bf16.mxu0 %v16380_v55  ;;  %v16459_v55 = vld [vmem:[#allocation8 + $0x280] ss:$16 sps:$4 sm:$0xff]  }
 0x39e   :  { %5465 = vmatpush1.bf16.msra.mxu1 %v16375_v36  ;;  %v16462_v36 = vld [vmem:[#allocation8 + $0x288] ss:$16 sps:$4 sm:$0xff]  }
 0x39f   :  { %5594 = vmatpush1.bf16.msra.mxu0 %v16378_v5  ;;  %5466 = vmatprep.subr.bf16.mxu1 %v16383_v3  ;;  %v16467_v5 = vld [vmem:[#allocation8 + $0x2a4] ss:$16 sps:$4 sm:$0xff]   ;;  %v16470_v3 = vld [vmem:[#allocation8 + $0x2ac] ss:$16 sps:$4 sm:$0xff]  }
 0x3a0   :  { %5595 = vmatprep.subr.bf16.mxu0 %v16386_v15  ;;  %v16465_v15 = vld [vmem:[#allocation8 + $0x2a0] ss:$16 sps:$4 sm:$0xff]  }
 0x3a2   :  { %5467 = vmatpush1.bf16.msra.mxu1 %v16381_v43  ;;  %v16468_v43 = vld [vmem:[#allocation8 + $0x2a8] ss:$16 sps:$4 sm:$0xff]  }
 0x3a3   :  { %5596 = vmatpush1.bf16.msra.mxu0 %v16384_v9  ;;  %5468 = vmatprep.subr.bf16.mxu1 %v16389_v59  ;;  %v16473_v9 = vld [vmem:[#allocation8 + $0x2c4] ss:$16 sps:$4 sm:$0xff]   ;;  %v16476_v59 = vld [vmem:[#allocation8 + $0x2cc] ss:$16 sps:$4 sm:$0xff]  }
 0x3a4   :  { %5597 = vmatprep.subr.bf16.mxu0 %v16392_v57  ;;  %v16471_v57 = vld [vmem:[#allocation8 + $0x2c0] ss:$16 sps:$4 sm:$0xff]  }
 0x3a6   :  { %5469 = vmatpush1.bf16.msra.mxu1 %v16387_v14  ;;  %v16474_v14 = vld [vmem:[#allocation8 + $0x2c8] ss:$16 sps:$4 sm:$0xff]  }
 0x3a7   :  { %5598 = vmatpush1.bf16.msra.mxu0 %v16390_v38  ;;  %5470 = vmatprep.subr.bf16.mxu1 %v16395_v13  ;;  %v16479_v38 = vld [vmem:[#allocation8 + $0x2e4] ss:$16 sps:$4 sm:$0xff]   ;;  %v16482_v13 = vld [vmem:[#allocation8 + $0x2ec] ss:$16 sps:$4 sm:$0xff]  }
 0x3a8   :  { %5599 = vmatprep.subr.bf16.mxu0 %v16398_v52  ;;  %v16477_v52 = vld [vmem:[#allocation8 + $0x2e0] ss:$16 sps:$4 sm:$0xff]  }
 0x3aa   :  { %5471 = vmatpush1.bf16.msra.mxu1 %v16393_v40  ;;  %v16480_v40 = vld [vmem:[#allocation8 + $0x2e8] ss:$16 sps:$4 sm:$0xff]  }
 0x3ab   :  { %5600 = vmatpush1.bf16.msra.mxu0 %v16396_v23  ;;  %5472 = vmatprep.subr.bf16.mxu1 %v16401_v54  ;;  %v16485_v23 = vld [vmem:[#allocation8 + $0x304] ss:$16 sps:$4 sm:$0xff]   ;;  %v16488_v54 = vld [vmem:[#allocation8 + $0x30c] ss:$16 sps:$4 sm:$0xff]  }
 0x3ac   :  { %5601 = vmatprep.subr.bf16.mxu0 %v16404_v11  ;;  %v16483_v11 = vld [vmem:[#allocation8 + $0x300] ss:$16 sps:$4 sm:$0xff]  }
 0x3ae   :  { %5473 = vmatpush1.bf16.msra.mxu1 %v16399_v34  ;;  %v16486_v34 = vld [vmem:[#allocation8 + $0x308] ss:$16 sps:$4 sm:$0xff]  }
 0x3af   :  { %5602 = vmatpush1.bf16.msra.mxu0 %v16402_v45  ;;  %5474 = vmatprep.subr.bf16.mxu1 %v16407_v24  ;;  %v16491_v45 = vld [vmem:[#allocation8 + $0x324] ss:$16 sps:$4 sm:$0xff]   ;;  %v16494_v24 = vld [vmem:[#allocation8 + $0x32c] ss:$16 sps:$4 sm:$0xff]  }
 0x3b0   :  { %5603 = vmatprep.subr.bf16.mxu0 %v16410_v51  ;;  %v16489_v51 = vld [vmem:[#allocation8 + $0x320] ss:$16 sps:$4 sm:$0xff]  }
 0x3b2   :  { %5475 = vmatpush1.bf16.msra.mxu1 %v16405_v25  ;;  %v16492_v25 = vld [vmem:[#allocation8 + $0x328] ss:$16 sps:$4 sm:$0xff]  }
 0x3b3   :  { %5604 = vmatpush1.bf16.msra.mxu0 %v16408_v41  ;;  %5476 = vmatprep.subr.bf16.mxu1 %v16413_v39  ;;  %v16497_v41 = vld [vmem:[#allocation8 + $0x344] ss:$16 sps:$4 sm:$0xff]   ;;  %v16500_v39 = vld [vmem:[#allocation8 + $0x34c] ss:$16 sps:$4 sm:$0xff]  }
 0x3b4   :  { %5605 = vmatprep.subr.bf16.mxu0 %v16416_v16  ;;  %v16495_v16 = vld [vmem:[#allocation8 + $0x340] ss:$16 sps:$4 sm:$0xff]  }
 0x3b6   :  { %5477 = vmatpush1.bf16.msra.mxu1 %v16411_v12  ;;  %v16498_v12 = vld [vmem:[#allocation8 + $0x348] ss:$16 sps:$4 sm:$0xff]  }
 0x3b7   :  { %5606 = vmatpush1.bf16.msra.mxu0 %v16414_v29  ;;  %5478 = vmatprep.subr.bf16.mxu1 %v16419_v37  ;;  %v16503_v29 = vld [vmem:[#allocation8 + $0x364] ss:$16 sps:$4 sm:$0xff]   ;;  %v16506_v37 = vld [vmem:[#allocation8 + $0x36c] ss:$16 sps:$4 sm:$0xff]  }
 0x3b8   :  { %5607 = vmatprep.subr.bf16.mxu0 %v16422_v49  ;;  %v16501_v49 = vld [vmem:[#allocation8 + $0x360] ss:$16 sps:$4 sm:$0xff]  }
 0x3ba   :  { %5479 = vmatpush1.bf16.msra.mxu1 %v16417_v58  ;;  %v16504_v58 = vld [vmem:[#allocation8 + $0x368] ss:$16 sps:$4 sm:$0xff]  }
 0x3bb   :  { %5608 = vmatpush1.bf16.msra.mxu0 %v16420_v32  ;;  %5480 = vmatprep.subr.bf16.mxu1 %v16425_v47  ;;  %v16509_v32 = vld [vmem:[#allocation8 + $0x384] ss:$16 sps:$4 sm:$0xff]   ;;  %v16512_v47 = vld [vmem:[#allocation8 + $0x38c] ss:$16 sps:$4 sm:$0xff]  }
 0x3bc   :  { %5609 = vmatprep.subr.bf16.mxu0 %v16428_v2  ;;  %v16507_v2 = vld [vmem:[#allocation8 + $0x380] ss:$16 sps:$4 sm:$0xff]  }
 0x3be   :  { %5481 = vmatpush1.bf16.msra.mxu1 %v16423_v60  ;;  %v16510_v60 = vld [vmem:[#allocation8 + $0x388] ss:$16 sps:$4 sm:$0xff]  }
 0x3bf   :  { %5610 = vmatpush1.bf16.msra.mxu0 %v16426_v48  ;;  %5482 = vmatprep.subr.bf16.mxu1 %v16431_v63  ;;  %v16515_v48 = vld [vmem:[#allocation8 + $0x3a4] ss:$16 sps:$4 sm:$0xff]   ;;  %v16518_v63 = vld [vmem:[#allocation8 + $0x3ac] ss:$16 sps:$4 sm:$0xff]  }
 0x3c0   :  { %5611 = vmatprep.subr.bf16.mxu0 %v16434_v21  ;;  %v16513_v21 = vld [vmem:[#allocation8 + $0x3a0] ss:$16 sps:$4 sm:$0xff]  }
 0x3c2   :  { %5483 = vmatpush1.bf16.msra.mxu1 %v16429_v61  ;;  %v16516_v61 = vld [vmem:[#allocation8 + $0x3a8] ss:$16 sps:$4 sm:$0xff]  }
 0x3c3   :  { %5612 = vmatpush1.bf16.msra.mxu0 %v16432_v6  ;;  %5495 = vmatprep.subr.bf16.mxu1 %v16437_v4  ;;  %v16521_v6 = vld [vmem:[#allocation8 + $0x3c4] ss:$16 sps:$4 sm:$0xff]   ;;  %v16524_v4 = vld [vmem:[#allocation8 + $0x3cc] ss:$16 sps:$4 sm:$0xff]  }
 0x3c4   :  { %5624 = vmatprep.subr.bf16.mxu0 %v16440_v1  ;;  %v16522_v1 = vld [vmem:[#allocation8 + $0x3c8] ss:$16 sps:$4 sm:$0xff]  }
 0x3c5   :  { %5485 = vmatmul.mubr.bf16.vlgmr.msra.gmra.mrb[12].mxu1 %v2871_v0 }
 0x3c6   :  { %5614 = vmatmul.mubr.bf16.vlgmr.msra.gmra.mrb[24].mxu0 %v2871_v0  ;;  %5496 = vmatpush1.bf16.msra.mxu1 %v16435_v30  ;;  %v16530_v30 = vld [vmem:[#allocation8 + $0x3ec] ss:$16 sps:$4 sm:$0xff]   ;;  %v16528_v0 = vld [vmem:[#allocation8 + $0x3e8] ss:$16 sps:$4 sm:$0xff]  }
 0x3c7   :  { %5527 = vmatprep.mubr.bf16.mxu1 %v2874_v19  ;;  %5625 = vmatpush1.bf16.msra.mxu0 %v16438_v26  ;;  %v16533_v26 = vld [vmem:[#allocation8 + $0x404] ss:$16 sps:$4 sm:$0xff]  }
 0x3c8   :  { %5656 = vmatprep.mubr.bf16.mxu0 %v2874_v19  ;;  %5497 = vmatprep.subr.bf16.mxu1 %v16443_v62  ;;  %v16536_v62 = vld [vmem:[#allocation8 + $0x40c] ss:$16 sps:$4 sm:$0xff]  }
 0x3c9   :  { %5626 = vmatprep.subr.bf16.mxu0 %v16446_v46  ;;  %v2861_v19 = vld [vmem:[#allocation2 + $0x10] sm:$0xff] }
 0x3ca   :  { %5498 = vmatpush1.bf16.msra.mxu1 %v16441_v31  ;;  %v16531_v46 = vld [vmem:[#allocation8 + $0x400] ss:$16 sps:$4 sm:$0xff]  }
 0x3cb   :  { %5627 = vmatpush1.bf16.msra.mxu0 %v16444_v8  ;;  %5499 = vmatprep.subr.bf16.mxu1 %v16449_v10  ;;  %v2870_v31 = vld [vmem:[#allocation2 + $0x88] sm:$0xff]  ;;  %v2873_v8 = vpack.c.bf16 %v2867_v7, %v2861_v19 }
 0x3cc   :  { %5628 = vmatprep.subr.bf16.mxu0 %v16452_v50  ;;  %v16534_v10 = vld [vmem:[#allocation8 + $0x408] ss:$16 sps:$4 sm:$0xff]   ;;  %v16617_v19 = vld [vmem:[#allocation8 + $0xb84] ss:$16 sps:$4 sm:$0xff]  }
 0x3cd   :  { %v2864_v50 = vld [vmem:[#allocation2 + $0x28] sm:$0xff] }
 0x3ce   :  { %5500 = vmatpush1.bf16.msra.mxu1 %v16447_v27  ;;  %v16539_v27 = vld [vmem:[#allocation8 + $0x424] ss:$16 sps:$4 sm:$0xff]  }
 0x3cf   :  { %5629 = vmatpush1.bf16.msra.mxu0 %v16450_v28  ;;  %5501 = vmatprep.subr.bf16.mxu1 %v16455_v53  ;;  %v2876_v28 = vpack.c.bf16 %v2870_v31, %v2864_v50  ;;  %v16542_v53 = vld [vmem:[#allocation8 + $0x42c] ss:$16 sps:$4 sm:$0xff]  }
 0x3d0   :  { %5630 = vmatprep.subr.bf16.mxu0 %v16458_v56  ;;  %v16537_v56 = vld [vmem:[#allocation8 + $0x420] ss:$16 sps:$4 sm:$0xff]  }
 0x3d1   :  { %v2869_v31 = vld [vmem:[#allocation2 + $0x80] sm:$0xff] }
 0x3d2   :  { %5502 = vmatpush1.bf16.msra.mxu1 %v16453_v44  ;;  %v16540_v44 = vld [vmem:[#allocation8 + $0x428] ss:$16 sps:$4 sm:$0xff]  }
 0x3d3   :  { %5631 = vmatpush1.bf16.msra.mxu0 %v16456_v42  ;;  %5503 = vmatprep.subr.bf16.mxu1 %v16461_v35  ;;  %v16545_v42 = vld [vmem:[#allocation8 + $0x444] ss:$16 sps:$4 sm:$0xff]   ;;  %v16548_v35 = vld [vmem:[#allocation8 + $0x44c] ss:$16 sps:$4 sm:$0xff]  }
 0x3d4   :  { %5632 = vmatprep.subr.bf16.mxu0 %v16464_v17  ;;  %v16543_v17 = vld [vmem:[#allocation8 + $0x440] ss:$16 sps:$4 sm:$0xff]  }
 0x3d6   :  { %5504 = vmatpush1.bf16.msra.mxu1 %v16459_v55  ;;  %v16546_v55 = vld [vmem:[#allocation8 + $0x448] ss:$16 sps:$4 sm:$0xff]  }
 0x3d7   :  { %5633 = vmatpush1.bf16.msra.mxu0 %v16462_v36  ;;  %5505 = vmatprep.subr.bf16.mxu1 %v16467_v5  ;;  %v16551_v36 = vld [vmem:[#allocation8 + $0x464] ss:$16 sps:$4 sm:$0xff]   ;;  %v16554_v5 = vld [vmem:[#allocation8 + $0x46c] ss:$16 sps:$4 sm:$0xff]  }
 0x3d8   :  { %5634 = vmatprep.subr.bf16.mxu0 %v16470_v3  ;;  %v16549_v3 = vld [vmem:[#allocation8 + $0x460] ss:$16 sps:$4 sm:$0xff]  }
 0x3da   :  { %5506 = vmatpush1.bf16.msra.mxu1 %v16465_v15  ;;  %v16552_v15 = vld [vmem:[#allocation8 + $0x468] ss:$16 sps:$4 sm:$0xff]  }
 0x3db   :  { %5635 = vmatpush1.bf16.msra.mxu0 %v16468_v43  ;;  %5507 = vmatprep.subr.bf16.mxu1 %v16473_v9  ;;  %v16557_v43 = vld [vmem:[#allocation8 + $0x484] ss:$16 sps:$4 sm:$0xff]   ;;  %v16560_v9 = vld [vmem:[#allocation8 + $0x48c] ss:$16 sps:$4 sm:$0xff]  }
 0x3dc   :  { %5636 = vmatprep.subr.bf16.mxu0 %v16476_v59  ;;  %v16555_v59 = vld [vmem:[#allocation8 + $0x480] ss:$16 sps:$4 sm:$0xff]  }
 0x3de   :  { %5508 = vmatpush1.bf16.msra.mxu1 %v16471_v57  ;;  %v16558_v57 = vld [vmem:[#allocation8 + $0x488] ss:$16 sps:$4 sm:$0xff]  }
 0x3df   :  { %5637 = vmatpush1.bf16.msra.mxu0 %v16474_v14  ;;  %5509 = vmatprep.subr.bf16.mxu1 %v16479_v38  ;;  %v16563_v14 = vld [vmem:[#allocation8 + $0x4a4] ss:$16 sps:$4 sm:$0xff]   ;;  %v16566_v38 = vld [vmem:[#allocation8 + $0x4ac] ss:$16 sps:$4 sm:$0xff]  }
 0x3e0   :  { %5638 = vmatprep.subr.bf16.mxu0 %v16482_v13  ;;  %v16561_v13 = vld [vmem:[#allocation8 + $0x4a0] ss:$16 sps:$4 sm:$0xff]  }
 0x3e2   :  { %5510 = vmatpush1.bf16.msra.mxu1 %v16477_v52  ;;  %v16564_v52 = vld [vmem:[#allocation8 + $0x4a8] ss:$16 sps:$4 sm:$0xff]  }
 0x3e3   :  { %5639 = vmatpush1.bf16.msra.mxu0 %v16480_v40  ;;  %5511 = vmatprep.subr.bf16.mxu1 %v16485_v23  ;;  %v16569_v40 = vld [vmem:[#allocation8 + $0x4c4] ss:$16 sps:$4 sm:$0xff]   ;;  %v16572_v23 = vld [vmem:[#allocation8 + $0x4cc] ss:$16 sps:$4 sm:$0xff]  }
 0x3e4   :  { %5640 = vmatprep.subr.bf16.mxu0 %v16488_v54  ;;  %v16567_v54 = vld [vmem:[#allocation8 + $0x4c0] ss:$16 sps:$4 sm:$0xff]  }
 0x3e6   :  { %5512 = vmatpush1.bf16.msra.mxu1 %v16483_v11  ;;  %v16570_v11 = vld [vmem:[#allocation8 + $0x4c8] ss:$16 sps:$4 sm:$0xff]  }
 0x3e7   :  { %5641 = vmatpush1.bf16.msra.mxu0 %v16486_v34  ;;  %5513 = vmatprep.subr.bf16.mxu1 %v16491_v45  ;;  %v16575_v34 = vld [vmem:[#allocation8 + $0x4e4] ss:$16 sps:$4 sm:$0xff]   ;;  %v16578_v45 = vld [vmem:[#allocation8 + $0x4ec] ss:$16 sps:$4 sm:$0xff]  }
 0x3e8   :  { %5642 = vmatprep.subr.bf16.mxu0 %v16494_v24  ;;  %v16573_v24 = vld [vmem:[#allocation8 + $0x4e0] ss:$16 sps:$4 sm:$0xff]  }
 0x3ea   :  { %5514 = vmatpush1.bf16.msra.mxu1 %v16489_v51  ;;  %v16576_v51 = vld [vmem:[#allocation8 + $0x4e8] ss:$16 sps:$4 sm:$0xff]  }
 0x3eb   :  { %5643 = vmatpush1.bf16.msra.mxu0 %v16492_v25  ;;  %5515 = vmatprep.subr.bf16.mxu1 %v16497_v41  ;;  %v16581_v25 = vld [vmem:[#allocation8 + $0x504] ss:$16 sps:$4 sm:$0xff]   ;;  %v16584_v41 = vld [vmem:[#allocation8 + $0x50c] ss:$16 sps:$4 sm:$0xff]  }
 0x3ec   :  { %5644 = vmatprep.subr.bf16.mxu0 %v16500_v39  ;;  %v16579_v39 = vld [vmem:[#allocation8 + $0x500] ss:$16 sps:$4 sm:$0xff]  }
 0x3ee   :  { %5516 = vmatpush1.bf16.msra.mxu1 %v16495_v16  ;;  %v16582_v16 = vld [vmem:[#allocation8 + $0x508] ss:$16 sps:$4 sm:$0xff]  }
 0x3ef   :  { %5645 = vmatpush1.bf16.msra.mxu0 %v16498_v12  ;;  %5517 = vmatprep.subr.bf16.mxu1 %v16503_v29  ;;  %v16587_v12 = vld [vmem:[#allocation8 + $0x524] ss:$16 sps:$4 sm:$0xff]   ;;  %v16590_v29 = vld [vmem:[#allocation8 + $0x52c] ss:$16 sps:$4 sm:$0xff]  }
 0x3f0   :  { %5646 = vmatprep.subr.bf16.mxu0 %v16506_v37  ;;  %v16585_v37 = vld [vmem:[#allocation8 + $0x520] ss:$16 sps:$4 sm:$0xff]  }
 0x3f2   :  { %5518 = vmatpush1.bf16.msra.mxu1 %v16501_v49  ;;  %v16588_v49 = vld [vmem:[#allocation8 + $0x528] ss:$16 sps:$4 sm:$0xff]  }
 0x3f3   :  { %5647 = vmatpush1.bf16.msra.mxu0 %v16504_v58  ;;  %5519 = vmatprep.subr.bf16.mxu1 %v16509_v32  ;;  %v16593_v58 = vld [vmem:[#allocation8 + $0x544] ss:$16 sps:$4 sm:$0xff]   ;;  %v16596_v32 = vld [vmem:[#allocation8 + $0x54c] ss:$16 sps:$4 sm:$0xff]  }
 0x3f4   :  { %5648 = vmatprep.subr.bf16.mxu0 %v16512_v47  ;;  %v16591_v47 = vld [vmem:[#allocation8 + $0x540] ss:$16 sps:$4 sm:$0xff]  }
 0x3f6   :  { %5520 = vmatpush1.bf16.msra.mxu1 %v16507_v2  ;;  %v16594_v2 = vld [vmem:[#allocation8 + $0x548] ss:$16 sps:$4 sm:$0xff]  }
 0x3f7   :  { %5649 = vmatpush1.bf16.msra.mxu0 %v16510_v60  ;;  %5521 = vmatprep.subr.bf16.mxu1 %v16515_v48  ;;  %v16599_v60 = vld [vmem:[#allocation8 + $0x564] ss:$16 sps:$4 sm:$0xff]   ;;  %v16602_v48 = vld [vmem:[#allocation8 + $0x56c] ss:$16 sps:$4 sm:$0xff]  }
 0x3f8   :  { %5650 = vmatprep.subr.bf16.mxu0 %v16518_v63  ;;  %v16597_v63 = vld [vmem:[#allocation8 + $0x560] ss:$16 sps:$4 sm:$0xff]  }
 0x3fa   :  { %5522 = vmatpush1.bf16.msra.mxu1 %v16513_v21  ;;  %v16600_v21 = vld [vmem:[#allocation8 + $0x568] ss:$16 sps:$4 sm:$0xff]  }
 0x3fb   :  { %5651 = vmatpush1.bf16.msra.mxu0 %v16516_v61  ;;  %5523 = vmatprep.subr.bf16.mxu1 %v16521_v6  ;;  %v16605_v61 = vld [vmem:[#allocation8 + $0x584] ss:$16 sps:$4 sm:$0xff]   ;;  %v16608_v6 = vld [vmem:[#allocation8 + $0x58c] ss:$16 sps:$4 sm:$0xff]  }
 0x3fc   :  { %5652 = vmatprep.subr.bf16.mxu0 %v16524_v4  ;;  %v16603_v4 = vld [vmem:[#allocation8 + $0x580] ss:$16 sps:$4 sm:$0xff]  }
 0x3fe   :  { %5524 = vmatpush1.bf16.msra.mxu1 %v16519_v33  ;;  %v16606_v33 = vld [vmem:[#allocation8 + $0x588] ss:$16 sps:$4 sm:$0xff]  }
 0x3ff   :  { %5653 = vmatpush1.bf16.msra.mxu0 %v16522_v1  ;;  %5525 = vmatprep.subr.bf16.mxu1 %v16527_v18  ;;  %v16611_v1 = vld [vmem:[#allocation8 + $0x5a4] ss:$16 sps:$4 sm:$0xff]   ;;  %v5729_v18 = vld [vmem:[#allocation2 + $0x98] sm:$0x3] }
 0x400   :  { %5654 = vmatprep.subr.bf16.mxu0 %v16530_v30  ;;  %v16614_v30 = vld [vmem:[#allocation8 + $0x5ac] ss:$16 sps:$4 sm:$0xff]   ;;  %v5780_v7 = vrot.slane %v5729_v18, 2  ;;  %v16681_v18 = vld [vmem:[#allocation8 + $0xce0] ss:$16 sps:$4 sm:$0xff]  }
 0x402   :  { %5526 = vmatpush1.bf16.msra.mxu1 %v16525_v20  ;;  %v5717_v20 = vld [vmem:[#allocation2 + $0x38] sm:$0x3] }
 0x403   :  { %5655 = vmatpush1.bf16.msra.mxu0 %v16528_v0  ;;  %5538 = vmatprep.subr.bf16.mxu1 %v16533_v26  ;;  %v5723_v0 = vld [vmem:[#allocation2 + $0x68] sm:$0xfc]  ;;  %v16609_v26 = vld [vmem:[#allocation8 + $0x5a0] ss:$16 sps:$4 sm:$0xff]  }
 0x404   :  { %5667 = vmatprep.subr.bf16.mxu0 %v16536_v62  ;;  %v16612_v62 = vld [vmem:[#allocation8 + $0x5a8] ss:$16 sps:$4 sm:$0xff]   ;;  %v5779_v50 = vrot.slane %v5723_v0, 2  ;;  %v16692_v0 = vld [vmem:[#allocation8 + $0xd0c] ss:$16 sps:$4 sm:$0xff]  }
 0x405   :  { %5528 = vmatmul.mubr.bf16.vlgmr.msra.gmra.mrb[12].mxu1 %v2873_v8 }
 0x406   :  { %5657 = vmatmul.mubr.bf16.vlgmr.msra.gmra.mrb[24].mxu0 %v2873_v8  ;;  %5539 = vmatpush1.bf16.msra.mxu1 %v16531_v46  ;;  %v5711_v46 = vld [vmem:[#allocation2 + $0x8] sm:$0xfc]  ;;  %v16620_v8 = vld [vmem:[#allocation8 + $0xb8c] ss:$16 sps:$4 sm:$0xff]  }
 0x407   :  { %14606 = vmatprep.mubr.msk.bf16.mxu1 %vm1858_vm5, %v2876_v28  ;;  %5668 = vmatpush1.bf16.msra.mxu0 %v16534_v10  ;;  %v5762_v10 = vrot.slane %v5717_v20, 2  ;;  %v16689_v20 = vld [vmem:[#allocation8 + $0xd04] ss:$16 sps:$4 sm:$0xff]  }
 0x408   :  { %14607 = vmatprep.mubr.msk.bf16.mxu0 %vm1858_vm5, %v2876_v28  ;;  %5540 = vmatprep.subr.bf16.mxu1 %v16539_v27  ;;  %v2863_v27 = vld [vmem:[#allocation2 + $0x20] sm:$0xff] }
 0x409   :  { %5669 = vmatprep.subr.bf16.mxu0 %v16542_v53  ;;  %v16615_v28 = vld [vmem:[#allocation8 + $0xb80] ss:$16 sps:$4 sm:$0xff]   ;;  %v5761_v53 = vrot.slane %v5711_v46, 2 }
 0x40a   :  { %5541 = vmatpush1.bf16.msra.mxu1 %v16537_v56  ;;  %v5781_v56 = vsel %vm267_vm0, %v5779_v50, %v5780_v7  ;;  %v16690_v7 = vld [vmem:[#allocation8 + $0xd08] ss:$16 sps:$4 sm:$0xff]   ;;  %v16693_v46 = vld [vmem:[#allocation8 + $0xd20] ss:$16 sps:$4 sm:$0xff]  }
 0x40b   :  { %5670 = vmatpush1.bf16.msra.mxu0 %v16540_v44  ;;  %5542 = vmatprep.subr.bf16.mxu1 %v16545_v42  ;;  %v2875_v44 = vpack.c.bf16 %v2869_v31, %v2863_v27  ;;  %v16618_v42 = vld [vmem:[#allocation8 + $0xb88] ss:$16 sps:$4 sm:$0xff]   ;;  %v16699_v27 = vld [vmem:[#allocation8 + $0xd40] ss:$16 sps:$4 sm:$0xff]  }
 0x40c   :  { %5671 = vmatprep.subr.bf16.mxu0 %v16548_v35  ;;  %v5763_v35 = vsel %vm267_vm0, %v5761_v53, %v5762_v10  ;;  %v16696_v31 = vld [vmem:[#allocation8 + $0xd28] ss:$16 sps:$4 sm:$0xff]   ;;  %v16704_v10 = vld [vmem:[#allocation8 + $0xd4c] ss:$16 sps:$4 sm:$0xff]  }
 0x40d   :  { %v5728_v50 = vld [vmem:[#allocation2 + $0x90] sm:$0x3]  ;;  %v5722_v53 = vld [vmem:[#allocation2 + $0x60] sm:$0xfc] }
 0x40e   :  { %5543 = vmatpush1.bf16.msra.mxu1 %v16543_v17  ;;  %v16623_v17 = vld [vmem:[#allocation8 + $0xba4] ss:$16 sps:$4 sm:$0xff]  }
 0x40f   :  { %5672 = vmatpush1.bf16.msra.mxu0 %v16546_v55  ;;  %5544 = vmatprep.subr.bf16.mxu1 %v16551_v36  ;;  %v5807_v55 = vpack.c.bf16 %v5781_v56, %v5763_v35  ;;  %v16626_v36 = vld [vmem:[#allocation8 + $0xbac] ss:$16 sps:$4 sm:$0xff]   ;;  %v16702_v56 = vld [vmem:[#allocation8 + $0xd48] ss:$16 sps:$4 sm:$0xff]  }
 0x410   :  { %5673 = vmatprep.subr.bf16.mxu0 %v16554_v5  ;;  %v16621_v5 = vld [vmem:[#allocation8 + $0xba0] ss:$16 sps:$4 sm:$0xff]   ;;  %v16710_v35 = vld [vmem:[#allocation8 + $0xd6c] ss:$16 sps:$4 sm:$0xff]  }
 0x412   :  { %5545 = vmatpush1.bf16.msra.mxu1 %v16549_v3  ;;  %v16624_v3 = vld [vmem:[#allocation8 + $0xba8] ss:$16 sps:$4 sm:$0xff]  }
 0x413   :  { %5674 = vmatpush1.bf16.msra.mxu0 %v16552_v15  ;;  %5546 = vmatprep.subr.bf16.mxu1 %v16557_v43  ;;  %v16629_v15 = vld [vmem:[#allocation8 + $0xbc4] ss:$16 sps:$4 sm:$0xff]   ;;  %v16632_v43 = vld [vmem:[#allocation8 + $0xbcc] ss:$16 sps:$4 sm:$0xff]  }
 0x414   :  { %5675 = vmatprep.subr.bf16.mxu0 %v16560_v9  ;;  %v16627_v9 = vld [vmem:[#allocation8 + $0xbc0] ss:$16 sps:$4 sm:$0xff]  }
 0x416   :  { %5547 = vmatpush1.bf16.msra.mxu1 %v16555_v59  ;;  %v16630_v59 = vld [vmem:[#allocation8 + $0xbc8] ss:$16 sps:$4 sm:$0xff]  }
 0x417   :  { %5676 = vmatpush1.bf16.msra.mxu0 %v16558_v57  ;;  %5548 = vmatprep.subr.bf16.mxu1 %v16563_v14  ;;  %v16635_v57 = vld [vmem:[#allocation8 + $0xbe4] ss:$16 sps:$4 sm:$0xff]   ;;  %v16638_v14 = vld [vmem:[#allocation8 + $0xbec] ss:$16 sps:$4 sm:$0xff]  }
 0x418   :  { %5677 = vmatprep.subr.bf16.mxu0 %v16566_v38  ;;  %v16633_v38 = vld [vmem:[#allocation8 + $0xbe0] ss:$16 sps:$4 sm:$0xff]  }
 0x41a   :  { %5549 = vmatpush1.bf16.msra.mxu1 %v16561_v13  ;;  %v16636_v13 = vld [vmem:[#allocation8 + $0xbe8] ss:$16 sps:$4 sm:$0xff]  }
 0x41b   :  { %5678 = vmatpush1.bf16.msra.mxu0 %v16564_v52  ;;  %5550 = vmatprep.subr.bf16.mxu1 %v16569_v40  ;;  %v16641_v52 = vld [vmem:[#allocation8 + $0xc04] ss:$16 sps:$4 sm:$0xff]   ;;  %v16644_v40 = vld [vmem:[#allocation8 + $0xc0c] ss:$16 sps:$4 sm:$0xff]  }
 0x41c   :  { %5679 = vmatprep.subr.bf16.mxu0 %v16572_v23  ;;  %v16639_v23 = vld [vmem:[#allocation8 + $0xc00] ss:$16 sps:$4 sm:$0xff]  }
 0x41e   :  { %5551 = vmatpush1.bf16.msra.mxu1 %v16567_v54  ;;  %v16642_v54 = vld [vmem:[#allocation8 + $0xc08] ss:$16 sps:$4 sm:$0xff]  }
 0x41f   :  { %5680 = vmatpush1.bf16.msra.mxu0 %v16570_v11  ;;  %5552 = vmatprep.subr.bf16.mxu1 %v16575_v34  ;;  %v16647_v11 = vld [vmem:[#allocation8 + $0xc24] ss:$16 sps:$4 sm:$0xff]   ;;  %v16650_v34 = vld [vmem:[#allocation8 + $0xc2c] ss:$16 sps:$4 sm:$0xff]  }
 0x420   :  { %5681 = vmatprep.subr.bf16.mxu0 %v16578_v45  ;;  %v16645_v45 = vld [vmem:[#allocation8 + $0xc20] ss:$16 sps:$4 sm:$0xff]  }
 0x422   :  { %5553 = vmatpush1.bf16.msra.mxu1 %v16573_v24  ;;  %v16648_v24 = vld [vmem:[#allocation8 + $0xc28] ss:$16 sps:$4 sm:$0xff]  }
 0x423   :  { %5682 = vmatpush1.bf16.msra.mxu0 %v16576_v51  ;;  %5554 = vmatprep.subr.bf16.mxu1 %v16581_v25  ;;  %v16653_v51 = vld [vmem:[#allocation8 + $0xc44] ss:$16 sps:$4 sm:$0xff]   ;;  %v16656_v25 = vld [vmem:[#allocation8 + $0xc4c] ss:$16 sps:$4 sm:$0xff]  }
 0x424   :  { %5683 = vmatprep.subr.bf16.mxu0 %v16584_v41  ;;  %v16651_v41 = vld [vmem:[#allocation8 + $0xc40] ss:$16 sps:$4 sm:$0xff]  }
 0x426   :  { %5555 = vmatpush1.bf16.msra.mxu1 %v16579_v39  ;;  %v16654_v39 = vld [vmem:[#allocation8 + $0xc48] ss:$16 sps:$4 sm:$0xff]  }
 0x427   :  { %5684 = vmatpush1.bf16.msra.mxu0 %v16582_v16  ;;  %5556 = vmatprep.subr.bf16.mxu1 %v16587_v12  ;;  %v16659_v16 = vld [vmem:[#allocation8 + $0xc64] ss:$16 sps:$4 sm:$0xff]   ;;  %v16662_v12 = vld [vmem:[#allocation8 + $0xc6c] ss:$16 sps:$4 sm:$0xff]  }
 0x428   :  { %5685 = vmatprep.subr.bf16.mxu0 %v16590_v29  ;;  %v16657_v29 = vld [vmem:[#allocation8 + $0xc60] ss:$16 sps:$4 sm:$0xff]  }
 0x42a   :  { %5557 = vmatpush1.bf16.msra.mxu1 %v16585_v37  ;;  %v16660_v37 = vld [vmem:[#allocation8 + $0xc68] ss:$16 sps:$4 sm:$0xff]  }
 0x42b   :  { %5686 = vmatpush1.bf16.msra.mxu0 %v16588_v49  ;;  %5558 = vmatprep.subr.bf16.mxu1 %v16593_v58  ;;  %v16665_v49 = vld [vmem:[#allocation8 + $0xc84] ss:$16 sps:$4 sm:$0xff]   ;;  %v16668_v58 = vld [vmem:[#allocation8 + $0xc8c] ss:$16 sps:$4 sm:$0xff]  }
 0x42c   :  { %5687 = vmatprep.subr.bf16.mxu0 %v16596_v32  ;;  %v16663_v32 = vld [vmem:[#allocation8 + $0xc80] ss:$16 sps:$4 sm:$0xff]  }
 0x42e   :  { %5559 = vmatpush1.bf16.msra.mxu1 %v16591_v47  ;;  %v16666_v47 = vld [vmem:[#allocation8 + $0xc88] ss:$16 sps:$4 sm:$0xff]  }
 0x42f   :  { %5688 = vmatpush1.bf16.msra.mxu0 %v16594_v2  ;;  %5560 = vmatprep.subr.bf16.mxu1 %v16599_v60  ;;  %v16671_v2 = vld [vmem:[#allocation8 + $0xca4] ss:$16 sps:$4 sm:$0xff]   ;;  %v16674_v60 = vld [vmem:[#allocation8 + $0xcac] ss:$16 sps:$4 sm:$0xff]  }
 0x430   :  { %5689 = vmatprep.subr.bf16.mxu0 %v16602_v48  ;;  %v16669_v48 = vld [vmem:[#allocation8 + $0xca0] ss:$16 sps:$4 sm:$0xff]  }
 0x432   :  { %5561 = vmatpush1.bf16.msra.mxu1 %v16597_v63  ;;  %v16672_v63 = vld [vmem:[#allocation8 + $0xca8] ss:$16 sps:$4 sm:$0xff]  }
 0x433   :  { %5690 = vmatpush1.bf16.msra.mxu0 %v16600_v21  ;;  %5562 = vmatprep.subr.bf16.mxu1 %v16605_v61  ;;  %v16677_v21 = vld [vmem:[#allocation8 + $0xcc4] ss:$16 sps:$4 sm:$0xff]   ;;  %v16680_v61 = vld [vmem:[#allocation8 + $0xccc] ss:$16 sps:$4 sm:$0xff]  }
 0x434   :  { %5691 = vmatprep.subr.bf16.mxu0 %v16608_v6  ;;  %v16675_v6 = vld [vmem:[#allocation8 + $0xcc0] ss:$16 sps:$4 sm:$0xff]  }
 0x436   :  { %5563 = vmatpush1.bf16.msra.mxu1 %v16603_v4  ;;  %v16678_v4 = vld [vmem:[#allocation8 + $0xcc8] ss:$16 sps:$4 sm:$0xff]  }
 0x437   :  { %5692 = vmatpush1.bf16.msra.mxu0 %v16606_v33  ;;  %5564 = vmatprep.subr.bf16.mxu1 %v16611_v1  ;;  %v16683_v33 = vld [vmem:[#allocation8 + $0xce4] ss:$16 sps:$4 sm:$0xff]   ;;  %v16686_v1 = vld [vmem:[#allocation8 + $0xcec] ss:$16 sps:$4 sm:$0xff]  }
 0x438   :  { %5693 = vmatprep.subr.bf16.mxu0 %v16614_v30  ;;  %v16684_v30 = vld [vmem:[#allocation8 + $0xce8] ss:$16 sps:$4 sm:$0xff]  }
 0x43a   :  { %5565 = vmatpush1.bf16.msra.mxu1 %v16609_v26  ;;  %v16687_v26 = vld [vmem:[#allocation8 + $0xd00] ss:$16 sps:$4 sm:$0xff]  }
 0x43b   :  { %5694 = vmatpush1.bf16.msra.mxu0 %v16612_v62  ;;  %6920 = vmatprep.subr.bf16.mxu1 %v16617_v19  ;;  %v16695_v62 = vld [vmem:[#allocation8 + $0xd24] ss:$16 sps:$4 sm:$0xff]   ;;  %v16698_v19 = vld [vmem:[#allocation8 + $0xd2c] ss:$16 sps:$4 sm:$0xff]  }
 0x43c   :  { %7049 = vmatprep.subr.bf16.mxu0 %v16620_v8  ;;  %v16701_v8 = vld [vmem:[#allocation8 + $0xd44] ss:$16 sps:$4 sm:$0xff]  }
 0x43d   :  { %5571 = vmatmul.mubr.bf16.vlgmr.msra.gmra.mrb[12].mxu1 %v2875_v44 }
 0x43e   :  { %5700 = vmatmul.mubr.bf16.vlgmr.msra.gmra.mrb[24].mxu0 %v2875_v44  ;;  %6921 = vmatpush1.bf16.msra.mxu1 %v16615_v28  ;;  %v5716_v28 = vld [vmem:[#allocation2 + $0x30] sm:$0x3]  ;;  %v16707_v44 = vld [vmem:[#allocation8 + $0xd64] ss:$16 sps:$4 sm:$0xff]  }
 0x43f   :  { %6952 = vmatprep.mubr.bf16.mxu1 %v5807_v55  ;;  %7050 = vmatpush1.bf16.msra.mxu0 %v16618_v42  ;;  %v5731_v42 = vld [vmem:[#allocation2 + $0xa8] sm:$0x3] }
 0x440   :  { %7081 = vmatprep.mubr.bf16.mxu0 %v5807_v55  ;;  %6922 = vmatprep.subr.bf16.mxu1 %v16623_v17  ;;  %v5777_v17 = vrot.slane %v5728_v50, 2  ;;  %v5710_v55 = vld [vmem:[#allocation2] sm:$0xfc]  ;;  %v16762_v50 = vld [vmem:[#allocation8 + $0xe88] ss:$16 sps:$4 sm:$0xff]  }
 0x441   :  { %7051 = vmatprep.subr.bf16.mxu0 %v16626_v36  ;;  %v5719_v36 = vld [vmem:[#allocation2 + $0x48] sm:$0x3] }
 0x442   :  { %6923 = vmatpush1.bf16.msra.mxu1 %v16621_v5  ;;  %v5725_v5 = vld [vmem:[#allocation2 + $0x78] sm:$0xfc] }
 0x443   :  { %7052 = vmatpush1.bf16.msra.mxu0 %v16624_v3  ;;  %6924 = vmatprep.subr.bf16.mxu1 %v16629_v15  ;;  %v16705_v3 = vld [vmem:[#allocation8 + $0xd60] ss:$16 sps:$4 sm:$0xff]   ;;  %v5759_v15 = vrot.slane %v5716_v28, 2  ;;  %v16770_v28 = vld [vmem:[#allocation8 + $0xeac] ss:$16 sps:$4 sm:$0xff]  }
 0x444   :  { %7053 = vmatprep.subr.bf16.mxu0 %v16632_v43  ;;  %v5776_v43 = vrot.slane %v5722_v53, 2  ;;  %v16765_v53 = vld [vmem:[#allocation8 + $0xea0] ss:$16 sps:$4 sm:$0xff]  }
 0x446   :  { %6925 = vmatpush1.bf16.msra.mxu1 %v16627_v9  ;;  %v5786_v9 = vrot.slane %v5731_v42, 2  ;;  %v16776_v42 = vld [vmem:[#allocation8 + $0xecc] ss:$16 sps:$4 sm:$0xff]  }
 0x447   :  { %7054 = vmatpush1.bf16.msra.mxu0 %v16630_v59  ;;  %6926 = vmatprep.subr.bf16.mxu1 %v16635_v57  ;;  %v16708_v59 = vld [vmem:[#allocation8 + $0xd68] ss:$16 sps:$4 sm:$0xff]   ;;  %v16713_v57 = vld [vmem:[#allocation8 + $0xd84] ss:$16 sps:$4 sm:$0xff]  }
 0x448   :  { %7055 = vmatprep.subr.bf16.mxu0 %v16638_v14  ;;  %v5713_v14 = vld [vmem:[#allocation2 + $0x18] sm:$0xfc] }
 0x44a   :  { %6927 = vmatpush1.bf16.msra.mxu1 %v16633_v38  ;;  %v5758_v38 = vrot.slane %v5710_v55, 2  ;;  %v16779_v55 = vld [vmem:[#allocation8 + $0xee4] ss:$16 sps:$4 sm:$0xff]  }
 0x44b   :  { %7056 = vmatpush1.bf16.msra.mxu0 %v16636_v13  ;;  %6928 = vmatprep.subr.bf16.mxu1 %v16641_v52  ;;  %v5778_v13 = vsel %vm267_vm0, %v5776_v43, %v5777_v17  ;;  %v16716_v52 = vld [vmem:[#allocation8 + $0xd8c] ss:$16 sps:$4 sm:$0xff]   ;;  %v16774_v17 = vld [vmem:[#allocation8 + $0xec8] ss:$16 sps:$4 sm:$0xff]  }
 0x44c   :  { %7057 = vmatprep.subr.bf16.mxu0 %v16644_v40  ;;  %v5768_v40 = vrot.slane %v5719_v36, 2  ;;  %v16782_v36 = vld [vmem:[#allocation8 + $0xeec] ss:$16 sps:$4 sm:$0xff]  }
 0x44d   :  { %v16788_v43 = vld [vmem:[#allocation8 + $0xf0c] ss:$16 sps:$4 sm:$0xff]  }
 0x44e   :  { %6929 = vmatpush1.bf16.msra.mxu1 %v16639_v23  ;;  %v5785_v23 = vrot.slane %v5725_v5, 2  ;;  %v16777_v5 = vld [vmem:[#allocation8 + $0xee0] ss:$16 sps:$4 sm:$0xff]  }
 0x44f   :  { %7058 = vmatpush1.bf16.msra.mxu0 %v16642_v54  ;;  %6930 = vmatprep.subr.bf16.mxu1 %v16647_v11  ;;  %v5760_v54 = vsel %vm267_vm0, %v5758_v38, %v5759_v15  ;;  %v16711_v11 = vld [vmem:[#allocation8 + $0xd80] ss:$16 sps:$4 sm:$0xff]   ;;  %v16785_v15 = vld [vmem:[#allocation8 + $0xf04] ss:$16 sps:$4 sm:$0xff]  }
 0x450   :  { %7059 = vmatprep.subr.bf16.mxu0 %v16650_v34  ;;  %v5767_v34 = vrot.slane %v5713_v14, 2  ;;  %v16794_v14 = vld [vmem:[#allocation8 + $0xf2c] ss:$16 sps:$4 sm:$0xff]   ;;  %v16789_v38 = vld [vmem:[#allocation8 + $0xf20] ss:$16 sps:$4 sm:$0xff]  }
 0x452   :  { %6931 = vmatpush1.bf16.msra.mxu1 %v16645_v45  ;;  %v5787_v45 = vsel %vm267_vm0, %v5785_v23, %v5786_v9  ;;  %v16783_v9 = vld [vmem:[#allocation8 + $0xf00] ss:$16 sps:$4 sm:$0xff]   ;;  %v5730_v23 = vld [vmem:[#allocation2 + $0xa0] sm:$0x3] }
 0x453   :  { %7060 = vmatpush1.bf16.msra.mxu0 %v16648_v24  ;;  %6932 = vmatprep.subr.bf16.mxu1 %v16653_v51  ;;  %v5806_v24 = vpack.c.bf16 %v5778_v13, %v5760_v54  ;;  %v16714_v51 = vld [vmem:[#allocation8 + $0xd88] ss:$16 sps:$4 sm:$0xff]   ;;  %v16795_v54 = vld [vmem:[#allocation8 + $0xf40] ss:$16 sps:$4 sm:$0xff]  }
 0x454   :  { %7061 = vmatprep.subr.bf16.mxu0 %v16656_v25  ;;  %v5769_v25 = vsel %vm267_vm0, %v5767_v34, %v5768_v40  ;;  %v16792_v13 = vld [vmem:[#allocation8 + $0xf28] ss:$16 sps:$4 sm:$0xff]   ;;  %v16800_v40 = vld [vmem:[#allocation8 + $0xf4c] ss:$16 sps:$4 sm:$0xff]  }
 0x455   :  { %v5724_v34 = vld [vmem:[#allocation2 + $0x70] sm:$0xfc] }
 0x456   :  { %6933 = vmatpush1.bf16.msra.mxu1 %v16651_v41  ;;  %v16719_v41 = vld [vmem:[#allocation8 + $0xda4] ss:$16 sps:$4 sm:$0xff]  }
 0x457   :  { %7062 = vmatpush1.bf16.msra.mxu0 %v16654_v39  ;;  %6934 = vmatprep.subr.bf16.mxu1 %v16659_v16  ;;  %v5809_v39 = vpack.c.bf16 %v5787_v45, %v5769_v25  ;;  %v16722_v16 = vld [vmem:[#allocation8 + $0xdac] ss:$16 sps:$4 sm:$0xff]   ;;  %v16798_v45 = vld [vmem:[#allocation8 + $0xf48] ss:$16 sps:$4 sm:$0xff]  }
 0x458   :  { %7063 = vmatprep.subr.bf16.mxu0 %v16662_v12  ;;  %v16717_v12 = vld [vmem:[#allocation8 + $0xda0] ss:$16 sps:$4 sm:$0xff]   ;;  %v16806_v25 = vld [vmem:[#allocation8 + $0xf6c] ss:$16 sps:$4 sm:$0xff]  }
 0x45a   :  { %6935 = vmatpush1.bf16.msra.mxu1 %v16657_v29  ;;  %v16720_v29 = vld [vmem:[#allocation8 + $0xda8] ss:$16 sps:$4 sm:$0xff]  }
 0x45b   :  { %7064 = vmatpush1.bf16.msra.mxu0 %v16660_v37  ;;  %6936 = vmatprep.subr.bf16.mxu1 %v16665_v49  ;;  %v16725_v37 = vld [vmem:[#allocation8 + $0xdc4] ss:$16 sps:$4 sm:$0xff]   ;;  %v16728_v49 = vld [vmem:[#allocation8 + $0xdcc] ss:$16 sps:$4 sm:$0xff]  }
 0x45c   :  { %7065 = vmatprep.subr.bf16.mxu0 %v16668_v58  ;;  %v16723_v58 = vld [vmem:[#allocation8 + $0xdc0] ss:$16 sps:$4 sm:$0xff]  }
 0x45e   :  { %6937 = vmatpush1.bf16.msra.mxu1 %v16663_v32  ;;  %v16726_v32 = vld [vmem:[#allocation8 + $0xdc8] ss:$16 sps:$4 sm:$0xff]  }
 0x45f   :  { %7066 = vmatpush1.bf16.msra.mxu0 %v16666_v47  ;;  %6938 = vmatprep.subr.bf16.mxu1 %v16671_v2  ;;  %v16731_v47 = vld [vmem:[#allocation8 + $0xde4] ss:$16 sps:$4 sm:$0xff]   ;;  %v16734_v2 = vld [vmem:[#allocation8 + $0xdec] ss:$16 sps:$4 sm:$0xff]  }
 0x460   :  { %7067 = vmatprep.subr.bf16.mxu0 %v16674_v60  ;;  %v16729_v60 = vld [vmem:[#allocation8 + $0xde0] ss:$16 sps:$4 sm:$0xff]  }
 0x462   :  { %6939 = vmatpush1.bf16.msra.mxu1 %v16669_v48  ;;  %v16732_v48 = vld [vmem:[#allocation8 + $0xde8] ss:$16 sps:$4 sm:$0xff]  }
 0x463   :  { %7068 = vmatpush1.bf16.msra.mxu0 %v16672_v63  ;;  %6940 = vmatprep.subr.bf16.mxu1 %v16677_v21  ;;  %v16737_v63 = vld [vmem:[#allocation8 + $0xe04] ss:$16 sps:$4 sm:$0xff]   ;;  %v16740_v21 = vld [vmem:[#allocation8 + $0xe0c] ss:$16 sps:$4 sm:$0xff]  }
 0x464   :  { %7069 = vmatprep.subr.bf16.mxu0 %v16680_v61  ;;  %v16735_v61 = vld [vmem:[#allocation8 + $0xe00] ss:$16 sps:$4 sm:$0xff]  }
 0x466   :  { %6941 = vmatpush1.bf16.msra.mxu1 %v16675_v6  ;;  %v16738_v6 = vld [vmem:[#allocation8 + $0xe08] ss:$16 sps:$4 sm:$0xff]  }
 0x467   :  { %7070 = vmatpush1.bf16.msra.mxu0 %v16678_v4  ;;  %6942 = vmatprep.subr.bf16.mxu1 %v16683_v33  ;;  %v16743_v4 = vld [vmem:[#allocation8 + $0xe24] ss:$16 sps:$4 sm:$0xff]   ;;  %v16746_v33 = vld [vmem:[#allocation8 + $0xe2c] ss:$16 sps:$4 sm:$0xff]  }
 0x468   :  { %7071 = vmatprep.subr.bf16.mxu0 %v16686_v1  ;;  %v16741_v1 = vld [vmem:[#allocation8 + $0xe20] ss:$16 sps:$4 sm:$0xff]  }
 0x46a   :  { %6943 = vmatpush1.bf16.msra.mxu1 %v16681_v18  ;;  %v16744_v18 = vld [vmem:[#allocation8 + $0xe28] ss:$16 sps:$4 sm:$0xff]  }
 0x46b   :  { %7072 = vmatpush1.bf16.msra.mxu0 %v16684_v30  ;;  %6944 = vmatprep.subr.bf16.mxu1 %v16689_v20  ;;  %v16749_v30 = vld [vmem:[#allocation8 + $0xe44] ss:$16 sps:$4 sm:$0xff]   ;;  %v16752_v20 = vld [vmem:[#allocation8 + $0xe4c] ss:$16 sps:$4 sm:$0xff]  }
 0x46c   :  { %7073 = vmatprep.subr.bf16.mxu0 %v16692_v0  ;;  %v16747_v0 = vld [vmem:[#allocation8 + $0xe40] ss:$16 sps:$4 sm:$0xff]  }
 0x46e   :  { %6945 = vmatpush1.bf16.msra.mxu1 %v16687_v26  ;;  %v16750_v26 = vld [vmem:[#allocation8 + $0xe48] ss:$16 sps:$4 sm:$0xff]  }
 0x46f   :  { %7074 = vmatpush1.bf16.msra.mxu0 %v16690_v7  ;;  %6946 = vmatprep.subr.bf16.mxu1 %v16695_v62  ;;  %v16755_v7 = vld [vmem:[#allocation8 + $0xe64] ss:$16 sps:$4 sm:$0xff]   ;;  %v16758_v62 = vld [vmem:[#allocation8 + $0xe6c] ss:$16 sps:$4 sm:$0xff]  }
 0x470   :  { %7075 = vmatprep.subr.bf16.mxu0 %v16698_v19  ;;  %v16753_v19 = vld [vmem:[#allocation8 + $0xe60] ss:$16 sps:$4 sm:$0xff]  }
 0x472   :  { %6947 = vmatpush1.bf16.msra.mxu1 %v16693_v46  ;;  %v16756_v46 = vld [vmem:[#allocation8 + $0xe68] ss:$16 sps:$4 sm:$0xff]  }
 0x473   :  { %7076 = vmatpush1.bf16.msra.mxu0 %v16696_v31  ;;  %6948 = vmatprep.subr.bf16.mxu1 %v16701_v8  ;;  %v16761_v31 = vld [vmem:[#allocation8 + $0xe84] ss:$16 sps:$4 sm:$0xff]   ;;  %v16764_v8 = vld [vmem:[#allocation8 + $0xe8c] ss:$16 sps:$4 sm:$0xff]  }
 0x474   :  { %7077 = vmatprep.subr.bf16.mxu0 %v16704_v10  ;;  %v16759_v10 = vld [vmem:[#allocation8 + $0xe80] ss:$16 sps:$4 sm:$0xff]  }
 0x476   :  { %6949 = vmatpush1.bf16.msra.mxu1 %v16699_v27  ;;  %v16767_v27 = vld [vmem:[#allocation8 + $0xea4] ss:$16 sps:$4 sm:$0xff]  }
 0x477   :  { %7078 = vmatpush1.bf16.msra.mxu0 %v16702_v56  ;;  %6950 = vmatprep.subr.bf16.mxu1 %v16707_v44  ;;  %v16768_v56 = vld [vmem:[#allocation8 + $0xea8] ss:$16 sps:$4 sm:$0xff]   ;;  %v16773_v44 = vld [vmem:[#allocation8 + $0xec4] ss:$16 sps:$4 sm:$0xff]  }
 0x478   :  { %7079 = vmatprep.subr.bf16.mxu0 %v16710_v35  ;;  %v16771_v35 = vld [vmem:[#allocation8 + $0xec0] ss:$16 sps:$4 sm:$0xff]  }
 0x47a   :  { %6951 = vmatpush1.bf16.msra.mxu1 %v16705_v3  ;;  %v16780_v3 = vld [vmem:[#allocation8 + $0xee8] ss:$16 sps:$4 sm:$0xff]  }
 0x47b   :  { %7080 = vmatpush1.bf16.msra.mxu0 %v16708_v59  ;;  %6963 = vmatprep.subr.bf16.mxu1 %v16713_v57  ;;  %v16786_v59 = vld [vmem:[#allocation8 + $0xf08] ss:$16 sps:$4 sm:$0xff]   ;;  %v16791_v57 = vld [vmem:[#allocation8 + $0xf24] ss:$16 sps:$4 sm:$0xff]  }
 0x47c   :  { %7092 = vmatprep.subr.bf16.mxu0 %v16716_v52  ;;  %v16797_v52 = vld [vmem:[#allocation8 + $0xf44] ss:$16 sps:$4 sm:$0xff]  }
 0x47d   :  { %6953 = vmatmul.mubr.bf16.vlgmr.msra.gmra.mrb[12].mxu1 %v5806_v24 }
 0x47e   :  { %7082 = vmatmul.mubr.bf16.vlgmr.msra.gmra.mrb[24].mxu0 %v5806_v24  ;;  %6964 = vmatpush1.bf16.msra.mxu1 %v16711_v11  ;;  %v5718_v11 = vld [vmem:[#allocation2 + $0x40] sm:$0x3]  ;;  %v16803_v24 = vld [vmem:[#allocation8 + $0xf64] ss:$16 sps:$4 sm:$0xff]  }
 0x47f   :  { %6995 = vmatprep.mubr.bf16.mxu1 %v5809_v39  ;;  %7093 = vmatpush1.bf16.msra.mxu0 %v16714_v51  ;;  %v5733_v51 = vld [vmem:[#allocation2 + $0xb8] sm:$0x3] }
 0x480   :  { %7124 = vmatprep.mubr.bf16.mxu0 %v5809_v39  ;;  %6965 = vmatprep.subr.bf16.mxu1 %v16719_v41  ;;  %v5783_v41 = vrot.slane %v5730_v23, 2  ;;  %v5712_v39 = vld [vmem:[#allocation2 + $0x10] sm:$0xfc]  ;;  %v16858_v23 = vld [vmem:[#allocation8 + $0x1088] ss:$16 sps:$4 sm:$0xff]  }
 0x481   :  { %7094 = vmatprep.subr.bf16.mxu0 %v16722_v16  ;;  %v5721_v16 = vld [vmem:[#allocation2 + $0x58] sm:$0x3] }
 0x482   :  { %6966 = vmatpush1.bf16.msra.mxu1 %v16717_v12  ;;  %v5727_v12 = vld [vmem:[#allocation2 + $0x88] sm:$0xfc] }
 0x483   :  { %7095 = vmatpush1.bf16.msra.mxu0 %v16720_v29  ;;  %6967 = vmatprep.subr.bf16.mxu1 %v16725_v37  ;;  %v16801_v29 = vld [vmem:[#allocation8 + $0xf60] ss:$16 sps:$4 sm:$0xff]   ;;  %v5765_v37 = vrot.slane %v5718_v11, 2  ;;  %v16866_v11 = vld [vmem:[#allocation8 + $0x10ac] ss:$16 sps:$4 sm:$0xff]  }
 0x484   :  { %7096 = vmatprep.subr.bf16.mxu0 %v16728_v49  ;;  %v5782_v49 = vrot.slane %v5724_v34, 2  ;;  %v16861_v34 = vld [vmem:[#allocation8 + $0x10a0] ss:$16 sps:$4 sm:$0xff]  }
 0x486   :  { %6968 = vmatpush1.bf16.msra.mxu1 %v16723_v58  ;;  %v5792_v58 = vrot.slane %v5733_v51, 2  ;;  %v16872_v51 = vld [vmem:[#allocation8 + $0x10cc] ss:$16 sps:$4 sm:$0xff]  }
 0x487   :  { %7097 = vmatpush1.bf16.msra.mxu0 %v16726_v32  ;;  %6969 = vmatprep.subr.bf16.mxu1 %v16731_v47  ;;  %v16804_v32 = vld [vmem:[#allocation8 + $0xf68] ss:$16 sps:$4 sm:$0xff]   ;;  %v16809_v47 = vld [vmem:[#allocation8 + $0xf84] ss:$16 sps:$4 sm:$0xff]  }
 0x488   :  { %7098 = vmatprep.subr.bf16.mxu0 %v16734_v2  ;;  %v5715_v2 = vld [vmem:[#allocation2 + $0x28] sm:$0xfc] }
 0x48a   :  { %6970 = vmatpush1.bf16.msra.mxu1 %v16729_v60  ;;  %v5764_v60 = vrot.slane %v5712_v39, 2  ;;  %v16875_v39 = vld [vmem:[#allocation8 + $0x10e4] ss:$16 sps:$4 sm:$0xff]  }
 0x48b   :  { %7099 = vmatpush1.bf16.msra.mxu0 %v16732_v48  ;;  %6971 = vmatprep.subr.bf16.mxu1 %v16737_v63  ;;  %v5784_v48 = vsel %vm267_vm0, %v5782_v49, %v5783_v41  ;;  %v16812_v63 = vld [vmem:[#allocation8 + $0xf8c] ss:$16 sps:$4 sm:$0xff]   ;;  %v16870_v41 = vld [vmem:[#allocation8 + $0x10c8] ss:$16 sps:$4 sm:$0xff]  }
 0x48c   :  { %7100 = vmatprep.subr.bf16.mxu0 %v16740_v21  ;;  %v5774_v21 = vrot.slane %v5721_v16, 2  ;;  %v16878_v16 = vld [vmem:[#allocation8 + $0x10ec] ss:$16 sps:$4 sm:$0xff]  }
 0x48d   :  { %v16884_v49 = vld [vmem:[#allocation8 + $0x110c] ss:$16 sps:$4 sm:$0xff]  }
 0x48e   :  { %6972 = vmatpush1.bf16.msra.mxu1 %v16735_v61  ;;  %v5791_v61 = vrot.slane %v5727_v12, 2  ;;  %v16873_v12 = vld [vmem:[#allocation8 + $0x10e0] ss:$16 sps:$4 sm:$0xff]  }
 0x48f   :  { %7101 = vmatpush1.bf16.msra.mxu0 %v16738_v6  ;;  %6973 = vmatprep.subr.bf16.mxu1 %v16743_v4  ;;  %v5766_v6 = vsel %vm267_vm0, %v5764_v60, %v5765_v37  ;;  %v16807_v4 = vld [vmem:[#allocation8 + $0xf80] ss:$16 sps:$4 sm:$0xff]   ;;  %v16881_v37 = vld [vmem:[#allocation8 + $0x1104] ss:$16 sps:$4 sm:$0xff]   ;;  %v16882_v60 = vld [vmem:[#allocation8 + $0x1108] ss:$16 sps:$4 sm:$0xff]  }
 0x490   :  { %7102 = vmatprep.subr.bf16.mxu0 %v16746_v33  ;;  %v5773_v33 = vrot.slane %v5715_v2, 2  ;;  %v5726_v2 = vld [vmem:[#allocation2 + $0x80] sm:$0xfc] }
 0x492   :  { %6974 = vmatpush1.bf16.msra.mxu1 %v16741_v1  ;;  %v5793_v1 = vsel %vm267_vm0, %v5791_v61, %v5792_v58  ;;  %v5732_v58 = vld [vmem:[#allocation2 + $0xb0] sm:$0x3] }
 0x493   :  { %7103 = vmatpush1.bf16.msra.mxu0 %v16744_v18  ;;  %6975 = vmatprep.subr.bf16.mxu1 %v16749_v30  ;;  %v5808_v18 = vpack.c.bf16 %v5784_v48, %v5766_v6  ;;  %v16810_v30 = vld [vmem:[#allocation8 + $0xf88] ss:$16 sps:$4 sm:$0xff]   ;;  %v16887_v48 = vld [vmem:[#allocation8 + $0x1124] ss:$16 sps:$4 sm:$0xff]   ;;  %v5789_v61 = vrot.slane %v5732_v58, 2 }
 0x494   :  { %7104 = vmatprep.subr.bf16.mxu0 %v16752_v20  ;;  %v5775_v20 = vsel %vm267_vm0, %v5773_v33, %v5774_v21  ;;  %v16890_v21 = vld [vmem:[#allocation8 + $0x112c] ss:$16 sps:$4 sm:$0xff]   ;;  %v7199_v33 = vld [vmem:[#allocation2 + $0x68] sm:$0xf8] }
 0x495   :  { %v5714_v6 = vld [vmem:[#allocation2 + $0x20] sm:$0xfc]  ;;  %v16942_v58 = vld [vmem:[#allocation8 + $0x1248] ss:$16 sps:$4 sm:$0xff]  }
 0x496   :  { %6976 = vmatpush1.bf16.msra.mxu1 %v16747_v0  ;;  %v16815_v0 = vld [vmem:[#allocation8 + $0xfa4] ss:$16 sps:$4 sm:$0xff]  }
 0x497   :  { %7105 = vmatpush1.bf16.msra.mxu0 %v16750_v26  ;;  %6977 = vmatprep.subr.bf16.mxu1 %v16755_v7  ;;  %v5811_v26 = vpack.c.bf16 %v5793_v1, %v5775_v20  ;;  %v16818_v7 = vld [vmem:[#allocation8 + $0xfac] ss:$16 sps:$4 sm:$0xff]   ;;  %v16885_v1 = vld [vmem:[#allocation8 + $0x1120] ss:$16 sps:$4 sm:$0xff]  }
 0x498   :  { %7106 = vmatprep.subr.bf16.mxu0 %v16758_v62  ;;  %v16813_v62 = vld [vmem:[#allocation8 + $0xfa0] ss:$16 sps:$4 sm:$0xff]  }
 0x49a   :  { %6978 = vmatpush1.bf16.msra.mxu1 %v16753_v19  ;;  %v16816_v19 = vld [vmem:[#allocation8 + $0xfa8] ss:$16 sps:$4 sm:$0xff]  }
 0x49b   :  { %7107 = vmatpush1.bf16.msra.mxu0 %v16756_v46  ;;  %6979 = vmatprep.subr.bf16.mxu1 %v16761_v31  ;;  %v16821_v46 = vld [vmem:[#allocation8 + $0xfc4] ss:$16 sps:$4 sm:$0xff]   ;;  %v16824_v31 = vld [vmem:[#allocation8 + $0xfcc] ss:$16 sps:$4 sm:$0xff]  }
 0x49c   :  { %7108 = vmatprep.subr.bf16.mxu0 %v16764_v8  ;;  %v16819_v8 = vld [vmem:[#allocation8 + $0xfc0] ss:$16 sps:$4 sm:$0xff]  }
 0x49e   :  { %6980 = vmatpush1.bf16.msra.mxu1 %v16759_v10  ;;  %v16822_v10 = vld [vmem:[#allocation8 + $0xfc8] ss:$16 sps:$4 sm:$0xff]  }
 0x49f   :  { %7109 = vmatpush1.bf16.msra.mxu0 %v16762_v50  ;;  %6981 = vmatprep.subr.bf16.mxu1 %v16767_v27  ;;  %v16827_v50 = vld [vmem:[#allocation8 + $0xfe4] ss:$16 sps:$4 sm:$0xff]   ;;  %v16830_v27 = vld [vmem:[#allocation8 + $0xfec] ss:$16 sps:$4 sm:$0xff]  }
 0x4a0   :  { %7110 = vmatprep.subr.bf16.mxu0 %v16770_v28  ;;  %v16825_v28 = vld [vmem:[#allocation8 + $0xfe0] ss:$16 sps:$4 sm:$0xff]  }
 0x4a2   :  { %6982 = vmatpush1.bf16.msra.mxu1 %v16765_v53  ;;  %v16828_v53 = vld [vmem:[#allocation8 + $0xfe8] ss:$16 sps:$4 sm:$0xff]  }
 0x4a3   :  { %7111 = vmatpush1.bf16.msra.mxu0 %v16768_v56  ;;  %6983 = vmatprep.subr.bf16.mxu1 %v16773_v44  ;;  %v16833_v56 = vld [vmem:[#allocation8 + $0x1004] ss:$16 sps:$4 sm:$0xff]   ;;  %v16836_v44 = vld [vmem:[#allocation8 + $0x100c] ss:$16 sps:$4 sm:$0xff]  }
 0x4a4   :  { %7112 = vmatprep.subr.bf16.mxu0 %v16776_v42  ;;  %v16831_v42 = vld [vmem:[#allocation8 + $0x1000] ss:$16 sps:$4 sm:$0xff]  }
 0x4a6   :  { %6984 = vmatpush1.bf16.msra.mxu1 %v16771_v35  ;;  %v16834_v35 = vld [vmem:[#allocation8 + $0x1008] ss:$16 sps:$4 sm:$0xff]  }
 0x4a7   :  { %7113 = vmatpush1.bf16.msra.mxu0 %v16774_v17  ;;  %6985 = vmatprep.subr.bf16.mxu1 %v16779_v55  ;;  %v16839_v17 = vld [vmem:[#allocation8 + $0x1024] ss:$16 sps:$4 sm:$0xff]   ;;  %v16842_v55 = vld [vmem:[#allocation8 + $0x102c] ss:$16 sps:$4 sm:$0xff]  }
 0x4a8   :  { %7114 = vmatprep.subr.bf16.mxu0 %v16782_v36  ;;  %v16837_v36 = vld [vmem:[#allocation8 + $0x1020] ss:$16 sps:$4 sm:$0xff]  }
 0x4aa   :  { %6986 = vmatpush1.bf16.msra.mxu1 %v16777_v5  ;;  %v16840_v5 = vld [vmem:[#allocation8 + $0x1028] ss:$16 sps:$4 sm:$0xff]  }
 0x4ab   :  { %7115 = vmatpush1.bf16.msra.mxu0 %v16780_v3  ;;  %6987 = vmatprep.subr.bf16.mxu1 %v16785_v15  ;;  %v16845_v3 = vld [vmem:[#allocation8 + $0x1044] ss:$16 sps:$4 sm:$0xff]   ;;  %v16848_v15 = vld [vmem:[#allocation8 + $0x104c] ss:$16 sps:$4 sm:$0xff]  }
 0x4ac   :  { %7116 = vmatprep.subr.bf16.mxu0 %v16788_v43  ;;  %v16843_v43 = vld [vmem:[#allocation8 + $0x1040] ss:$16 sps:$4 sm:$0xff]  }
 0x4ae   :  { %6988 = vmatpush1.bf16.msra.mxu1 %v16783_v9  ;;  %v16846_v9 = vld [vmem:[#allocation8 + $0x1048] ss:$16 sps:$4 sm:$0xff]  }
 0x4af   :  { %7117 = vmatpush1.bf16.msra.mxu0 %v16786_v59  ;;  %6989 = vmatprep.subr.bf16.mxu1 %v16791_v57  ;;  %v16851_v59 = vld [vmem:[#allocation8 + $0x1064] ss:$16 sps:$4 sm:$0xff]   ;;  %v16854_v57 = vld [vmem:[#allocation8 + $0x106c] ss:$16 sps:$4 sm:$0xff]  }
 0x4b0   :  { %7118 = vmatprep.subr.bf16.mxu0 %v16794_v14  ;;  %v16849_v14 = vld [vmem:[#allocation8 + $0x1060] ss:$16 sps:$4 sm:$0xff]  }
 0x4b2   :  { %6990 = vmatpush1.bf16.msra.mxu1 %v16789_v38  ;;  %v16852_v38 = vld [vmem:[#allocation8 + $0x1068] ss:$16 sps:$4 sm:$0xff]  }
 0x4b3   :  { %7119 = vmatpush1.bf16.msra.mxu0 %v16792_v13  ;;  %6991 = vmatprep.subr.bf16.mxu1 %v16797_v52  ;;  %v16857_v13 = vld [vmem:[#allocation8 + $0x1084] ss:$16 sps:$4 sm:$0xff]   ;;  %v16860_v52 = vld [vmem:[#allocation8 + $0x108c] ss:$16 sps:$4 sm:$0xff]  }
 0x4b4   :  { %7120 = vmatprep.subr.bf16.mxu0 %v16800_v40  ;;  %v16855_v40 = vld [vmem:[#allocation8 + $0x1080] ss:$16 sps:$4 sm:$0xff]  }
 0x4b6   :  { %6992 = vmatpush1.bf16.msra.mxu1 %v16795_v54  ;;  %v16863_v54 = vld [vmem:[#allocation8 + $0x10a4] ss:$16 sps:$4 sm:$0xff]  }
 0x4b7   :  { %7121 = vmatpush1.bf16.msra.mxu0 %v16798_v45  ;;  %6993 = vmatprep.subr.bf16.mxu1 %v16803_v24  ;;  %v16864_v45 = vld [vmem:[#allocation8 + $0x10a8] ss:$16 sps:$4 sm:$0xff]   ;;  %v16869_v24 = vld [vmem:[#allocation8 + $0x10c4] ss:$16 sps:$4 sm:$0xff]  }
 0x4b8   :  { %7122 = vmatprep.subr.bf16.mxu0 %v16806_v25  ;;  %v16867_v25 = vld [vmem:[#allocation8 + $0x10c0] ss:$16 sps:$4 sm:$0xff]  }
 0x4ba   :  { %6994 = vmatpush1.bf16.msra.mxu1 %v16801_v29  ;;  %v16876_v29 = vld [vmem:[#allocation8 + $0x10e8] ss:$16 sps:$4 sm:$0xff]  }
 0x4bb   :  { %7123 = vmatpush1.bf16.msra.mxu0 %v16804_v32  ;;  %7006 = vmatprep.subr.bf16.mxu1 %v16809_v47  ;;  %v16879_v32 = vld [vmem:[#allocation8 + $0x1100] ss:$16 sps:$4 sm:$0xff]   ;;  %v5720_v47 = vld [vmem:[#allocation2 + $0x50] sm:$0x3] }
 0x4bc   :  { %7135 = vmatprep.subr.bf16.mxu0 %v16812_v63  ;;  %v7205_v63 = vld [vmem:[#allocation2 + $0x98] sm:$0x7] }
 0x4bd   :  { %6996 = vmatmul.mubr.bf16.vlgmr.msra.gmra.mrb[12].mxu1 %v5808_v18  ;;  %v7256_v20 = vrot.slane %v7205_v63, 3  ;;  %v16956_v63 = vld [vmem:[#allocation8 + $0x128c] ss:$16 sps:$4 sm:$0xff]  }
 0x4be   :  { %7125 = vmatmul.mubr.bf16.vlgmr.msra.gmra.mrb[24].mxu0 %v5808_v18  ;;  %7007 = vmatpush1.bf16.msra.mxu1 %v16807_v4  ;;  %v7193_v4 = vld [vmem:[#allocation2 + $0x38] sm:$0x7]  ;;  %v5771_v18 = vrot.slane %v5720_v47, 2  ;;  %v16950_v47 = vld [vmem:[#allocation8 + $0x126c] ss:$16 sps:$4 sm:$0xff]  }
 0x4bf   :  { %14792 = vmatprep.mubr.msk.bf16.mxu1 %vm1858_vm5, %v5811_v26  ;;  %7136 = vmatpush1.bf16.msra.mxu0 %v16810_v30  ;;  %v5788_v30 = vrot.slane %v5726_v2, 2  ;;  %v16945_v2 = vld [vmem:[#allocation8 + $0x1260] ss:$16 sps:$4 sm:$0xff]  }
 0x4c0   :  { %14793 = vmatprep.mubr.msk.bf16.mxu0 %vm1858_vm5, %v5811_v26  ;;  %7008 = vmatprep.subr.bf16.mxu1 %v16815_v0  ;;  %v16888_v0 = vld [vmem:[#allocation8 + $0x1128] ss:$16 sps:$4 sm:$0xff]   ;;  %v16893_v26 = vld [vmem:[#allocation8 + $0x1144] ss:$16 sps:$4 sm:$0xff]  }
 0x4c1   :  { %7137 = vmatprep.subr.bf16.mxu0 %v16818_v7  ;;  %v7187_v7 = vld [vmem:[#allocation2 + $0x8] sm:$0xf8] }
 0x4c2   :  { %7009 = vmatpush1.bf16.msra.mxu1 %v16813_v62  ;;  %v5770_v62 = vrot.slane %v5714_v6, 2  ;;  %v16959_v6 = vld [vmem:[#allocation8 + $0x12a4] ss:$16 sps:$4 sm:$0xff]  }
 0x4c3   :  { %7138 = vmatpush1.bf16.msra.mxu0 %v16816_v19  ;;  %7010 = vmatprep.subr.bf16.mxu1 %v16821_v46  ;;  %v5790_v19 = vsel %vm267_vm0, %v5788_v30, %v5789_v61  ;;  %v16896_v46 = vld [vmem:[#allocation8 + $0x114c] ss:$16 sps:$4 sm:$0xff]   ;;  %v16954_v61 = vld [vmem:[#allocation8 + $0x1288] ss:$16 sps:$4 sm:$0xff]  }
 0x4c4   :  { %7139 = vmatprep.subr.bf16.mxu0 %v16824_v31  ;;  %v7238_v31 = vrot.slane %v7193_v4, 3  ;;  %v16962_v4 = vld [vmem:[#allocation8 + $0x12ac] ss:$16 sps:$4 sm:$0xff]  }
 0x4c5   :  { %v16968_v30 = vld [vmem:[#allocation8 + $0x12cc] ss:$16 sps:$4 sm:$0xff]  }
 0x4c6   :  { %7011 = vmatpush1.bf16.msra.mxu1 %v16819_v8  ;;  %v7255_v8 = vrot.slane %v7199_v33, 3  ;;  %v16957_v33 = vld [vmem:[#allocation8 + $0x12a0] ss:$16 sps:$4 sm:$0xff]  }
 0x4c7   :  { %7140 = vmatpush1.bf16.msra.mxu0 %v16822_v10  ;;  %7012 = vmatprep.subr.bf16.mxu1 %v16827_v50  ;;  %v5772_v10 = vsel %vm267_vm0, %v5770_v62, %v5771_v18  ;;  %v16891_v50 = vld [vmem:[#allocation8 + $0x1140] ss:$16 sps:$4 sm:$0xff]   ;;  %v16965_v18 = vld [vmem:[#allocation8 + $0x12c4] ss:$16 sps:$4 sm:$0xff]  }
 0x4c8   :  { %7141 = vmatprep.subr.bf16.mxu0 %v16830_v27  ;;  %v7237_v27 = vrot.slane %v7187_v7, 3  ;;  %v16974_v7 = vld [vmem:[#allocation8 + $0x12ec] ss:$16 sps:$4 sm:$0xff]   ;;  %v16969_v62 = vld [vmem:[#allocation8 + $0x12e0] ss:$16 sps:$4 sm:$0xff]  }
 0x4ca   :  { %7013 = vmatpush1.bf16.msra.mxu1 %v16825_v28  ;;  %v7257_v28 = vsel %vm1087_vm3, %v7255_v8, %v7256_v20  ;;  %v16963_v20 = vld [vmem:[#allocation8 + $0x12c0] ss:$16 sps:$4 sm:$0xff]   ;;  %v7204_v8 = vld [vmem:[#allocation2 + $0x90] sm:$0x7] }
 0x4cb   :  { %7142 = vmatpush1.bf16.msra.mxu0 %v16828_v53  ;;  %7014 = vmatprep.subr.bf16.mxu1 %v16833_v56  ;;  %v5810_v53 = vpack.c.bf16 %v5790_v19, %v5772_v10  ;;  %v16894_v56 = vld [vmem:[#allocation8 + $0x1148] ss:$16 sps:$4 sm:$0xff]   ;;  %v16975_v10 = vld [vmem:[#allocation8 + $0x1300] ss:$16 sps:$4 sm:$0xff]  }
 0x4cc   :  { %7143 = vmatprep.subr.bf16.mxu0 %v16836_v44  ;;  %v7239_v44 = vsel %vm1087_vm3, %v7237_v27, %v7238_v31  ;;  %v16972_v19 = vld [vmem:[#allocation8 + $0x12e8] ss:$16 sps:$4 sm:$0xff]   ;;  %v16980_v31 = vld [vmem:[#allocation8 + $0x130c] ss:$16 sps:$4 sm:$0xff]  }
 0x4cd   :  { %v7198_v27 = vld [vmem:[#allocation2 + $0x60] sm:$0xf8] }
 0x4ce   :  { %7015 = vmatpush1.bf16.msra.mxu1 %v16831_v42  ;;  %v16899_v42 = vld [vmem:[#allocation8 + $0x1164] ss:$16 sps:$4 sm:$0xff]  }
 0x4cf   :  { %7144 = vmatpush1.bf16.msra.mxu0 %v16834_v35  ;;  %7016 = vmatprep.subr.bf16.mxu1 %v16839_v17  ;;  %v7283_v35 = vpack.c.bf16 %v7257_v28, %v7239_v44  ;;  %v16902_v17 = vld [vmem:[#allocation8 + $0x116c] ss:$16 sps:$4 sm:$0xff]   ;;  %v16978_v28 = vld [vmem:[#allocation8 + $0x1308] ss:$16 sps:$4 sm:$0xff]  }
 0x4d0   :  { %7145 = vmatprep.subr.bf16.mxu0 %v16842_v55  ;;  %v16897_v55 = vld [vmem:[#allocation8 + $0x1160] ss:$16 sps:$4 sm:$0xff]   ;;  %v16986_v44 = vld [vmem:[#allocation8 + $0x132c] ss:$16 sps:$4 sm:$0xff]  }
 0x4d2   :  { %7017 = vmatpush1.bf16.msra.mxu1 %v16837_v36  ;;  %v16900_v36 = vld [vmem:[#allocation8 + $0x1168] ss:$16 sps:$4 sm:$0xff]  }
 0x4d3   :  { %7146 = vmatpush1.bf16.msra.mxu0 %v16840_v5  ;;  %7018 = vmatprep.subr.bf16.mxu1 %v16845_v3  ;;  %v16905_v5 = vld [vmem:[#allocation8 + $0x1184] ss:$16 sps:$4 sm:$0xff]   ;;  %v16908_v3 = vld [vmem:[#allocation8 + $0x118c] ss:$16 sps:$4 sm:$0xff]  }
 0x4d4   :  { %7147 = vmatprep.subr.bf16.mxu0 %v16848_v15  ;;  %v16903_v15 = vld [vmem:[#allocation8 + $0x1180] ss:$16 sps:$4 sm:$0xff]  }
 0x4d6   :  { %7019 = vmatpush1.bf16.msra.mxu1 %v16843_v43  ;;  %v16906_v43 = vld [vmem:[#allocation8 + $0x1188] ss:$16 sps:$4 sm:$0xff]  }
 0x4d7   :  { %7148 = vmatpush1.bf16.msra.mxu0 %v16846_v9  ;;  %7020 = vmatprep.subr.bf16.mxu1 %v16851_v59  ;;  %v16911_v9 = vld [vmem:[#allocation8 + $0x11a4] ss:$16 sps:$4 sm:$0xff]   ;;  %v16914_v59 = vld [vmem:[#allocation8 + $0x11ac] ss:$16 sps:$4 sm:$0xff]  }
 0x4d8   :  { %7149 = vmatprep.subr.bf16.mxu0 %v16854_v57  ;;  %v16909_v57 = vld [vmem:[#allocation8 + $0x11a0] ss:$16 sps:$4 sm:$0xff]  }
 0x4da   :  { %7021 = vmatpush1.bf16.msra.mxu1 %v16849_v14  ;;  %v16912_v14 = vld [vmem:[#allocation8 + $0x11a8] ss:$16 sps:$4 sm:$0xff]  }
 0x4db   :  { %7150 = vmatpush1.bf16.msra.mxu0 %v16852_v38  ;;  %7022 = vmatprep.subr.bf16.mxu1 %v16857_v13  ;;  %v16917_v38 = vld [vmem:[#allocation8 + $0x11c4] ss:$16 sps:$4 sm:$0xff]   ;;  %v16920_v13 = vld [vmem:[#allocation8 + $0x11cc] ss:$16 sps:$4 sm:$0xff]  }
 0x4dc   :  { %7151 = vmatprep.subr.bf16.mxu0 %v16860_v52  ;;  %v16915_v52 = vld [vmem:[#allocation8 + $0x11c0] ss:$16 sps:$4 sm:$0xff]  }
 0x4de   :  { %7023 = vmatpush1.bf16.msra.mxu1 %v16855_v40  ;;  %v16918_v40 = vld [vmem:[#allocation8 + $0x11c8] ss:$16 sps:$4 sm:$0xff]  }
 0x4df   :  { %7152 = vmatpush1.bf16.msra.mxu0 %v16858_v23  ;;  %7024 = vmatprep.subr.bf16.mxu1 %v16863_v54  ;;  %v16923_v23 = vld [vmem:[#allocation8 + $0x11e4] ss:$16 sps:$4 sm:$0xff]   ;;  %v16926_v54 = vld [vmem:[#allocation8 + $0x11ec] ss:$16 sps:$4 sm:$0xff]  }
 0x4e0   :  { %7153 = vmatprep.subr.bf16.mxu0 %v16866_v11  ;;  %v16921_v11 = vld [vmem:[#allocation8 + $0x11e0] ss:$16 sps:$4 sm:$0xff]  }
 0x4e2   :  { %7025 = vmatpush1.bf16.msra.mxu1 %v16861_v34  ;;  %v16924_v34 = vld [vmem:[#allocation8 + $0x11e8] ss:$16 sps:$4 sm:$0xff]  }
 0x4e3   :  { %7154 = vmatpush1.bf16.msra.mxu0 %v16864_v45  ;;  %7026 = vmatprep.subr.bf16.mxu1 %v16869_v24  ;;  %v16929_v45 = vld [vmem:[#allocation8 + $0x1204] ss:$16 sps:$4 sm:$0xff]   ;;  %v16932_v24 = vld [vmem:[#allocation8 + $0x120c] ss:$16 sps:$4 sm:$0xff]  }
 0x4e4   :  { %7155 = vmatprep.subr.bf16.mxu0 %v16872_v51  ;;  %v16927_v51 = vld [vmem:[#allocation8 + $0x1200] ss:$16 sps:$4 sm:$0xff]  }
 0x4e6   :  { %7027 = vmatpush1.bf16.msra.mxu1 %v16867_v25  ;;  %v16930_v25 = vld [vmem:[#allocation8 + $0x1208] ss:$16 sps:$4 sm:$0xff]  }
 0x4e7   :  { %7156 = vmatpush1.bf16.msra.mxu0 %v16870_v41  ;;  %7028 = vmatprep.subr.bf16.mxu1 %v16875_v39  ;;  %v16935_v41 = vld [vmem:[#allocation8 + $0x1224] ss:$16 sps:$4 sm:$0xff]   ;;  %v16938_v39 = vld [vmem:[#allocation8 + $0x122c] ss:$16 sps:$4 sm:$0xff]  }
 0x4e8   :  { %7157 = vmatprep.subr.bf16.mxu0 %v16878_v16  ;;  %v16933_v16 = vld [vmem:[#allocation8 + $0x1220] ss:$16 sps:$4 sm:$0xff]  }
 0x4ea   :  { %7029 = vmatpush1.bf16.msra.mxu1 %v16873_v12  ;;  %v16936_v12 = vld [vmem:[#allocation8 + $0x1228] ss:$16 sps:$4 sm:$0xff]  }
 0x4eb   :  { %7158 = vmatpush1.bf16.msra.mxu0 %v16876_v29  ;;  %7030 = vmatprep.subr.bf16.mxu1 %v16881_v37  ;;  %v16941_v29 = vld [vmem:[#allocation8 + $0x1244] ss:$16 sps:$4 sm:$0xff]   ;;  %v16944_v37 = vld [vmem:[#allocation8 + $0x124c] ss:$16 sps:$4 sm:$0xff]  }
 0x4ec   :  { %7159 = vmatprep.subr.bf16.mxu0 %v16884_v49  ;;  %v16939_v49 = vld [vmem:[#allocation8 + $0x1240] ss:$16 sps:$4 sm:$0xff]  }
 0x4ee   :  { %7031 = vmatpush1.bf16.msra.mxu1 %v16879_v32  ;;  %v16947_v32 = vld [vmem:[#allocation8 + $0x1264] ss:$16 sps:$4 sm:$0xff]  }
 0x4ef   :  { %7160 = vmatpush1.bf16.msra.mxu0 %v16882_v60  ;;  %7032 = vmatprep.subr.bf16.mxu1 %v16887_v48  ;;  %v16948_v60 = vld [vmem:[#allocation8 + $0x1268] ss:$16 sps:$4 sm:$0xff]   ;;  %v16953_v48 = vld [vmem:[#allocation8 + $0x1284] ss:$16 sps:$4 sm:$0xff]  }
 0x4f0   :  { %7161 = vmatprep.subr.bf16.mxu0 %v16890_v21  ;;  %v16951_v21 = vld [vmem:[#allocation8 + $0x1280] ss:$16 sps:$4 sm:$0xff]  }
 0x4f2   :  { %7033 = vmatpush1.bf16.msra.mxu1 %v16885_v1  ;;  %v16960_v1 = vld [vmem:[#allocation8 + $0x12a8] ss:$16 sps:$4 sm:$0xff]  }
 0x4f3   :  { %7162 = vmatpush1.bf16.msra.mxu0 %v16888_v0  ;;  %8396 = vmatprep.subr.bf16.mxu1 %v16893_v26  ;;  %v16966_v0 = vld [vmem:[#allocation8 + $0x12c8] ss:$16 sps:$4 sm:$0xff]   ;;  %v16971_v26 = vld [vmem:[#allocation8 + $0x12e4] ss:$16 sps:$4 sm:$0xff]  }
 0x4f4   :  { %8525 = vmatprep.subr.bf16.mxu0 %v16896_v46  ;;  %v16977_v46 = vld [vmem:[#allocation8 + $0x1304] ss:$16 sps:$4 sm:$0xff]  }
 0x4f5   :  { %7039 = vmatmul.mubr.bf16.vlgmr.msra.gmra.mrb[12].mxu1 %v5810_v53 }
 0x4f6   :  { %7168 = vmatmul.mubr.bf16.vlgmr.msra.gmra.mrb[24].mxu0 %v5810_v53  ;;  %8397 = vmatpush1.bf16.msra.mxu1 %v16891_v50  ;;  %v7192_v50 = vld [vmem:[#allocation2 + $0x30] sm:$0x7]  ;;  %v16983_v53 = vld [vmem:[#allocation8 + $0x1324] ss:$16 sps:$4 sm:$0xff]  }
 0x4f7   :  { %8428 = vmatprep.mubr.bf16.mxu1 %v7283_v35  ;;  %8526 = vmatpush1.bf16.msra.mxu0 %v16894_v56  ;;  %v7207_v56 = vld [vmem:[#allocation2 + $0xa8] sm:$0x7] }
 0x4f8   :  { %8557 = vmatprep.mubr.bf16.mxu0 %v7283_v35  ;;  %8398 = vmatprep.subr.bf16.mxu1 %v16899_v42  ;;  %v7253_v42 = vrot.slane %v7204_v8, 3  ;;  %v7186_v35 = vld [vmem:[#allocation2] sm:$0xf8]  ;;  %v17038_v8 = vld [vmem:[#allocation8 + $0x1448] ss:$16 sps:$4 sm:$0xff]  }
 0x4f9   :  { %8527 = vmatprep.subr.bf16.mxu0 %v16902_v17  ;;  %v7195_v17 = vld [vmem:[#allocation2 + $0x48] sm:$0x7] }
 0x4fa   :  { %8399 = vmatpush1.bf16.msra.mxu1 %v16897_v55  ;;  %v7201_v55 = vld [vmem:[#allocation2 + $0x78] sm:$0xf8] }
 0x4fb   :  { %8528 = vmatpush1.bf16.msra.mxu0 %v16900_v36  ;;  %8400 = vmatprep.subr.bf16.mxu1 %v16905_v5  ;;  %v16981_v36 = vld [vmem:[#allocation8 + $0x1320] ss:$16 sps:$4 sm:$0xff]   ;;  %v7235_v5 = vrot.slane %v7192_v50, 3  ;;  %v17046_v50 = vld [vmem:[#allocation8 + $0x146c] ss:$16 sps:$4 sm:$0xff]  }
 0x4fc   :  { %8529 = vmatprep.subr.bf16.mxu0 %v16908_v3  ;;  %v7252_v3 = vrot.slane %v7198_v27, 3  ;;  %v17041_v27 = vld [vmem:[#allocation8 + $0x1460] ss:$16 sps:$4 sm:$0xff]  }
 0x4fe   :  { %8401 = vmatpush1.bf16.msra.mxu1 %v16903_v15  ;;  %v7262_v15 = vrot.slane %v7207_v56, 3  ;;  %v17052_v56 = vld [vmem:[#allocation8 + $0x148c] ss:$16 sps:$4 sm:$0xff]  }
 0x4ff   :  { %8530 = vmatpush1.bf16.msra.mxu0 %v16906_v43  ;;  %8402 = vmatprep.subr.bf16.mxu1 %v16911_v9  ;;  %v16984_v43 = vld [vmem:[#allocation8 + $0x1328] ss:$16 sps:$4 sm:$0xff]   ;;  %v16989_v9 = vld [vmem:[#allocation8 + $0x1344] ss:$16 sps:$4 sm:$0xff]  }
 0x500   :  { %8531 = vmatprep.subr.bf16.mxu0 %v16914_v59  ;;  %v7189_v59 = vld [vmem:[#allocation2 + $0x18] sm:$0xf8] }
 0x502   :  { %8403 = vmatpush1.bf16.msra.mxu1 %v16909_v57  ;;  %v7234_v57 = vrot.slane %v7186_v35, 3  ;;  %v17055_v35 = vld [vmem:[#allocation8 + $0x14a4] ss:$16 sps:$4 sm:$0xff]  }
 0x503   :  { %8532 = vmatpush1.bf16.msra.mxu0 %v16912_v14  ;;  %8404 = vmatprep.subr.bf16.mxu1 %v16917_v38  ;;  %v7254_v14 = vsel %vm1087_vm3, %v7252_v3, %v7253_v42  ;;  %v16992_v38 = vld [vmem:[#allocation8 + $0x134c] ss:$16 sps:$4 sm:$0xff]   ;;  %v17050_v42 = vld [vmem:[#allocation8 + $0x1488] ss:$16 sps:$4 sm:$0xff]  }
 0x504   :  { %8533 = vmatprep.subr.bf16.mxu0 %v16920_v13  ;;  %v7244_v13 = vrot.slane %v7195_v17, 3  ;;  %v17058_v17 = vld [vmem:[#allocation8 + $0x14ac] ss:$16 sps:$4 sm:$0xff]  }
 0x505   :  { %v17064_v3 = vld [vmem:[#allocation8 + $0x14cc] ss:$16 sps:$4 sm:$0xff]  }
 0x506   :  { %8405 = vmatpush1.bf16.msra.mxu1 %v16915_v52  ;;  %v7261_v52 = vrot.slane %v7201_v55, 3  ;;  %v17053_v55 = vld [vmem:[#allocation8 + $0x14a0] ss:$16 sps:$4 sm:$0xff]  }
 0x507   :  { %8534 = vmatpush1.bf16.msra.mxu0 %v16918_v40  ;;  %8406 = vmatprep.subr.bf16.mxu1 %v16923_v23  ;;  %v7236_v40 = vsel %vm1087_vm3, %v7234_v57, %v7235_v5  ;;  %v16987_v23 = vld [vmem:[#allocation8 + $0x1340] ss:$16 sps:$4 sm:$0xff]   ;;  %v17061_v5 = vld [vmem:[#allocation8 + $0x14c4] ss:$16 sps:$4 sm:$0xff]  }
 0x508   :  { %8535 = vmatprep.subr.bf16.mxu0 %v16926_v54  ;;  %v7243_v54 = vrot.slane %v7189_v59, 3  ;;  %v17070_v59 = vld [vmem:[#allocation8 + $0x14ec] ss:$16 sps:$4 sm:$0xff]   ;;  %v17065_v57 = vld [vmem:[#allocation8 + $0x14e0] ss:$16 sps:$4 sm:$0xff]  }
 0x50a   :  { %8407 = vmatpush1.bf16.msra.mxu1 %v16921_v11  ;;  %v7263_v11 = vsel %vm1087_vm3, %v7261_v52, %v7262_v15  ;;  %v17059_v15 = vld [vmem:[#allocation8 + $0x14c0] ss:$16 sps:$4 sm:$0xff]   ;;  %v7206_v52 = vld [vmem:[#allocation2 + $0xa0] sm:$0x7] }
 0x50b   :  { %8536 = vmatpush1.bf16.msra.mxu0 %v16924_v34  ;;  %8408 = vmatprep.subr.bf16.mxu1 %v16929_v45  ;;  %v7282_v34 = vpack.c.bf16 %v7254_v14, %v7236_v40  ;;  %v16990_v45 = vld [vmem:[#allocation8 + $0x1348] ss:$16 sps:$4 sm:$0xff]   ;;  %v17071_v40 = vld [vmem:[#allocation8 + $0x1500] ss:$16 sps:$4 sm:$0xff]  }
 0x50c   :  { %8537 = vmatprep.subr.bf16.mxu0 %v16932_v24  ;;  %v7245_v24 = vsel %vm1087_vm3, %v7243_v54, %v7244_v13  ;;  %v17068_v14 = vld [vmem:[#allocation8 + $0x14e8] ss:$16 sps:$4 sm:$0xff]   ;;  %v17076_v13 = vld [vmem:[#allocation8 + $0x150c] ss:$16 sps:$4 sm:$0xff]  }
 0x50d   :  { %v7200_v54 = vld [vmem:[#allocation2 + $0x70] sm:$0xf8] }
 0x50e   :  { %8409 = vmatpush1.bf16.msra.mxu1 %v16927_v51  ;;  %v16995_v51 = vld [vmem:[#allocation8 + $0x1364] ss:$16 sps:$4 sm:$0xff]  }
 0x50f   :  { %8538 = vmatpush1.bf16.msra.mxu0 %v16930_v25  ;;  %8410 = vmatprep.subr.bf16.mxu1 %v16935_v41  ;;  %v7285_v25 = vpack.c.bf16 %v7263_v11, %v7245_v24  ;;  %v16998_v41 = vld [vmem:[#allocation8 + $0x136c] ss:$16 sps:$4 sm:$0xff]   ;;  %v17074_v11 = vld [vmem:[#allocation8 + $0x1508] ss:$16 sps:$4 sm:$0xff]  }
 0x510   :  { %8539 = vmatprep.subr.bf16.mxu0 %v16938_v39  ;;  %v16993_v39 = vld [vmem:[#allocation8 + $0x1360] ss:$16 sps:$4 sm:$0xff]   ;;  %v17082_v24 = vld [vmem:[#allocation8 + $0x152c] ss:$16 sps:$4 sm:$0xff]  }
 0x512   :  { %8411 = vmatpush1.bf16.msra.mxu1 %v16933_v16  ;;  %v16996_v16 = vld [vmem:[#allocation8 + $0x1368] ss:$16 sps:$4 sm:$0xff]  }
 0x513   :  { %8540 = vmatpush1.bf16.msra.mxu0 %v16936_v12  ;;  %8412 = vmatprep.subr.bf16.mxu1 %v16941_v29  ;;  %v17001_v12 = vld [vmem:[#allocation8 + $0x1384] ss:$16 sps:$4 sm:$0xff]   ;;  %v17004_v29 = vld [vmem:[#allocation8 + $0x138c] ss:$16 sps:$4 sm:$0xff]  }
 0x514   :  { %8541 = vmatprep.subr.bf16.mxu0 %v16944_v37  ;;  %v16999_v37 = vld [vmem:[#allocation8 + $0x1380] ss:$16 sps:$4 sm:$0xff]  }
 0x516   :  { %8413 = vmatpush1.bf16.msra.mxu1 %v16939_v49  ;;  %v17002_v49 = vld [vmem:[#allocation8 + $0x1388] ss:$16 sps:$4 sm:$0xff]  }
 0x517   :  { %8542 = vmatpush1.bf16.msra.mxu0 %v16942_v58  ;;  %8414 = vmatprep.subr.bf16.mxu1 %v16947_v32  ;;  %v17007_v58 = vld [vmem:[#allocation8 + $0x13a4] ss:$16 sps:$4 sm:$0xff]   ;;  %v17010_v32 = vld [vmem:[#allocation8 + $0x13ac] ss:$16 sps:$4 sm:$0xff]  }
 0x518   :  { %8543 = vmatprep.subr.bf16.mxu0 %v16950_v47  ;;  %v17005_v47 = vld [vmem:[#allocation8 + $0x13a0] ss:$16 sps:$4 sm:$0xff]  }
 0x51a   :  { %8415 = vmatpush1.bf16.msra.mxu1 %v16945_v2  ;;  %v17008_v2 = vld [vmem:[#allocation8 + $0x13a8] ss:$16 sps:$4 sm:$0xff]  }
 0x51b   :  { %8544 = vmatpush1.bf16.msra.mxu0 %v16948_v60  ;;  %8416 = vmatprep.subr.bf16.mxu1 %v16953_v48  ;;  %v17013_v60 = vld [vmem:[#allocation8 + $0x13c4] ss:$16 sps:$4 sm:$0xff]   ;;  %v17016_v48 = vld [vmem:[#allocation8 + $0x13cc] ss:$16 sps:$4 sm:$0xff]  }
 0x51c   :  { %8545 = vmatprep.subr.bf16.mxu0 %v16956_v63  ;;  %v17011_v63 = vld [vmem:[#allocation8 + $0x13c0] ss:$16 sps:$4 sm:$0xff]  }
 0x51e   :  { %8417 = vmatpush1.bf16.msra.mxu1 %v16951_v21  ;;  %v17014_v21 = vld [vmem:[#allocation8 + $0x13c8] ss:$16 sps:$4 sm:$0xff]  }
 0x51f   :  { %8546 = vmatpush1.bf16.msra.mxu0 %v16954_v61  ;;  %8418 = vmatprep.subr.bf16.mxu1 %v16959_v6  ;;  %v17019_v61 = vld [vmem:[#allocation8 + $0x13e4] ss:$16 sps:$4 sm:$0xff]   ;;  %v17022_v6 = vld [vmem:[#allocation8 + $0x13ec] ss:$16 sps:$4 sm:$0xff]  }
 0x520   :  { %8547 = vmatprep.subr.bf16.mxu0 %v16962_v4  ;;  %v17017_v4 = vld [vmem:[#allocation8 + $0x13e0] ss:$16 sps:$4 sm:$0xff]  }
 0x522   :  { %8419 = vmatpush1.bf16.msra.mxu1 %v16957_v33  ;;  %v17020_v33 = vld [vmem:[#allocation8 + $0x13e8] ss:$16 sps:$4 sm:$0xff]  }
 0x523   :  { %8548 = vmatpush1.bf16.msra.mxu0 %v16960_v1  ;;  %8420 = vmatprep.subr.bf16.mxu1 %v16965_v18  ;;  %v17025_v1 = vld [vmem:[#allocation8 + $0x1404] ss:$16 sps:$4 sm:$0xff]   ;;  %v17028_v18 = vld [vmem:[#allocation8 + $0x140c] ss:$16 sps:$4 sm:$0xff]  }
 0x524   :  { %8549 = vmatprep.subr.bf16.mxu0 %v16968_v30  ;;  %v17023_v30 = vld [vmem:[#allocation8 + $0x1400] ss:$16 sps:$4 sm:$0xff]  }
 0x526   :  { %8421 = vmatpush1.bf16.msra.mxu1 %v16963_v20  ;;  %v17026_v20 = vld [vmem:[#allocation8 + $0x1408] ss:$16 sps:$4 sm:$0xff]  }
 0x527   :  { %8550 = vmatpush1.bf16.msra.mxu0 %v16966_v0  ;;  %8422 = vmatprep.subr.bf16.mxu1 %v16971_v26  ;;  %v17031_v0 = vld [vmem:[#allocation8 + $0x1424] ss:$16 sps:$4 sm:$0xff]   ;;  %v17034_v26 = vld [vmem:[#allocation8 + $0x142c] ss:$16 sps:$4 sm:$0xff]  }
 0x528   :  { %8551 = vmatprep.subr.bf16.mxu0 %v16974_v7  ;;  %v17029_v7 = vld [vmem:[#allocation8 + $0x1420] ss:$16 sps:$4 sm:$0xff]  }
 0x52a   :  { %8423 = vmatpush1.bf16.msra.mxu1 %v16969_v62  ;;  %v17032_v62 = vld [vmem:[#allocation8 + $0x1428] ss:$16 sps:$4 sm:$0xff]  }
 0x52b   :  { %8552 = vmatpush1.bf16.msra.mxu0 %v16972_v19  ;;  %8424 = vmatprep.subr.bf16.mxu1 %v16977_v46  ;;  %v17037_v19 = vld [vmem:[#allocation8 + $0x1444] ss:$16 sps:$4 sm:$0xff]   ;;  %v17040_v46 = vld [vmem:[#allocation8 + $0x144c] ss:$16 sps:$4 sm:$0xff]  }
 0x52c   :  { %8553 = vmatprep.subr.bf16.mxu0 %v16980_v31  ;;  %v17035_v31 = vld [vmem:[#allocation8 + $0x1440] ss:$16 sps:$4 sm:$0xff]  }
 0x52e   :  { %8425 = vmatpush1.bf16.msra.mxu1 %v16975_v10  ;;  %v17043_v10 = vld [vmem:[#allocation8 + $0x1464] ss:$16 sps:$4 sm:$0xff]  }
 0x52f   :  { %8554 = vmatpush1.bf16.msra.mxu0 %v16978_v28  ;;  %8426 = vmatprep.subr.bf16.mxu1 %v16983_v53  ;;  %v17044_v28 = vld [vmem:[#allocation8 + $0x1468] ss:$16 sps:$4 sm:$0xff]   ;;  %v17049_v53 = vld [vmem:[#allocation8 + $0x1484] ss:$16 sps:$4 sm:$0xff]  }
 0x530   :  { %8555 = vmatprep.subr.bf16.mxu0 %v16986_v44  ;;  %v17047_v44 = vld [vmem:[#allocation8 + $0x1480] ss:$16 sps:$4 sm:$0xff]  }
 0x532   :  { %8427 = vmatpush1.bf16.msra.mxu1 %v16981_v36  ;;  %v17056_v36 = vld [vmem:[#allocation8 + $0x14a8] ss:$16 sps:$4 sm:$0xff]  }
 0x533   :  { %8556 = vmatpush1.bf16.msra.mxu0 %v16984_v43  ;;  %8439 = vmatprep.subr.bf16.mxu1 %v16989_v9  ;;  %v17062_v43 = vld [vmem:[#allocation8 + $0x14c8] ss:$16 sps:$4 sm:$0xff]   ;;  %v17067_v9 = vld [vmem:[#allocation8 + $0x14e4] ss:$16 sps:$4 sm:$0xff]  }
 0x534   :  { %8568 = vmatprep.subr.bf16.mxu0 %v16992_v38  ;;  %v17073_v38 = vld [vmem:[#allocation8 + $0x1504] ss:$16 sps:$4 sm:$0xff]  }
 0x535   :  { %8429 = vmatmul.mubr.bf16.vlgmr.msra.gmra.mrb[12].mxu1 %v7282_v34 }
 0x536   :  { %8558 = vmatmul.mubr.bf16.vlgmr.msra.gmra.mrb[24].mxu0 %v7282_v34  ;;  %8440 = vmatpush1.bf16.msra.mxu1 %v16987_v23  ;;  %v7194_v23 = vld [vmem:[#allocation2 + $0x40] sm:$0x7]  ;;  %v17079_v34 = vld [vmem:[#allocation8 + $0x1524] ss:$16 sps:$4 sm:$0xff]  }
 0x537   :  { %8471 = vmatprep.mubr.bf16.mxu1 %v7285_v25  ;;  %8569 = vmatpush1.bf16.msra.mxu0 %v16990_v45  ;;  %v7209_v45 = vld [vmem:[#allocation2 + $0xb8] sm:$0x7] }
 0x538   :  { %8600 = vmatprep.mubr.bf16.mxu0 %v7285_v25  ;;  %8441 = vmatprep.subr.bf16.mxu1 %v16995_v51  ;;  %v7259_v51 = vrot.slane %v7206_v52, 3  ;;  %v7188_v25 = vld [vmem:[#allocation2 + $0x10] sm:$0xf8]  ;;  %v17134_v52 = vld [vmem:[#allocation8 + $0x1648] ss:$16 sps:$4 sm:$0xff]  }
 0x539   :  { %8570 = vmatprep.subr.bf16.mxu0 %v16998_v41  ;;  %v7197_v41 = vld [vmem:[#allocation2 + $0x58] sm:$0x7] }
 0x53a   :  { %8442 = vmatpush1.bf16.msra.mxu1 %v16993_v39  ;;  %v7203_v39 = vld [vmem:[#allocation2 + $0x88] sm:$0xf8] }
 0x53b   :  { %8571 = vmatpush1.bf16.msra.mxu0 %v16996_v16  ;;  %8443 = vmatprep.subr.bf16.mxu1 %v17001_v12  ;;  %v17077_v16 = vld [vmem:[#allocation8 + $0x1520] ss:$16 sps:$4 sm:$0xff]   ;;  %v7241_v12 = vrot.slane %v7194_v23, 3  ;;  %v17142_v23 = vld [vmem:[#allocation8 + $0x166c] ss:$16 sps:$4 sm:$0xff]  }
 0x53c   :  { %8572 = vmatprep.subr.bf16.mxu0 %v17004_v29  ;;  %v7258_v29 = vrot.slane %v7200_v54, 3  ;;  %v17137_v54 = vld [vmem:[#allocation8 + $0x1660] ss:$16 sps:$4 sm:$0xff]  }
 0x53e   :  { %8444 = vmatpush1.bf16.msra.mxu1 %v16999_v37  ;;  %v7268_v37 = vrot.slane %v7209_v45, 3  ;;  %v17148_v45 = vld [vmem:[#allocation8 + $0x168c] ss:$16 sps:$4 sm:$0xff]  }
 0x53f   :  { %8573 = vmatpush1.bf16.msra.mxu0 %v17002_v49  ;;  %8445 = vmatprep.subr.bf16.mxu1 %v17007_v58  ;;  %v17080_v49 = vld [vmem:[#allocation8 + $0x1528] ss:$16 sps:$4 sm:$0xff]   ;;  %v17085_v58 = vld [vmem:[#allocation8 + $0x1544] ss:$16 sps:$4 sm:$0xff]  }
 0x540   :  { %8574 = vmatprep.subr.bf16.mxu0 %v17010_v32  ;;  %v7191_v32 = vld [vmem:[#allocation2 + $0x28] sm:$0xf8] }
 0x542   :  { %8446 = vmatpush1.bf16.msra.mxu1 %v17005_v47  ;;  %v7240_v47 = vrot.slane %v7188_v25, 3  ;;  %v17151_v25 = vld [vmem:[#allocation8 + $0x16a4] ss:$16 sps:$4 sm:$0xff]  }
 0x543   :  { %8575 = vmatpush1.bf16.msra.mxu0 %v17008_v2  ;;  %8447 = vmatprep.subr.bf16.mxu1 %v17013_v60  ;;  %v7260_v2 = vsel %vm1087_vm3, %v7258_v29, %v7259_v51  ;;  %v17088_v60 = vld [vmem:[#allocation8 + $0x154c] ss:$16 sps:$4 sm:$0xff]   ;;  %v17146_v51 = vld [vmem:[#allocation8 + $0x1688] ss:$16 sps:$4 sm:$0xff]  }
 0x544   :  { %8576 = vmatprep.subr.bf16.mxu0 %v17016_v48  ;;  %v7250_v48 = vrot.slane %v7197_v41, 3  ;;  %v17154_v41 = vld [vmem:[#allocation8 + $0x16ac] ss:$16 sps:$4 sm:$0xff]  }
 0x545   :  { %v17160_v29 = vld [vmem:[#allocation8 + $0x16cc] ss:$16 sps:$4 sm:$0xff]  }
 0x546   :  { %8448 = vmatpush1.bf16.msra.mxu1 %v17011_v63  ;;  %v7267_v63 = vrot.slane %v7203_v39, 3  ;;  %v17149_v39 = vld [vmem:[#allocation8 + $0x16a0] ss:$16 sps:$4 sm:$0xff]  }
 0x547   :  { %8577 = vmatpush1.bf16.msra.mxu0 %v17014_v21  ;;  %8449 = vmatprep.subr.bf16.mxu1 %v17019_v61  ;;  %v7242_v21 = vsel %vm1087_vm3, %v7240_v47, %v7241_v12  ;;  %v17083_v61 = vld [vmem:[#allocation8 + $0x1540] ss:$16 sps:$4 sm:$0xff]   ;;  %v17157_v12 = vld [vmem:[#allocation8 + $0x16c4] ss:$16 sps:$4 sm:$0xff]   ;;  %v17158_v47 = vld [vmem:[#allocation8 + $0x16c8] ss:$16 sps:$4 sm:$0xff]  }
 0x548   :  { %8578 = vmatprep.subr.bf16.mxu0 %v17022_v6  ;;  %v7249_v6 = vrot.slane %v7191_v32, 3  ;;  %v7202_v32 = vld [vmem:[#allocation2 + $0x80] sm:$0xf8] }
 0x54a   :  { %8450 = vmatpush1.bf16.msra.mxu1 %v17017_v4  ;;  %v7269_v4 = vsel %vm1087_vm3, %v7267_v63, %v7268_v37  ;;  %v7208_v37 = vld [vmem:[#allocation2 + $0xb0] sm:$0x7] }
 0x54b   :  { %8579 = vmatpush1.bf16.msra.mxu0 %v17020_v33  ;;  %8451 = vmatprep.subr.bf16.mxu1 %v17025_v1  ;;  %v7284_v33 = vpack.c.bf16 %v7260_v2, %v7242_v21  ;;  %v17086_v1 = vld [vmem:[#allocation8 + $0x1548] ss:$16 sps:$4 sm:$0xff]   ;;  %v17163_v2 = vld [vmem:[#allocation8 + $0x16e4] ss:$16 sps:$4 sm:$0xff]   ;;  %v7265_v63 = vrot.slane %v7208_v37, 3 }
 0x54c   :  { %8580 = vmatprep.subr.bf16.mxu0 %v17028_v18  ;;  %v7251_v18 = vsel %vm1087_vm3, %v7249_v6, %v7250_v48  ;;  %v17166_v48 = vld [vmem:[#allocation8 + $0x16ec] ss:$16 sps:$4 sm:$0xff]   ;;  %v8675_v6 = vld [vmem:[#allocation2 + $0x68] sm:$0xf0] }
 0x54d   :  { %v7190_v21 = vld [vmem:[#allocation2 + $0x20] sm:$0xf8]  ;;  %v17218_v37 = vld [vmem:[#allocation8 + $0x1808] ss:$16 sps:$4 sm:$0xff]  }
 0x54e   :  { %8452 = vmatpush1.bf16.msra.mxu1 %v17023_v30  ;;  %v17091_v30 = vld [vmem:[#allocation8 + $0x1564] ss:$16 sps:$4 sm:$0xff]  }
 0x54f   :  { %8581 = vmatpush1.bf16.msra.mxu0 %v17026_v20  ;;  %8453 = vmatprep.subr.bf16.mxu1 %v17031_v0  ;;  %v7287_v20 = vpack.c.bf16 %v7269_v4, %v7251_v18  ;;  %v17094_v0 = vld [vmem:[#allocation8 + $0x156c] ss:$16 sps:$4 sm:$0xff]   ;;  %v17161_v4 = vld [vmem:[#allocation8 + $0x16e0] ss:$16 sps:$4 sm:$0xff]  }
 0x550   :  { %8582 = vmatprep.subr.bf16.mxu0 %v17034_v26  ;;  %v17089_v26 = vld [vmem:[#allocation8 + $0x1560] ss:$16 sps:$4 sm:$0xff]  }
 0x552   :  { %8454 = vmatpush1.bf16.msra.mxu1 %v17029_v7  ;;  %v17092_v7 = vld [vmem:[#allocation8 + $0x1568] ss:$16 sps:$4 sm:$0xff]  }
 0x553   :  { %8583 = vmatpush1.bf16.msra.mxu0 %v17032_v62  ;;  %8455 = vmatprep.subr.bf16.mxu1 %v17037_v19  ;;  %v17097_v62 = vld [vmem:[#allocation8 + $0x1584] ss:$16 sps:$4 sm:$0xff]   ;;  %v17100_v19 = vld [vmem:[#allocation8 + $0x158c] ss:$16 sps:$4 sm:$0xff]  }
 0x554   :  { %8584 = vmatprep.subr.bf16.mxu0 %v17040_v46  ;;  %v17095_v46 = vld [vmem:[#allocation8 + $0x1580] ss:$16 sps:$4 sm:$0xff]  }
 0x556   :  { %8456 = vmatpush1.bf16.msra.mxu1 %v17035_v31  ;;  %v17098_v31 = vld [vmem:[#allocation8 + $0x1588] ss:$16 sps:$4 sm:$0xff]  }
 0x557   :  { %8585 = vmatpush1.bf16.msra.mxu0 %v17038_v8  ;;  %8457 = vmatprep.subr.bf16.mxu1 %v17043_v10  ;;  %v17103_v8 = vld [vmem:[#allocation8 + $0x15a4] ss:$16 sps:$4 sm:$0xff]   ;;  %v17106_v10 = vld [vmem:[#allocation8 + $0x15ac] ss:$16 sps:$4 sm:$0xff]  }
 0x558   :  { %8586 = vmatprep.subr.bf16.mxu0 %v17046_v50  ;;  %v17101_v50 = vld [vmem:[#allocation8 + $0x15a0] ss:$16 sps:$4 sm:$0xff]  }
 0x55a   :  { %8458 = vmatpush1.bf16.msra.mxu1 %v17041_v27  ;;  %v17104_v27 = vld [vmem:[#allocation8 + $0x15a8] ss:$16 sps:$4 sm:$0xff]  }
 0x55b   :  { %8587 = vmatpush1.bf16.msra.mxu0 %v17044_v28  ;;  %8459 = vmatprep.subr.bf16.mxu1 %v17049_v53  ;;  %v17109_v28 = vld [vmem:[#allocation8 + $0x15c4] ss:$16 sps:$4 sm:$0xff]   ;;  %v17112_v53 = vld [vmem:[#allocation8 + $0x15cc] ss:$16 sps:$4 sm:$0xff]  }
 0x55c   :  { %8588 = vmatprep.subr.bf16.mxu0 %v17052_v56  ;;  %v17107_v56 = vld [vmem:[#allocation8 + $0x15c0] ss:$16 sps:$4 sm:$0xff]  }
 0x55e   :  { %8460 = vmatpush1.bf16.msra.mxu1 %v17047_v44  ;;  %v17110_v44 = vld [vmem:[#allocation8 + $0x15c8] ss:$16 sps:$4 sm:$0xff]  }
 0x55f   :  { %8589 = vmatpush1.bf16.msra.mxu0 %v17050_v42  ;;  %8461 = vmatprep.subr.bf16.mxu1 %v17055_v35  ;;  %v17115_v42 = vld [vmem:[#allocation8 + $0x15e4] ss:$16 sps:$4 sm:$0xff]   ;;  %v17118_v35 = vld [vmem:[#allocation8 + $0x15ec] ss:$16 sps:$4 sm:$0xff]  }
 0x560   :  { %8590 = vmatprep.subr.bf16.mxu0 %v17058_v17  ;;  %v17113_v17 = vld [vmem:[#allocation8 + $0x15e0] ss:$16 sps:$4 sm:$0xff]  }
 0x562   :  { %8462 = vmatpush1.bf16.msra.mxu1 %v17053_v55  ;;  %v17116_v55 = vld [vmem:[#allocation8 + $0x15e8] ss:$16 sps:$4 sm:$0xff]  }
 0x563   :  { %8591 = vmatpush1.bf16.msra.mxu0 %v17056_v36  ;;  %8463 = vmatprep.subr.bf16.mxu1 %v17061_v5  ;;  %v17121_v36 = vld [vmem:[#allocation8 + $0x1604] ss:$16 sps:$4 sm:$0xff]   ;;  %v17124_v5 = vld [vmem:[#allocation8 + $0x160c] ss:$16 sps:$4 sm:$0xff]  }
 0x564   :  { %8592 = vmatprep.subr.bf16.mxu0 %v17064_v3  ;;  %v17119_v3 = vld [vmem:[#allocation8 + $0x1600] ss:$16 sps:$4 sm:$0xff]  }
 0x566   :  { %8464 = vmatpush1.bf16.msra.mxu1 %v17059_v15  ;;  %v17122_v15 = vld [vmem:[#allocation8 + $0x1608] ss:$16 sps:$4 sm:$0xff]  }
 0x567   :  { %8593 = vmatpush1.bf16.msra.mxu0 %v17062_v43  ;;  %8465 = vmatprep.subr.bf16.mxu1 %v17067_v9  ;;  %v17127_v43 = vld [vmem:[#allocation8 + $0x1624] ss:$16 sps:$4 sm:$0xff]   ;;  %v17130_v9 = vld [vmem:[#allocation8 + $0x162c] ss:$16 sps:$4 sm:$0xff]  }
 0x568   :  { %8594 = vmatprep.subr.bf16.mxu0 %v17070_v59  ;;  %v17125_v59 = vld [vmem:[#allocation8 + $0x1620] ss:$16 sps:$4 sm:$0xff]  }
 0x56a   :  { %8466 = vmatpush1.bf16.msra.mxu1 %v17065_v57  ;;  %v17128_v57 = vld [vmem:[#allocation8 + $0x1628] ss:$16 sps:$4 sm:$0xff]  }
 0x56b   :  { %8595 = vmatpush1.bf16.msra.mxu0 %v17068_v14  ;;  %8467 = vmatprep.subr.bf16.mxu1 %v17073_v38  ;;  %v17133_v14 = vld [vmem:[#allocation8 + $0x1644] ss:$16 sps:$4 sm:$0xff]   ;;  %v17136_v38 = vld [vmem:[#allocation8 + $0x164c] ss:$16 sps:$4 sm:$0xff]  }
 0x56c   :  { %8596 = vmatprep.subr.bf16.mxu0 %v17076_v13  ;;  %v17131_v13 = vld [vmem:[#allocation8 + $0x1640] ss:$16 sps:$4 sm:$0xff]  }
 0x56e   :  { %8468 = vmatpush1.bf16.msra.mxu1 %v17071_v40  ;;  %v17139_v40 = vld [vmem:[#allocation8 + $0x1664] ss:$16 sps:$4 sm:$0xff]  }
 0x56f   :  { %8597 = vmatpush1.bf16.msra.mxu0 %v17074_v11  ;;  %8469 = vmatprep.subr.bf16.mxu1 %v17079_v34  ;;  %v17140_v11 = vld [vmem:[#allocation8 + $0x1668] ss:$16 sps:$4 sm:$0xff]   ;;  %v17145_v34 = vld [vmem:[#allocation8 + $0x1684] ss:$16 sps:$4 sm:$0xff]  }
 0x570   :  { %8598 = vmatprep.subr.bf16.mxu0 %v17082_v24  ;;  %v17143_v24 = vld [vmem:[#allocation8 + $0x1680] ss:$16 sps:$4 sm:$0xff]  }
 0x572   :  { %8470 = vmatpush1.bf16.msra.mxu1 %v17077_v16  ;;  %v17152_v16 = vld [vmem:[#allocation8 + $0x16a8] ss:$16 sps:$4 sm:$0xff]  }
 0x573   :  { %8599 = vmatpush1.bf16.msra.mxu0 %v17080_v49  ;;  %8482 = vmatprep.subr.bf16.mxu1 %v17085_v58  ;;  %v17155_v49 = vld [vmem:[#allocation8 + $0x16c0] ss:$16 sps:$4 sm:$0xff]   ;;  %v7196_v58 = vld [vmem:[#allocation2 + $0x50] sm:$0x7] }
 0x574   :  { %8611 = vmatprep.subr.bf16.mxu0 %v17088_v60  ;;  %v8681_v60 = vld [vmem:[#allocation2 + $0x98] sm:$0xf] }
 0x575   :  { %8472 = vmatmul.mubr.bf16.vlgmr.msra.gmra.mrb[12].mxu1 %v7284_v33  ;;  %v8732_v18 = vrot.slane %v8681_v60, 4  ;;  %v17232_v60 = vld [vmem:[#allocation8 + $0x184c] ss:$16 sps:$4 sm:$0xff]  }
 0x576   :  { %8601 = vmatmul.mubr.bf16.vlgmr.msra.gmra.mrb[24].mxu0 %v7284_v33  ;;  %8483 = vmatpush1.bf16.msra.mxu1 %v17083_v61  ;;  %v8669_v61 = vld [vmem:[#allocation2 + $0x38] sm:$0xf]  ;;  %v7247_v33 = vrot.slane %v7196_v58, 3  ;;  %v17226_v58 = vld [vmem:[#allocation8 + $0x182c] ss:$16 sps:$4 sm:$0xff]  }
 0x577   :  { %14978 = vmatprep.mubr.msk.bf16.mxu1 %vm1858_vm5, %v7287_v20  ;;  %8612 = vmatpush1.bf16.msra.mxu0 %v17086_v1  ;;  %v7264_v1 = vrot.slane %v7202_v32, 3  ;;  %v17221_v32 = vld [vmem:[#allocation8 + $0x1820] ss:$16 sps:$4 sm:$0xff]  }
 0x578   :  { %14979 = vmatprep.mubr.msk.bf16.mxu0 %vm1858_vm5, %v7287_v20  ;;  %8484 = vmatprep.subr.bf16.mxu1 %v17091_v30  ;;  %v17164_v30 = vld [vmem:[#allocation8 + $0x16e8] ss:$16 sps:$4 sm:$0xff]   ;;  %v17169_v20 = vld [vmem:[#allocation8 + $0x1704] ss:$16 sps:$4 sm:$0xff]  }
 0x579   :  { %8613 = vmatprep.subr.bf16.mxu0 %v17094_v0  ;;  %v8663_v0 = vld [vmem:[#allocation2 + $0x8] sm:$0xf0] }
 0x57a   :  { %8485 = vmatpush1.bf16.msra.mxu1 %v17089_v26  ;;  %v7246_v26 = vrot.slane %v7190_v21, 3  ;;  %v17235_v21 = vld [vmem:[#allocation8 + $0x1864] ss:$16 sps:$4 sm:$0xff]  }
 0x57b   :  { %8614 = vmatpush1.bf16.msra.mxu0 %v17092_v7  ;;  %8486 = vmatprep.subr.bf16.mxu1 %v17097_v62  ;;  %v7266_v7 = vsel %vm1087_vm3, %v7264_v1, %v7265_v63  ;;  %v17172_v62 = vld [vmem:[#allocation8 + $0x170c] ss:$16 sps:$4 sm:$0xff]   ;;  %v17230_v63 = vld [vmem:[#allocation8 + $0x1848] ss:$16 sps:$4 sm:$0xff]  }
 0x57c   :  { %8615 = vmatprep.subr.bf16.mxu0 %v17100_v19  ;;  %v8714_v19 = vrot.slane %v8669_v61, 4  ;;  %v17238_v61 = vld [vmem:[#allocation8 + $0x186c] ss:$16 sps:$4 sm:$0xff]  }
 0x57d   :  { %v17244_v1 = vld [vmem:[#allocation8 + $0x188c] ss:$16 sps:$4 sm:$0xff]  }
 0x57e   :  { %8487 = vmatpush1.bf16.msra.mxu1 %v17095_v46  ;;  %v8731_v46 = vrot.slane %v8675_v6, 4  ;;  %v17233_v6 = vld [vmem:[#allocation8 + $0x1860] ss:$16 sps:$4 sm:$0xff]  }
 0x57f   :  { %8616 = vmatpush1.bf16.msra.mxu0 %v17098_v31  ;;  %8488 = vmatprep.subr.bf16.mxu1 %v17103_v8  ;;  %v7248_v31 = vsel %vm1087_vm3, %v7246_v26, %v7247_v33  ;;  %v17167_v8 = vld [vmem:[#allocation8 + $0x1700] ss:$16 sps:$4 sm:$0xff]   ;;  %v17241_v33 = vld [vmem:[#allocation8 + $0x1884] ss:$16 sps:$4 sm:$0xff]  }
 0x580   :  { %8617 = vmatprep.subr.bf16.mxu0 %v17106_v10  ;;  %v8713_v10 = vrot.slane %v8663_v0, 4  ;;  %v17250_v0 = vld [vmem:[#allocation8 + $0x18ac] ss:$16 sps:$4 sm:$0xff]   ;;  %v17245_v26 = vld [vmem:[#allocation8 + $0x18a0] ss:$16 sps:$4 sm:$0xff]  }
 0x582   :  { %8489 = vmatpush1.bf16.msra.mxu1 %v17101_v50  ;;  %v8733_v50 = vsel %vm1430_vm4, %v8731_v46, %v8732_v18  ;;  %v17239_v18 = vld [vmem:[#allocation8 + $0x1880] ss:$16 sps:$4 sm:$0xff]   ;;  %v8680_v46 = vld [vmem:[#allocation2 + $0x90] sm:$0xf] }
 0x583   :  { %8618 = vmatpush1.bf16.msra.mxu0 %v17104_v27  ;;  %8490 = vmatprep.subr.bf16.mxu1 %v17109_v28  ;;  %v7286_v27 = vpack.c.bf16 %v7266_v7, %v7248_v31  ;;  %v17170_v28 = vld [vmem:[#allocation8 + $0x1708] ss:$16 sps:$4 sm:$0xff]   ;;  %v17251_v31 = vld [vmem:[#allocation8 + $0x18c0] ss:$16 sps:$4 sm:$0xff]  }
 0x584   :  { %8619 = vmatprep.subr.bf16.mxu0 %v17112_v53  ;;  %v8715_v53 = vsel %vm1430_vm4, %v8713_v10, %v8714_v19  ;;  %v17248_v7 = vld [vmem:[#allocation8 + $0x18a8] ss:$16 sps:$4 sm:$0xff]   ;;  %v17256_v19 = vld [vmem:[#allocation8 + $0x18cc] ss:$16 sps:$4 sm:$0xff]  }
 0x585   :  { %v8674_v10 = vld [vmem:[#allocation2 + $0x60] sm:$0xf0] }
 0x586   :  { %8491 = vmatpush1.bf16.msra.mxu1 %v17107_v56  ;;  %v17175_v56 = vld [vmem:[#allocation8 + $0x1724] ss:$16 sps:$4 sm:$0xff]  }
 0x587   :  { %8620 = vmatpush1.bf16.msra.mxu0 %v17110_v44  ;;  %8492 = vmatprep.subr.bf16.mxu1 %v17115_v42  ;;  %v8759_v44 = vpack.c.bf16 %v8733_v50, %v8715_v53  ;;  %v17178_v42 = vld [vmem:[#allocation8 + $0x172c] ss:$16 sps:$4 sm:$0xff]   ;;  %v17254_v50 = vld [vmem:[#allocation8 + $0x18c8] ss:$16 sps:$4 sm:$0xff]  }
 0x588   :  { %8621 = vmatprep.subr.bf16.mxu0 %v17118_v35  ;;  %v17173_v35 = vld [vmem:[#allocation8 + $0x1720] ss:$16 sps:$4 sm:$0xff]   ;;  %v17262_v53 = vld [vmem:[#allocation8 + $0x18ec] ss:$16 sps:$4 sm:$0xff]  }
 0x58a   :  { %8493 = vmatpush1.bf16.msra.mxu1 %v17113_v17  ;;  %v17176_v17 = vld [vmem:[#allocation8 + $0x1728] ss:$16 sps:$4 sm:$0xff]  }
 0x58b   :  { %8622 = vmatpush1.bf16.msra.mxu0 %v17116_v55  ;;  %8494 = vmatprep.subr.bf16.mxu1 %v17121_v36  ;;  %v17181_v55 = vld [vmem:[#allocation8 + $0x1744] ss:$16 sps:$4 sm:$0xff]   ;;  %v17184_v36 = vld [vmem:[#allocation8 + $0x174c] ss:$16 sps:$4 sm:$0xff]  }
 0x58c   :  { %8623 = vmatprep.subr.bf16.mxu0 %v17124_v5  ;;  %v17179_v5 = vld [vmem:[#allocation8 + $0x1740] ss:$16 sps:$4 sm:$0xff]  }
 0x58e   :  { %8495 = vmatpush1.bf16.msra.mxu1 %v17119_v3  ;;  %v17182_v3 = vld [vmem:[#allocation8 + $0x1748] ss:$16 sps:$4 sm:$0xff]  }
 0x58f   :  { %8624 = vmatpush1.bf16.msra.mxu0 %v17122_v15  ;;  %8496 = vmatprep.subr.bf16.mxu1 %v17127_v43  ;;  %v17187_v15 = vld [vmem:[#allocation8 + $0x1764] ss:$16 sps:$4 sm:$0xff]   ;;  %v17190_v43 = vld [vmem:[#allocation8 + $0x176c] ss:$16 sps:$4 sm:$0xff]  }
 0x590   :  { %8625 = vmatprep.subr.bf16.mxu0 %v17130_v9  ;;  %v17185_v9 = vld [vmem:[#allocation8 + $0x1760] ss:$16 sps:$4 sm:$0xff]  }
 0x592   :  { %8497 = vmatpush1.bf16.msra.mxu1 %v17125_v59  ;;  %v17188_v59 = vld [vmem:[#allocation8 + $0x1768] ss:$16 sps:$4 sm:$0xff]  }
 0x593   :  { %8626 = vmatpush1.bf16.msra.mxu0 %v17128_v57  ;;  %8498 = vmatprep.subr.bf16.mxu1 %v17133_v14  ;;  %v17193_v57 = vld [vmem:[#allocation8 + $0x1784] ss:$16 sps:$4 sm:$0xff]   ;;  %v17196_v14 = vld [vmem:[#allocation8 + $0x178c] ss:$16 sps:$4 sm:$0xff]  }
 0x594   :  { %8627 = vmatprep.subr.bf16.mxu0 %v17136_v38  ;;  %v17191_v38 = vld [vmem:[#allocation8 + $0x1780] ss:$16 sps:$4 sm:$0xff]  }
 0x596   :  { %8499 = vmatpush1.bf16.msra.mxu1 %v17131_v13  ;;  %v17194_v13 = vld [vmem:[#allocation8 + $0x1788] ss:$16 sps:$4 sm:$0xff]  }
 0x597   :  { %8628 = vmatpush1.bf16.msra.mxu0 %v17134_v52  ;;  %8500 = vmatprep.subr.bf16.mxu1 %v17139_v40  ;;  %v17199_v52 = vld [vmem:[#allocation8 + $0x17a4] ss:$16 sps:$4 sm:$0xff]   ;;  %v17202_v40 = vld [vmem:[#allocation8 + $0x17ac] ss:$16 sps:$4 sm:$0xff]  }
 0x598   :  { %8629 = vmatprep.subr.bf16.mxu0 %v17142_v23  ;;  %v17197_v23 = vld [vmem:[#allocation8 + $0x17a0] ss:$16 sps:$4 sm:$0xff]  }
 0x59a   :  { %8501 = vmatpush1.bf16.msra.mxu1 %v17137_v54  ;;  %v17200_v54 = vld [vmem:[#allocation8 + $0x17a8] ss:$16 sps:$4 sm:$0xff]  }
 0x59b   :  { %8630 = vmatpush1.bf16.msra.mxu0 %v17140_v11  ;;  %8502 = vmatprep.subr.bf16.mxu1 %v17145_v34  ;;  %v17205_v11 = vld [vmem:[#allocation8 + $0x17c4] ss:$16 sps:$4 sm:$0xff]   ;;  %v17208_v34 = vld [vmem:[#allocation8 + $0x17cc] ss:$16 sps:$4 sm:$0xff]  }
 0x59c   :  { %8631 = vmatprep.subr.bf16.mxu0 %v17148_v45  ;;  %v17203_v45 = vld [vmem:[#allocation8 + $0x17c0] ss:$16 sps:$4 sm:$0xff]  }
 0x59e   :  { %8503 = vmatpush1.bf16.msra.mxu1 %v17143_v24  ;;  %v17206_v24 = vld [vmem:[#allocation8 + $0x17c8] ss:$16 sps:$4 sm:$0xff]  }
 0x59f   :  { %8632 = vmatpush1.bf16.msra.mxu0 %v17146_v51  ;;  %8504 = vmatprep.subr.bf16.mxu1 %v17151_v25  ;;  %v17211_v51 = vld [vmem:[#allocation8 + $0x17e4] ss:$16 sps:$4 sm:$0xff]   ;;  %v17214_v25 = vld [vmem:[#allocation8 + $0x17ec] ss:$16 sps:$4 sm:$0xff]  }
 0x5a0   :  { %8633 = vmatprep.subr.bf16.mxu0 %v17154_v41  ;;  %v17209_v41 = vld [vmem:[#allocation8 + $0x17e0] ss:$16 sps:$4 sm:$0xff]  }
 0x5a2   :  { %8505 = vmatpush1.bf16.msra.mxu1 %v17149_v39  ;;  %v17212_v39 = vld [vmem:[#allocation8 + $0x17e8] ss:$16 sps:$4 sm:$0xff]  }
 0x5a3   :  { %8634 = vmatpush1.bf16.msra.mxu0 %v17152_v16  ;;  %8506 = vmatprep.subr.bf16.mxu1 %v17157_v12  ;;  %v17217_v16 = vld [vmem:[#allocation8 + $0x1804] ss:$16 sps:$4 sm:$0xff]   ;;  %v17220_v12 = vld [vmem:[#allocation8 + $0x180c] ss:$16 sps:$4 sm:$0xff]  }
 0x5a4   :  { %8635 = vmatprep.subr.bf16.mxu0 %v17160_v29  ;;  %v17215_v29 = vld [vmem:[#allocation8 + $0x1800] ss:$16 sps:$4 sm:$0xff]  }
 0x5a6   :  { %8507 = vmatpush1.bf16.msra.mxu1 %v17155_v49  ;;  %v17223_v49 = vld [vmem:[#allocation8 + $0x1824] ss:$16 sps:$4 sm:$0xff]  }
 0x5a7   :  { %8636 = vmatpush1.bf16.msra.mxu0 %v17158_v47  ;;  %8508 = vmatprep.subr.bf16.mxu1 %v17163_v2  ;;  %v17224_v47 = vld [vmem:[#allocation8 + $0x1828] ss:$16 sps:$4 sm:$0xff]   ;;  %v17229_v2 = vld [vmem:[#allocation8 + $0x1844] ss:$16 sps:$4 sm:$0xff]  }
 0x5a8   :  { %8637 = vmatprep.subr.bf16.mxu0 %v17166_v48  ;;  %v17227_v48 = vld [vmem:[#allocation8 + $0x1840] ss:$16 sps:$4 sm:$0xff]  }
 0x5aa   :  { %8509 = vmatpush1.bf16.msra.mxu1 %v17161_v4  ;;  %v17236_v4 = vld [vmem:[#allocation8 + $0x1868] ss:$16 sps:$4 sm:$0xff]  }
 0x5ab   :  { %8638 = vmatpush1.bf16.msra.mxu0 %v17164_v30  ;;  %9872 = vmatprep.subr.bf16.mxu1 %v17169_v20  ;;  %v17242_v30 = vld [vmem:[#allocation8 + $0x1888] ss:$16 sps:$4 sm:$0xff]   ;;  %v17247_v20 = vld [vmem:[#allocation8 + $0x18a4] ss:$16 sps:$4 sm:$0xff]  }
 0x5ac   :  { %10001 = vmatprep.subr.bf16.mxu0 %v17172_v62  ;;  %v17253_v62 = vld [vmem:[#allocation8 + $0x18c4] ss:$16 sps:$4 sm:$0xff]  }
 0x5ad   :  { %8515 = vmatmul.mubr.bf16.vlgmr.msra.gmra.mrb[12].mxu1 %v7286_v27 }
 0x5ae   :  { %8644 = vmatmul.mubr.bf16.vlgmr.msra.gmra.mrb[24].mxu0 %v7286_v27  ;;  %9873 = vmatpush1.bf16.msra.mxu1 %v17167_v8  ;;  %v8668_v8 = vld [vmem:[#allocation2 + $0x30] sm:$0xf]  ;;  %v17259_v27 = vld [vmem:[#allocation8 + $0x18e4] ss:$16 sps:$4 sm:$0xff]  }
 0x5af   :  { %9904 = vmatprep.mubr.bf16.mxu1 %v8759_v44  ;;  %10002 = vmatpush1.bf16.msra.mxu0 %v17170_v28  ;;  %v8683_v28 = vld [vmem:[#allocation2 + $0xa8] sm:$0xf] }
 0x5b0   :  { %10033 = vmatprep.mubr.bf16.mxu0 %v8759_v44  ;;  %9874 = vmatprep.subr.bf16.mxu1 %v17175_v56  ;;  %v8729_v56 = vrot.slane %v8680_v46, 4  ;;  %v8662_v44 = vld [vmem:[#allocation2] sm:$0xf0]  ;;  %v17314_v46 = vld [vmem:[#allocation8 + $0x1a08] ss:$16 sps:$4 sm:$0xff]  }
 0x5b1   :  { %10003 = vmatprep.subr.bf16.mxu0 %v17178_v42  ;;  %v8671_v42 = vld [vmem:[#allocation2 + $0x48] sm:$0xf] }
 0x5b2   :  { %9875 = vmatpush1.bf16.msra.mxu1 %v17173_v35  ;;  %v8677_v35 = vld [vmem:[#allocation2 + $0x78] sm:$0xf0] }
 0x5b3   :  { %10004 = vmatpush1.bf16.msra.mxu0 %v17176_v17  ;;  %9876 = vmatprep.subr.bf16.mxu1 %v17181_v55  ;;  %v17257_v17 = vld [vmem:[#allocation8 + $0x18e0] ss:$16 sps:$4 sm:$0xff]   ;;  %v8711_v55 = vrot.slane %v8668_v8, 4  ;;  %v17322_v8 = vld [vmem:[#allocation8 + $0x1a2c] ss:$16 sps:$4 sm:$0xff]  }
 0x5b4   :  { %10005 = vmatprep.subr.bf16.mxu0 %v17184_v36  ;;  %v8728_v36 = vrot.slane %v8674_v10, 4  ;;  %v17317_v10 = vld [vmem:[#allocation8 + $0x1a20] ss:$16 sps:$4 sm:$0xff]  }
 0x5b6   :  { %9877 = vmatpush1.bf16.msra.mxu1 %v17179_v5  ;;  %v8738_v5 = vrot.slane %v8683_v28, 4  ;;  %v17328_v28 = vld [vmem:[#allocation8 + $0x1a4c] ss:$16 sps:$4 sm:$0xff]  }
 0x5b7   :  { %10006 = vmatpush1.bf16.msra.mxu0 %v17182_v3  ;;  %9878 = vmatprep.subr.bf16.mxu1 %v17187_v15  ;;  %v17260_v3 = vld [vmem:[#allocation8 + $0x18e8] ss:$16 sps:$4 sm:$0xff]   ;;  %v17265_v15 = vld [vmem:[#allocation8 + $0x1904] ss:$16 sps:$4 sm:$0xff]  }
 0x5b8   :  { %10007 = vmatprep.subr.bf16.mxu0 %v17190_v43  ;;  %v8665_v43 = vld [vmem:[#allocation2 + $0x18] sm:$0xf0] }
 0x5ba   :  { %9879 = vmatpush1.bf16.msra.mxu1 %v17185_v9  ;;  %v8710_v9 = vrot.slane %v8662_v44, 4  ;;  %v17331_v44 = vld [vmem:[#allocation8 + $0x1a64] ss:$16 sps:$4 sm:$0xff]  }
 0x5bb   :  { %10008 = vmatpush1.bf16.msra.mxu0 %v17188_v59  ;;  %9880 = vmatprep.subr.bf16.mxu1 %v17193_v57  ;;  %v8730_v59 = vsel %vm1430_vm4, %v8728_v36, %v8729_v56  ;;  %v17268_v57 = vld [vmem:[#allocation8 + $0x190c] ss:$16 sps:$4 sm:$0xff]   ;;  %v17326_v56 = vld [vmem:[#allocation8 + $0x1a48] ss:$16 sps:$4 sm:$0xff]  }
 0x5bc   :  { %10009 = vmatprep.subr.bf16.mxu0 %v17196_v14  ;;  %v8720_v14 = vrot.slane %v8671_v42, 4  ;;  %v17334_v42 = vld [vmem:[#allocation8 + $0x1a6c] ss:$16 sps:$4 sm:$0xff]  }
 0x5bd   :  { %v17340_v36 = vld [vmem:[#allocation8 + $0x1a8c] ss:$16 sps:$4 sm:$0xff]  }
 0x5be   :  { %9881 = vmatpush1.bf16.msra.mxu1 %v17191_v38  ;;  %v8737_v38 = vrot.slane %v8677_v35, 4  ;;  %v17329_v35 = vld [vmem:[#allocation8 + $0x1a60] ss:$16 sps:$4 sm:$0xff]  }
 0x5bf   :  { %10010 = vmatpush1.bf16.msra.mxu0 %v17194_v13  ;;  %9882 = vmatprep.subr.bf16.mxu1 %v17199_v52  ;;  %v8712_v13 = vsel %vm1430_vm4, %v8710_v9, %v8711_v55  ;;  %v17263_v52 = vld [vmem:[#allocation8 + $0x1900] ss:$16 sps:$4 sm:$0xff]   ;;  %v17337_v55 = vld [vmem:[#allocation8 + $0x1a84] ss:$16 sps:$4 sm:$0xff]  }
 0x5c0   :  { %10011 = vmatprep.subr.bf16.mxu0 %v17202_v40  ;;  %v8719_v40 = vrot.slane %v8665_v43, 4  ;;  %v17346_v43 = vld [vmem:[#allocation8 + $0x1aac] ss:$16 sps:$4 sm:$0xff]   ;;  %v17341_v9 = vld [vmem:[#allocation8 + $0x1aa0] ss:$16 sps:$4 sm:$0xff]  }
 0x5c2   :  { %9883 = vmatpush1.bf16.msra.mxu1 %v17197_v23  ;;  %v8739_v23 = vsel %vm1430_vm4, %v8737_v38, %v8738_v5  ;;  %v17335_v5 = vld [vmem:[#allocation8 + $0x1a80] ss:$16 sps:$4 sm:$0xff]   ;;  %v8682_v38 = vld [vmem:[#allocation2 + $0xa0] sm:$0xf] }
 0x5c3   :  { %10012 = vmatpush1.bf16.msra.mxu0 %v17200_v54  ;;  %9884 = vmatprep.subr.bf16.mxu1 %v17205_v11  ;;  %v8758_v54 = vpack.c.bf16 %v8730_v59, %v8712_v13  ;;  %v17266_v11 = vld [vmem:[#allocation8 + $0x1908] ss:$16 sps:$4 sm:$0xff]   ;;  %v17347_v13 = vld [vmem:[#allocation8 + $0x1ac0] ss:$16 sps:$4 sm:$0xff]  }
 0x5c4   :  { %10013 = vmatprep.subr.bf16.mxu0 %v17208_v34  ;;  %v8721_v34 = vsel %vm1430_vm4, %v8719_v40, %v8720_v14  ;;  %v17344_v59 = vld [vmem:[#allocation8 + $0x1aa8] ss:$16 sps:$4 sm:$0xff]   ;;  %v17352_v14 = vld [vmem:[#allocation8 + $0x1acc] ss:$16 sps:$4 sm:$0xff]  }
 0x5c5   :  { %v8676_v40 = vld [vmem:[#allocation2 + $0x70] sm:$0xf0] }
 0x5c6   :  { %9885 = vmatpush1.bf16.msra.mxu1 %v17203_v45  ;;  %v17271_v45 = vld [vmem:[#allocation8 + $0x1924] ss:$16 sps:$4 sm:$0xff]  }
 0x5c7   :  { %10014 = vmatpush1.bf16.msra.mxu0 %v17206_v24  ;;  %9886 = vmatprep.subr.bf16.mxu1 %v17211_v51  ;;  %v8761_v24 = vpack.c.bf16 %v8739_v23, %v8721_v34  ;;  %v17274_v51 = vld [vmem:[#allocation8 + $0x192c] ss:$16 sps:$4 sm:$0xff]   ;;  %v17350_v23 = vld [vmem:[#allocation8 + $0x1ac8] ss:$16 sps:$4 sm:$0xff]  }
 0x5c8   :  { %10015 = vmatprep.subr.bf16.mxu0 %v17214_v25  ;;  %v17269_v25 = vld [vmem:[#allocation8 + $0x1920] ss:$16 sps:$4 sm:$0xff]   ;;  %v17358_v34 = vld [vmem:[#allocation8 + $0x1aec] ss:$16 sps:$4 sm:$0xff]  }
 0x5ca   :  { %9887 = vmatpush1.bf16.msra.mxu1 %v17209_v41  ;;  %v17272_v41 = vld [vmem:[#allocation8 + $0x1928] ss:$16 sps:$4 sm:$0xff]  }
 0x5cb   :  { %10016 = vmatpush1.bf16.msra.mxu0 %v17212_v39  ;;  %9888 = vmatprep.subr.bf16.mxu1 %v17217_v16  ;;  %v17277_v39 = vld [vmem:[#allocation8 + $0x1944] ss:$16 sps:$4 sm:$0xff]   ;;  %v17280_v16 = vld [vmem:[#allocation8 + $0x194c] ss:$16 sps:$4 sm:$0xff]  }
 0x5cc   :  { %10017 = vmatprep.subr.bf16.mxu0 %v17220_v12  ;;  %v17275_v12 = vld [vmem:[#allocation8 + $0x1940] ss:$16 sps:$4 sm:$0xff]  }
 0x5ce   :  { %9889 = vmatpush1.bf16.msra.mxu1 %v17215_v29  ;;  %v17278_v29 = vld [vmem:[#allocation8 + $0x1948] ss:$16 sps:$4 sm:$0xff]  }
 0x5cf   :  { %10018 = vmatpush1.bf16.msra.mxu0 %v17218_v37  ;;  %9890 = vmatprep.subr.bf16.mxu1 %v17223_v49  ;;  %v17283_v37 = vld [vmem:[#allocation8 + $0x1964] ss:$16 sps:$4 sm:$0xff]   ;;  %v17286_v49 = vld [vmem:[#allocation8 + $0x196c] ss:$16 sps:$4 sm:$0xff]  }
 0x5d0   :  { %10019 = vmatprep.subr.bf16.mxu0 %v17226_v58  ;;  %v17281_v58 = vld [vmem:[#allocation8 + $0x1960] ss:$16 sps:$4 sm:$0xff]  }
 0x5d2   :  { %9891 = vmatpush1.bf16.msra.mxu1 %v17221_v32  ;;  %v17284_v32 = vld [vmem:[#allocation8 + $0x1968] ss:$16 sps:$4 sm:$0xff]  }
 0x5d3   :  { %10020 = vmatpush1.bf16.msra.mxu0 %v17224_v47  ;;  %9892 = vmatprep.subr.bf16.mxu1 %v17229_v2  ;;  %v17289_v47 = vld [vmem:[#allocation8 + $0x1984] ss:$16 sps:$4 sm:$0xff]   ;;  %v17292_v2 = vld [vmem:[#allocation8 + $0x198c] ss:$16 sps:$4 sm:$0xff]  }
 0x5d4   :  { %10021 = vmatprep.subr.bf16.mxu0 %v17232_v60  ;;  %v17287_v60 = vld [vmem:[#allocation8 + $0x1980] ss:$16 sps:$4 sm:$0xff]  }
 0x5d6   :  { %9893 = vmatpush1.bf16.msra.mxu1 %v17227_v48  ;;  %v17290_v48 = vld [vmem:[#allocation8 + $0x1988] ss:$16 sps:$4 sm:$0xff]  }
 0x5d7   :  { %10022 = vmatpush1.bf16.msra.mxu0 %v17230_v63  ;;  %9894 = vmatprep.subr.bf16.mxu1 %v17235_v21  ;;  %v17295_v63 = vld [vmem:[#allocation8 + $0x19a4] ss:$16 sps:$4 sm:$0xff]   ;;  %v17298_v21 = vld [vmem:[#allocation8 + $0x19ac] ss:$16 sps:$4 sm:$0xff]  }
 0x5d8   :  { %10023 = vmatprep.subr.bf16.mxu0 %v17238_v61  ;;  %v17293_v61 = vld [vmem:[#allocation8 + $0x19a0] ss:$16 sps:$4 sm:$0xff]  }
 0x5da   :  { %9895 = vmatpush1.bf16.msra.mxu1 %v17233_v6  ;;  %v17296_v6 = vld [vmem:[#allocation8 + $0x19a8] ss:$16 sps:$4 sm:$0xff]  }
 0x5db   :  { %10024 = vmatpush1.bf16.msra.mxu0 %v17236_v4  ;;  %9896 = vmatprep.subr.bf16.mxu1 %v17241_v33  ;;  %v17301_v4 = vld [vmem:[#allocation8 + $0x19c4] ss:$16 sps:$4 sm:$0xff]   ;;  %v17304_v33 = vld [vmem:[#allocation8 + $0x19cc] ss:$16 sps:$4 sm:$0xff]  }
 0x5dc   :  { %10025 = vmatprep.subr.bf16.mxu0 %v17244_v1  ;;  %v17299_v1 = vld [vmem:[#allocation8 + $0x19c0] ss:$16 sps:$4 sm:$0xff]  }
 0x5de   :  { %9897 = vmatpush1.bf16.msra.mxu1 %v17239_v18  ;;  %v17302_v18 = vld [vmem:[#allocation8 + $0x19c8] ss:$16 sps:$4 sm:$0xff]  }
 0x5df   :  { %10026 = vmatpush1.bf16.msra.mxu0 %v17242_v30  ;;  %9898 = vmatprep.subr.bf16.mxu1 %v17247_v20  ;;  %v17307_v30 = vld [vmem:[#allocation8 + $0x19e4] ss:$16 sps:$4 sm:$0xff]   ;;  %v17310_v20 = vld [vmem:[#allocation8 + $0x19ec] ss:$16 sps:$4 sm:$0xff]  }
 0x5e0   :  { %10027 = vmatprep.subr.bf16.mxu0 %v17250_v0  ;;  %v17305_v0 = vld [vmem:[#allocation8 + $0x19e0] ss:$16 sps:$4 sm:$0xff]  }
 0x5e2   :  { %9899 = vmatpush1.bf16.msra.mxu1 %v17245_v26  ;;  %v17308_v26 = vld [vmem:[#allocation8 + $0x19e8] ss:$16 sps:$4 sm:$0xff]  }
 0x5e3   :  { %10028 = vmatpush1.bf16.msra.mxu0 %v17248_v7  ;;  %9900 = vmatprep.subr.bf16.mxu1 %v17253_v62  ;;  %v17313_v7 = vld [vmem:[#allocation8 + $0x1a04] ss:$16 sps:$4 sm:$0xff]   ;;  %v17316_v62 = vld [vmem:[#allocation8 + $0x1a0c] ss:$16 sps:$4 sm:$0xff]  }
 0x5e4   :  { %10029 = vmatprep.subr.bf16.mxu0 %v17256_v19  ;;  %v17311_v19 = vld [vmem:[#allocation8 + $0x1a00] ss:$16 sps:$4 sm:$0xff]  }
 0x5e6   :  { %9901 = vmatpush1.bf16.msra.mxu1 %v17251_v31  ;;  %v17319_v31 = vld [vmem:[#allocation8 + $0x1a24] ss:$16 sps:$4 sm:$0xff]  }
 0x5e7   :  { %10030 = vmatpush1.bf16.msra.mxu0 %v17254_v50  ;;  %9902 = vmatprep.subr.bf16.mxu1 %v17259_v27  ;;  %v17320_v50 = vld [vmem:[#allocation8 + $0x1a28] ss:$16 sps:$4 sm:$0xff]   ;;  %v17325_v27 = vld [vmem:[#allocation8 + $0x1a44] ss:$16 sps:$4 sm:$0xff]  }
 0x5e8   :  { %10031 = vmatprep.subr.bf16.mxu0 %v17262_v53  ;;  %v17323_v53 = vld [vmem:[#allocation8 + $0x1a40] ss:$16 sps:$4 sm:$0xff]  }
 0x5ea   :  { %9903 = vmatpush1.bf16.msra.mxu1 %v17257_v17  ;;  %v17332_v17 = vld [vmem:[#allocation8 + $0x1a68] ss:$16 sps:$4 sm:$0xff]  }
 0x5eb   :  { %10032 = vmatpush1.bf16.msra.mxu0 %v17260_v3  ;;  %9915 = vmatprep.subr.bf16.mxu1 %v17265_v15  ;;  %v17338_v3 = vld [vmem:[#allocation8 + $0x1a88] ss:$16 sps:$4 sm:$0xff]   ;;  %v17343_v15 = vld [vmem:[#allocation8 + $0x1aa4] ss:$16 sps:$4 sm:$0xff]  }
 0x5ec   :  { %10044 = vmatprep.subr.bf16.mxu0 %v17268_v57  ;;  %v17349_v57 = vld [vmem:[#allocation8 + $0x1ac4] ss:$16 sps:$4 sm:$0xff]  }
 0x5ed   :  { %9905 = vmatmul.mubr.bf16.vlgmr.msra.gmra.mrb[12].mxu1 %v8758_v54 }
 0x5ee   :  { %10034 = vmatmul.mubr.bf16.vlgmr.msra.gmra.mrb[24].mxu0 %v8758_v54  ;;  %9916 = vmatpush1.bf16.msra.mxu1 %v17263_v52  ;;  %v8670_v52 = vld [vmem:[#allocation2 + $0x40] sm:$0xf]  ;;  %v17355_v54 = vld [vmem:[#allocation8 + $0x1ae4] ss:$16 sps:$4 sm:$0xff]  }
 0x5ef   :  { %9947 = vmatprep.mubr.bf16.mxu1 %v8761_v24  ;;  %10045 = vmatpush1.bf16.msra.mxu0 %v17266_v11  ;;  %v8685_v11 = vld [vmem:[#allocation2 + $0xb8] sm:$0xf] }
 0x5f0   :  { %10076 = vmatprep.mubr.bf16.mxu0 %v8761_v24  ;;  %9917 = vmatprep.subr.bf16.mxu1 %v17271_v45  ;;  %v8735_v45 = vrot.slane %v8682_v38, 4  ;;  %v8664_v24 = vld [vmem:[#allocation2 + $0x10] sm:$0xf0]  ;;  %v17410_v38 = vld [vmem:[#allocation8 + $0x1c08] ss:$16 sps:$4 sm:$0xff]  }
 0x5f1   :  { %10046 = vmatprep.subr.bf16.mxu0 %v17274_v51  ;;  %v8673_v51 = vld [vmem:[#allocation2 + $0x58] sm:$0xf] }
 0x5f2   :  { %9918 = vmatpush1.bf16.msra.mxu1 %v17269_v25  ;;  %v8679_v25 = vld [vmem:[#allocation2 + $0x88] sm:$0xf0] }
 0x5f3   :  { %10047 = vmatpush1.bf16.msra.mxu0 %v17272_v41  ;;  %9919 = vmatprep.subr.bf16.mxu1 %v17277_v39  ;;  %v17353_v41 = vld [vmem:[#allocation8 + $0x1ae0] ss:$16 sps:$4 sm:$0xff]   ;;  %v8717_v39 = vrot.slane %v8670_v52, 4  ;;  %v17418_v52 = vld [vmem:[#allocation8 + $0x1c2c] ss:$16 sps:$4 sm:$0xff]  }
 0x5f4   :  { %10048 = vmatprep.subr.bf16.mxu0 %v17280_v16  ;;  %v8734_v16 = vrot.slane %v8676_v40, 4  ;;  %v17413_v40 = vld [vmem:[#allocation8 + $0x1c20] ss:$16 sps:$4 sm:$0xff]  }
 0x5f6   :  { %9920 = vmatpush1.bf16.msra.mxu1 %v17275_v12  ;;  %v8744_v12 = vrot.slane %v8685_v11, 4  ;;  %v17424_v11 = vld [vmem:[#allocation8 + $0x1c4c] ss:$16 sps:$4 sm:$0xff]  }
 0x5f7   :  { %10049 = vmatpush1.bf16.msra.mxu0 %v17278_v29  ;;  %9921 = vmatprep.subr.bf16.mxu1 %v17283_v37  ;;  %v17356_v29 = vld [vmem:[#allocation8 + $0x1ae8] ss:$16 sps:$4 sm:$0xff]   ;;  %v17361_v37 = vld [vmem:[#allocation8 + $0x1b04] ss:$16 sps:$4 sm:$0xff]  }
 0x5f8   :  { %10050 = vmatprep.subr.bf16.mxu0 %v17286_v49  ;;  %v8667_v49 = vld [vmem:[#allocation2 + $0x28] sm:$0xf0] }
 0x5fa   :  { %9922 = vmatpush1.bf16.msra.mxu1 %v17281_v58  ;;  %v8716_v58 = vrot.slane %v8664_v24, 4  ;;  %v17427_v24 = vld [vmem:[#allocation8 + $0x1c64] ss:$16 sps:$4 sm:$0xff]  }
 0x5fb   :  { %10051 = vmatpush1.bf16.msra.mxu0 %v17284_v32  ;;  %9923 = vmatprep.subr.bf16.mxu1 %v17289_v47  ;;  %v8736_v32 = vsel %vm1430_vm4, %v8734_v16, %v8735_v45  ;;  %v17364_v47 = vld [vmem:[#allocation8 + $0x1b0c] ss:$16 sps:$4 sm:$0xff]   ;;  %v17422_v45 = vld [vmem:[#allocation8 + $0x1c48] ss:$16 sps:$4 sm:$0xff]  }
 0x5fc   :  { %10052 = vmatprep.subr.bf16.mxu0 %v17292_v2  ;;  %v8726_v2 = vrot.slane %v8673_v51, 4  ;;  %v17430_v51 = vld [vmem:[#allocation8 + $0x1c6c] ss:$16 sps:$4 sm:$0xff]  }
 0x5fd   :  { %v17436_v16 = vld [vmem:[#allocation8 + $0x1c8c] ss:$16 sps:$4 sm:$0xff]  }
 0x5fe   :  { %9924 = vmatpush1.bf16.msra.mxu1 %v17287_v60  ;;  %v8743_v60 = vrot.slane %v8679_v25, 4  ;;  %v17425_v25 = vld [vmem:[#allocation8 + $0x1c60] ss:$16 sps:$4 sm:$0xff]  }
 0x5ff   :  { %10053 = vmatpush1.bf16.msra.mxu0 %v17290_v48  ;;  %9925 = vmatprep.subr.bf16.mxu1 %v17295_v63  ;;  %v8718_v48 = vsel %vm1430_vm4, %v8716_v58, %v8717_v39  ;;  %v17359_v63 = vld [vmem:[#allocation8 + $0x1b00] ss:$16 sps:$4 sm:$0xff]   ;;  %v17433_v39 = vld [vmem:[#allocation8 + $0x1c84] ss:$16 sps:$4 sm:$0xff]  }
 0x600   :  { %10054 = vmatprep.subr.bf16.mxu0 %v17298_v21  ;;  %v8725_v21 = vrot.slane %v8667_v49, 4  ;;  %v17434_v49 = vld [vmem:[#allocation8 + $0x1c88] ss:$16 sps:$4 sm:$0xff]   ;;  %v17439_v58 = vld [vmem:[#allocation8 + $0x1ca4] ss:$16 sps:$4 sm:$0xff]  }
 0x602   :  { %9926 = vmatpush1.bf16.msra.mxu1 %v17293_v61  ;;  %v8745_v61 = vsel %vm1430_vm4, %v8743_v60, %v8744_v12  ;;  %v8684_v12 = vld [vmem:[#allocation2 + $0xb0] sm:$0xf]  ;;  %v8666_v60 = vld [vmem:[#allocation2 + $0x20] sm:$0xf0] }
 0x603   :  { %10055 = vmatpush1.bf16.msra.mxu0 %v17296_v6  ;;  %9927 = vmatprep.subr.bf16.mxu1 %v17301_v4  ;;  %v8760_v6 = vpack.c.bf16 %v8736_v32, %v8718_v48  ;;  %v17362_v4 = vld [vmem:[#allocation8 + $0x1b08] ss:$16 sps:$4 sm:$0xff]   ;;  %v8678_v32 = vld [vmem:[#allocation2 + $0x80] sm:$0xf0] }
 0x604   :  { %10056 = vmatprep.subr.bf16.mxu0 %v17304_v33  ;;  %v8727_v33 = vsel %vm1430_vm4, %v8725_v21, %v8726_v2  ;;  %v8741_v2 = vrot.slane %v8684_v12, 4  ;;  %v17437_v48 = vld [vmem:[#allocation8 + $0x1ca0] ss:$16 sps:$4 sm:$0xff]   ;;  %v8740_v21 = vrot.slane %v8678_v32, 4 }
 0x605   :  { %v17499_v32 = vld [vmem:[#allocation11 + $0x64c] ss:$16 sps:$4 sm:$0xff]  }
 0x606   :  { %9928 = vmatpush1.bf16.msra.mxu1 %v17299_v1  ;;  %v17367_v1 = vld [vmem:[#allocation8 + $0x1b24] ss:$16 sps:$4 sm:$0xff]  }
 0x607   :  { %10057 = vmatpush1.bf16.msra.mxu0 %v17302_v18  ;;  %9929 = vmatprep.subr.bf16.mxu1 %v17307_v30  ;;  %v8763_v18 = vpack.c.bf16 %v8745_v61, %v8727_v33  ;;  %v17370_v30 = vld [vmem:[#allocation8 + $0x1b2c] ss:$16 sps:$4 sm:$0xff]   ;;  %v17440_v61 = vld [vmem:[#allocation8 + $0x1ca8] ss:$16 sps:$4 sm:$0xff]  }
 0x608   :  { %10058 = vmatprep.subr.bf16.mxu0 %v17310_v20  ;;  %v17365_v20 = vld [vmem:[#allocation8 + $0x1b20] ss:$16 sps:$4 sm:$0xff]  }
 0x60a   :  { %9930 = vmatpush1.bf16.msra.mxu1 %v17305_v0  ;;  %v17368_v0 = vld [vmem:[#allocation8 + $0x1b28] ss:$16 sps:$4 sm:$0xff]  }
 0x60b   :  { %10059 = vmatpush1.bf16.msra.mxu0 %v17308_v26  ;;  %9931 = vmatprep.subr.bf16.mxu1 %v17313_v7  ;;  %v17373_v26 = vld [vmem:[#allocation8 + $0x1b44] ss:$16 sps:$4 sm:$0xff]   ;;  %v17376_v7 = vld [vmem:[#allocation8 + $0x1b4c] ss:$16 sps:$4 sm:$0xff]  }
 0x60c   :  { %10060 = vmatprep.subr.bf16.mxu0 %v17316_v62  ;;  %v17371_v62 = vld [vmem:[#allocation8 + $0x1b40] ss:$16 sps:$4 sm:$0xff]  }
 0x60e   :  { %9932 = vmatpush1.bf16.msra.mxu1 %v17311_v19  ;;  %v17374_v19 = vld [vmem:[#allocation8 + $0x1b48] ss:$16 sps:$4 sm:$0xff]  }
 0x60f   :  { %10061 = vmatpush1.bf16.msra.mxu0 %v17314_v46  ;;  %9933 = vmatprep.subr.bf16.mxu1 %v17319_v31  ;;  %v17379_v46 = vld [vmem:[#allocation8 + $0x1b64] ss:$16 sps:$4 sm:$0xff]   ;;  %v17382_v31 = vld [vmem:[#allocation8 + $0x1b6c] ss:$16 sps:$4 sm:$0xff]  }
 0x610   :  { %10062 = vmatprep.subr.bf16.mxu0 %v17322_v8  ;;  %v17377_v8 = vld [vmem:[#allocation8 + $0x1b60] ss:$16 sps:$4 sm:$0xff]  }
 0x612   :  { %9934 = vmatpush1.bf16.msra.mxu1 %v17317_v10  ;;  %v17380_v10 = vld [vmem:[#allocation8 + $0x1b68] ss:$16 sps:$4 sm:$0xff]  }
 0x613   :  { %10063 = vmatpush1.bf16.msra.mxu0 %v17320_v50  ;;  %9935 = vmatprep.subr.bf16.mxu1 %v17325_v27  ;;  %v17385_v50 = vld [vmem:[#allocation8 + $0x1b84] ss:$16 sps:$4 sm:$0xff]   ;;  %v17388_v27 = vld [vmem:[#allocation8 + $0x1b8c] ss:$16 sps:$4 sm:$0xff]  }
 0x614   :  { %10064 = vmatprep.subr.bf16.mxu0 %v17328_v28  ;;  %v17383_v28 = vld [vmem:[#allocation8 + $0x1b80] ss:$16 sps:$4 sm:$0xff]  }
 0x616   :  { %9936 = vmatpush1.bf16.msra.mxu1 %v17323_v53  ;;  %v17386_v53 = vld [vmem:[#allocation8 + $0x1b88] ss:$16 sps:$4 sm:$0xff]  }
 0x617   :  { %10065 = vmatpush1.bf16.msra.mxu0 %v17326_v56  ;;  %9937 = vmatprep.subr.bf16.mxu1 %v17331_v44  ;;  %v17391_v56 = vld [vmem:[#allocation8 + $0x1ba4] ss:$16 sps:$4 sm:$0xff]   ;;  %v17394_v44 = vld [vmem:[#allocation8 + $0x1bac] ss:$16 sps:$4 sm:$0xff]  }
 0x618   :  { %10066 = vmatprep.subr.bf16.mxu0 %v17334_v42  ;;  %v17389_v42 = vld [vmem:[#allocation8 + $0x1ba0] ss:$16 sps:$4 sm:$0xff]  }
 0x61a   :  { %9938 = vmatpush1.bf16.msra.mxu1 %v17329_v35  ;;  %v17392_v35 = vld [vmem:[#allocation8 + $0x1ba8] ss:$16 sps:$4 sm:$0xff]  }
 0x61b   :  { %10067 = vmatpush1.bf16.msra.mxu0 %v17332_v17  ;;  %9939 = vmatprep.subr.bf16.mxu1 %v17337_v55  ;;  %v17397_v17 = vld [vmem:[#allocation8 + $0x1bc4] ss:$16 sps:$4 sm:$0xff]   ;;  %v17400_v55 = vld [vmem:[#allocation8 + $0x1bcc] ss:$16 sps:$4 sm:$0xff]  }
 0x61c   :  { %10068 = vmatprep.subr.bf16.mxu0 %v17340_v36  ;;  %v17395_v36 = vld [vmem:[#allocation8 + $0x1bc0] ss:$16 sps:$4 sm:$0xff]  }
 0x61e   :  { %9940 = vmatpush1.bf16.msra.mxu1 %v17335_v5  ;;  %v17398_v5 = vld [vmem:[#allocation8 + $0x1bc8] ss:$16 sps:$4 sm:$0xff]  }
 0x61f   :  { %10069 = vmatpush1.bf16.msra.mxu0 %v17338_v3  ;;  %9941 = vmatprep.subr.bf16.mxu1 %v17343_v15  ;;  %v17403_v3 = vld [vmem:[#allocation8 + $0x1be4] ss:$16 sps:$4 sm:$0xff]   ;;  %v17406_v15 = vld [vmem:[#allocation8 + $0x1bec] ss:$16 sps:$4 sm:$0xff]  }
 0x620   :  { %10070 = vmatprep.subr.bf16.mxu0 %v17346_v43  ;;  %v17401_v43 = vld [vmem:[#allocation8 + $0x1be0] ss:$16 sps:$4 sm:$0xff]  }
 0x622   :  { %9942 = vmatpush1.bf16.msra.mxu1 %v17341_v9  ;;  %v17404_v9 = vld [vmem:[#allocation8 + $0x1be8] ss:$16 sps:$4 sm:$0xff]  }
 0x623   :  { %10071 = vmatpush1.bf16.msra.mxu0 %v17344_v59  ;;  %9943 = vmatprep.subr.bf16.mxu1 %v17349_v57  ;;  %v17409_v59 = vld [vmem:[#allocation8 + $0x1c04] ss:$16 sps:$4 sm:$0xff]   ;;  %v17412_v57 = vld [vmem:[#allocation8 + $0x1c0c] ss:$16 sps:$4 sm:$0xff]  }
 0x624   :  { %10072 = vmatprep.subr.bf16.mxu0 %v17352_v14  ;;  %v17407_v14 = vld [vmem:[#allocation8 + $0x1c00] ss:$16 sps:$4 sm:$0xff]  }
 0x626   :  { %9944 = vmatpush1.bf16.msra.mxu1 %v17347_v13  ;;  %v17415_v13 = vld [vmem:[#allocation8 + $0x1c24] ss:$16 sps:$4 sm:$0xff]  }
 0x627   :  { %10073 = vmatpush1.bf16.msra.mxu0 %v17350_v23  ;;  %9945 = vmatprep.subr.bf16.mxu1 %v17355_v54  ;;  %v17416_v23 = vld [vmem:[#allocation8 + $0x1c28] ss:$16 sps:$4 sm:$0xff]   ;;  %v17421_v54 = vld [vmem:[#allocation8 + $0x1c44] ss:$16 sps:$4 sm:$0xff]  }
 0x628   :  { %10074 = vmatprep.subr.bf16.mxu0 %v17358_v34  ;;  %v17419_v34 = vld [vmem:[#allocation8 + $0x1c40] ss:$16 sps:$4 sm:$0xff]  }
 0x62a   :  { %9946 = vmatpush1.bf16.msra.mxu1 %v17353_v41  ;;  %v17428_v41 = vld [vmem:[#allocation8 + $0x1c68] ss:$16 sps:$4 sm:$0xff]  }
 0x62b   :  { %10075 = vmatpush1.bf16.msra.mxu0 %v17356_v29  ;;  %9958 = vmatprep.subr.bf16.mxu1 %v17361_v37  ;;  %v17431_v29 = vld [vmem:[#allocation8 + $0x1c80] ss:$16 sps:$4 sm:$0xff]   ;;  %v8672_v37 = vld [vmem:[#allocation2 + $0x50] sm:$0xf] }
 0x62c   :  { %10087 = vmatprep.subr.bf16.mxu0 %v17364_v47  ;;  %v17442_v47 = vld [vmem:[#allocation8 + $0x1cac] ss:$16 sps:$4 sm:$0xff]  }
 0x62d   :  { %9948 = vmatmul.mubr.bf16.vlgmr.msra.gmra.mrb[12].mxu1 %v8760_v6 }
 0x62e   :  { %10077 = vmatmul.mubr.bf16.vlgmr.msra.gmra.mrb[24].mxu0 %v8760_v6  ;;  %9959 = vmatpush1.bf16.msra.mxu1 %v17359_v63  ;;  %v8723_v63 = vrot.slane %v8672_v37, 4  ;;  %v8722_v6 = vrot.slane %v8666_v60, 4 }
 0x62f   :  { %15164 = vmatprep.mubr.msk.bf16.mxu1 %vm1858_vm5, %v8763_v18  ;;  %10088 = vmatpush1.bf16.msra.mxu0 %v17362_v4  ;;  %v8742_v4 = vsel %vm1430_vm4, %v8740_v21, %v8741_v2  ;;  %v17502_v21 = vld [vmem:[#allocation11 + $0x504] ss:$16 sps:$4 sm:$0xff]  }
 0x630   :  { %15165 = vmatprep.mubr.msk.bf16.mxu0 %vm1858_vm5, %v8763_v18  ;;  %9960 = vmatprep.subr.bf16.mxu1 %v17367_v1  ;;  %v8724_v33 = vsel %vm1430_vm4, %v8722_v6, %v8723_v63  ;;  %v17443_v18 = vld [vmem:[#allocation11 + $0x380] ss:$16 sps:$4 sm:$0xff]   ;;  %v17505_v6 = vld [vmem:[#allocation11 + $0x66c] ss:$16 sps:$4 sm:$0xff]  }
 0x631   :  { %10089 = vmatprep.subr.bf16.mxu0 %v17370_v30  ;;  %v8762_v1 = vpack.c.bf16 %v8742_v4, %v8724_v33  ;;  %v17445_v30 = vld [vmem:[#allocation11 + $0x384] ss:$16 sps:$4 sm:$0xff]   ;;  %v17500_v63 = vld [vmem:[#allocation11 + $0x500] ss:$16 sps:$4 sm:$0xff]  }
 0x632   :  { %9961 = vmatpush1.bf16.msra.mxu1 %v17365_v20  ;;  %v17448_v20 = vld [vmem:[#allocation11 + $0x3a4] ss:$16 sps:$4 sm:$0xff]  }
 0x633   :  { %10090 = vmatpush1.bf16.msra.mxu0 %v17368_v0  ;;  %9962 = vmatprep.subr.bf16.mxu1 %v17373_v26  ;;  %v17446_v0 = vld [vmem:[#allocation11 + $0x3a0] ss:$16 sps:$4 sm:$0xff]   ;;  %v17451_v26 = vld [vmem:[#allocation11 + $0x3c4] ss:$16 sps:$4 sm:$0xff]  }
 0x634   :  { %10091 = vmatprep.subr.bf16.mxu0 %v17376_v7  ;;  %v17461_v7 = vld [vmem:[#allocation11 + $0x588] ss:$16 sps:$4 sm:$0xff]  }
 0x636   :  { %9963 = vmatpush1.bf16.msra.mxu1 %v17371_v62  ;;  %v17463_v62 = vld [vmem:[#allocation11 + $0x58c] ss:$16 sps:$4 sm:$0xff]  }
 0x637   :  { %10092 = vmatpush1.bf16.msra.mxu0 %v17374_v19  ;;  %9964 = vmatprep.subr.bf16.mxu1 %v17379_v46  ;;  %v17469_v19 = vld [vmem:[#allocation11 + $0x5ac] ss:$16 sps:$4 sm:$0xff]   ;;  %v17449_v46 = vld [vmem:[#allocation11 + $0x3c0] ss:$16 sps:$4 sm:$0xff]  }
 0x638   :  { %10093 = vmatprep.subr.bf16.mxu0 %v17382_v31  ;;  %v17467_v31 = vld [vmem:[#allocation11 + $0x5a8] ss:$16 sps:$4 sm:$0xff]  }
 0x63a   :  { %9965 = vmatpush1.bf16.msra.mxu1 %v17377_v8  ;;  %v17454_v8 = vld [vmem:[#allocation11 + $0x3e4] ss:$16 sps:$4 sm:$0xff]  }
 0x63b   :  { %10094 = vmatpush1.bf16.msra.mxu0 %v17380_v10  ;;  %9966 = vmatprep.subr.bf16.mxu1 %v17385_v50  ;;  %v17475_v10 = vld [vmem:[#allocation11 + $0x5cc] ss:$16 sps:$4 sm:$0xff]   ;;  %v17452_v50 = vld [vmem:[#allocation11 + $0x3e0] ss:$16 sps:$4 sm:$0xff]  }
 0x63c   :  { %10095 = vmatprep.subr.bf16.mxu0 %v17388_v27  ;;  %v17473_v27 = vld [vmem:[#allocation11 + $0x5c8] ss:$16 sps:$4 sm:$0xff]  }
 0x63e   :  { %9967 = vmatpush1.bf16.msra.mxu1 %v17383_v28  ;;  %v17457_v28 = vld [vmem:[#allocation11 + $0x404] ss:$16 sps:$4 sm:$0xff]  }
 0x63f   :  { %10096 = vmatpush1.bf16.msra.mxu0 %v17386_v53  ;;  %9968 = vmatprep.subr.bf16.mxu1 %v17391_v56  ;;  %v17481_v53 = vld [vmem:[#allocation11 + $0x5ec] ss:$16 sps:$4 sm:$0xff]   ;;  %v17455_v56 = vld [vmem:[#allocation11 + $0x400] ss:$16 sps:$4 sm:$0xff]  }
 0x640   :  { %10097 = vmatprep.subr.bf16.mxu0 %v17394_v44  ;;  %v17479_v44 = vld [vmem:[#allocation11 + $0x5e8] ss:$16 sps:$4 sm:$0xff]  }
 0x642   :  { %9969 = vmatpush1.bf16.msra.mxu1 %v17389_v42  ;;  %v17460_v42 = vld [vmem:[#allocation11 + $0x424] ss:$16 sps:$4 sm:$0xff]  }
 0x643   :  { %10098 = vmatpush1.bf16.msra.mxu0 %v17392_v35  ;;  %9970 = vmatprep.subr.bf16.mxu1 %v17397_v17  ;;  %v17487_v35 = vld [vmem:[#allocation11 + $0x60c] ss:$16 sps:$4 sm:$0xff]   ;;  %v17458_v17 = vld [vmem:[#allocation11 + $0x420] ss:$16 sps:$4 sm:$0xff]  }
 0x644   :  { %10099 = vmatprep.subr.bf16.mxu0 %v17400_v55  ;;  %v17485_v55 = vld [vmem:[#allocation11 + $0x608] ss:$16 sps:$4 sm:$0xff]  }
 0x646   :  { %9971 = vmatpush1.bf16.msra.mxu1 %v17395_v36  ;;  %v17466_v36 = vld [vmem:[#allocation11 + $0x444] ss:$16 sps:$4 sm:$0xff]  }
 0x647   :  { %10100 = vmatpush1.bf16.msra.mxu0 %v17398_v5  ;;  %9972 = vmatprep.subr.bf16.mxu1 %v17403_v3  ;;  %v17464_v5 = vld [vmem:[#allocation11 + $0x440] ss:$16 sps:$4 sm:$0xff]   ;;  %v17472_v3 = vld [vmem:[#allocation11 + $0x464] ss:$16 sps:$4 sm:$0xff]  }
 0x648   :  { %10101 = vmatprep.subr.bf16.mxu0 %v17406_v15  ;;  %v17470_v15 = vld [vmem:[#allocation11 + $0x460] ss:$16 sps:$4 sm:$0xff]  }
 0x64a   :  { %9973 = vmatpush1.bf16.msra.mxu1 %v17401_v43  ;;  %v17478_v43 = vld [vmem:[#allocation11 + $0x484] ss:$16 sps:$4 sm:$0xff]  }
 0x64b   :  { %10102 = vmatpush1.bf16.msra.mxu0 %v17404_v9  ;;  %9974 = vmatprep.subr.bf16.mxu1 %v17409_v59  ;;  %v17476_v9 = vld [vmem:[#allocation11 + $0x480] ss:$16 sps:$4 sm:$0xff]   ;;  %v17484_v59 = vld [vmem:[#allocation11 + $0x4a4] ss:$16 sps:$4 sm:$0xff]  }
 0x64c   :  { %10103 = vmatprep.subr.bf16.mxu0 %v17412_v57  ;;  %v17482_v57 = vld [vmem:[#allocation11 + $0x4a0] ss:$16 sps:$4 sm:$0xff]  }
 0x64e   :  { %9975 = vmatpush1.bf16.msra.mxu1 %v17407_v14  ;;  %v17488_v14 = vld [vmem:[#allocation11 + $0x4c0] ss:$16 sps:$4 sm:$0xff]  }
 0x64f   :  { %10104 = vmatpush1.bf16.msra.mxu0 %v17410_v38  ;;  %9976 = vmatprep.subr.bf16.mxu1 %v17415_v13  ;;  %v17490_v38 = vld [vmem:[#allocation11 + $0x4c4] ss:$16 sps:$4 sm:$0xff]   ;;  %v17491_v13 = vld [vmem:[#allocation11 + $0x628] ss:$16 sps:$4 sm:$0xff]  }
 0x650   :  { %10105 = vmatprep.subr.bf16.mxu0 %v17418_v52  ;;  %v17493_v52 = vld [vmem:[#allocation11 + $0x62c] ss:$16 sps:$4 sm:$0xff]  }
 0x652   :  { %9977 = vmatpush1.bf16.msra.mxu1 %v17413_v40 }
 0x653   :  { %10106 = vmatpush1.bf16.msra.mxu0 %v17416_v23  ;;  %9978 = vmatprep.subr.bf16.mxu1 %v17421_v54 }
 0x654   :  { %10107 = vmatprep.subr.bf16.mxu0 %v17424_v11 }
 0x656   :  { %9979 = vmatpush1.bf16.msra.mxu1 %v17419_v34 }
 0x657   :  { %10108 = vmatpush1.bf16.msra.mxu0 %v17422_v45  ;;  %9980 = vmatprep.subr.bf16.mxu1 %v17427_v24 }
 0x658   :  { %10109 = vmatprep.subr.bf16.mxu0 %v17430_v51 }
 0x65a   :  { %9981 = vmatpush1.bf16.msra.mxu1 %v17425_v25 }
 0x65b   :  { %10110 = vmatpush1.bf16.msra.mxu0 %v17428_v41  ;;  %9982 = vmatprep.subr.bf16.mxu1 %v17433_v39  ;;  %v17494_v41 = vld [vmem:[#allocation11 + $0x4e0] ss:$16 sps:$4 sm:$0xff]   ;;  %v17496_v39 = vld [vmem:[#allocation11 + $0x4e4] ss:$16 sps:$4 sm:$0xff]  }
 0x65c   :  { %10111 = vmatprep.subr.bf16.mxu0 %v17436_v16 }
 0x65e   :  { %9983 = vmatpush1.bf16.msra.mxu1 %v17431_v29 }
 0x65f   :  { %10112 = vmatpush1.bf16.msra.mxu0 %v17434_v49  ;;  %9984 = vmatprep.subr.bf16.mxu1 %v17439_v58  ;;  %v17497_v58 = vld [vmem:[#allocation11 + $0x648] ss:$16 sps:$4 sm:$0xff]  }
 0x660   :  { %10113 = vmatprep.subr.bf16.mxu0 %v17442_v47 }
 0x662   :  { %9985 = vmatpush1.bf16.msra.mxu1 %v17437_v48 }
 0x663   :  { %10114 = vmatpush1.bf16.msra.mxu0 %v17440_v61  ;;  %11087 = vmatprep.subr.bf16.mxu1 %v17445_v30  ;;  %v17503_v61 = vld [vmem:[#allocation11 + $0x668] ss:$16 sps:$4 sm:$0xff]   ;;  %v17506_v30 = vld [vmem:[#allocation11 + $0x520] ss:$16 sps:$4 sm:$0xff]  }
 0x664   :  { %11210 = vmatprep.subr.bf16.mxu0 %v17463_v62  ;;  %v17511_v62 = vld [vmem:[#allocation11 + $0x68c] ss:$16 sps:$4 sm:$0xff]  }
 0x665   :  { %9991 = vmatmul.mubr.bf16.vlgmr.msra.gmra.mrb[12].mxu1 %v8762_v1 }
 0x666   :  { %10120 = vmatmul.mubr.bf16.vlgmr.msra.gmra.mrb[24].mxu0 %v8762_v1  ;;  %11088 = vmatpush1.bf16.msra.mxu1 %v17443_v18 }
 0x667   :  { %11089 = vmatprep.subr.bf16.mxu1 %v17448_v20  ;;  %11211 = vmatpush1.bf16.msra.mxu0 %v17461_v7  ;;  %v17508_v20 = vld [vmem:[#allocation11 + $0x524] ss:$16 sps:$4 sm:$0xff]   ;;  %v17509_v7 = vld [vmem:[#allocation11 + $0x688] ss:$16 sps:$4 sm:$0xff]  }
 0x668   :  { %11212 = vmatprep.subr.bf16.mxu0 %v17469_v19  ;;  %v17514_v19 = vld [vmem:[#allocation11 + $0x544] ss:$16 sps:$4 sm:$0xff]  }
 0x66a   :  { %11090 = vmatpush1.bf16.msra.mxu1 %v17446_v0 }
 0x66b   :  { %11091 = vmatprep.subr.bf16.mxu1 %v17451_v26  ;;  %11213 = vmatpush1.bf16.msra.mxu0 %v17467_v31  ;;  %v17512_v31 = vld [vmem:[#allocation11 + $0x540] ss:$16 sps:$4 sm:$0xff]  }
 0x66c   :  { %11214 = vmatprep.subr.bf16.mxu0 %v17475_v10  ;;  %v17520_v10 = vld [vmem:[#allocation11 + $0x564] ss:$16 sps:$4 sm:$0xff]  }
 0x66e   :  { %11092 = vmatpush1.bf16.msra.mxu1 %v17449_v46  ;;  %v17517_v46 = vld [vmem:[#allocation11 + $0x6ac] ss:$16 sps:$4 sm:$0xff]  }
 0x66f   :  { %11093 = vmatprep.subr.bf16.mxu1 %v17454_v8  ;;  %11215 = vmatpush1.bf16.msra.mxu0 %v17473_v27  ;;  %v17515_v8 = vld [vmem:[#allocation11 + $0x6a8] ss:$16 sps:$4 sm:$0xff]   ;;  %v17518_v27 = vld [vmem:[#allocation11 + $0x560] ss:$16 sps:$4 sm:$0xff]  }
 0x670   :  { %11216 = vmatprep.subr.bf16.mxu0 %v17481_v53  ;;  %v17526_v53 = vld [vmem:[#allocation11 + $0x584] ss:$16 sps:$4 sm:$0xff]  }
 0x672   :  { %11094 = vmatpush1.bf16.msra.mxu1 %v17452_v50  ;;  %v17523_v50 = vld [vmem:[#allocation11 + $0x6cc] ss:$16 sps:$4 sm:$0xff]  }
 0x673   :  { %11095 = vmatprep.subr.bf16.mxu1 %v17457_v28  ;;  %11217 = vmatpush1.bf16.msra.mxu0 %v17479_v44  ;;  %v17521_v28 = vld [vmem:[#allocation11 + $0x6c8] ss:$16 sps:$4 sm:$0xff]  }
 0x674   :  { %11218 = vmatprep.subr.bf16.mxu0 %v17487_v35  ;;  %v17527_v44 = vld [vmem:[#allocation11 + $0x6e8] ss:$16 sps:$4 sm:$0xff]   ;;  %v10138_v35 = vld [vmem:[#allocation9] sm:$0xf] }
 0x676   :  { %11096 = vmatpush1.bf16.msra.mxu1 %v17455_v56  ;;  %v17529_v56 = vld [vmem:[#allocation11 + $0x6ec] ss:$16 sps:$4 sm:$0xff]  }
 0x677   :  { %11097 = vmatprep.subr.bf16.mxu1 %v17460_v42  ;;  %11219 = vmatpush1.bf16.msra.mxu0 %v17485_v55  ;;  %v17535_v42 = vld [vmem:[#allocation11 + $0x4] ss:$16 sps:$4 sm:$0xff]  }
 0x678   :  { %11220 = vmatprep.subr.bf16.mxu0 %v17493_v52  ;;  %v19769_v55 = vld [vmem:[#allocation33_spill] sm:$0xff] }
 0x67a   :  { %11098 = vmatpush1.bf16.msra.mxu1 %v17458_v17 }
 0x67b   :  { %11099 = vmatprep.subr.bf16.mxu1 %v17466_v36  ;;  %11221 = vmatpush1.bf16.msra.mxu0 %v17491_v13  ;;  %v10226_v36 = vrot.slane %v10138_v35, %v19769_v55 }
 0x67c   :  { %11222 = vmatprep.subr.bf16.mxu0 %v17499_v32 }
 0x67e   :  { %11100 = vmatpush1.bf16.msra.mxu1 %v17464_v5 }
 0x67f   :  { %11101 = vmatprep.subr.bf16.mxu1 %v17472_v3  ;;  %11223 = vmatpush1.bf16.msra.mxu0 %v17497_v58 }
 0x680   :  { %11224 = vmatprep.subr.bf16.mxu0 %v17505_v6 }
 0x682   :  { %11102 = vmatpush1.bf16.msra.mxu1 %v17470_v15 }
 0x683   :  { %11103 = vmatprep.subr.bf16.mxu1 %v17478_v43  ;;  %11225 = vmatpush1.bf16.msra.mxu0 %v17503_v61 }
 0x684   :  { %11226 = vmatprep.subr.bf16.mxu0 %v17511_v62 }
 0x686   :  { %11104 = vmatpush1.bf16.msra.mxu1 %v17476_v9 }
 0x687   :  { %11105 = vmatprep.subr.bf16.mxu1 %v17484_v59  ;;  %11227 = vmatpush1.bf16.msra.mxu0 %v17509_v7 }
 0x688   :  { %11228 = vmatprep.subr.bf16.mxu0 %v17517_v46 }
 0x68a   :  { %11106 = vmatpush1.bf16.msra.mxu1 %v17482_v57 }
 0x68b   :  { %11107 = vmatprep.subr.bf16.mxu1 %v17490_v38  ;;  %11229 = vmatpush1.bf16.msra.mxu0 %v17515_v8 }
 0x68c   :  { %11230 = vmatprep.subr.bf16.mxu0 %v17523_v50 }
 0x68e   :  { %11108 = vmatpush1.bf16.msra.mxu1 %v17488_v14 }
 0x68f   :  { %11109 = vmatprep.subr.bf16.mxu1 %v17496_v39  ;;  %11231 = vmatpush1.bf16.msra.mxu0 %v17521_v28  ;;  %v19771_v39 = vld [vmem:[#allocation32_spill] sm:$0xff] }
 0x690   :  { %11232 = vmatprep.subr.bf16.mxu0 %v17529_v56 }
 0x692   :  { %11110 = vmatpush1.bf16.msra.mxu1 %v17494_v41 }
 0x693   :  { %11111 = vmatprep.subr.bf16.mxu1 %v17502_v21  ;;  %11233 = vmatpush1.bf16.msra.mxu0 %v17527_v44 }
 0x694   :  { %11829 = vmatprep.subr.bf16.mxu0 %v17535_v42 }
 0x696   :  { %11112 = vmatpush1.bf16.msra.mxu1 %v17500_v63 }
 0x697   :  { %11113 = vmatprep.subr.bf16.mxu1 %v17508_v20 }
 0x69a   :  { %11114 = vmatpush1.bf16.msra.mxu1 %v17506_v30 }
 0x69b   :  { %11115 = vmatprep.subr.bf16.mxu1 %v17514_v19 }
 0x69e   :  { %11116 = vmatpush1.bf16.msra.mxu1 %v17512_v31 }
 0x69f   :  { %11117 = vmatprep.subr.bf16.mxu1 %v17520_v10 }
 0x6a2   :  { %11118 = vmatpush1.bf16.msra.mxu1 %v17518_v27 }
 0x6a3   :  { %11128 = vmatprep.subr.bf16.mxu1 %v17526_v53 }
 0x738   :  { %v9992_v40 = vpop.f32.mrb[12].mxu1 }
 0x739   :  { %v10121_v23 = vpop.f32.mrb[24].mxu0  ;;  %v9994_v54 = vpop.f32.mrb[13].mxu1  ;;  %v10147_v47 = vrot.slane %v9992_v40, 1 }
 0x73a   :  { %v10149_v11 = vrot.slane %v10121_v23, 1  ;;  %v10148_v34 = vrot.slane %v9994_v54, 1  ;;  %v10123_v45 = vpop.f32.mrb[25].mxu0  ;;  %v9996_v24 = vpop.f32.mrb[14].mxu1 }
 0x73b   :  { %v10125_v51 = vpop.f32.mrb[26].mxu0  ;;  %v9998_v25 = vpop.f32.mrb[15].mxu1  ;;  %v10151_v2 = vrot.slane %v9996_v24, 1  ;;  %v10150_v4 = vrot.slane %v10123_v45, 1  ;;  %v19466_v18 = vmax.f32 %v9992_v40, %v10147_v47  ;;  %v19770_v40 = vld [vmem:[#allocation34_spill] sm:$0xff] }
 0x73c   :  { %v10153_v16 = vrot.slane %v10125_v51, 1  ;;  %v10152_v12 = vrot.slane %v9998_v25, 1  ;;  %v10127_v29 = vpop.f32.mrb[27].mxu0  ;;  %v19448_v37 = vmax.f32 %v10121_v23, %v10149_v11  ;;  %v19450_v49 = vmax.f32 %v9994_v54, %v10148_v34 }
 0x73d   :  { %v10154_v33 = vrot.slane %v10127_v29, 1  ;;  %v19464_v1 = vmax.f32 %v9996_v24, %v10151_v2  ;;  %v19474_v26 = vmax.f32 %v10123_v45, %v10150_v4  ;;  %v10222_v23 = vrot.slane %v10138_v35, %v19770_v40 }
 0x73e   :  { %10183 = vrot.lane.b32.xlu1 %v19448_v37, %s18368_s5  ;;  %10181 = vrot.lane.b32.xlu0 %v19450_v49, %s18368_s5  ;;  %v19456_v60 = vmax.f32 %v10125_v51, %v10153_v16  ;;  %v19458_v48 = vmax.f32 %v9998_v25, %v10152_v12  ;;  %v10230_v16 = vrot.slane %v10138_v35, %v19771_v39 }
 0x73f   :  { %v19472_v0 = vmax.f32 %v10127_v29, %v10154_v33  ;;  %v10234_v12 = vrot.slane %v10138_v35, %v19012_v22 }
 0x742   :  { %10191 = vrot.lane.b32.xlu1 %v19456_v60, %s18368_s5  ;;  %10189 = vrot.lane.b32.xlu0 %v19458_v48, %s18368_s5 }
 0x746   :  { %10187 = vrot.lane.b32.xlu1 %v19464_v1, %s18368_s5  ;;  %10179 = vrot.lane.b32.xlu0 %v19466_v18, %s18368_s5 }
 0x74a   :  { %10193 = vrot.lane.b32.xlu1 %v19472_v0, %s18368_s5  ;;  %10185 = vrot.lane.b32.xlu0 %v19474_v26, %s18368_s5  ;;  %s18374_s5 = smov [#allocation17]  }
 0x74b   :  { %s14103_s25 = sshll.u32 %s18374_s5, 4  ;;  %s14104_s25 = int_to_ptr.vmem [resolvable:$true] %s14103_s25 }
 0x74c   :  { %s18323_s26 = scalar_lea.vmem %s14104_s25, 32  ;;  %p18328_p9 = scmp.lt.s32.totalorder %s14104_s25, %s14104_s25 }
 0x74d   :  { %p18324_p8 = scmp.ne.s32.totalorder %s14104_s25, %s18323_s26  ;;  %p18329_p10 = scmp.lt.s32.totalorder %s18323_s26, %s18323_s26 }
 0x74f   :  { %p18330_p11 = por %p18329_p10, %p18328_p9 }
 0x751   :  { %p18331_p12 = pnand %p18330_p11, %p18324_p8 }
 0x7b0   :  { %v10184_v17 = vpop.permute.xlu1 %10183  ;;  %v10182_v5 = vpop.permute.xlu0 %10181 }
 0x7b1   :  { %v10197_v3 = vsel %vm10195_vm7, %v10182_v5, %v10184_v17 }
 0x7b2   :  { %v10211_v15 = vmax.f32 %v19450_v49, %v10197_v3 }
 0x7b4   :  { %v10240_v43 = vadd.f32 %v10226_v36, %v10211_v15  ;;  %v10192_v9 = vpop.permute.xlu1 %10191  ;;  %v10190_v59 = vpop.permute.xlu0 %10189 }
 0x7b5   :  { %v10200_v57 = vsel %vm10195_vm7, %v10190_v59, %v10192_v9 }
 0x7b6   :  { %v10248_v14 = vmax.f32 %v10240_v43, 0.0  ;;  %v10215_v38 = vmax.f32 %v19458_v48, %v10200_v57 }
 0x7b8   :  { %v10256_v13 = vpack.c.bf16 %v10248_v14, %v10248_v14  ;;  %v10244_v52 = vadd.f32 %v10226_v36, %v10215_v38  ;;  %v10188_v54 = vpop.permute.xlu1 %10187  ;;  %v10180_v11 = vpop.permute.xlu0 %10179 }
 0x7b9   :  { %v10199_v34 = vsel %vm10195_vm7, %v10188_v54, %v10190_v59  ;;  %v10196_v45 = vsel %vm10195_vm7, %v10180_v11, %v10182_v5  ;;  %v17524_v54 = vld [vmem:[#allocation11 + $0x580] ss:$16 sps:$4 sm:$0xff]  }
 0x7ba   :  { %v10252_v24 = vmax.f32 %v10244_v52, 0.0  ;;  %v10214_v51 = vmax.f32 %v19464_v1, %v10199_v34  ;;  %v10210_v25 = vmax.f32 %v19466_v18, %v10196_v45  ;;  %v19490_v41 = vunpack.c.l.b16 %v10256_v13  ;;  %v17532_v34 = vld [vmem:[#allocation11 + $0x5a4] ss:$16 sps:$4 sm:$0xff]  }
 0x7bc   :  { %v10260_v29 = vpack.c.bf16 %v10252_v24, %v10252_v24  ;;  %v10243_v49 = vadd.f32 %v10222_v23, %v10214_v51  ;;  %v10239_v58 = vadd.f32 %v10222_v23, %v10210_v25  ;;  %v10194_v32 = vpop.permute.xlu1 %10193  ;;  %v10186_v47 = vpop.permute.xlu0 %10185  ;;  %v10508_v20 = vrot.slane %v19490_v41, 2 }
 0x7bd   :  { %v10201_v2 = vsel %vm10195_vm7, %v10192_v9, %v10194_v32  ;;  %v10217_v48 = vmax.f32 %v19472_v0, %v10194_v32  ;;  %v10198_v63 = vsel %vm10195_vm7, %v10184_v17, %v10186_v47  ;;  %v10213_v21 = vmax.f32 %v19474_v26, %v10186_v47 }
 0x7be   :  { %v19498_v61 = vunpack.c.l.b16 %v10260_v29  ;;  %v10251_v6 = vmax.f32 %v10243_v49, 0.0  ;;  %v10247_v4 = vmax.f32 %v10239_v58, 0.0  ;;  %v10216_v33 = vmax.f32 %v19456_v60, %v10201_v2 }
 0x7bf   :  { %v10246_v1 = vadd.f32 %v10234_v12, %v10217_v48  ;;  %v10212_v18 = vmax.f32 %v19448_v37, %v10198_v63  ;;  %v10242_v30 = vadd.f32 %v10234_v12, %v10213_v21  ;;  %v12109_v57 = vrot.slane %v19490_v41, 4  ;;  %v17530_v48 = vld [vmem:[#allocation11 + $0x5a0] ss:$16 sps:$4 sm:$0xff]  }
 0x7c0   :  { %v10259_v7 = vpack.c.bf16 %v10251_v6, %v10251_v6  ;;  %v10255_v62 = vpack.c.bf16 %v10247_v4, %v10247_v4  ;;  %v10245_v19 = vadd.f32 %v10230_v16, %v10216_v33  ;;  %v10509_v0 = vrot.slane %v19498_v61, 1  ;;  %v17533_v63 = vld [vmem:[#allocation11] ss:$16 sps:$4 sm:$0xff]  }
 0x7c1   :  { %v10254_v46 = vmax.f32 %v10246_v1, 0.0  ;;  %v10241_v31 = vadd.f32 %v10230_v16, %v10212_v18  ;;  %v10250_v26 = vmax.f32 %v10242_v30, 0.0  ;;  %v11253_v15 = vrot.slane %v19498_v61, 7  ;;  %v17538_v1 = vld [vmem:[#allocation11 + $0x5c4] ss:$16 sps:$4 sm:$0xff]  }
 0x7c2   :  { %v19504_v8 = vunpack.c.l.b16 %v10259_v7  ;;  %v19506_v10 = vunpack.c.l.b16 %v10255_v62  ;;  %v10253_v50 = vmax.f32 %v10245_v19, 0.0  ;;  %v10510_v60 = vsel %vm10506_vm8, %v10509_v0, %v10508_v20  ;;  %v17541_v30 = vld [vmem:[#allocation11 + $0x24] ss:$16 sps:$4 sm:$0xff]  }
 0x7c3   :  { %v10262_v27 = vpack.c.bf16 %v10254_v46, %v10254_v46  ;;  %v10249_v37 = vmax.f32 %v10241_v31, 0.0  ;;  %v10258_v28 = vpack.c.bf16 %v10250_v26, %v10250_v26  ;;  %v19509_v53 = vpack.c.b16 %v10510_v60, %v10510_v60  ;;  %v17536_v26 = vld [vmem:[#allocation11 + $0x5c0] ss:$16 sps:$4 sm:$0xff]  }
 0x7c4   :  { %v10261_v56 = vpack.c.bf16 %v10253_v50, %v10253_v50  ;;  %v10504_v44 = vrot.slane %v19506_v10, 2  ;;  %v10505_v42 = vrot.slane %v19504_v8, 1  ;;  %v11251_v43 = vrot.slane %v19504_v8, 7  ;;  %v17539_v50 = vld [vmem:[#allocation11 + $0x20] ss:$16 sps:$4 sm:$0xff]  }
 0x7c5   :  { %v10503_v35 = vunpack.c.l.b16 %v10262_v27  ;;  %v10257_v17 = vpack.c.bf16 %v10249_v37, %v10249_v37  ;;  %v10499_v36 = vunpack.c.l.b16 %v10258_v28  ;;  %11119 = vmatprep.mubr.bf16.mxu1 %v19509_v53  ;;  %v12110_v14 = vrot.slane %v19498_v61, 3 }
 0x7c6   :  { %v19514_v5 = vunpack.c.l.b16 %v10261_v56  ;;  %v10507_v3 = vsel %vm10506_vm8, %v10505_v42, %v10504_v44  ;;  %v19526_v24 = vsel %vm10506_vm8, %v11251_v43, %v19506_v10  ;;  %v11254_v29 = vsel %vm10506_vm8, %v11253_v15, %v19490_v41  ;;  %v17545_v42 = vld [vmem:[#allocation11 + $0x40] ss:$16 sps:$4 sm:$0xff]   ;;  %v17556_v43 = vld [vmem:[#allocation11 + $0x624] ss:$16 sps:$4 sm:$0xff]  }
 0x7c7   :  { %v10515_v9 = vrot.slane %v10503_v35, 1  ;;  %v11257_v59 = vrot.slane %v10503_v35, 7  ;;  %v12116_v38 = vrot.slane %v10503_v35, 3  ;;  %v10498_v13 = vunpack.c.l.b16 %v10257_v17  ;;  %v17550_v17 = vld [vmem:[#allocation11 + $0x604] ss:$16 sps:$4 sm:$0xff]  }
 0x7c8   :  { %v10514_v52 = vrot.slane %v10499_v36, 2  ;;  %v12115_v23 = vrot.slane %v10499_v36, 4  ;;  %v19521_v11 = vpack.c.b16 %v10507_v3, %v10507_v3  ;;  %v10512_v45 = vrot.slane %v19514_v5, 1  ;;  %v17548_v3 = vld [vmem:[#allocation11 + $0x600] ss:$16 sps:$4 sm:$0xff]  }
 0x7c9   :  { %v19529_v51 = vsel %vm10506_vm8, %v11257_v59, %v10499_v36  ;;  %v12979_v25 = vrot.slane %v10503_v35, 5  ;;  %v10511_v12 = vrot.slane %v10498_v13, 2  ;;  %v11255_v58 = vrot.slane %v19514_v5, 7  ;;  %v17551_v15 = vld [vmem:[#allocation11 + $0x60] ss:$16 sps:$4 sm:$0xff]  }
 0x7ca   :  { %v10516_v16 = vsel %vm10506_vm8, %v10515_v9, %v10514_v52  ;;  %11120 = vmatmul.mubr.bf16.vlgmr.msra.gmra.mrb[16].mxu1 %v19521_v11  ;;  %v19537_v32 = vsel %vm10506_vm8, %v12110_v14, %v12109_v57  ;;  %v12106_v47 = vrot.slane %v19506_v10, 4  ;;  %v12978_v2 = vrot.slane %v10499_v36, 6  ;;  %v17553_v36 = vld [vmem:[#allocation11 + $0x64] ss:$16 sps:$4 sm:$0xff]   ;;  %v17557_v59 = vld [vmem:[#allocation11 + $0x80] ss:$16 sps:$4 sm:$0xff]  }
 0x7cb   :  { %v10520_v49 = vpack.c.b16 %v10516_v16, %v10516_v16  ;;  %11129 = vmatpush1.bf16.msra.mxu1 %v17524_v54  ;;  %v10513_v21 = vsel %vm10506_vm8, %v10512_v45, %v10511_v12  ;;  %v12107_v6 = vrot.slane %v19504_v8, 3  ;;  %v19543_v4 = vsel %vm10506_vm8, %v12116_v38, %v12115_v23  ;;  %v17559_v9 = vld [vmem:[#allocation11 + $0x84] ss:$16 sps:$4 sm:$0xff]   ;;  %v17560_v38 = vld [vmem:[#allocation11 + $0x640] ss:$16 sps:$4 sm:$0xff]  }
 0x7cc   :  { %11130 = vmatprep.subr.bf16.mxu1 %v17532_v34  ;;  %v19546_v33 = vpack.c.b16 %v10513_v21, %v10513_v21  ;;  %v19549_v18 = vsel %vm10506_vm8, %v11255_v58, %v10498_v13  ;;  %v12112_v7 = vrot.slane %v10498_v13, 4  ;;  %v12113_v62 = vrot.slane %v19514_v5, 3  ;;  %v17562_v57 = vld [vmem:[#allocation11 + $0x644] ss:$16 sps:$4 sm:$0xff]   ;;  %v17566_v54 = vld [vmem:[#allocation11 + $0x660] ss:$16 sps:$4 sm:$0xff]  }
 0x7cd   :  { %15278 = vmatprep.mubr.msk.bf16.mxu1 %vm10195_vm7, %v10520_v49  ;;  %15279 = vmatprep.mubr.msk.bf16.mxu0 %vm10195_vm7, %v10520_v49  ;;  %v19553_v20 = vsel %vm10506_vm8, %v12107_v6, %v12106_v47  ;;  %v19557_v19 = vpack.c.b16 %v11254_v29, %v11254_v29  ;;  %v12972_v0 = vrot.slane %v19490_v41, 6  ;;  %v12973_v46 = vrot.slane %v19498_v61, 5  ;;  %v17544_v41 = vld [vmem:[#allocation11 + $0x5e4] ss:$16 sps:$4 sm:$0xff]   ;;  %v17569_v34 = vld [vmem:[#allocation11 + $0xc0] ss:$16 sps:$4 sm:$0xff]  }
 0x7ce   :  { %11243 = vmatmul.mubr.bf16.vlgmr.msra.gmra.mrb[28].mxu0 %v19546_v33  ;;  %v12969_v31 = vrot.slane %v19506_v10, 6  ;;  %v19563_v60 = vsel %vm10506_vm8, %v12113_v62, %v12112_v7  ;;  %v12970_v27 = vrot.slane %v19504_v8, 5  ;;  %v19567_v37 = vsel %vm10506_vm8, %v12979_v25, %v12978_v2  ;;  %v17547_v61 = vld [vmem:[#allocation11 + $0x44] ss:$16 sps:$4 sm:$0xff]   ;;  %v17542_v8 = vld [vmem:[#allocation11 + $0x5e0] ss:$16 sps:$4 sm:$0xff]  }
 0x7cf   :  { %11131 = vmatpush1.bf16.msra.mxu1 %v17530_v48  ;;  %11830 = vmatpush1.bf16.msra.mxu0 %v17533_v63  ;;  %v12975_v28 = vrot.slane %v10498_v13, 6  ;;  %v19571_v10 = vsel %vm10506_vm8, %v12973_v46, %v12972_v0  ;;  %v12976_v44 = vrot.slane %v19514_v5, 5  ;;  %v17554_v5 = vld [vmem:[#allocation11 + $0x620] ss:$16 sps:$4 sm:$0xff]   ;;  %v17565_v14 = vld [vmem:[#allocation11 + $0xa4] ss:$16 sps:$4 sm:$0xff]  }
 0x7d0   :  { %11861 = vmatprep.mubr.bf16.mxu0 %v19557_v19  ;;  %11132 = vmatprep.subr.bf16.mxu1 %v17538_v1  ;;  %v19574_v56 = vsel %vm10506_vm8, %v12970_v27, %v12969_v31  ;;  %v17563_v13 = vld [vmem:[#allocation11 + $0xa0] ss:$16 sps:$4 sm:$0xff]   ;;  %v17568_v52 = vld [vmem:[#allocation11 + $0x664] ss:$16 sps:$4 sm:$0xff]   ;;  %v17598_v62 = vld [vmem:[#allocation11 + $0x38c] ss:$16 sps:$4 sm:$0xff]  }
 0x7d1   :  { %11831 = vmatprep.subr.bf16.mxu0 %v17541_v30  ;;  %v19578_v35 = vsel %vm10506_vm8, %v12976_v44, %v12975_v28  ;;  %v17571_v23 = vld [vmem:[#allocation11 + $0xc4] ss:$16 sps:$4 sm:$0xff]   ;;  %v17572_v16 = vld [vmem:[#allocation11 + $0x680] ss:$16 sps:$4 sm:$0xff]   ;;  %v17596_v46 = vld [vmem:[#allocation11 + $0x388] ss:$16 sps:$4 sm:$0xff]  }
 0x7d2   :  { %v17574_v45 = vld [vmem:[#allocation11 + $0x684] ss:$16 sps:$4 sm:$0xff]   ;;  %v17575_v12 = vld [vmem:[#allocation11 + $0xe0] ss:$16 sps:$4 sm:$0xff]   ;;  %v17602_v27 = vld [vmem:[#allocation11 + $0x3a8] ss:$16 sps:$4 sm:$0xff]  }
 0x7d3   :  { %11133 = vmatpush1.bf16.msra.mxu1 %v17536_v26  ;;  %11832 = vmatpush1.bf16.msra.mxu0 %v17539_v50  ;;  %v17577_v25 = vld [vmem:[#allocation11 + $0xe4] ss:$16 sps:$4 sm:$0xff]   ;;  %v17578_v58 = vld [vmem:[#allocation11 + $0x6a0] ss:$16 sps:$4 sm:$0xff]   ;;  %v17604_v26 = vld [vmem:[#allocation11 + $0x3ac] ss:$16 sps:$4 sm:$0xff]  }
 0x7d4   :  { %11134 = vmatprep.subr.bf16.mxu1 %v17544_v41  ;;  %11833 = vmatprep.subr.bf16.mxu0 %v17547_v61  ;;  %v17580_v29 = vld [vmem:[#allocation11 + $0x6a4] ss:$16 sps:$4 sm:$0xff]   ;;  %v17581_v47 = vld [vmem:[#allocation11 + $0x100] ss:$16 sps:$4 sm:$0xff]   ;;  %v17610_v41 = vld [vmem:[#allocation11 + $0x3cc] ss:$16 sps:$4 sm:$0xff]  }
 0x7d5   :  { %v17583_v49 = vld [vmem:[#allocation11 + $0x104] ss:$16 sps:$4 sm:$0xff]   ;;  %v17584_v63 = vld [vmem:[#allocation11 + $0x6c0] ss:$16 sps:$4 sm:$0xff]   ;;  %v17608_v44 = vld [vmem:[#allocation11 + $0x3c8] ss:$16 sps:$4 sm:$0xff]  }
 0x7d6   :  { %v17586_v2 = vld [vmem:[#allocation11 + $0x6c4] ss:$16 sps:$4 sm:$0xff]   ;;  %v17587_v21 = vld [vmem:[#allocation11 + $0x120] ss:$16 sps:$4 sm:$0xff]  }
 0x7d7   :  { %11135 = vmatpush1.bf16.msra.mxu1 %v17542_v8  ;;  %11834 = vmatpush1.bf16.msra.mxu0 %v17545_v42  ;;  %v17589_v48 = vld [vmem:[#allocation11 + $0x124] ss:$16 sps:$4 sm:$0xff]   ;;  %v17590_v30 = vld [vmem:[#allocation11 + $0x6e0] ss:$16 sps:$4 sm:$0xff]   ;;  %v17616_v42 = vld [vmem:[#allocation11 + $0x3ec] ss:$16 sps:$4 sm:$0xff]  }
 0x7d8   :  { %11136 = vmatprep.subr.bf16.mxu1 %v17550_v17  ;;  %11835 = vmatprep.subr.bf16.mxu0 %v17553_v36  ;;  %v17592_v6 = vld [vmem:[#allocation11 + $0x6e4] ss:$16 sps:$4 sm:$0xff]   ;;  %v17593_v7 = vld [vmem:[#allocation11 + $0x140] ss:$16 sps:$4 sm:$0xff]   ;;  %v17622_v36 = vld [vmem:[#allocation11 + $0x40c] ss:$16 sps:$4 sm:$0xff]  }
 0x7d9   :  { %v17595_v1 = vld [vmem:[#allocation11 + $0x144] ss:$16 sps:$4 sm:$0xff]   ;;  %v17599_v31 = vld [vmem:[#allocation11 + $0x160] ss:$16 sps:$4 sm:$0xff]  }
 0x7da   :  { %v17601_v0 = vld [vmem:[#allocation11 + $0x164] ss:$16 sps:$4 sm:$0xff]   ;;  %v17605_v28 = vld [vmem:[#allocation11 + $0x180] ss:$16 sps:$4 sm:$0xff]  }
 0x7db   :  { %11137 = vmatpush1.bf16.msra.mxu1 %v17548_v3  ;;  %11836 = vmatpush1.bf16.msra.mxu0 %v17551_v15  ;;  %v17607_v50 = vld [vmem:[#allocation11 + $0x184] ss:$16 sps:$4 sm:$0xff]   ;;  %v17611_v8 = vld [vmem:[#allocation11 + $0x1a0] ss:$16 sps:$4 sm:$0xff]   ;;  %v17620_v15 = vld [vmem:[#allocation11 + $0x408] ss:$16 sps:$4 sm:$0xff]  }
 0x7dc   :  { %11138 = vmatprep.subr.bf16.mxu1 %v17556_v43  ;;  %11837 = vmatprep.subr.bf16.mxu0 %v17559_v9  ;;  %v17613_v61 = vld [vmem:[#allocation11 + $0x1a4] ss:$16 sps:$4 sm:$0xff]   ;;  %v17623_v43 = vld [vmem:[#allocation11 + $0x1e0] ss:$16 sps:$4 sm:$0xff]   ;;  %v17628_v9 = vld [vmem:[#allocation11 + $0x42c] ss:$16 sps:$4 sm:$0xff]  }
 0x7dd   :  { %v17619_v17 = vld [vmem:[#allocation11 + $0x1c4] ss:$16 sps:$4 sm:$0xff]  }
 0x7de   :  { %v17625_v3 = vld [vmem:[#allocation11 + $0x1e4] ss:$16 sps:$4 sm:$0xff]  }
 0x7df   :  { %11139 = vmatpush1.bf16.msra.mxu1 %v17554_v5  ;;  %11838 = vmatpush1.bf16.msra.mxu0 %v17557_v59  ;;  %v17631_v5 = vld [vmem:[#allocation11 + $0x20c] ss:$16 sps:$4 sm:$0xff]   ;;  %v17626_v59 = vld [vmem:[#allocation11 + $0x428] ss:$16 sps:$4 sm:$0xff]  }
 0x7e0   :  { %11140 = vmatprep.subr.bf16.mxu1 %v17562_v57  ;;  %11839 = vmatprep.subr.bf16.mxu0 %v17565_v14  ;;  %v17629_v57 = vld [vmem:[#allocation11 + $0x208] ss:$16 sps:$4 sm:$0xff]   ;;  %v19584_v14 = vpack.c.b16 %v19526_v24, %v19526_v24  ;;  %v17643_v24 = vld [vmem:[#allocation11 + $0x24c] ss:$16 sps:$4 sm:$0xff]  }
 0x7e3   :  { %11141 = vmatpush1.bf16.msra.mxu1 %v17560_v38  ;;  %11840 = vmatpush1.bf16.msra.mxu0 %v17563_v13  ;;  %v17634_v38 = vld [vmem:[#allocation11 + $0x44c] ss:$16 sps:$4 sm:$0xff]  }
 0x7e4   :  { %11142 = vmatprep.subr.bf16.mxu1 %v17568_v52  ;;  %11841 = vmatprep.subr.bf16.mxu0 %v17571_v23  ;;  %v17637_v13 = vld [vmem:[#allocation11 + $0x22c] ss:$16 sps:$4 sm:$0xff]   ;;  %v19588_v52 = vpack.c.b16 %v19529_v51, %v19529_v51  ;;  %v17632_v23 = vld [vmem:[#allocation11 + $0x448] ss:$16 sps:$4 sm:$0xff]  }
 0x7e5   :  { %v17646_v51 = vld [vmem:[#allocation11 + $0x48c] ss:$16 sps:$4 sm:$0xff]  }
 0x7e7   :  { %11143 = vmatpush1.bf16.msra.mxu1 %v17566_v54  ;;  %11842 = vmatpush1.bf16.msra.mxu0 %v17569_v34  ;;  %v17635_v54 = vld [vmem:[#allocation11 + $0x228] ss:$16 sps:$4 sm:$0xff]   ;;  %v17640_v34 = vld [vmem:[#allocation11 + $0x46c] ss:$16 sps:$4 sm:$0xff]  }
 0x7e8   :  { %11144 = vmatprep.subr.bf16.mxu1 %v17574_v45  ;;  %11843 = vmatprep.subr.bf16.mxu0 %v17577_v25  ;;  %v17638_v45 = vld [vmem:[#allocation11 + $0x468] ss:$16 sps:$4 sm:$0xff]  }
 0x7e9   :  { %v17641_v25 = vld [vmem:[#allocation11 + $0x248] ss:$16 sps:$4 sm:$0xff]  }
 0x7eb   :  { %11145 = vmatpush1.bf16.msra.mxu1 %v17572_v16  ;;  %11844 = vmatpush1.bf16.msra.mxu0 %v17575_v12  ;;  %v17649_v16 = vld [vmem:[#allocation11 + $0x26c] ss:$16 sps:$4 sm:$0xff]   ;;  %v17644_v12 = vld [vmem:[#allocation11 + $0x488] ss:$16 sps:$4 sm:$0xff]  }
 0x7ec   :  { %11146 = vmatprep.subr.bf16.mxu1 %v17580_v29  ;;  %11845 = vmatprep.subr.bf16.mxu0 %v17583_v49  ;;  %v17647_v29 = vld [vmem:[#allocation11 + $0x268] ss:$16 sps:$4 sm:$0xff]   ;;  %v17652_v49 = vld [vmem:[#allocation11 + $0x4ac] ss:$16 sps:$4 sm:$0xff]  }
 0x7ef   :  { %11147 = vmatpush1.bf16.msra.mxu1 %v17578_v58  ;;  %11846 = vmatpush1.bf16.msra.mxu0 %v17581_v47  ;;  %v17655_v58 = vld [vmem:[#allocation11 + $0x28c] ss:$16 sps:$4 sm:$0xff]   ;;  %v17650_v47 = vld [vmem:[#allocation11 + $0x4a8] ss:$16 sps:$4 sm:$0xff]  }
 0x7f0   :  { %11148 = vmatprep.subr.bf16.mxu1 %v17586_v2  ;;  %11847 = vmatprep.subr.bf16.mxu0 %v17589_v48  ;;  %v17653_v2 = vld [vmem:[#allocation11 + $0x288] ss:$16 sps:$4 sm:$0xff]   ;;  %v17658_v48 = vld [vmem:[#allocation11 + $0x4cc] ss:$16 sps:$4 sm:$0xff]  }
 0x7f3   :  { %11149 = vmatpush1.bf16.msra.mxu1 %v17584_v63  ;;  %11848 = vmatpush1.bf16.msra.mxu0 %v17587_v21  ;;  %v17661_v63 = vld [vmem:[#allocation11 + $0x2ac] ss:$16 sps:$4 sm:$0xff]   ;;  %v17656_v21 = vld [vmem:[#allocation11 + $0x4c8] ss:$16 sps:$4 sm:$0xff]  }
 0x7f4   :  { %11150 = vmatprep.subr.bf16.mxu1 %v17592_v6  ;;  %11849 = vmatprep.subr.bf16.mxu0 %v17595_v1  ;;  %v17659_v6 = vld [vmem:[#allocation11 + $0x2a8] ss:$16 sps:$4 sm:$0xff]   ;;  %v17664_v1 = vld [vmem:[#allocation11 + $0x4ec] ss:$16 sps:$4 sm:$0xff]  }
 0x7f7   :  { %11151 = vmatpush1.bf16.msra.mxu1 %v17590_v30  ;;  %11850 = vmatpush1.bf16.msra.mxu0 %v17593_v7  ;;  %v17667_v30 = vld [vmem:[#allocation11 + $0x2cc] ss:$16 sps:$4 sm:$0xff]   ;;  %v17662_v7 = vld [vmem:[#allocation11 + $0x4e8] ss:$16 sps:$4 sm:$0xff]  }
 0x7f8   :  { %11169 = vmatprep.subr.bf16.mxu1 %v17598_v62  ;;  %11851 = vmatprep.subr.bf16.mxu0 %v17601_v0  ;;  %v17665_v62 = vld [vmem:[#allocation11 + $0x2c8] ss:$16 sps:$4 sm:$0xff]   ;;  %v17670_v0 = vld [vmem:[#allocation11 + $0x50c] ss:$16 sps:$4 sm:$0xff]  }
 0x7fa   :  { %11161 = vmatmul.mubr.bf16.vlgmr.msra.gmra.mrb[20].mxu1 %v19546_v33  ;;  %v17614_v33 = vld [vmem:[#allocation11 + $0x3e8] ss:$16 sps:$4 sm:$0xff]  }
 0x7fb   :  { %11170 = vmatpush1.bf16.msra.mxu1 %v17596_v46  ;;  %11201 = vmatprep.mubr.bf16.mxu1 %v19509_v53  ;;  %v17617_v53 = vld [vmem:[#allocation11 + $0x1c0] ss:$16 sps:$4 sm:$0xff]   ;;  %v17673_v46 = vld [vmem:[#allocation11 + $0x2ec] ss:$16 sps:$4 sm:$0xff]  }
 0x7fc   :  { %11852 = vmatpush1.bf16.msra.mxu0 %v17599_v31  ;;  %11171 = vmatprep.subr.bf16.mxu1 %v17604_v26  ;;  %v17668_v31 = vld [vmem:[#allocation11 + $0x508] ss:$16 sps:$4 sm:$0xff]  }
 0x7fd   :  { %11853 = vmatprep.subr.bf16.mxu0 %v17607_v50  ;;  %v17671_v26 = vld [vmem:[#allocation11 + $0x2e8] ss:$16 sps:$4 sm:$0xff]   ;;  %v17676_v50 = vld [vmem:[#allocation11 + $0x52c] ss:$16 sps:$4 sm:$0xff]  }
 0x7ff   :  { %11172 = vmatpush1.bf16.msra.mxu1 %v17602_v27  ;;  %v17679_v27 = vld [vmem:[#allocation11 + $0x30c] ss:$16 sps:$4 sm:$0xff]  }
 0x800   :  { %11854 = vmatpush1.bf16.msra.mxu0 %v17605_v28  ;;  %11173 = vmatprep.subr.bf16.mxu1 %v17610_v41  ;;  %v17674_v28 = vld [vmem:[#allocation11 + $0x528] ss:$16 sps:$4 sm:$0xff]  }
 0x801   :  { %11855 = vmatprep.subr.bf16.mxu0 %v17613_v61  ;;  %v17677_v41 = vld [vmem:[#allocation11 + $0x308] ss:$16 sps:$4 sm:$0xff]   ;;  %v17682_v61 = vld [vmem:[#allocation11 + $0x54c] ss:$16 sps:$4 sm:$0xff]  }
 0x803   :  { %11174 = vmatpush1.bf16.msra.mxu1 %v17608_v44  ;;  %v17685_v44 = vld [vmem:[#allocation11 + $0x32c] ss:$16 sps:$4 sm:$0xff]  }
 0x804   :  { %11856 = vmatpush1.bf16.msra.mxu0 %v17611_v8  ;;  %11175 = vmatprep.subr.bf16.mxu1 %v17616_v42  ;;  %v17680_v8 = vld [vmem:[#allocation11 + $0x548] ss:$16 sps:$4 sm:$0xff]  }
 0x805   :  { %11857 = vmatprep.subr.bf16.mxu0 %v17619_v17  ;;  %v17683_v42 = vld [vmem:[#allocation11 + $0x328] ss:$16 sps:$4 sm:$0xff]   ;;  %v17688_v17 = vld [vmem:[#allocation11 + $0x56c] ss:$16 sps:$4 sm:$0xff]  }
 0x807   :  { %11176 = vmatpush1.bf16.msra.mxu1 %v17614_v33  ;;  %v17691_v33 = vld [vmem:[#allocation11 + $0x34c] ss:$16 sps:$4 sm:$0xff]  }
 0x808   :  { %11858 = vmatpush1.bf16.msra.mxu0 %v17617_v53  ;;  %11177 = vmatprep.subr.bf16.mxu1 %v17622_v36  ;;  %v17686_v53 = vld [vmem:[#allocation11 + $0x568] ss:$16 sps:$4 sm:$0xff]  }
 0x809   :  { %11859 = vmatprep.subr.bf16.mxu0 %v17625_v3  ;;  %v17689_v36 = vld [vmem:[#allocation11 + $0x348] ss:$16 sps:$4 sm:$0xff]   ;;  %v17694_v3 = vld [vmem:[#allocation11 + $0x204] ss:$16 sps:$4 sm:$0xff]  }
 0x80b   :  { %11178 = vmatpush1.bf16.msra.mxu1 %v17620_v15  ;;  %v17697_v15 = vld [vmem:[#allocation11 + $0x36c] ss:$16 sps:$4 sm:$0xff]  }
 0x80c   :  { %11860 = vmatpush1.bf16.msra.mxu0 %v17623_v43  ;;  %11179 = vmatprep.subr.bf16.mxu1 %v17628_v9  ;;  %v17692_v43 = vld [vmem:[#allocation11 + $0x200] ss:$16 sps:$4 sm:$0xff]   ;;  %v17695_v9 = vld [vmem:[#allocation11 + $0x368] ss:$16 sps:$4 sm:$0xff]  }
 0x80d   :  { %11952 = vmatprep.subr.bf16.mxu0 %v17631_v5  ;;  %v17700_v5 = vld [vmem:[#allocation11 + $0x224] ss:$16 sps:$4 sm:$0xff]  }
 0x80f   :  { %11862 = vmatmul.mubr.bf16.vlgmr.msra.gmra.mrb[32].mxu0 %v19584_v14  ;;  %11180 = vmatpush1.bf16.msra.mxu1 %v17626_v59  ;;  %v17703_v59 = vld [vmem:[#allocation11 + $0x704] ss:$16 sps:$4 sm:$0xff]  }
 0x810   :  { %11953 = vmatpush1.bf16.msra.mxu0 %v17629_v57  ;;  %15393 = vmatprep.mubr.msk.bf16.mxu0 %vm10195_vm7, %v19588_v52  ;;  %v17698_v57 = vld [vmem:[#allocation11 + $0x220] ss:$16 sps:$4 sm:$0xff]  }
 0x811   :  { %11181 = vmatprep.subr.bf16.mxu1 %v17634_v38  ;;  %11954 = vmatprep.subr.bf16.mxu0 %v17637_v13  ;;  %v17701_v38 = vld [vmem:[#allocation11 + $0x700] ss:$16 sps:$4 sm:$0xff]   ;;  %v19598_v13 = vpack.c.b16 %v19549_v18, %v19549_v18  ;;  %v17715_v18 = vld [vmem:[#allocation11 + $0x744] ss:$16 sps:$4 sm:$0xff]  }
 0x813   :  { %11182 = vmatpush1.bf16.msra.mxu1 %v17632_v23  ;;  %v17706_v23 = vld [vmem:[#allocation11 + $0x244] ss:$16 sps:$4 sm:$0xff]  }
 0x814   :  { %11955 = vmatpush1.bf16.msra.mxu0 %v17635_v54  ;;  %11183 = vmatprep.subr.bf16.mxu1 %v17640_v34  ;;  %v17709_v54 = vld [vmem:[#allocation11 + $0x724] ss:$16 sps:$4 sm:$0xff]   ;;  %v19602_v34 = vpack.c.b16 %v19537_v32, %v19537_v32 }
 0x815   :  { %11956 = vmatprep.subr.bf16.mxu0 %v17643_v24  ;;  %v17712_v24 = vld [vmem:[#allocation11 + $0x264] ss:$16 sps:$4 sm:$0xff]  }
 0x816   :  { %v17721_v32 = vld [vmem:[#allocation11 + $0x764] ss:$16 sps:$4 sm:$0xff]  }
 0x817   :  { %11184 = vmatpush1.bf16.msra.mxu1 %v17638_v45  ;;  %v17710_v45 = vld [vmem:[#allocation11 + $0x260] ss:$16 sps:$4 sm:$0xff]  }
 0x818   :  { %11957 = vmatpush1.bf16.msra.mxu0 %v17641_v25  ;;  %11185 = vmatprep.subr.bf16.mxu1 %v17646_v51  ;;  %v17713_v25 = vld [vmem:[#allocation11 + $0x740] ss:$16 sps:$4 sm:$0xff]   ;;  %v17718_v51 = vld [vmem:[#allocation11 + $0x284] ss:$16 sps:$4 sm:$0xff]  }
 0x819   :  { %11958 = vmatprep.subr.bf16.mxu0 %v17649_v16  ;;  %v17716_v16 = vld [vmem:[#allocation11 + $0x280] ss:$16 sps:$4 sm:$0xff]  }
 0x81b   :  { %11186 = vmatpush1.bf16.msra.mxu1 %v17644_v12  ;;  %v17719_v12 = vld [vmem:[#allocation11 + $0x760] ss:$16 sps:$4 sm:$0xff]  }
 0x81c   :  { %11959 = vmatpush1.bf16.msra.mxu0 %v17647_v29  ;;  %11187 = vmatprep.subr.bf16.mxu1 %v17652_v49  ;;  %v17724_v29 = vld [vmem:[#allocation11 + $0x2a4] ss:$16 sps:$4 sm:$0xff]  }
 0x81d   :  { %11960 = vmatprep.subr.bf16.mxu0 %v17655_v58  ;;  %v17727_v49 = vld [vmem:[#allocation11 + $0x784] ss:$16 sps:$4 sm:$0xff]   ;;  %v17722_v58 = vld [vmem:[#allocation11 + $0x2a0] ss:$16 sps:$4 sm:$0xff]  }
 0x81f   :  { %11188 = vmatpush1.bf16.msra.mxu1 %v17650_v47  ;;  %v17725_v47 = vld [vmem:[#allocation11 + $0x780] ss:$16 sps:$4 sm:$0xff]  }
 0x820   :  { %11961 = vmatpush1.bf16.msra.mxu0 %v17653_v2  ;;  %11189 = vmatprep.subr.bf16.mxu1 %v17658_v48  ;;  %v17730_v2 = vld [vmem:[#allocation11 + $0x2c4] ss:$16 sps:$4 sm:$0xff]  }
 0x821   :  { %11962 = vmatprep.subr.bf16.mxu0 %v17661_v63  ;;  %v17733_v48 = vld [vmem:[#allocation11 + $0x7a4] ss:$16 sps:$4 sm:$0xff]   ;;  %v17728_v63 = vld [vmem:[#allocation11 + $0x2c0] ss:$16 sps:$4 sm:$0xff]  }
 0x823   :  { %11190 = vmatpush1.bf16.msra.mxu1 %v17656_v21  ;;  %v17731_v21 = vld [vmem:[#allocation11 + $0x7a0] ss:$16 sps:$4 sm:$0xff]  }
 0x824   :  { %11963 = vmatpush1.bf16.msra.mxu0 %v17659_v6  ;;  %11191 = vmatprep.subr.bf16.mxu1 %v17664_v1  ;;  %v17736_v6 = vld [vmem:[#allocation11 + $0x2e4] ss:$16 sps:$4 sm:$0xff]  }
 0x825   :  { %11964 = vmatprep.subr.bf16.mxu0 %v17667_v30  ;;  %v17739_v1 = vld [vmem:[#allocation11 + $0x7c4] ss:$16 sps:$4 sm:$0xff]   ;;  %v17734_v30 = vld [vmem:[#allocation11 + $0x2e0] ss:$16 sps:$4 sm:$0xff]  }
 0x827   :  { %11192 = vmatpush1.bf16.msra.mxu1 %v17662_v7  ;;  %v17737_v7 = vld [vmem:[#allocation11 + $0x7c0] ss:$16 sps:$4 sm:$0xff]  }
 0x828   :  { %11965 = vmatpush1.bf16.msra.mxu0 %v17665_v62  ;;  %11193 = vmatprep.subr.bf16.mxu1 %v17670_v0  ;;  %v17742_v62 = vld [vmem:[#allocation11 + $0x304] ss:$16 sps:$4 sm:$0xff]  }
 0x829   :  { %11966 = vmatprep.subr.bf16.mxu0 %v17673_v46  ;;  %v17745_v0 = vld [vmem:[#allocation11 + $0x7e4] ss:$16 sps:$4 sm:$0xff]   ;;  %v17740_v46 = vld [vmem:[#allocation11 + $0x300] ss:$16 sps:$4 sm:$0xff]  }
 0x82b   :  { %11194 = vmatpush1.bf16.msra.mxu1 %v17668_v31  ;;  %v17743_v31 = vld [vmem:[#allocation11 + $0x7e0] ss:$16 sps:$4 sm:$0xff]  }
 0x82c   :  { %11967 = vmatpush1.bf16.msra.mxu0 %v17671_v26  ;;  %11195 = vmatprep.subr.bf16.mxu1 %v17676_v50  ;;  %v17748_v26 = vld [vmem:[#allocation11 + $0x324] ss:$16 sps:$4 sm:$0xff]  }
 0x82d   :  { %11968 = vmatprep.subr.bf16.mxu0 %v17679_v27  ;;  %v17751_v50 = vld [vmem:[#allocation11 + $0x804] ss:$16 sps:$4 sm:$0xff]   ;;  %v17746_v27 = vld [vmem:[#allocation11 + $0x320] ss:$16 sps:$4 sm:$0xff]  }
 0x82f   :  { %11196 = vmatpush1.bf16.msra.mxu1 %v17674_v28  ;;  %v17749_v28 = vld [vmem:[#allocation11 + $0x800] ss:$16 sps:$4 sm:$0xff]  }
 0x830   :  { %11969 = vmatpush1.bf16.msra.mxu0 %v17677_v41  ;;  %11197 = vmatprep.subr.bf16.mxu1 %v17682_v61  ;;  %v17754_v41 = vld [vmem:[#allocation11 + $0x344] ss:$16 sps:$4 sm:$0xff]  }
 0x831   :  { %11970 = vmatprep.subr.bf16.mxu0 %v17685_v44  ;;  %v17757_v61 = vld [vmem:[#allocation11 + $0x824] ss:$16 sps:$4 sm:$0xff]   ;;  %v17752_v44 = vld [vmem:[#allocation11 + $0x340] ss:$16 sps:$4 sm:$0xff]  }
 0x833   :  { %11198 = vmatpush1.bf16.msra.mxu1 %v17680_v8  ;;  %v17755_v8 = vld [vmem:[#allocation11 + $0x820] ss:$16 sps:$4 sm:$0xff]  }
 0x834   :  { %11971 = vmatpush1.bf16.msra.mxu0 %v17683_v42  ;;  %11199 = vmatprep.subr.bf16.mxu1 %v17688_v17  ;;  %v17760_v42 = vld [vmem:[#allocation11 + $0x364] ss:$16 sps:$4 sm:$0xff]  }
 0x835   :  { %11972 = vmatprep.subr.bf16.mxu0 %v17691_v33  ;;  %v17763_v17 = vld [vmem:[#allocation11 + $0x844] ss:$16 sps:$4 sm:$0xff]   ;;  %v17758_v33 = vld [vmem:[#allocation11 + $0x360] ss:$16 sps:$4 sm:$0xff]  }
 0x837   :  { %11200 = vmatpush1.bf16.msra.mxu1 %v17686_v53  ;;  %v17761_v53 = vld [vmem:[#allocation11 + $0x840] ss:$16 sps:$4 sm:$0xff]  }
 0x838   :  { %11973 = vmatpush1.bf16.msra.mxu0 %v17689_v36  ;;  %11870 = vmatprep.subr.bf16.mxu1 %v17694_v3  ;;  %v17766_v36 = vld [vmem:[#allocation11 + $0xc] ss:$16 sps:$4 sm:$0xff]   ;;  %v17769_v3 = vld [vmem:[#allocation11 + $0x864] ss:$16 sps:$4 sm:$0xff]  }
 0x839   :  { %11974 = vmatprep.subr.bf16.mxu0 %v17697_v15  ;;  %v17764_v15 = vld [vmem:[#allocation11 + $0x8] ss:$16 sps:$4 sm:$0xff]  }
 0x83a   :  { %11202 = vmatmul.mubr.bf16.vlgmr.msra.gmra.mrb[24].mxu1 %v19521_v11  ;;  %v17704_v11 = vld [vmem:[#allocation11 + $0x240] ss:$16 sps:$4 sm:$0xff]  }
 0x83b   :  { %11871 = vmatpush1.bf16.msra.mxu1 %v17692_v43  ;;  %15392 = vmatprep.mubr.msk.bf16.mxu1 %vm10195_vm7, %v19588_v52  ;;  %v17707_v52 = vld [vmem:[#allocation11 + $0x720] ss:$16 sps:$4 sm:$0xff]  }
 0x83c   :  { %11975 = vmatpush1.bf16.msra.mxu0 %v17695_v9  ;;  %11872 = vmatprep.subr.bf16.mxu1 %v17700_v5  ;;  %v17767_v43 = vld [vmem:[#allocation11 + $0x860] ss:$16 sps:$4 sm:$0xff]   ;;  %v17772_v9 = vld [vmem:[#allocation11 + $0x2c] ss:$16 sps:$4 sm:$0xff]   ;;  %v17775_v5 = vld [vmem:[#allocation11 + $0x884] ss:$16 sps:$4 sm:$0xff]  }
 0x83d   :  { %12688 = vmatprep.subr.bf16.mxu0 %v17703_v59  ;;  %v17770_v59 = vld [vmem:[#allocation11 + $0x28] ss:$16 sps:$4 sm:$0xff]  }
 0x83f   :  { %11985 = vmatmul.mubr.bf16.vlgmr.msra.gmra.mrb[36].mxu0 %v19598_v13  ;;  %11873 = vmatpush1.bf16.msra.mxu1 %v17698_v57  ;;  %v17773_v57 = vld [vmem:[#allocation11 + $0x880] ss:$16 sps:$4 sm:$0xff]  }
 0x840   :  { %12689 = vmatpush1.bf16.msra.mxu0 %v17701_v38  ;;  %12720 = vmatprep.mubr.bf16.mxu0 %v19602_v34  ;;  %v17778_v38 = vld [vmem:[#allocation11 + $0x4c] ss:$16 sps:$4 sm:$0xff]  }
 0x841   :  { %11874 = vmatprep.subr.bf16.mxu1 %v17706_v23  ;;  %12690 = vmatprep.subr.bf16.mxu0 %v17709_v54  ;;  %v17781_v23 = vld [vmem:[#allocation11 + $0x8a4] ss:$16 sps:$4 sm:$0xff]   ;;  %v17776_v54 = vld [vmem:[#allocation11 + $0x48] ss:$16 sps:$4 sm:$0xff]  }
 0x843   :  { %11875 = vmatpush1.bf16.msra.mxu1 %v17704_v11  ;;  %v17779_v11 = vld [vmem:[#allocation11 + $0x8a0] ss:$16 sps:$4 sm:$0xff]  }
 0x844   :  { %12691 = vmatpush1.bf16.msra.mxu0 %v17707_v52  ;;  %11876 = vmatprep.subr.bf16.mxu1 %v17712_v24  ;;  %v17784_v52 = vld [vmem:[#allocation11 + $0x6c] ss:$16 sps:$4 sm:$0xff]   ;;  %v17787_v24 = vld [vmem:[#allocation11 + $0x8c4] ss:$16 sps:$4 sm:$0xff]  }
 0x845   :  { %12692 = vmatprep.subr.bf16.mxu0 %v17715_v18  ;;  %v17790_v18 = vld [vmem:[#allocation11 + $0x8c] ss:$16 sps:$4 sm:$0xff]  }
 0x847   :  { %11877 = vmatpush1.bf16.msra.mxu1 %v17710_v45  ;;  %v17793_v45 = vld [vmem:[#allocation11 + $0x8e4] ss:$16 sps:$4 sm:$0xff]  }
 0x848   :  { %12693 = vmatpush1.bf16.msra.mxu0 %v17713_v25  ;;  %11878 = vmatprep.subr.bf16.mxu1 %v17718_v51  ;;  %v17788_v25 = vld [vmem:[#allocation11 + $0x88] ss:$16 sps:$4 sm:$0xff]   ;;  %v17791_v51 = vld [vmem:[#allocation11 + $0x8e0] ss:$16 sps:$4 sm:$0xff]  }
 0x849   :  { %12694 = vmatprep.subr.bf16.mxu0 %v17721_v32  ;;  %v17796_v32 = vld [vmem:[#allocation11 + $0xac] ss:$16 sps:$4 sm:$0xff]  }
 0x84b   :  { %11879 = vmatpush1.bf16.msra.mxu1 %v17716_v16  ;;  %v17799_v16 = vld [vmem:[#allocation11 + $0x90c] ss:$16 sps:$4 sm:$0xff]  }
 0x84c   :  { %12695 = vmatpush1.bf16.msra.mxu0 %v17719_v12  ;;  %11880 = vmatprep.subr.bf16.mxu1 %v17724_v29  ;;  %v17794_v12 = vld [vmem:[#allocation11 + $0xa8] ss:$16 sps:$4 sm:$0xff]  }
 0x84d   :  { %12696 = vmatprep.subr.bf16.mxu0 %v17727_v49  ;;  %v17797_v29 = vld [vmem:[#allocation11 + $0x908] ss:$16 sps:$4 sm:$0xff]   ;;  %v19610_v49 = vpack.c.b16 %v19553_v20, %v19553_v20  ;;  %v17811_v20 = vld [vmem:[#allocation11 + $0x94c] ss:$16 sps:$4 sm:$0xff]  }
 0x84f   :  { %11881 = vmatpush1.bf16.msra.mxu1 %v17722_v58  ;;  %v17802_v58 = vld [vmem:[#allocation11 + $0xcc] ss:$16 sps:$4 sm:$0xff]  }
 0x850   :  { %12697 = vmatpush1.bf16.msra.mxu0 %v17725_v47  ;;  %11882 = vmatprep.subr.bf16.mxu1 %v17730_v2  ;;  %v17805_v47 = vld [vmem:[#allocation11 + $0x92c] ss:$16 sps:$4 sm:$0xff]   ;;  %v19614_v2 = vpack.c.b16 %v19543_v4, %v19543_v4 }
 0x851   :  { %12698 = vmatprep.subr.bf16.mxu0 %v17733_v48  ;;  %v17800_v48 = vld [vmem:[#allocation11 + $0xc8] ss:$16 sps:$4 sm:$0xff]   ;;  %v17814_v4 = vld [vmem:[#allocation11 + $0x10c] ss:$16 sps:$4 sm:$0xff]  }
 0x853   :  { %11883 = vmatpush1.bf16.msra.mxu1 %v17728_v63  ;;  %v17803_v63 = vld [vmem:[#allocation11 + $0x928] ss:$16 sps:$4 sm:$0xff]  }
 0x854   :  { %12699 = vmatpush1.bf16.msra.mxu0 %v17731_v21  ;;  %11884 = vmatprep.subr.bf16.mxu1 %v17736_v6  ;;  %v17808_v21 = vld [vmem:[#allocation11 + $0xec] ss:$16 sps:$4 sm:$0xff]   ;;  %v17806_v6 = vld [vmem:[#allocation11 + $0xe8] ss:$16 sps:$4 sm:$0xff]  }
 0x855   :  { %12700 = vmatprep.subr.bf16.mxu0 %v17739_v1  ;;  %v17809_v1 = vld [vmem:[#allocation11 + $0x948] ss:$16 sps:$4 sm:$0xff]  }
 0x857   :  { %11885 = vmatpush1.bf16.msra.mxu1 %v17734_v30  ;;  %v17817_v30 = vld [vmem:[#allocation11 + $0x96c] ss:$16 sps:$4 sm:$0xff]  }
 0x858   :  { %12701 = vmatpush1.bf16.msra.mxu0 %v17737_v7  ;;  %11886 = vmatprep.subr.bf16.mxu1 %v17742_v62  ;;  %v17812_v7 = vld [vmem:[#allocation11 + $0x108] ss:$16 sps:$4 sm:$0xff]  }
 0x859   :  { %12702 = vmatprep.subr.bf16.mxu0 %v17745_v0  ;;  %v17815_v62 = vld [vmem:[#allocation11 + $0x968] ss:$16 sps:$4 sm:$0xff]   ;;  %v17820_v0 = vld [vmem:[#allocation11 + $0x12c] ss:$16 sps:$4 sm:$0xff]  }
 0x85b   :  { %11887 = vmatpush1.bf16.msra.mxu1 %v17740_v46  ;;  %v17823_v46 = vld [vmem:[#allocation11 + $0x98c] ss:$16 sps:$4 sm:$0xff]  }
 0x85c   :  { %12703 = vmatpush1.bf16.msra.mxu0 %v17743_v31  ;;  %11888 = vmatprep.subr.bf16.mxu1 %v17748_v26  ;;  %v17818_v31 = vld [vmem:[#allocation11 + $0x128] ss:$16 sps:$4 sm:$0xff]  }
 0x85d   :  { %12704 = vmatprep.subr.bf16.mxu0 %v17751_v50  ;;  %v17821_v26 = vld [vmem:[#allocation11 + $0x988] ss:$16 sps:$4 sm:$0xff]   ;;  %v17826_v50 = vld [vmem:[#allocation11 + $0x14c] ss:$16 sps:$4 sm:$0xff]  }
 0x85f   :  { %11889 = vmatpush1.bf16.msra.mxu1 %v17746_v27  ;;  %v17829_v27 = vld [vmem:[#allocation11 + $0x9ac] ss:$16 sps:$4 sm:$0xff]  }
 0x860   :  { %12705 = vmatpush1.bf16.msra.mxu0 %v17749_v28  ;;  %11890 = vmatprep.subr.bf16.mxu1 %v17754_v41  ;;  %v17824_v28 = vld [vmem:[#allocation11 + $0x148] ss:$16 sps:$4 sm:$0xff]  }
 0x861   :  { %12706 = vmatprep.subr.bf16.mxu0 %v17757_v61  ;;  %v17827_v41 = vld [vmem:[#allocation11 + $0x9a8] ss:$16 sps:$4 sm:$0xff]   ;;  %v17832_v61 = vld [vmem:[#allocation11 + $0x16c] ss:$16 sps:$4 sm:$0xff]  }
 0x863   :  { %11891 = vmatpush1.bf16.msra.mxu1 %v17752_v44  ;;  %v17835_v44 = vld [vmem:[#allocation11 + $0x9cc] ss:$16 sps:$4 sm:$0xff]  }
 0x864   :  { %12707 = vmatpush1.bf16.msra.mxu0 %v17755_v8  ;;  %11892 = vmatprep.subr.bf16.mxu1 %v17760_v42  ;;  %v17830_v8 = vld [vmem:[#allocation11 + $0x168] ss:$16 sps:$4 sm:$0xff]  }
 0x865   :  { %12708 = vmatprep.subr.bf16.mxu0 %v17763_v17  ;;  %v17833_v42 = vld [vmem:[#allocation11 + $0x9c8] ss:$16 sps:$4 sm:$0xff]   ;;  %v17838_v17 = vld [vmem:[#allocation11 + $0x18c] ss:$16 sps:$4 sm:$0xff]  }
 0x867   :  { %11893 = vmatpush1.bf16.msra.mxu1 %v17758_v33  ;;  %v17841_v33 = vld [vmem:[#allocation11 + $0x9ec] ss:$16 sps:$4 sm:$0xff]  }
 0x868   :  { %12709 = vmatpush1.bf16.msra.mxu0 %v17761_v53  ;;  %11911 = vmatprep.subr.bf16.mxu1 %v17766_v36  ;;  %v17836_v53 = vld [vmem:[#allocation11 + $0x188] ss:$16 sps:$4 sm:$0xff]  }
 0x869   :  { %12710 = vmatprep.subr.bf16.mxu0 %v17769_v3  ;;  %v17839_v36 = vld [vmem:[#allocation11 + $0x9e8] ss:$16 sps:$4 sm:$0xff]   ;;  %v17844_v3 = vld [vmem:[#allocation11 + $0x1ac] ss:$16 sps:$4 sm:$0xff]  }
 0x86a   :  { %11903 = vmatmul.mubr.bf16.vlgmr.msra.gmra.mrb[28].mxu1 %v19598_v13  ;;  %v17782_v13 = vld [vmem:[#allocation11 + $0x68] ss:$16 sps:$4 sm:$0xff]  }
 0x86b   :  { %11912 = vmatpush1.bf16.msra.mxu1 %v17764_v15  ;;  %11943 = vmatprep.mubr.bf16.mxu1 %v19557_v19  ;;  %v17785_v19 = vld [vmem:[#allocation11 + $0x8c0] ss:$16 sps:$4 sm:$0xff]   ;;  %v17847_v15 = vld [vmem:[#allocation11 + $0xa0c] ss:$16 sps:$4 sm:$0xff]  }
 0x86c   :  { %12711 = vmatpush1.bf16.msra.mxu0 %v17767_v43  ;;  %11913 = vmatprep.subr.bf16.mxu1 %v17772_v9  ;;  %v17842_v43 = vld [vmem:[#allocation11 + $0x1a8] ss:$16 sps:$4 sm:$0xff]  }
 0x86d   :  { %12712 = vmatprep.subr.bf16.mxu0 %v17775_v5  ;;  %v17845_v9 = vld [vmem:[#allocation11 + $0xa08] ss:$16 sps:$4 sm:$0xff]   ;;  %v17850_v5 = vld [vmem:[#allocation11 + $0x1cc] ss:$16 sps:$4 sm:$0xff]  }
 0x86f   :  { %11914 = vmatpush1.bf16.msra.mxu1 %v17770_v59 }
 0x870   :  { %12713 = vmatpush1.bf16.msra.mxu0 %v17773_v57  ;;  %11915 = vmatprep.subr.bf16.mxu1 %v17778_v38  ;;  %v17853_v57 = vld [vmem:[#allocation11 + $0xa2c] ss:$16 sps:$4 sm:$0xff]  }
 0x871   :  { %12714 = vmatprep.subr.bf16.mxu0 %v17781_v23 }
 0x873   :  { %11916 = vmatpush1.bf16.msra.mxu1 %v17776_v54  ;;  %v17848_v54 = vld [vmem:[#allocation11 + $0x1c8] ss:$16 sps:$4 sm:$0xff]  }
 0x874   :  { %12715 = vmatpush1.bf16.msra.mxu0 %v17779_v11  ;;  %11917 = vmatprep.subr.bf16.mxu1 %v17784_v52  ;;  %v17851_v52 = vld [vmem:[#allocation11 + $0xa28] ss:$16 sps:$4 sm:$0xff]  }
 0x875   :  { %12716 = vmatprep.subr.bf16.mxu0 %v17787_v24  ;;  %v17856_v24 = vld [vmem:[#allocation11 + $0x1ec] ss:$16 sps:$4 sm:$0xff]  }
 0x877   :  { %11918 = vmatpush1.bf16.msra.mxu1 %v17782_v13 }
 0x878   :  { %12717 = vmatpush1.bf16.msra.mxu0 %v17785_v19  ;;  %11919 = vmatprep.subr.bf16.mxu1 %v17790_v18  ;;  %v17859_v19 = vld [vmem:[#allocation11 + $0xa4c] ss:$16 sps:$4 sm:$0xff]  }
 0x879   :  { %12718 = vmatprep.subr.bf16.mxu0 %v17793_v45 }
 0x87b   :  { %11920 = vmatpush1.bf16.msra.mxu1 %v17788_v25  ;;  %v17854_v25 = vld [vmem:[#allocation11 + $0x1e8] ss:$16 sps:$4 sm:$0xff]  }
 0x87c   :  { %12719 = vmatpush1.bf16.msra.mxu0 %v17791_v51  ;;  %11921 = vmatprep.subr.bf16.mxu1 %v17796_v32  ;;  %v17857_v32 = vld [vmem:[#allocation11 + $0xa48] ss:$16 sps:$4 sm:$0xff]  }
 0x87d   :  { %12811 = vmatprep.subr.bf16.mxu0 %v17799_v16  ;;  %v17862_v16 = vld [vmem:[#allocation11 + $0x904] ss:$16 sps:$4 sm:$0xff]  }
 0x87f   :  { %12721 = vmatmul.mubr.bf16.vlgmr.msra.gmra.mrb[40].mxu0 %v19610_v49  ;;  %11922 = vmatpush1.bf16.msra.mxu1 %v17794_v12  ;;  %v17865_v12 = vld [vmem:[#allocation11 + $0xa6c] ss:$16 sps:$4 sm:$0xff]  }
 0x880   :  { %12812 = vmatpush1.bf16.msra.mxu0 %v17797_v29  ;;  %15507 = vmatprep.mubr.msk.bf16.mxu0 %vm10195_vm7, %v19614_v2  ;;  %v17860_v29 = vld [vmem:[#allocation11 + $0x900] ss:$16 sps:$4 sm:$0xff]  }
 0x881   :  { %11923 = vmatprep.subr.bf16.mxu1 %v17802_v58  ;;  %12813 = vmatprep.subr.bf16.mxu0 %v17805_v47  ;;  %v17863_v58 = vld [vmem:[#allocation11 + $0xa68] ss:$16 sps:$4 sm:$0xff]   ;;  %v17868_v47 = vld [vmem:[#allocation11 + $0x924] ss:$16 sps:$4 sm:$0xff]  }
 0x883   :  { %11924 = vmatpush1.bf16.msra.mxu1 %v17800_v48  ;;  %v17871_v48 = vld [vmem:[#allocation11 + $0xa84] ss:$16 sps:$4 sm:$0xff]  }
 0x884   :  { %12814 = vmatpush1.bf16.msra.mxu0 %v17803_v63  ;;  %11925 = vmatprep.subr.bf16.mxu1 %v17808_v21  ;;  %v17866_v63 = vld [vmem:[#allocation11 + $0x920] ss:$16 sps:$4 sm:$0xff]  }
 0x885   :  { %12815 = vmatprep.subr.bf16.mxu0 %v17811_v20  ;;  %v17869_v21 = vld [vmem:[#allocation11 + $0xa80] ss:$16 sps:$4 sm:$0xff]   ;;  %v19632_v20 = vpack.c.b16 %v19563_v60, %v19563_v60  ;;  %v17883_v60 = vld [vmem:[#allocation11 + $0xac4] ss:$16 sps:$4 sm:$0xff]  }
 0x887   :  { %11926 = vmatpush1.bf16.msra.mxu1 %v17806_v6  ;;  %v17874_v6 = vld [vmem:[#allocation11 + $0x944] ss:$16 sps:$4 sm:$0xff]  }
 0x888   :  { %12816 = vmatpush1.bf16.msra.mxu0 %v17809_v1  ;;  %11927 = vmatprep.subr.bf16.mxu1 %v17814_v4  ;;  %v17877_v1 = vld [vmem:[#allocation11 + $0xaa4] ss:$16 sps:$4 sm:$0xff]   ;;  %v19636_v4 = vpack.c.b16 %v19571_v10, %v19571_v10 }
 0x889   :  { %12817 = vmatprep.subr.bf16.mxu0 %v17817_v30  ;;  %v17880_v30 = vld [vmem:[#allocation11 + $0x964] ss:$16 sps:$4 sm:$0xff]  }
 0x88a   :  { %v17889_v10 = vld [vmem:[#allocation11 + $0xae4] ss:$16 sps:$4 sm:$0xff]  }
 0x88b   :  { %11928 = vmatpush1.bf16.msra.mxu1 %v17812_v7  ;;  %v17878_v7 = vld [vmem:[#allocation11 + $0x960] ss:$16 sps:$4 sm:$0xff]  }
 0x88c   :  { %12818 = vmatpush1.bf16.msra.mxu0 %v17815_v62  ;;  %11929 = vmatprep.subr.bf16.mxu1 %v17820_v0  ;;  %v17881_v62 = vld [vmem:[#allocation11 + $0xac0] ss:$16 sps:$4 sm:$0xff]   ;;  %v17886_v0 = vld [vmem:[#allocation11 + $0x984] ss:$16 sps:$4 sm:$0xff]  }
 0x88d   :  { %12819 = vmatprep.subr.bf16.mxu0 %v17823_v46  ;;  %v17884_v46 = vld [vmem:[#allocation11 + $0x980] ss:$16 sps:$4 sm:$0xff]  }
 0x88f   :  { %11930 = vmatpush1.bf16.msra.mxu1 %v17818_v31  ;;  %v17887_v31 = vld [vmem:[#allocation11 + $0xae0] ss:$16 sps:$4 sm:$0xff]  }
 0x890   :  { %12820 = vmatpush1.bf16.msra.mxu0 %v17821_v26  ;;  %11931 = vmatprep.subr.bf16.mxu1 %v17826_v50  ;;  %v17892_v26 = vld [vmem:[#allocation11 + $0x9a4] ss:$16 sps:$4 sm:$0xff]  }
 0x891   :  { %12821 = vmatprep.subr.bf16.mxu0 %v17829_v27  ;;  %v17895_v50 = vld [vmem:[#allocation11 + $0xb04] ss:$16 sps:$4 sm:$0xff]   ;;  %v17890_v27 = vld [vmem:[#allocation11 + $0x9a0] ss:$16 sps:$4 sm:$0xff]  }
 0x893   :  { %11932 = vmatpush1.bf16.msra.mxu1 %v17824_v28  ;;  %v17893_v28 = vld [vmem:[#allocation11 + $0xb00] ss:$16 sps:$4 sm:$0xff]  }
 0x894   :  { %12822 = vmatpush1.bf16.msra.mxu0 %v17827_v41  ;;  %11933 = vmatprep.subr.bf16.mxu1 %v17832_v61  ;;  %v17898_v41 = vld [vmem:[#allocation11 + $0x9c4] ss:$16 sps:$4 sm:$0xff]  }
 0x895   :  { %12823 = vmatprep.subr.bf16.mxu0 %v17835_v44  ;;  %v17901_v61 = vld [vmem:[#allocation11 + $0xb24] ss:$16 sps:$4 sm:$0xff]   ;;  %v17896_v44 = vld [vmem:[#allocation11 + $0x9c0] ss:$16 sps:$4 sm:$0xff]  }
 0x897   :  { %11934 = vmatpush1.bf16.msra.mxu1 %v17830_v8  ;;  %v17899_v8 = vld [vmem:[#allocation11 + $0xb20] ss:$16 sps:$4 sm:$0xff]  }
 0x898   :  { %12824 = vmatpush1.bf16.msra.mxu0 %v17833_v42  ;;  %11935 = vmatprep.subr.bf16.mxu1 %v17838_v17  ;;  %v17904_v42 = vld [vmem:[#allocation11 + $0x9e4] ss:$16 sps:$4 sm:$0xff]  }
 0x899   :  { %12825 = vmatprep.subr.bf16.mxu0 %v17841_v33  ;;  %v17907_v17 = vld [vmem:[#allocation11 + $0xb44] ss:$16 sps:$4 sm:$0xff]   ;;  %v17902_v33 = vld [vmem:[#allocation11 + $0x9e0] ss:$16 sps:$4 sm:$0xff]  }
 0x89b   :  { %11936 = vmatpush1.bf16.msra.mxu1 %v17836_v53  ;;  %v17905_v53 = vld [vmem:[#allocation11 + $0xb40] ss:$16 sps:$4 sm:$0xff]  }
 0x89c   :  { %12826 = vmatpush1.bf16.msra.mxu0 %v17839_v36  ;;  %11937 = vmatprep.subr.bf16.mxu1 %v17844_v3  ;;  %v17910_v36 = vld [vmem:[#allocation11 + $0xa04] ss:$16 sps:$4 sm:$0xff]  }
 0x89d   :  { %v19619_v59 = vpop.f32.mrb[16].mxu1  ;;  %12827 = vmatprep.subr.bf16.mxu0 %v17847_v15  ;;  %v17913_v3 = vld [vmem:[#allocation11 + $0xb64] ss:$16 sps:$4 sm:$0xff]   ;;  %v17908_v15 = vld [vmem:[#allocation11 + $0xa00] ss:$16 sps:$4 sm:$0xff]  }
 0x89e   :  { %v19621_v38 = vpop.f32.mrb[17].mxu1 }
 0x89f   :  { %11938 = vmatpush1.bf16.msra.mxu1 %v17842_v43  ;;  %v11125_v23 = vpop.f32.mrb[18].mxu1  ;;  %v17911_v43 = vld [vmem:[#allocation11 + $0xb60] ss:$16 sps:$4 sm:$0xff]  }
 0x8a0   :  { %12828 = vmatpush1.bf16.msra.mxu0 %v17845_v9  ;;  %v11126_v11 = vpop.f32.mrb[19].mxu1  ;;  %11939 = vmatprep.subr.bf16.mxu1 %v17850_v5  ;;  %v17916_v9 = vld [vmem:[#allocation11 + $0xa24] ss:$16 sps:$4 sm:$0xff]   ;;  %v17917_v23 = vld [vmem:[#allocation11 + $0xb80] ss:$16 sps:$4 sm:$0xff]  }
 0x8a1   :  { %v19623_v13 = vpop.f32.mrb[28].mxu0  ;;  %12829 = vmatprep.subr.bf16.mxu0 %v17853_v57  ;;  %v17919_v5 = vld [vmem:[#allocation11 + $0xb84] ss:$16 sps:$4 sm:$0xff]   ;;  %v17914_v57 = vld [vmem:[#allocation11 + $0xa20] ss:$16 sps:$4 sm:$0xff]  }
 0x8a2   :  { %v19625_v18 = vpop.f32.mrb[29].mxu0 }
 0x8a3   :  { %11940 = vmatpush1.bf16.msra.mxu1 %v17848_v54  ;;  %v11248_v45 = vpop.f32.mrb[30].mxu0  ;;  %v17922_v54 = vld [vmem:[#allocation11 + $0xa44] ss:$16 sps:$4 sm:$0xff]  }
 0x8a4   :  { %12830 = vmatpush1.bf16.msra.mxu0 %v17851_v52  ;;  %v11249_v51 = vpop.f32.mrb[31].mxu0  ;;  %11941 = vmatprep.subr.bf16.mxu1 %v17856_v24  ;;  %v17925_v52 = vld [vmem:[#allocation11 + $0xba4] ss:$16 sps:$4 sm:$0xff]  }
 0x8a5   :  { %12831 = vmatprep.subr.bf16.mxu0 %v17859_v19  ;;  %v17920_v51 = vld [vmem:[#allocation11 + $0xa40] ss:$16 sps:$4 sm:$0xff]  }
 0x8a7   :  { %11942 = vmatpush1.bf16.msra.mxu1 %v17854_v25 }
 0x8a8   :  { %12832 = vmatpush1.bf16.msra.mxu0 %v17857_v32  ;;  %12729 = vmatprep.subr.bf16.mxu1 %v17862_v16  ;;  %v17923_v16 = vld [vmem:[#allocation11 + $0xba0] ss:$16 sps:$4 sm:$0xff]  }
 0x8a9   :  { %12833 = vmatprep.subr.bf16.mxu0 %v17865_v12  ;;  %v17928_v12 = vld [vmem:[#allocation11 + $0xa64] ss:$16 sps:$4 sm:$0xff]  }
 0x8aa   :  { %11944 = vmatmul.mubr.bf16.vlgmr.msra.gmra.mrb[32].mxu1 %v19584_v14  ;;  %v17872_v14 = vld [vmem:[#allocation11 + $0x940] ss:$16 sps:$4 sm:$0xff]  }
 0x8ab   :  { %12730 = vmatpush1.bf16.msra.mxu1 %v17860_v29  ;;  %15506 = vmatprep.mubr.msk.bf16.mxu1 %vm10195_vm7, %v19614_v2  ;;  %v17875_v2 = vld [vmem:[#allocation11 + $0xaa0] ss:$16 sps:$4 sm:$0xff]   ;;  %v17931_v29 = vld [vmem:[#allocation11 + $0xbc4] ss:$16 sps:$4 sm:$0xff]  }
 0x8ac   :  { %12834 = vmatpush1.bf16.msra.mxu0 %v17863_v58  ;;  %12731 = vmatprep.subr.bf16.mxu1 %v17868_v47  ;;  %v17926_v58 = vld [vmem:[#allocation11 + $0xa60] ss:$16 sps:$4 sm:$0xff]  }
 0x8ad   :  { %13551 = vmatprep.subr.bf16.mxu0 %v17871_v48  ;;  %v17929_v47 = vld [vmem:[#allocation11 + $0xbc0] ss:$16 sps:$4 sm:$0xff]   ;;  %v17934_v48 = vld [vmem:[#allocation11 + $0x70c] ss:$16 sps:$4 sm:$0xff]  }
 0x8af   :  { %12844 = vmatmul.mubr.bf16.vlgmr.msra.gmra.mrb[44].mxu0 %v19632_v20  ;;  %12732 = vmatpush1.bf16.msra.mxu1 %v17866_v63  ;;  %v17935_v63 = vld [vmem:[#allocation11 + $0xbe0] ss:$16 sps:$4 sm:$0xff]  }
 0x8b0   :  { %13552 = vmatpush1.bf16.msra.mxu0 %v17869_v21  ;;  %13583 = vmatprep.mubr.bf16.mxu0 %v19636_v4  ;;  %v17940_v21 = vld [vmem:[#allocation11 + $0x72c] ss:$16 sps:$4 sm:$0xff]  }
 0x8b1   :  { %12733 = vmatprep.subr.bf16.mxu1 %v17874_v6  ;;  %13553 = vmatprep.subr.bf16.mxu0 %v17877_v1  ;;  %v17943_v6 = vld [vmem:[#allocation11 + $0xc04] ss:$16 sps:$4 sm:$0xff]   ;;  %v17938_v1 = vld [vmem:[#allocation11 + $0x728] ss:$16 sps:$4 sm:$0xff]  }
 0x8b3   :  { %12734 = vmatpush1.bf16.msra.mxu1 %v17872_v14  ;;  %v17941_v14 = vld [vmem:[#allocation11 + $0xc00] ss:$16 sps:$4 sm:$0xff]  }
 0x8b4   :  { %13554 = vmatpush1.bf16.msra.mxu0 %v17875_v2  ;;  %12735 = vmatprep.subr.bf16.mxu1 %v17880_v30  ;;  %v17946_v2 = vld [vmem:[#allocation11 + $0x74c] ss:$16 sps:$4 sm:$0xff]   ;;  %v17949_v30 = vld [vmem:[#allocation11 + $0xc24] ss:$16 sps:$4 sm:$0xff]  }
 0x8b5   :  { %13555 = vmatprep.subr.bf16.mxu0 %v17883_v60  ;;  %v17944_v60 = vld [vmem:[#allocation11 + $0x748] ss:$16 sps:$4 sm:$0xff]  }
 0x8b7   :  { %12736 = vmatpush1.bf16.msra.mxu1 %v17878_v7  ;;  %v17947_v7 = vld [vmem:[#allocation11 + $0xc20] ss:$16 sps:$4 sm:$0xff]  }
 0x8b8   :  { %13556 = vmatpush1.bf16.msra.mxu0 %v17881_v62  ;;  %12737 = vmatprep.subr.bf16.mxu1 %v17886_v0  ;;  %v17952_v62 = vld [vmem:[#allocation11 + $0x76c] ss:$16 sps:$4 sm:$0xff]   ;;  %v17955_v0 = vld [vmem:[#allocation11 + $0xc44] ss:$16 sps:$4 sm:$0xff]  }
 0x8b9   :  { %13557 = vmatprep.subr.bf16.mxu0 %v17889_v10 }
 0x8bb   :  { %12738 = vmatpush1.bf16.msra.mxu1 %v17884_v46 }
 0x8bc   :  { %13558 = vmatpush1.bf16.msra.mxu0 %v17887_v31  ;;  %12739 = vmatprep.subr.bf16.mxu1 %v17892_v26 }
 0x8bd   :  { %13559 = vmatprep.subr.bf16.mxu0 %v17895_v50  ;;  %v17953_v50 = vld [vmem:[#allocation11 + $0xc40] ss:$16 sps:$4 sm:$0xff]  }
 0x8bf   :  { %12740 = vmatpush1.bf16.msra.mxu1 %v17890_v27  ;;  %v17958_v27 = vld [vmem:[#allocation11 + $0x78c] ss:$16 sps:$4 sm:$0xff]  }
 0x8c0   :  { %13560 = vmatpush1.bf16.msra.mxu0 %v17893_v28  ;;  %12741 = vmatprep.subr.bf16.mxu1 %v17898_v41  ;;  %v17961_v41 = vld [vmem:[#allocation11 + $0xc64] ss:$16 sps:$4 sm:$0xff]  }
 0x8c1   :  { %13561 = vmatprep.subr.bf16.mxu0 %v17901_v61  ;;  %v17956_v61 = vld [vmem:[#allocation11 + $0x788] ss:$16 sps:$4 sm:$0xff]  }
 0x8c3   :  { %12742 = vmatpush1.bf16.msra.mxu1 %v17896_v44  ;;  %v17959_v44 = vld [vmem:[#allocation11 + $0xc60] ss:$16 sps:$4 sm:$0xff]  }
 0x8c4   :  { %13562 = vmatpush1.bf16.msra.mxu0 %v17899_v8  ;;  %12743 = vmatprep.subr.bf16.mxu1 %v17904_v42  ;;  %v17964_v8 = vld [vmem:[#allocation11 + $0x7ac] ss:$16 sps:$4 sm:$0xff]  }
 0x8c5   :  { %13563 = vmatprep.subr.bf16.mxu0 %v17907_v17  ;;  %v17967_v42 = vld [vmem:[#allocation11 + $0xc8c] ss:$16 sps:$4 sm:$0xff]   ;;  %v17962_v17 = vld [vmem:[#allocation11 + $0x7a8] ss:$16 sps:$4 sm:$0xff]  }
 0x8c7   :  { %12744 = vmatpush1.bf16.msra.mxu1 %v17902_v33  ;;  %v17965_v33 = vld [vmem:[#allocation11 + $0xc88] ss:$16 sps:$4 sm:$0xff]  }
 0x8c8   :  { %13564 = vmatpush1.bf16.msra.mxu0 %v17905_v53  ;;  %12745 = vmatprep.subr.bf16.mxu1 %v17910_v36  ;;  %v19650_v53 = vpack.c.b16 %v19574_v56, %v19574_v56  ;;  %v17970_v36 = vld [vmem:[#allocation11 + $0x7cc] ss:$16 sps:$4 sm:$0xff]  }
 0x8c9   :  { %13565 = vmatprep.subr.bf16.mxu0 %v17913_v3  ;;  %v17973_v3 = vld [vmem:[#allocation11 + $0xcac] ss:$16 sps:$4 sm:$0xff]  }
 0x8ca   :  { %v17979_v56 = vld [vmem:[#allocation11 + $0xccc] ss:$16 sps:$4 sm:$0xff]  }
 0x8cb   :  { %12746 = vmatpush1.bf16.msra.mxu1 %v17908_v15  ;;  %v19654_v15 = vpack.c.b16 %v19567_v37, %v19567_v37  ;;  %v17982_v37 = vld [vmem:[#allocation11 + $0x80c] ss:$16 sps:$4 sm:$0xff]  }
 0x8cc   :  { %13566 = vmatpush1.bf16.msra.mxu0 %v17911_v43  ;;  %12747 = vmatprep.subr.bf16.mxu1 %v17916_v9  ;;  %v17968_v43 = vld [vmem:[#allocation11 + $0x7c8] ss:$16 sps:$4 sm:$0xff]  }
 0x8cd   :  { %v11162_v11 = vpop.f32.mrb[20].mxu1  ;;  %13567 = vmatprep.subr.bf16.mxu0 %v17919_v5  ;;  %v17971_v9 = vld [vmem:[#allocation11 + $0xca8] ss:$16 sps:$4 sm:$0xff]   ;;  %v17976_v5 = vld [vmem:[#allocation11 + $0x7ec] ss:$16 sps:$4 sm:$0xff]  }
 0x8ce   :  { %v11163_v24 = vadd.f32 %v11162_v11, %v19619_v59  ;;  %v11164_v19 = vpop.f32.mrb[21].mxu1  ;;  %v17937_v59 = vld [vmem:[#allocation11 + $0xbe4] ss:$16 sps:$4 sm:$0xff]   ;;  %v17980_v11 = vld [vmem:[#allocation11 + $0x808] ss:$16 sps:$4 sm:$0xff]  }
 0x8cf   :  { %v11165_v45 = vadd.f32 %v11164_v19, %v19621_v38  ;;  %v11166_v25 = vpop.f32.mrb[22].mxu1  ;;  %12748 = vmatpush1.bf16.msra.mxu1 %v17914_v57  ;;  %v17932_v38 = vld [vmem:[#allocation11 + $0x708] ss:$16 sps:$4 sm:$0xff]   ;;  %v17991_v19 = vld [vmem:[#allocation11 + $0xd0c] ss:$16 sps:$4 sm:$0xff]  }
 0x8d0   :  { %13568 = vmatpush1.bf16.msra.mxu0 %v17917_v23  ;;  %v11167_v32 = vpop.f32.mrb[23].mxu1  ;;  %12749 = vmatprep.subr.bf16.mxu1 %v17922_v54  ;;  %v17974_v57 = vld [vmem:[#allocation11 + $0x7e8] ss:$16 sps:$4 sm:$0xff]   ;;  %v17985_v54 = vld [vmem:[#allocation11 + $0xcec] ss:$16 sps:$4 sm:$0xff]  }
 0x8d1   :  { %13569 = vmatprep.subr.bf16.mxu0 %v17925_v52  ;;  %v17977_v23 = vld [vmem:[#allocation11 + $0xcc8] ss:$16 sps:$4 sm:$0xff]   ;;  %v17997_v32 = vld [vmem:[#allocation11 + $0xd2c] ss:$16 sps:$4 sm:$0xff]  }
 0x8d2   :  { %v17983_v52 = vld [vmem:[#allocation11 + $0xce8] ss:$16 sps:$4 sm:$0xff]  }
 0x8d3   :  { %12750 = vmatpush1.bf16.msra.mxu1 %v17920_v51  ;;  %v17989_v25 = vld [vmem:[#allocation11 + $0xd08] ss:$16 sps:$4 sm:$0xff]   ;;  %v17994_v51 = vld [vmem:[#allocation11 + $0x84c] ss:$16 sps:$4 sm:$0xff]  }
 0x8d4   :  { %13570 = vmatpush1.bf16.msra.mxu0 %v17923_v16  ;;  %12751 = vmatprep.subr.bf16.mxu1 %v17928_v12  ;;  %v17992_v16 = vld [vmem:[#allocation11 + $0x848] ss:$16 sps:$4 sm:$0xff]  }
 0x8d5   :  { %13571 = vmatprep.subr.bf16.mxu0 %v17931_v29  ;;  %v17995_v12 = vld [vmem:[#allocation11 + $0xd28] ss:$16 sps:$4 sm:$0xff]   ;;  %v18000_v29 = vld [vmem:[#allocation11 + $0x86c] ss:$16 sps:$4 sm:$0xff]  }
 0x8d7   :  { %12752 = vmatpush1.bf16.msra.mxu1 %v17926_v58  ;;  %v18003_v58 = vld [vmem:[#allocation11 + $0xd4c] ss:$16 sps:$4 sm:$0xff]  }
 0x8d8   :  { %13572 = vmatpush1.bf16.msra.mxu0 %v17929_v47  ;;  %12770 = vmatprep.subr.bf16.mxu1 %v17934_v48  ;;  %v17998_v47 = vld [vmem:[#allocation11 + $0x868] ss:$16 sps:$4 sm:$0xff]  }
 0x8d9   :  { %13573 = vmatprep.subr.bf16.mxu0 %v17937_v59  ;;  %v18001_v48 = vld [vmem:[#allocation11 + $0xd48] ss:$16 sps:$4 sm:$0xff]   ;;  %v18006_v59 = vld [vmem:[#allocation11 + $0x88c] ss:$16 sps:$4 sm:$0xff]  }
 0x8da   :  { %12762 = vmatmul.mubr.bf16.vlgmr.msra.gmra.mrb[36].mxu1 %v19632_v20 }
 0x8db   :  { %12771 = vmatpush1.bf16.msra.mxu1 %v17932_v38  ;;  %12802 = vmatprep.mubr.bf16.mxu1 %v19602_v34  ;;  %v17950_v34 = vld [vmem:[#allocation11 + $0x768] ss:$16 sps:$4 sm:$0xff]   ;;  %v18009_v38 = vld [vmem:[#allocation11 + $0xd6c] ss:$16 sps:$4 sm:$0xff]  }
 0x8dc   :  { %13574 = vmatpush1.bf16.msra.mxu0 %v17935_v63  ;;  %12772 = vmatprep.subr.bf16.mxu1 %v17940_v21  ;;  %v18004_v63 = vld [vmem:[#allocation11 + $0x888] ss:$16 sps:$4 sm:$0xff]  }
 0x8dd   :  { %13575 = vmatprep.subr.bf16.mxu0 %v17943_v6  ;;  %v18007_v21 = vld [vmem:[#allocation11 + $0xd68] ss:$16 sps:$4 sm:$0xff]   ;;  %v18012_v6 = vld [vmem:[#allocation11 + $0x8ac] ss:$16 sps:$4 sm:$0xff]  }
 0x8df   :  { %12773 = vmatpush1.bf16.msra.mxu1 %v17938_v1  ;;  %v18015_v1 = vld [vmem:[#allocation11 + $0xd8c] ss:$16 sps:$4 sm:$0xff]  }
 0x8e0   :  { %13576 = vmatpush1.bf16.msra.mxu0 %v17941_v14  ;;  %12774 = vmatprep.subr.bf16.mxu1 %v17946_v2  ;;  %v18010_v14 = vld [vmem:[#allocation11 + $0x8a8] ss:$16 sps:$4 sm:$0xff]  }
 0x8e1   :  { %13577 = vmatprep.subr.bf16.mxu0 %v17949_v30  ;;  %v18013_v2 = vld [vmem:[#allocation11 + $0xd88] ss:$16 sps:$4 sm:$0xff]   ;;  %v18018_v30 = vld [vmem:[#allocation11 + $0x8cc] ss:$16 sps:$4 sm:$0xff]  }
 0x8e2   :  { %v11863_v10 = vpop.f32.mrb[32].mxu0 }
 0x8e3   :  { %v19644_v20 = vadd.f32 %v11863_v10, %v11163_v24  ;;  %v11865_v46 = vpop.f32.mrb[33].mxu0  ;;  %12775 = vmatpush1.bf16.msra.mxu1 %v17944_v60  ;;  %v17988_v24 = vld [vmem:[#allocation11 + $0x82c] ss:$16 sps:$4 sm:$0xff]  }
 0x8e4   :  { %v19646_v31 = vadd.f32 %v11865_v46, %v11165_v45  ;;  %v11867_v26 = vpop.f32.mrb[34].mxu0  ;;  %13578 = vmatpush1.bf16.msra.mxu0 %v17947_v7  ;;  %12776 = vmatprep.subr.bf16.mxu1 %v17952_v62  ;;  %v17986_v45 = vld [vmem:[#allocation11 + $0x828] ss:$16 sps:$4 sm:$0xff]   ;;  %v18021_v7 = vld [vmem:[#allocation11 + $0xdac] ss:$16 sps:$4 sm:$0xff]  }
 0x8e5   :  { %v11868_v28 = vpop.f32.mrb[35].mxu0  ;;  %13579 = vmatprep.subr.bf16.mxu0 %v17955_v0 }
 0x8e6   :  { %v18027_v28 = vld [vmem:[#allocation11 + $0xdcc] ss:$16 sps:$4 sm:$0xff]  }
 0x8e7   :  { %12777 = vmatpush1.bf16.msra.mxu1 %v17950_v34  ;;  %v18016_v34 = vld [vmem:[#allocation11 + $0x8c8] ss:$16 sps:$4 sm:$0xff]  }
 0x8e8   :  { %13580 = vmatpush1.bf16.msra.mxu0 %v17953_v50  ;;  %12778 = vmatprep.subr.bf16.mxu1 %v17958_v27  ;;  %v18019_v50 = vld [vmem:[#allocation11 + $0xda8] ss:$16 sps:$4 sm:$0xff]   ;;  %v18024_v27 = vld [vmem:[#allocation11 + $0x8ec] ss:$16 sps:$4 sm:$0xff]  }
 0x8e9   :  { %13581 = vmatprep.subr.bf16.mxu0 %v17961_v41 }
 0x8eb   :  { %12779 = vmatpush1.bf16.msra.mxu1 %v17956_v61 }
 0x8ec   :  { %13582 = vmatpush1.bf16.msra.mxu0 %v17959_v44  ;;  %12780 = vmatprep.subr.bf16.mxu1 %v17964_v8  ;;  %v18030_v8 = vld [vmem:[#allocation11 + $0xc84] ss:$16 sps:$4 sm:$0xff]  }
 0x8ed   :  { %13674 = vmatprep.subr.bf16.mxu0 %v17967_v42 }
 0x8ef   :  { %13584 = vmatmul.mubr.bf16.vlgmr.msra.gmra.mrb[48].mxu0 %v19650_v53  ;;  %12781 = vmatpush1.bf16.msra.mxu1 %v17962_v17  ;;  %v18033_v17 = vld [vmem:[#allocation11 + $0xdec] ss:$16 sps:$4 sm:$0xff]  }
 0x8f0   :  { %13675 = vmatpush1.bf16.msra.mxu0 %v17965_v33  ;;  %15621 = vmatprep.mubr.msk.bf16.mxu0 %vm10195_vm7, %v19654_v15  ;;  %v18028_v33 = vld [vmem:[#allocation11 + $0xc80] ss:$16 sps:$4 sm:$0xff]  }
 0x8f1   :  { %12782 = vmatprep.subr.bf16.mxu1 %v17970_v36  ;;  %13676 = vmatprep.subr.bf16.mxu0 %v17973_v3  ;;  %v18031_v36 = vld [vmem:[#allocation11 + $0xde8] ss:$16 sps:$4 sm:$0xff]   ;;  %v18036_v3 = vld [vmem:[#allocation11 + $0xca4] ss:$16 sps:$4 sm:$0xff]  }
 0x8f3   :  { %12783 = vmatpush1.bf16.msra.mxu1 %v17968_v43  ;;  %v18034_v43 = vld [vmem:[#allocation11 + $0xca0] ss:$16 sps:$4 sm:$0xff]  }
 0x8f4   :  { %13677 = vmatpush1.bf16.msra.mxu0 %v17971_v9  ;;  %12784 = vmatprep.subr.bf16.mxu1 %v17976_v5  ;;  %v18039_v9 = vld [vmem:[#allocation11 + $0xcc4] ss:$16 sps:$4 sm:$0xff]   ;;  %v12983_v5 = vpack.c.b16 %v19578_v35, %v19578_v35 }
 0x8f5   :  { %13678 = vmatprep.subr.bf16.mxu0 %v17979_v56  ;;  %v18037_v56 = vld [vmem:[#allocation11 + $0xcc0] ss:$16 sps:$4 sm:$0xff]   ;;  %v18054_v35 = vld [vmem:[#allocation11 + $0xd64] ss:$16 sps:$4 sm:$0xff]  }
 0x8f7   :  { %12785 = vmatpush1.bf16.msra.mxu1 %v17974_v57  ;;  %v18042_v57 = vld [vmem:[#allocation11 + $0xce4] ss:$16 sps:$4 sm:$0xff]  }
 0x8f8   :  { %13679 = vmatpush1.bf16.msra.mxu0 %v17977_v23  ;;  %12786 = vmatprep.subr.bf16.mxu1 %v17982_v37  ;;  %v18040_v23 = vld [vmem:[#allocation11 + $0xce0] ss:$16 sps:$4 sm:$0xff]  }
 0x8f9   :  { %13680 = vmatprep.subr.bf16.mxu0 %v17985_v54  ;;  %v18043_v37 = vld [vmem:[#allocation11 + $0xd00] ss:$16 sps:$4 sm:$0xff]  }
 0x8fa   :  { %v18046_v54 = vld [vmem:[#allocation11 + $0xd20] ss:$16 sps:$4 sm:$0xff]  }
 0x8fb   :  { %12787 = vmatpush1.bf16.msra.mxu1 %v17980_v11  ;;  %v18051_v11 = vld [vmem:[#allocation11 + $0xd44] ss:$16 sps:$4 sm:$0xff]  }
 0x8fc   :  { %13681 = vmatpush1.bf16.msra.mxu0 %v17983_v52  ;;  %12788 = vmatprep.subr.bf16.mxu1 %v17988_v24  ;;  %v18049_v52 = vld [vmem:[#allocation11 + $0xd40] ss:$16 sps:$4 sm:$0xff]  }
 0x8fd   :  { %13682 = vmatprep.subr.bf16.mxu0 %v17991_v19  ;;  %v18052_v24 = vld [vmem:[#allocation11 + $0xd60] ss:$16 sps:$4 sm:$0xff]   ;;  %v18057_v19 = vld [vmem:[#allocation11 + $0xd84] ss:$16 sps:$4 sm:$0xff]  }
 0x8ff   :  { %12789 = vmatpush1.bf16.msra.mxu1 %v17986_v45  ;;  %v18055_v45 = vld [vmem:[#allocation11 + $0xd80] ss:$16 sps:$4 sm:$0xff]  }
 0x900   :  { %13683 = vmatpush1.bf16.msra.mxu0 %v17989_v25  ;;  %12790 = vmatprep.subr.bf16.mxu1 %v17994_v51  ;;  %v18060_v25 = vld [vmem:[#allocation11 + $0xda4] ss:$16 sps:$4 sm:$0xff]   ;;  %v18058_v51 = vld [vmem:[#allocation11 + $0xda0] ss:$16 sps:$4 sm:$0xff]  }
 0x901   :  { %13684 = vmatprep.subr.bf16.mxu0 %v17997_v32  ;;  %v18063_v32 = vld [vmem:[#allocation11 + $0xdc4] ss:$16 sps:$4 sm:$0xff]  }
 0x903   :  { %12791 = vmatpush1.bf16.msra.mxu1 %v17992_v16 }
 0x904   :  { %13685 = vmatpush1.bf16.msra.mxu0 %v17995_v12  ;;  %12792 = vmatprep.subr.bf16.mxu1 %v18000_v29 }
 0x905   :  { %13686 = vmatprep.subr.bf16.mxu0 %v18003_v58 }
 0x907   :  { %12793 = vmatpush1.bf16.msra.mxu1 %v17998_v47 }
 0x908   :  { %13687 = vmatpush1.bf16.msra.mxu0 %v18001_v48  ;;  %12794 = vmatprep.subr.bf16.mxu1 %v18006_v59  ;;  %v18061_v48 = vld [vmem:[#allocation11 + $0xdc0] ss:$16 sps:$4 sm:$0xff]  }
 0x909   :  { %13688 = vmatprep.subr.bf16.mxu0 %v18009_v38  ;;  %v18066_v38 = vld [vmem:[#allocation11 + $0xde4] ss:$16 sps:$4 sm:$0xff]  }
 0x90b   :  { %12795 = vmatpush1.bf16.msra.mxu1 %v18004_v63  ;;  %v18064_v63 = vld [vmem:[#allocation11 + $0xde0] ss:$16 sps:$4 sm:$0xff]  }
 0x90c   :  { %13689 = vmatpush1.bf16.msra.mxu0 %v18007_v21  ;;  %12796 = vmatprep.subr.bf16.mxu1 %v18012_v6  ;;  %v18069_v21 = vld [vmem:[#allocation11 + $0xa8c] ss:$16 sps:$4 sm:$0xff]   ;;  %v18067_v6 = vld [vmem:[#allocation11 + $0xa88] ss:$16 sps:$4 sm:$0xff]  }
 0x90d   :  { %v11203_v60 = vpop.f32.mrb[24].mxu1  ;;  %13690 = vmatprep.subr.bf16.mxu0 %v18015_v1  ;;  %v18072_v1 = vld [vmem:[#allocation11 + $0xaac] ss:$16 sps:$4 sm:$0xff]  }
 0x90e   :  { %v19660_v62 = vadd.f32 %v19623_v13, %v11203_v60  ;;  %v11205_v0 = vpop.f32.mrb[25].mxu1  ;;  %v18022_v13 = vld [vmem:[#allocation11 + $0x8e8] ss:$16 sps:$4 sm:$0xff]  }
 0x90f   :  { %v19663_v10 = vadd.f32 %v19625_v18, %v11205_v0  ;;  %v11207_v46 = vpop.f32.mrb[26].mxu1  ;;  %12797 = vmatpush1.bf16.msra.mxu1 %v18010_v14  ;;  %v18025_v18 = vld [vmem:[#allocation11 + $0xdc8] ss:$16 sps:$4 sm:$0xff]  }
 0x910   :  { %13691 = vmatpush1.bf16.msra.mxu0 %v18013_v2  ;;  %v11208_v26 = vpop.f32.mrb[27].mxu1  ;;  %12798 = vmatprep.subr.bf16.mxu1 %v18018_v30  ;;  %v18073_v14 = vld [vmem:[#allocation11 + $0xac8] ss:$16 sps:$4 sm:$0xff]   ;;  %v18078_v2 = vld [vmem:[#allocation11 + $0xaec] ss:$16 sps:$4 sm:$0xff]  }
 0x911   :  { %13692 = vmatprep.subr.bf16.mxu0 %v18021_v7  ;;  %v18076_v7 = vld [vmem:[#allocation11 + $0xae8] ss:$16 sps:$4 sm:$0xff]   ;;  %v18081_v46 = vld [vmem:[#allocation11 + $0xb0c] ss:$16 sps:$4 sm:$0xff]  }
 0x912   :  { %v19665_v41 = vpop.f32.mrb[36].mxu0  ;;  %v18079_v26 = vld [vmem:[#allocation11 + $0xb08] ss:$16 sps:$4 sm:$0xff]  }
 0x913   :  { %v19667_v61 = vpop.f32.mrb[37].mxu0  ;;  %12799 = vmatpush1.bf16.msra.mxu1 %v18016_v34 }
 0x914   :  { %v11990_v44 = vpop.f32.mrb[38].mxu0  ;;  %13693 = vmatpush1.bf16.msra.mxu0 %v18019_v50  ;;  %12800 = vmatprep.subr.bf16.mxu1 %v18024_v27  ;;  %v18082_v50 = vld [vmem:[#allocation11 + $0xb28] ss:$16 sps:$4 sm:$0xff]   ;;  %v18087_v27 = vld [vmem:[#allocation11 + $0xb4c] ss:$16 sps:$4 sm:$0xff]  }
 0x915   :  { %v11991_v42 = vpop.f32.mrb[39].mxu0  ;;  %13694 = vmatprep.subr.bf16.mxu0 %v18027_v28  ;;  %v18085_v28 = vld [vmem:[#allocation11 + $0xb48] ss:$16 sps:$4 sm:$0xff]  }
 0x916   :  { %v18088_v44 = vld [vmem:[#allocation11 + $0xb68] ss:$16 sps:$4 sm:$0xff]   ;;  %v18096_v42 = vld [vmem:[#allocation11 + $0xbac] ss:$16 sps:$4 sm:$0xff]  }
 0x917   :  { %12801 = vmatpush1.bf16.msra.mxu1 %v18022_v13  ;;  %v18090_v13 = vld [vmem:[#allocation11 + $0xb6c] ss:$16 sps:$4 sm:$0xff]  }
 0x918   :  { %13695 = vmatpush1.bf16.msra.mxu0 %v18025_v18  ;;  %13592 = vmatprep.subr.bf16.mxu1 %v18030_v8  ;;  %v18093_v18 = vld [vmem:[#allocation11 + $0xb8c] ss:$16 sps:$4 sm:$0xff]   ;;  %v18091_v8 = vld [vmem:[#allocation11 + $0xb88] ss:$16 sps:$4 sm:$0xff]  }
 0x919   :  { %13696 = vmatprep.subr.bf16.mxu0 %v18033_v17  ;;  %v18094_v17 = vld [vmem:[#allocation11 + $0xba8] ss:$16 sps:$4 sm:$0xff]  }
 0x91a   :  { %12803 = vmatmul.mubr.bf16.vlgmr.msra.gmra.mrb[40].mxu1 %v19610_v49  ;;  %v18045_v49 = vld [vmem:[#allocation11 + $0xd04] ss:$16 sps:$4 sm:$0xff]  }
 0x91b   :  { %13593 = vmatpush1.bf16.msra.mxu1 %v18028_v33  ;;  %15620 = vmatprep.mubr.msk.bf16.mxu1 %vm10195_vm7, %v19654_v15  ;;  %v18048_v15 = vld [vmem:[#allocation11 + $0xd24] ss:$16 sps:$4 sm:$0xff]   ;;  %v18099_v33 = vld [vmem:[#allocation11 + $0xbcc] ss:$16 sps:$4 sm:$0xff]  }
 0x91c   :  { %13697 = vmatpush1.bf16.msra.mxu0 %v18031_v36  ;;  %13594 = vmatprep.subr.bf16.mxu1 %v18036_v3  ;;  %v18097_v36 = vld [vmem:[#allocation11 + $0xbc8] ss:$16 sps:$4 sm:$0xff]   ;;  %v18102_v3 = vld [vmem:[#allocation11 + $0xbec] ss:$16 sps:$4 sm:$0xff]  }
 0x91f   :  { %13707 = vmatmul.mubr.bf16.vlgmr.msra.gmra.mrb[52].mxu0 %v12983_v5  ;;  %13595 = vmatpush1.bf16.msra.mxu1 %v18034_v43  ;;  %v18100_v43 = vld [vmem:[#allocation11 + $0xbe8] ss:$16 sps:$4 sm:$0xff]  }
 0x920   :  { %13596 = vmatprep.subr.bf16.mxu1 %v18039_v9  ;;  %v18105_v9 = vld [vmem:[#allocation11 + $0xc0c] ss:$16 sps:$4 sm:$0xff]  }
 0x923   :  { %13597 = vmatpush1.bf16.msra.mxu1 %v18037_v56  ;;  %v18116_v56 = vld [vmem:[#allocation14] sm:$0xff]  }
 0x924   :  { %13598 = vmatprep.subr.bf16.mxu1 %v18042_v57  ;;  %v18117_v57 = vld [vmem:[#allocation14 + $0x48] sm:$0xff]  }
 0x927   :  { %13599 = vmatpush1.bf16.msra.mxu1 %v18040_v23  ;;  %v18103_v23 = vld [vmem:[#allocation11 + $0xc08] ss:$16 sps:$4 sm:$0xff]  }
 0x928   :  { %13600 = vmatprep.subr.bf16.mxu1 %v18045_v49  ;;  %v18108_v49 = vld [vmem:[#allocation11 + $0xc2c] ss:$16 sps:$4 sm:$0xff]  }
 0x92b   :  { %13601 = vmatpush1.bf16.msra.mxu1 %v18043_v37  ;;  %v18118_v37 = vld [vmem:[#allocation14 + $0x8] sm:$0xff]  }
 0x92c   :  { %13602 = vmatprep.subr.bf16.mxu1 %v18048_v15  ;;  %v18119_v15 = vld [vmem:[#allocation14 + $0x50] sm:$0xff]  }
 0x92f   :  { %13603 = vmatpush1.bf16.msra.mxu1 %v18046_v54  ;;  %v18106_v54 = vld [vmem:[#allocation11 + $0xc28] ss:$16 sps:$4 sm:$0xff]  }
 0x930   :  { %13604 = vmatprep.subr.bf16.mxu1 %v18051_v11  ;;  %v18111_v11 = vld [vmem:[#allocation11 + $0xc4c] ss:$16 sps:$4 sm:$0xff]  }
 0x933   :  { %13605 = vmatpush1.bf16.msra.mxu1 %v18049_v52  ;;  %v18120_v52 = vld [vmem:[#allocation14 + $0x10] sm:$0xff]  }
 0x934   :  { %13606 = vmatprep.subr.bf16.mxu1 %v18054_v35 }
 0x937   :  { %13607 = vmatpush1.bf16.msra.mxu1 %v18052_v24  ;;  %v18121_v24 = vld [vmem:[#allocation14 + $0x58] sm:$0xff]  }
 0x938   :  { %13608 = vmatprep.subr.bf16.mxu1 %v18057_v19 }
 0x93b   :  { %13609 = vmatpush1.bf16.msra.mxu1 %v18055_v45 }
 0x93c   :  { %13610 = vmatprep.subr.bf16.mxu1 %v18060_v25 }
 0x93d   :  { %v11904_v16 = vpop.f32.mrb[28].mxu1 }
 0x93e   :  { %v19675_v12 = vadd.f32 %v11904_v16, %v19644_v20  ;;  %v11906_v29 = vpop.f32.mrb[29].mxu1  ;;  %v18070_v20 = vld [vmem:[#allocation11 + $0xaa8] ss:$16 sps:$4 sm:$0xff]  }
 0x93f   :  { %v19678_v58 = vadd.f32 %v11906_v29, %v19646_v31  ;;  %v11908_v47 = vpop.f32.mrb[30].mxu1  ;;  %13611 = vmatpush1.bf16.msra.mxu1 %v18058_v51  ;;  %v18075_v31 = vld [vmem:[#allocation11 + $0xacc] ss:$16 sps:$4 sm:$0xff]  }
 0x940   :  { %v11909_v59 = vpop.f32.mrb[31].mxu1  ;;  %13612 = vmatprep.subr.bf16.mxu1 %v18063_v32  ;;  %v18109_v32 = vld [vmem:[#allocation11 + $0xc48] ss:$16 sps:$4 sm:$0xff]   ;;  %v18114_v47 = vld [vmem:[#allocation11 + $0xc6c] ss:$16 sps:$4 sm:$0xff]  }
 0x943   :  { %13613 = vmatpush1.bf16.msra.mxu1 %v18061_v48  ;;  %v18122_v48 = vld [vmem:[#allocation14 + $0x18] sm:$0xff]  }
 0x944   :  { %13614 = vmatprep.subr.bf16.mxu1 %v18066_v38  ;;  %v18123_v38 = vld [vmem:[#allocation14 + $0x60] sm:$0xff]  }
 0x947   :  { %13615 = vmatpush1.bf16.msra.mxu1 %v18064_v63 }
 0x948   :  { %13633 = vmatprep.subr.bf16.mxu1 %v18069_v21 }
 0x94a   :  { %13625 = vmatmul.mubr.bf16.vlgmr.msra.gmra.mrb[44].mxu1 %v12983_v5  ;;  %v18115_v5 = vld [vmem:[#allocation14 + $0x40] sm:$0xff]  }
 0x94b   :  { %13634 = vmatpush1.bf16.msra.mxu1 %v18067_v6  ;;  %13665 = vmatprep.mubr.bf16.mxu1 %v19636_v4  ;;  %v18084_v4 = vld [vmem:[#allocation11 + $0xb2c] ss:$16 sps:$4 sm:$0xff]  }
 0x94c   :  { %13635 = vmatprep.subr.bf16.mxu1 %v18072_v1  ;;  %15655 = vmatprep.subr.bf16.mxu0 %v18115_v5  ;;  %v18126_v1 = vld [vmem:[#allocation14 + $0x28] sm:$0xff]   ;;  %v18144_v5 = vld [vmem:[#allocation14 + $0xb0] sm:$0xff]  }
 0x94d   :  { %15656 = vmatpush3.bf16.msra.mxu0 %v18116_v56  ;;  %v18145_v56 = vld [vmem:[#allocation14 + $0xf8] sm:$0xff]  }
 0x94e   :  { %15657 = vmatprep.subr.bf16.mxu0 %v18117_v57 }
 0x94f   :  { %13636 = vmatpush1.bf16.msra.mxu1 %v18070_v20  ;;  %v18127_v20 = vld [vmem:[#allocation14 + $0x70] sm:$0xff]  }
 0x950   :  { %13637 = vmatprep.subr.bf16.mxu1 %v18075_v31  ;;  %v18128_v31 = vld [vmem:[#allocation14 + $0x30] sm:$0xff]  }
 0x951   :  { %15658 = vmatpush3.bf16.msra.mxu0 %v18118_v37 }
 0x952   :  { %v19681_v30 = vpop.f32.mrb[40].mxu0  ;;  %15659 = vmatprep.subr.bf16.mxu0 %v18119_v15 }
 0x953   :  { %v19683_v60 = vpop.f32.mrb[41].mxu0  ;;  %13638 = vmatpush1.bf16.msra.mxu1 %v18073_v14  ;;  %v18129_v14 = vld [vmem:[#allocation14 + $0x78] sm:$0xff]  }
 0x954   :  { %v12726_v0 = vpop.f32.mrb[42].mxu0  ;;  %13639 = vmatprep.subr.bf16.mxu1 %v18078_v2  ;;  %v18131_v2 = vld [vmem:[#allocation14 + $0xc0] sm:$0xff]  }
 0x955   :  { %v12727_v34 = vpop.f32.mrb[43].mxu0  ;;  %15660 = vmatpush3.bf16.msra.mxu0 %v18120_v52  ;;  %v18133_v0 = vld [vmem:[#allocation14 + $0xc8] sm:$0xff]  }
 0x956   :  { %15661 = vmatprep.subr.bf16.mxu0 %v18121_v24  ;;  %v18130_v34 = vld [vmem:[#allocation14 + $0x38] sm:$0xff]  }
 0x957   :  { %13640 = vmatpush1.bf16.msra.mxu1 %v18076_v7  ;;  %v18132_v7 = vld [vmem:[#allocation14 + $0x80] sm:$0xff]  }
 0x958   :  { %13641 = vmatprep.subr.bf16.mxu1 %v18081_v46 }
 0x959   :  { %15662 = vmatpush3.bf16.msra.mxu0 %v18122_v48 }
 0x95a   :  { %15663 = vmatprep.subr.bf16.mxu0 %v18123_v38 }
 0x95b   :  { %13642 = vmatpush1.bf16.msra.mxu1 %v18079_v26  ;;  %v18134_v26 = vld [vmem:[#allocation14 + $0x88] sm:$0xff]  }
 0x95c   :  { %13643 = vmatprep.subr.bf16.mxu1 %v18084_v4 }
 0x95f   :  { %13644 = vmatpush1.bf16.msra.mxu1 %v18082_v50  ;;  %v18135_v50 = vld [vmem:[#allocation14 + $0xd0] sm:$0xff]  }
 0x960   :  { %13645 = vmatprep.subr.bf16.mxu1 %v18087_v27 }
 0x963   :  { %13646 = vmatpush1.bf16.msra.mxu1 %v18085_v28 }
 0x964   :  { %13647 = vmatprep.subr.bf16.mxu1 %v18090_v13 }
 0x967   :  { %13648 = vmatpush1.bf16.msra.mxu1 %v18088_v44 }
 0x968   :  { %13649 = vmatprep.subr.bf16.mxu1 %v18093_v18 }
 0x96b   :  { %13650 = vmatpush1.bf16.msra.mxu1 %v18091_v8  ;;  %v18136_v8 = vld [vmem:[#allocation14 + $0x90] sm:$0xff]  }
 0x96c   :  { %13651 = vmatprep.subr.bf16.mxu1 %v18096_v42  ;;  %v18137_v42 = vld [vmem:[#allocation14 + $0xd8] sm:$0xff]  }
 0x96f   :  { %13652 = vmatpush1.bf16.msra.mxu1 %v18094_v17  ;;  %v18138_v17 = vld [vmem:[#allocation14 + $0x98] sm:$0xff]  }
 0x970   :  { %13653 = vmatprep.subr.bf16.mxu1 %v18099_v33  ;;  %v18140_v33 = vld [vmem:[#allocation14 + $0xa0] sm:$0xff]  }
 0x973   :  { %13654 = vmatpush1.bf16.msra.mxu1 %v18097_v36 }
 0x974   :  { %13655 = vmatprep.subr.bf16.mxu1 %v18102_v3 }
 0x977   :  { %13656 = vmatpush1.bf16.msra.mxu1 %v18100_v43  ;;  %v18141_v43 = vld [vmem:[#allocation14 + $0xe8] sm:$0xff]  }
 0x978   :  { %13657 = vmatprep.subr.bf16.mxu1 %v18105_v9  ;;  %v18142_v9 = vld [vmem:[#allocation14 + $0xa8] sm:$0xff]  }
 0x97b   :  { %13658 = vmatpush1.bf16.msra.mxu1 %v18103_v23  ;;  %v18146_v23 = vld [vmem:[#allocation14 + $0xb8] sm:$0xff]  }
 0x97c   :  { %13659 = vmatprep.subr.bf16.mxu1 %v18108_v49 }
 0x97d   :  { %v11945_v35 = vpop.f32.mrb[32].mxu1 }
 0x97e   :  { %v11946_v19 = vadd.f32 %v11945_v35, %v19660_v62  ;;  %v11947_v45 = vpop.f32.mrb[33].mxu1 }
 0x97f   :  { %v11948_v25 = vadd.f32 %v11947_v45, %v19663_v10  ;;  %v11949_v51 = vpop.f32.mrb[34].mxu1  ;;  %13660 = vmatpush1.bf16.msra.mxu1 %v18106_v54  ;;  %v18112_v10 = vld [vmem:[#allocation11 + $0xc68] ss:$16 sps:$4 sm:$0xff]  }
 0x980   :  { %v19688_v16 = vadd.f32 %v19665_v41, %v11946_v19  ;;  %v11950_v29 = vpop.f32.mrb[35].mxu1  ;;  %13661 = vmatprep.subr.bf16.mxu1 %v18111_v11  ;;  %v18124_v41 = vld [vmem:[#allocation14 + $0x20] sm:$0xff]   ;;  %v13719_v51 = vld [vmem:[#allocation12] sm:$0xf] }
 0x981   :  { %v19691_v59 = vadd.f32 %v19667_v61, %v11948_v25  ;;  %15664 = vmatpush3.bf16.msra.mxu0 %v18124_v41  ;;  %v18125_v61 = vld [vmem:[#allocation14 + $0x68] sm:$0xff]  }
 0x982   :  { %v19693_v62 = vpop.f32.mrb[44].mxu0  ;;  %15665 = vmatprep.subr.bf16.mxu0 %v18125_v61 }
 0x983   :  { %v19695_v63 = vpop.f32.mrb[45].mxu0  ;;  %13662 = vmatpush1.bf16.msra.mxu1 %v18109_v32 }
 0x984   :  { %v12849_v21 = vpop.f32.mrb[46].mxu0  ;;  %13663 = vmatprep.subr.bf16.mxu1 %v18114_v47  ;;  %v13724_v47 = vrot.slane %v13719_v51, %v19770_v40  ;;  %v13732_v40 = vrot.slane %v13719_v51, %v19771_v39 }
 0x985   :  { %v12850_v6 = vpop.f32.mrb[47].mxu0  ;;  %15666 = vmatpush3.bf16.msra.mxu0 %v18126_v1 }
 0x986   :  { %15667 = vmatprep.subr.bf16.mxu0 %v18127_v20 }
 0x987   :  { %13664 = vmatpush1.bf16.msra.mxu1 %v18112_v10 }
 0x988   :  { %15677 = vmatprep.subr.bf16.mxu1 %v18131_v2 }
 0x989   :  { %15668 = vmatpush3.bf16.msra.mxu0 %v18128_v31 }
 0x98a   :  { %13666 = vmatmul.mubr.bf16.vlgmr.msra.gmra.mrb[48].mxu1 %v19650_v53  ;;  %15669 = vmatprep.subr.bf16.mxu0 %v18129_v14 }
 0x98b   :  { %15678 = vmatpush3.bf16.msra.mxu1 %v18132_v7 }
 0x98c   :  { %15679 = vmatprep.subr.bf16.mxu1 %v18133_v0 }
 0x98d   :  { %15670 = vmatpush3.bf16.msra.mxu0 %v18130_v34 }
 0x98f   :  { %15680 = vmatpush3.bf16.msra.mxu1 %v18134_v26 }
 0x990   :  { %15681 = vmatprep.subr.bf16.mxu1 %v18135_v50 }
 0x993   :  { %15682 = vmatpush3.bf16.msra.mxu1 %v18136_v8 }
 0x994   :  { %15683 = vmatprep.subr.bf16.mxu1 %v18137_v42 }
 0x997   :  { %15684 = vmatpush3.bf16.msra.mxu1 %v18138_v17  ;;  %v15622_v17 = vld [vmem:[#allocation15] ss:$0 sm:$0xff] }
 0x9ad   :  { %v12763_v46 = vpop.f32.mrb[36].mxu1 }
 0x9ae   :  { %v12764_v4 = vadd.f32 %v12763_v46, %v19681_v30  ;;  %v12765_v53 = vpop.f32.mrb[37].mxu1  ;;  %v18139_v30 = vld [vmem:[#allocation14 + $0xe0] sm:$0xff]  }
 0x9af   :  { %v12766_v27 = vadd.f32 %v12765_v53, %v19683_v60  ;;  %v12767_v28 = vpop.f32.mrb[38].mxu1  ;;  %15685 = vmatprep.subr.bf16.mxu1 %v18139_v30 }
 0x9b0   :  { %v12852_v13 = vadd.f32 %v12764_v4, %v19675_v12  ;;  %v12768_v44 = vpop.f32.mrb[39].mxu1  ;;  %15686 = vmatpush3.bf16.msra.mxu1 %v18140_v33 }
 0x9b1   :  { %v12853_v18 = vadd.f32 %v12766_v27, %v19678_v58  ;;  %v18143_v58 = vld [vmem:[#allocation14 + $0xf0] sm:$0xff]   ;;  %15687 = vmatprep.subr.bf16.mxu1 %v18141_v43 }
 0x9b4   :  { %15688 = vmatpush3.bf16.msra.mxu1 %v18142_v9 }
 0x9b5   :  { %15689 = vmatprep.subr.bf16.mxu1 %v18143_v58 }
 0x9b8   :  { %15690 = vmatpush3.bf16.msra.mxu1 %v18144_v5 }
 0x9b9   :  { %15691 = vmatprep.subr.bf16.mxu1 %v18145_v56 }
 0x9bc   :  { %15692 = vmatpush3.bf16.msra.mxu1 %v18146_v23 }
 0x9c2   :  { %v13585_v60 = vpop.f32.mrb[48].mxu0 }
 0x9c3   :  { %v13587_v36 = vpop.f32.mrb[49].mxu0 }
 0x9c4   :  { %v13589_v3 = vpop.f32.mrb[50].mxu0 }
 0x9c5   :  { %v13590_v12 = vpop.f32.mrb[51].mxu0 }
 0x9ed   :  { %v12804_v57 = vpop.f32.mrb[40].mxu1 }
 0x9ee   :  { %v12846_v49 = vadd.f32 %v19693_v62, %v12804_v57  ;;  %v12806_v37 = vpop.f32.mrb[41].mxu1  ;;  %v13728_v62 = vrot.slane %v13719_v51, %v19769_v55  ;;  %v13736_v55 = vrot.slane %v13719_v51, %v19012_v22 }
 0x9ef   :  { %v12848_v15 = vadd.f32 %v19695_v63, %v12806_v37  ;;  %v12808_v54 = vpop.f32.mrb[42].mxu1 }
 0x9f0   :  { %v12854_v11 = vadd.f32 %v12846_v49, %v19688_v16  ;;  %v12809_v52 = vpop.f32.mrb[43].mxu1 }
 0x9f1   :  { %v12855_v35 = vadd.f32 %v12848_v15, %v19691_v59 }
 0x9f2   :  { %v13708_v24 = vpop.f32.mrb[52].mxu0 }
 0x9f3   :  { %v13710_v19 = vpop.f32.mrb[53].mxu0 }
 0x9f4   :  { %v13712_v45 = vpop.f32.mrb[54].mxu0 }
 0x9f5   :  { %v13713_v25 = vpop.f32.mrb[55].mxu0 }
 0xa1d   :  { %v13626_v32 = vpop.f32.mrb[44].mxu1 }
 0xa1e   :  { %v13627_v29 = vadd.f32 %v13626_v32, %v13585_v60  ;;  %v13628_v48 = vpop.f32.mrb[45].mxu1 }
 0xa1f   :  { %v13629_v38 = vadd.f32 %v13628_v48, %v13587_v36  ;;  %v13630_v63 = vpop.f32.mrb[46].mxu1 }
 0xa20   :  { %v13715_v10 = vadd.f32 %v13627_v29, %v12852_v13  ;;  %v13631_v16 = vpop.f32.mrb[47].mxu1 }
 0xa21   :  { %v13716_v21 = vadd.f32 %v13629_v38, %v12853_v18 }
 0xa22   :  { %v13741_v41 = vadd.f32 %v13724_v47, %v13715_v10 }
 0xa23   :  { %v13742_v59 = vadd.f32 %v13728_v62, %v13716_v21 }
 0xa24   :  { %v13745_v6 = vmax.f32 %v13741_v41, 0.0 }
 0xa25   :  { %v13746_v61 = vmax.f32 %v13742_v59, 0.0 }
 0xa26   :  { %v13749_v20 = vpack.c.bf16 %v13745_v6, %v13745_v6 }
 0xa27   :  { %v13750_v1 = vpack.c.bf16 %v13746_v61, %v13746_v61 }
 0xa29   :  { %14048 = vmatprep.mubr.bf16.mxu0 %v13750_v1 }
 0xa2a   :  { %14049 = vmatmul.mubr.bf16.vlgmr.msra.gmra.mrb[56].mxu0 %v13749_v20 }
 0xa5d   :  { %v13667_v31 = vpop.f32.mrb[48].mxu1 }
 0xa5e   :  { %v13709_v14 = vadd.f32 %v13708_v24, %v13667_v31  ;;  %v13669_v2 = vpop.f32.mrb[49].mxu1 }
 0xa5f   :  { %v13711_v7 = vadd.f32 %v13710_v19, %v13669_v2  ;;  %v13671_v0 = vpop.f32.mrb[50].mxu1 }
 0xa60   :  { %v13717_v46 = vadd.f32 %v13709_v14, %v12854_v11  ;;  %v13672_v34 = vpop.f32.mrb[51].mxu1 }
 0xa61   :  { %v13718_v26 = vadd.f32 %v13711_v7, %v12855_v35 }
 0xa62   :  { %v13743_v4 = vadd.f32 %v13732_v40, %v13717_v46 }
 0xa63   :  { %v13744_v53 = vadd.f32 %v13736_v55, %v13718_v26 }
 0xa64   :  { %v13747_v50 = vmax.f32 %v13743_v4, 0.0 }
 0xa65   :  { %v13748_v27 = vmax.f32 %v13744_v53, 0.0 }
 0xa66   :  { %v13751_v13 = vpack.c.bf16 %v13747_v50, %v13747_v50 }
 0xa67   :  { %v13752_v28 = vpack.c.bf16 %v13748_v27, %v13748_v27 }
 0xa69   :  { %14088 = vmatprep.mubr.bf16.mxu1 %v13752_v28 }
 0xa6a   :  { %14089 = vmatmul.mubr.bf16.vlgmr.msra.gmra.mrb[52].mxu1 %v13751_v13 }
 0xafd   :  { %v15671_v44 = vpop.f32.mrb[56].mxu0 }
 0xafe   :  { %v15672_v18 = vpop.f32.mrb[57].mxu0 }
 0xaff   :  { %v15673_v8 = vadd.f32 %v15672_v18, %v15671_v44  ;;  %v15674_v39 = vpop.f32.mrb[58].mxu0 }
 0xb00   :  { %v15675_v42 = vpop.f32.mrb[59].mxu0 }
 0xb01   :  { %v14051_v33 = vadd.f32 %v15673_v8, %v15622_v17 }
 0xb3d   :  { %v15693_v30 = vpop.f32.mrb[52].mxu1 }
 0xb3e   :  { %v15694_v22 = vpop.f32.mrb[53].mxu1 }
 0xb3f   :  { %v15695_v60 = vadd.f32 %v15694_v22, %v15693_v30  ;;  %v15696_v36 = vpop.f32.mrb[54].mxu1 }
 0xb40   :  { %v15697_v3 = vpop.f32.mrb[55].mxu1 }
 0xb41   :  { %v14091_v12 = vadd.f32 %v15695_v60, %v14051_v33 }
 0xb43   :  { %14096 = vst [vmem:[#allocation17] sm:$0x3] %v14091_v12 }
 0xb44   :  { %18334 = shalt.err (!%p18331_p12)
}
 0xb45   :  { %s18335_s30 = scalar_lea.hbm %s19731_s9, 32 }
 0xb46   :  { %p18336_p13 = scmp.ne.s32.totalorder %s19731_s9, %s18335_s30  ;;  %p18339_p0 = scmp.lt.u32.totalorder %s18335_s30, %s19731_s9 }
 0xb48   :  { %p18341_p1 = pnand %p18339_p0, %p18336_p13 }
 0xb4a   :  { %18344 = shalt.err (!%p18341_p1)
}
 0xb4b   :  { %14106 = dma.vmem_to_hbm [thread:$0]  %s14104_s25, 32, %s19731_s9, [#allocation5]  }
 0xb4c   :  { %18355 = dma.done.wait [#allocation5], 32  }
 0xb4d   :  { %18356 = vsyncadd [#allocation5], 4294967264 }
 0xb4e   :  { %14110 = vsyncpa [#allocation4], 1 }
 0xb4f   :  { %14111 = vsyncpa [#allocation7], 1 }
 0xb50   :  { %14112 = vsyncpa [#allocation10], 1 }
 0xb51   :  { %14113 = vsyncpa [#allocation13], 1 }
 0xb52   :  { %14114 = vsyncpa [#allocation16], 1 }
 0xb53   :  { %14115 = vsyncpa [#allocation5], 1 }

</bundles_post_ra>
